<compile_context>
chip_gen: v7x
topology: tpu7x:2x2x1
jax: 0.10.0
libtpu: 0.0.40
codegen_flags: <defaults>
</compile_context>

<pallas_src>
import numpy as np
import jax
import jax.numpy as jnp
from jax.experimental import pallas as pl
from jax.experimental.pallas import tpu as pltpu


# ---------------------------------------------------------------------------
# One-time parameter repacking (banded conv weights, pool-selection matrices,
# transposed / permuted FC weights).
# ---------------------------------------------------------------------------

def _banded_conv_weight(w_oihw, wi):
    """OIHW 3x3 weights -> banded matmul weights.

    Returns (6, wi*cin, wp*cout) bf16 with index = parity*3 + dh such that,
    for an input row-block X of shape (Ho, wi*cin) (lanes = (w, ci) flattened),

        sum_dh  X[dh:dh+Ho, :] @ band[parity*3 + dh]

    equals the valid 3x3 conv restricted to output columns w' = 2*wp + parity,
    flattened on lanes as (wp, cout).
    """
    w = np.asarray(w_oihw, np.float32)
    cout, cin = int(w.shape[0]), int(w.shape[1])
    wo = wi - 2
    wp = wo // 2
    band = np.zeros((2, 3, wi * cin, wp * cout), np.float32)
    for p in range(2):
        for dh in range(3):
            for dw in range(3):
                blk = w[:, :, dh, dw].T                      # (cin, cout)
                for j in range(wp):
                    w_in = 2 * j + p + dw                    # input column used
                    band[p, dh,
                         w_in * cin:(w_in + 1) * cin,
                         j * cout:(j + 1) * cout] = blk
    return jnp.asarray(band.reshape(6, wi * cin, wp * cout), jnp.bfloat16)


def _pool_row_select(ho, hp):
    """(2, hp, ho) 0/1 matrices selecting rows 2r (index 0) and 2r+1 (index 1)."""
    s = np.zeros((2, hp, ho), np.float32)
    r = np.arange(hp)
    s[0, r, 2 * r] = 1.0
    s[1, r, 2 * r + 1] = 1.0
    return jnp.asarray(s, jnp.bfloat16)


def prepare_params(params, input_size=(61, 61)):
    """Repack PyTorch-layout params once into kernel-friendly layouts."""
    hi, wi = int(input_size[0]), int(input_size[1])
    cin = int(np.asarray(params["w_conv1"]).shape[1])
    out = {}
    h, w, c = hi, wi, cin
    for l, name in ((1, "conv1"), (2, "conv2"), (3, "conv3")):
        wt = np.asarray(params[f"w_{name}"], np.float32)     # (cout, cin, 3, 3)
        bt = np.asarray(params[f"b_{name}"], np.float32)
        cout = int(wt.shape[0])
        ho, wo = h - 2, w - 2
        hp, wp = ho // 2, wo // 2
        out[f"bw{l}"] = _banded_conv_weight(wt, w)                       # (6, w*c, wp*cout) bf16
        out[f"cb{l}"] = jnp.asarray(np.tile(bt, wp)[None, :], jnp.float32)  # (1, wp*cout) f32
        out[f"sel{l}"] = _pool_row_select(ho, hp)                        # (2, hp, ho) bf16
        h, w, c = hp, wp, cout

    # fc1: (out, in) with PyTorch NCHW-flatten columns -> (in, out) with
    # columns permuted to the kernel's (h, w, c) flatten order.
    d1 = int(np.asarray(params["w_fc1"]).shape[0])
    wf1 = np.asarray(params["w_fc1"], np.float32).reshape(d1, c, h, w)
    wf1 = wf1.transpose(0, 2, 3, 1).reshape(d1, -1)
    out["fw1"] = jnp.asarray(wf1.T, jnp.bfloat16)
    out["fb1"] = jnp.asarray(np.asarray(params["b_fc1"], np.float32)[None, :])
    out["fw2"] = jnp.asarray(np.asarray(params["w_fc2"], np.float32).T, jnp.bfloat16)
    out["fb2"] = jnp.asarray(np.asarray(params["b_fc2"], np.float32)[None, :])
    out["fw3"] = jnp.asarray(np.asarray(params["w_fc3"], np.float32).T, jnp.bfloat16)
    out["fb3"] = jnp.asarray(np.asarray(params["b_fc3"], np.float32)[None, :])
    return out


# ---------------------------------------------------------------------------
# Fused whole-network kernel (conv1/2/3 + pool + MLP), one batch block / step
# ---------------------------------------------------------------------------

def _make_fused_kernel(conv_dims, Bt):
    (H1, W1, C1, O1), (H2, W2, C2, O2), (H3, W3, C3, O3) = conv_dims
    Ho1 = H1 - 2
    Ho2 = H2 - 2
    Ho3 = H3 - 2
    Hp3 = Ho3 // 2
    N3 = ((W3 - 2) // 2) * O3

    def conv_relu_pool(get_rows, bw_ref, cb_ref, sel_ref):
        """3x3 valid conv + bias + ReLU + 2x2 max-pool, banded-matmul form.

        get_rows(dh): (Ho, Wi*Cin) bf16 input row-block shifted down by dh.
        Returns the pooled activation, (Hp, Wp*Cout) f32.
        """
        bias = cb_ref[...]                                    # (1, Wp*Cout) f32
        col = None
        for p in range(2):                                    # even / odd output cols
            acc = jnp.dot(get_rows(0), bw_ref[p * 3 + 0],
                          preferred_element_type=jnp.float32)
            acc = acc + jnp.dot(get_rows(1), bw_ref[p * 3 + 1],
                                preferred_element_type=jnp.float32)
            acc = acc + jnp.dot(get_rows(2), bw_ref[p * 3 + 2],
                                preferred_element_type=jnp.float32)
            yp = jnp.maximum(acc + bias, 0.0)                 # bias + ReLU (f32)
            col = yp if col is None else jnp.maximum(col, yp)  # width-direction pool
        col = col.astype(jnp.bfloat16)                        # (Ho, Wp*Cout)
        # Height-direction pool: 0/1 row-selection matmuls (rows 2r and 2r+1).
        r_even = jnp.dot(sel_ref[0], col, preferred_element_type=jnp.float32)
        r_odd = jnp.dot(sel_ref[1], col, preferred_element_type=jnp.float32)
        return jnp.maximum(r_even, r_odd)                     # (Hp, Wp*Cout) f32

    def kernel(x_ref,
               bw1_ref, cb1_ref, sel1_ref,
               bw2_ref, cb2_ref, sel2_ref,
               bw3_ref, cb3_ref, sel3_ref,
               fw1_ref, fb1_ref, fw2_ref, fb2_ref, fw3_ref, fb3_ref,
               o_ref, feats_ref):
        # ---- conv stack, fully unrolled over the images of this batch block ----
        for b in range(Bt):
            a1 = conv_relu_pool(lambda dh: x_ref[b, pl.ds(dh, Ho1), :],
                                bw1_ref, cb1_ref, sel1_ref)
            a1 = a1.astype(jnp.bfloat16)                      # (H2, W2*C2)
            a2 = conv_relu_pool(lambda dh: a1[dh:dh + Ho2, :],
                                bw2_ref, cb2_ref, sel2_ref)
            a2 = a2.astype(jnp.bfloat16)                      # (H3, W3*C3)
            a3 = conv_relu_pool(lambda dh: a2[dh:dh + Ho3, :],
                                bw3_ref, cb3_ref, sel3_ref)   # (Hp3, N3) f32
            # Flatten the (h, w, c)-ordered activation into this image's row.
            for hh in range(Hp3):
                feats_ref[pl.ds(b, 1), pl.ds(hh * N3, N3)] = a3[hh:hh + 1, :]

        # ---- fused MLP over the whole batch block (weights resident in VMEM) ----
        f = feats_ref[...].astype(jnp.bfloat16)               # (Bt, feat_dim)
        h = jnp.dot(f, fw1_ref[...], preferred_element_type=jnp.float32) + fb1_ref[...]
        h = jnp.maximum(h, 0.0).astype(jnp.bfloat16)
        h = jnp.dot(h, fw2_ref[...], preferred_element_type=jnp.float32) + fb2_ref[...]
        h = jnp.maximum(h, 0.0).astype(jnp.bfloat16)
        out = jnp.dot(h, fw3_ref[...], preferred_element_type=jnp.float32) + fb3_ref[...]
        o_ref[...] = out.astype(o_ref.dtype)

    return kernel


def simple_conv_net_forward(prepped, x_nchw):
    """Forward pass of simple_conv_net.  x_nchw: (B, Cin, H, W) float32."""
    B, Cin, Hi, Wi = (int(d) for d in x_nchw.shape)

    # Static per-layer dims, derived from the prepared weight shapes.
    conv_dims = []
    h, w, c = Hi, Wi, Cin
    for l in (1, 2, 3):
        hp, wp = (h - 2) // 2, (w - 2) // 2
        cout = int(prepped[f"cb{l}"].shape[1]) // wp
        conv_dims.append((h, w, c, cout))
        h, w, c = hp, wp, cout
    feat_dim = h * w * c
    d_out = int(prepped["fw3"].shape[1])

    # NCHW -> NHWC, flatten (w, c) onto lanes, cast the matmul operand to
    # bf16.  One small fused XLA op (~45 KB/image) feeding the kernel.
    x2d = (jnp.transpose(x_nchw, (0, 2, 3, 1))
           .reshape(B, Hi, Wi * Cin)
           .astype(jnp.bfloat16))

    # Batch block per grid step: 8 images when possible (keeps v7x VMEM small
    # and lets the "parallel" grid shard across its 2 TCs), else whole batch.
    Bt = 8 if (B % 8 == 0) else B
    grid = (B // Bt,)

    def resident(arr):
        nd = arr.ndim
        return pl.BlockSpec(arr.shape, lambda i: (0,) * nd)

    weight_names = ("bw1", "cb1", "sel1", "bw2", "cb2", "sel2",
                    "bw3", "cb3", "sel3",
                    "fw1", "fb1", "fw2", "fb2", "fw3", "fb3")
    in_specs = [pl.BlockSpec((Bt, Hi, Wi * Cin), lambda i: (i, 0, 0))]
    in_specs += [resident(prepped[n]) for n in weight_names]

    return pl.pallas_call(
        _make_fused_kernel(conv_dims, Bt),
        out_shape=jax.ShapeDtypeStruct((B, d_out), jnp.float32),
        grid=grid,
        in_specs=in_specs,
        out_specs=pl.BlockSpec((Bt, d_out), lambda i: (i, 0)),
        scratch_shapes=[pltpu.VMEM((Bt, feat_dim), jnp.float32)],
        compiler_params=pltpu.CompilerParams(
            dimension_semantics=("parallel",)),
    )(x2d, *[prepped[n] for n in weight_names])


# ---------------------------------------------------------------------------
# Deterministic parameters (PyTorch nn.Conv2d / nn.Linear style init)
# ---------------------------------------------------------------------------

def init_params(key, d_out=1):
    def uinit(k, shape, fan_in):
        bound = 1.0 / float(np.sqrt(fan_in))
        return jax.random.uniform(k, shape, jnp.float32, -bound, bound)

    keys = jax.random.split(key, 12)
    p = {}
    p["w_conv1"] = uinit(keys[0], (16, 3, 3, 3), 3 * 9)
    p["b_conv1"] = uinit(keys[1], (16,), 3 * 9)
    p["w_conv2"] = uinit(keys[2], (8, 16, 3, 3), 16 * 9)
    p["b_conv2"] = uinit(keys[3], (8,), 16 * 9)
    p["w_conv3"] = uinit(keys[4], (4, 8, 3, 3), 8 * 9)
    p["b_conv3"] = uinit(keys[5], (4,), 8 * 9)
    # input_size=(61,61): 61->59->29 ->27->13 ->11->5  => 4*5*5 = 100 features
    p["w_fc1"] = uinit(keys[6], (128, 100), 100)
    p["b_fc1"] = uinit(keys[7], (128,), 100)
    p["w_fc2"] = uinit(keys[8], (32, 128), 128)
    p["b_fc2"] = uinit(keys[9], (32,), 128)
    p["w_fc3"] = uinit(keys[10], (d_out, 32), 32)
    p["b_fc3"] = uinit(keys[11], (d_out,), 32)
    return p


# ---------------------------------------------------------------------------
# Pure-JAX reference (PyTorch-ordered).  With operand_dtype=bfloat16 it follows
# the same numerics contract as the Pallas path (bf16 operands, f32 accum).
# ---------------------------------------------------------------------------

def reference_forward(params, x_nchw, operand_dtype=jnp.float32):
    def cast(a):
        return a.astype(operand_dtype).astype(jnp.float32)

    b = x_nchw.shape[0]
    x = cast(jnp.transpose(x_nchw, (0, 2, 3, 1)))

    def conv_block(x, w, bias):
        cout, cin = w.shape[0], w.shape[1]
        bb, h, wd, _ = x.shape
        ho, wo = h - 2, wd - 2
        cols = [x[:, dh:dh + ho, dw:dw + wo, :]
                for dh in range(3) for dw in range(3)]
        patches = jnp.concatenate(cols, axis=-1).reshape(bb * ho * wo, 9 * cin)
        wmat = cast(jnp.transpose(w, (2, 3, 1, 0)).reshape(9 * cin, cout))
        y = jnp.maximum(patches @ wmat + bias[None, :], 0.0)
        y = y.reshape(bb, ho, wo, cout)
        hp, wp = ho // 2, wo // 2
        y = y[:, :2 * hp, :2 * wp, :].reshape(bb, hp, 2, wp, 2, cout)
        return cast(y.max(axis=(2, 4)))

    x = conv_block(x, params["w_conv1"], params["b_conv1"])
    x = conv_block(x, params["w_conv2"], params["b_conv2"])
    x = conv_block(x, params["w_conv3"], params["b_conv3"])
    x = jnp.transpose(x, (0, 3, 1, 2)).reshape(b, -1)      # PyTorch view(B, -1)

    h = jnp.maximum(x @ cast(params["w_fc1"].T) + params["b_fc1"], 0.0)
    h = cast(h)
    h = jnp.maximum(h @ cast(params["w_fc2"].T) + params["b_fc2"], 0.0)
    h = cast(h)
    return h @ cast(params["w_fc3"].T) + params["b_fc3"]


if __name__ == "__main__":
    key = jax.random.PRNGKey(0)
    pkey, xkey = jax.random.split(key)
    params = init_params(pkey, d_out=1)
    x = jax.random.normal(xkey, (2, 3, 61, 61), dtype=jnp.float32)

    prepped = prepare_params(params, input_size=(61, 61))
    fwd = jax.jit(simple_conv_net_forward)
    out = jax.block_until_ready(fwd(prepped, x))
    assert out.shape == (2, 1), out.shape

    out_np = np.asarray(out, np.float32)
    # Tight check vs. a reference with the same bf16-operand / f32-accumulate
    # numerics contract, plus a loose sanity bound vs. full-f32 PyTorch math.
    ref_bf16 = np.asarray(reference_forward(params, x, jnp.bfloat16), np.float32)
    ref_f32 = np.asarray(reference_forward(params, x, jnp.float32), np.float32)
    assert np.allclose(out_np, ref_bf16, atol=1e-2, rtol=1e-2), (out_np, ref_bf16)
    assert np.allclose(out_np, ref_f32, atol=7e-2, rtol=7e-2), (out_np, ref_f32)
    print("KERNEL_OK")
</pallas_src>

<mosaic_0001>
module attributes {stable_mosaic.version = 11 : i64} {
  func.func @kernel(%arg0: i32, %arg1: memref<2x61x183xbf16, #tpu.memory_space<vmem>>, %arg2: memref<6x183x464xbf16, #tpu.memory_space<vmem>>, %arg3: memref<1x464xf32, #tpu.memory_space<vmem>>, %arg4: memref<2x29x59xbf16, #tpu.memory_space<vmem>>, %arg5: memref<6x464x104xbf16, #tpu.memory_space<vmem>>, %arg6: memref<1x104xf32, #tpu.memory_space<vmem>>, %arg7: memref<2x13x27xbf16, #tpu.memory_space<vmem>>, %arg8: memref<6x104x20xbf16, #tpu.memory_space<vmem>>, %arg9: memref<1x20xf32, #tpu.memory_space<vmem>>, %arg10: memref<2x5x11xbf16, #tpu.memory_space<vmem>>, %arg11: memref<100x128xbf16, #tpu.memory_space<vmem>>, %arg12: memref<1x128xf32, #tpu.memory_space<vmem>>, %arg13: memref<128x32xbf16, #tpu.memory_space<vmem>>, %arg14: memref<1x32xf32, #tpu.memory_space<vmem>>, %arg15: memref<32x1xbf16, #tpu.memory_space<vmem>>, %arg16: memref<1x1xf32, #tpu.memory_space<vmem>>, %arg17: memref<2x1xf32, #tpu.memory_space<vmem>>, %arg18: memref<2x100xf32, #tpu.memory_space<vmem>>) attributes {dimension_semantics = [#tpu.dimension_semantics<parallel>], iteration_bounds = array<i64: 1>, scalar_prefetch = 0 : i64, scratch_operands = 1 : i64, tpu.core_type = #tpu.core_type<tc>, window_params = [{transform_indices = @transform_0, window_bounds = array<i64: 2, 61, 183>}, {pipeline_mode = #tpu.pipeline_mode<synchronous>, transform_indices = @transform_1, window_bounds = array<i64: 6, 183, 464>}, {pipeline_mode = #tpu.pipeline_mode<synchronous>, transform_indices = @transform_2, window_bounds = array<i64: 1, 464>}, {pipeline_mode = #tpu.pipeline_mode<synchronous>, transform_indices = @transform_3, window_bounds = array<i64: 2, 29, 59>}, {pipeline_mode = #tpu.pipeline_mode<synchronous>, transform_indices = @transform_4, window_bounds = array<i64: 6, 464, 104>}, {pipeline_mode = #tpu.pipeline_mode<synchronous>, transform_indices = @transform_5, window_bounds = array<i64: 1, 104>}, {pipeline_mode = #tpu.pipeline_mode<synchronous>, transform_indices = @transform_6, window_bounds = array<i64: 2, 13, 27>}, {pipeline_mode = #tpu.pipeline_mode<synchronous>, transform_indices = @transform_7, window_bounds = array<i64: 6, 104, 20>}, {pipeline_mode = #tpu.pipeline_mode<synchronous>, transform_indices = @transform_8, window_bounds = array<i64: 1, 20>}, {pipeline_mode = #tpu.pipeline_mode<synchronous>, transform_indices = @transform_9, window_bounds = array<i64: 2, 5, 11>}, {pipeline_mode = #tpu.pipeline_mode<synchronous>, transform_indices = @transform_10, window_bounds = array<i64: 100, 128>}, {pipeline_mode = #tpu.pipeline_mode<synchronous>, transform_indices = @transform_11, window_bounds = array<i64: 1, 128>}, {pipeline_mode = #tpu.pipeline_mode<synchronous>, transform_indices = @transform_12, window_bounds = array<i64: 128, 32>}, {pipeline_mode = #tpu.pipeline_mode<synchronous>, transform_indices = @transform_13, window_bounds = array<i64: 1, 32>}, {pipeline_mode = #tpu.pipeline_mode<synchronous>, transform_indices = @transform_14, window_bounds = array<i64: 32, 1>}, {pipeline_mode = #tpu.pipeline_mode<synchronous>, transform_indices = @transform_15, window_bounds = array<i64: 1, 1>}, {transform_indices = @transform_16, window_bounds = array<i64: 2, 1>}]} {
    %c0 = arith.constant 0 : index
    %c0_0 = arith.constant 0 : index
    %0 = vector.load %arg3[%c0, %c0_0] : memref<1x464xf32, #tpu.memory_space<vmem>>, vector<1x464xf32>
    %c0_1 = arith.constant 0 : index
    %c0_2 = arith.constant 0 : index
    %c0_3 = arith.constant 0 : index
    %1 = vector.load %arg1[%c0_1, %c0_2, %c0_3] : memref<2x61x183xbf16, #tpu.memory_space<vmem>>, vector<1x59x183xbf16>
    %2 = vector.shape_cast %1 : vector<1x59x183xbf16> to vector<59x183xbf16>
    %c0_4 = arith.constant 0 : index
    %c0_5 = arith.constant 0 : index
    %c0_6 = arith.constant 0 : index
    %3 = vector.load %arg2[%c0_4, %c0_5, %c0_6] : memref<6x183x464xbf16, #tpu.memory_space<vmem>>, vector<1x183x464xbf16>
    %4 = vector.shape_cast %3 : vector<1x183x464xbf16> to vector<183x464xbf16>
    %cst = arith.constant dense<0.000000e+00> : vector<59x464xf32>
    %5 = tpu.matmul %2, %4, %cst {dimension_numbers = #tpu.dot_dimension_numbers<[1], [0], [0], [1], [0, 0, 1, 1], [], []>} : vector<59x183xbf16>, vector<183x464xbf16>, vector<59x464xf32> -> vector<59x464xf32>
    %c0_7 = arith.constant 0 : index
    %c1 = arith.constant 1 : index
    %c0_8 = arith.constant 0 : index
    %6 = vector.load %arg1[%c0_7, %c1, %c0_8] : memref<2x61x183xbf16, #tpu.memory_space<vmem>>, vector<1x59x183xbf16>
    %7 = vector.shape_cast %6 : vector<1x59x183xbf16> to vector<59x183xbf16>
    %c1_9 = arith.constant 1 : index
    %c0_10 = arith.constant 0 : index
    %c0_11 = arith.constant 0 : index
    %8 = vector.load %arg2[%c1_9, %c0_10, %c0_11] : memref<6x183x464xbf16, #tpu.memory_space<vmem>>, vector<1x183x464xbf16>
    %9 = vector.shape_cast %8 : vector<1x183x464xbf16> to vector<183x464xbf16>
    %cst_12 = arith.constant dense<0.000000e+00> : vector<59x464xf32>
    %10 = tpu.matmul %7, %9, %cst_12 {dimension_numbers = #tpu.dot_dimension_numbers<[1], [0], [0], [1], [0, 0, 1, 1], [], []>} : vector<59x183xbf16>, vector<183x464xbf16>, vector<59x464xf32> -> vector<59x464xf32>
    %11 = arith.addf %5, %10 : vector<59x464xf32>
    %c0_13 = arith.constant 0 : index
    %c2 = arith.constant 2 : index
    %c0_14 = arith.constant 0 : index
    %12 = vector.load %arg1[%c0_13, %c2, %c0_14] : memref<2x61x183xbf16, #tpu.memory_space<vmem>>, vector<1x59x183xbf16>
    %13 = vector.shape_cast %12 : vector<1x59x183xbf16> to vector<59x183xbf16>
    %c2_15 = arith.constant 2 : index
    %c0_16 = arith.constant 0 : index
    %c0_17 = arith.constant 0 : index
    %14 = vector.load %arg2[%c2_15, %c0_16, %c0_17] : memref<6x183x464xbf16, #tpu.memory_space<vmem>>, vector<1x183x464xbf16>
    %15 = vector.shape_cast %14 : vector<1x183x464xbf16> to vector<183x464xbf16>
    %cst_18 = arith.constant dense<0.000000e+00> : vector<59x464xf32>
    %16 = tpu.matmul %13, %15, %cst_18 {dimension_numbers = #tpu.dot_dimension_numbers<[1], [0], [0], [1], [0, 0, 1, 1], [], []>} : vector<59x183xbf16>, vector<183x464xbf16>, vector<59x464xf32> -> vector<59x464xf32>
    %17 = arith.addf %11, %16 : vector<59x464xf32>
    %18 = vector.broadcast %0 : vector<1x464xf32> to vector<59x464xf32>
    %19 = arith.addf %17, %18 : vector<59x464xf32>
    %cst_19 = arith.constant 0.000000e+00 : f32
    %20 = vector.broadcast %cst_19 : f32 to vector<59x464xf32>
    %21 = arith.maximumf %19, %20 : vector<59x464xf32>
    %c0_20 = arith.constant 0 : index
    %c0_21 = arith.constant 0 : index
    %c0_22 = arith.constant 0 : index
    %22 = vector.load %arg1[%c0_20, %c0_21, %c0_22] : memref<2x61x183xbf16, #tpu.memory_space<vmem>>, vector<1x59x183xbf16>
    %23 = vector.shape_cast %22 : vector<1x59x183xbf16> to vector<59x183xbf16>
    %c3 = arith.constant 3 : index
    %c0_23 = arith.constant 0 : index
    %c0_24 = arith.constant 0 : index
    %24 = vector.load %arg2[%c3, %c0_23, %c0_24] : memref<6x183x464xbf16, #tpu.memory_space<vmem>>, vector<1x183x464xbf16>
    %25 = vector.shape_cast %24 : vector<1x183x464xbf16> to vector<183x464xbf16>
    %cst_25 = arith.constant dense<0.000000e+00> : vector<59x464xf32>
    %26 = tpu.matmul %23, %25, %cst_25 {dimension_numbers = #tpu.dot_dimension_numbers<[1], [0], [0], [1], [0, 0, 1, 1], [], []>} : vector<59x183xbf16>, vector<183x464xbf16>, vector<59x464xf32> -> vector<59x464xf32>
    %c0_26 = arith.constant 0 : index
    %c1_27 = arith.constant 1 : index
    %c0_28 = arith.constant 0 : index
    %27 = vector.load %arg1[%c0_26, %c1_27, %c0_28] : memref<2x61x183xbf16, #tpu.memory_space<vmem>>, vector<1x59x183xbf16>
    %28 = vector.shape_cast %27 : vector<1x59x183xbf16> to vector<59x183xbf16>
    %c4 = arith.constant 4 : index
    %c0_29 = arith.constant 0 : index
    %c0_30 = arith.constant 0 : index
    %29 = vector.load %arg2[%c4, %c0_29, %c0_30] : memref<6x183x464xbf16, #tpu.memory_space<vmem>>, vector<1x183x464xbf16>
    %30 = vector.shape_cast %29 : vector<1x183x464xbf16> to vector<183x464xbf16>
    %cst_31 = arith.constant dense<0.000000e+00> : vector<59x464xf32>
    %31 = tpu.matmul %28, %30, %cst_31 {dimension_numbers = #tpu.dot_dimension_numbers<[1], [0], [0], [1], [0, 0, 1, 1], [], []>} : vector<59x183xbf16>, vector<183x464xbf16>, vector<59x464xf32> -> vector<59x464xf32>
    %32 = arith.addf %26, %31 : vector<59x464xf32>
    %c0_32 = arith.constant 0 : index
    %c2_33 = arith.constant 2 : index
    %c0_34 = arith.constant 0 : index
    %33 = vector.load %arg1[%c0_32, %c2_33, %c0_34] : memref<2x61x183xbf16, #tpu.memory_space<vmem>>, vector<1x59x183xbf16>
    %34 = vector.shape_cast %33 : vector<1x59x183xbf16> to vector<59x183xbf16>
    %c5 = arith.constant 5 : index
    %c0_35 = arith.constant 0 : index
    %c0_36 = arith.constant 0 : index
    %35 = vector.load %arg2[%c5, %c0_35, %c0_36] : memref<6x183x464xbf16, #tpu.memory_space<vmem>>, vector<1x183x464xbf16>
    %36 = vector.shape_cast %35 : vector<1x183x464xbf16> to vector<183x464xbf16>
    %cst_37 = arith.constant dense<0.000000e+00> : vector<59x464xf32>
    %37 = tpu.matmul %34, %36, %cst_37 {dimension_numbers = #tpu.dot_dimension_numbers<[1], [0], [0], [1], [0, 0, 1, 1], [], []>} : vector<59x183xbf16>, vector<183x464xbf16>, vector<59x464xf32> -> vector<59x464xf32>
    %38 = arith.addf %32, %37 : vector<59x464xf32>
    %39 = vector.broadcast %0 : vector<1x464xf32> to vector<59x464xf32>
    %40 = arith.addf %38, %39 : vector<59x464xf32>
    %cst_38 = arith.constant 0.000000e+00 : f32
    %41 = vector.broadcast %cst_38 : f32 to vector<59x464xf32>
    %42 = arith.maximumf %40, %41 : vector<59x464xf32>
    %43 = arith.maximumf %21, %42 : vector<59x464xf32>
    %44 = arith.truncf %43 : vector<59x464xf32> to vector<59x464xbf16>
    %c0_39 = arith.constant 0 : index
    %c0_40 = arith.constant 0 : index
    %c0_41 = arith.constant 0 : index
    %45 = vector.load %arg4[%c0_39, %c0_40, %c0_41] : memref<2x29x59xbf16, #tpu.memory_space<vmem>>, vector<1x29x59xbf16>
    %46 = vector.shape_cast %45 : vector<1x29x59xbf16> to vector<29x59xbf16>
    %cst_42 = arith.constant dense<0.000000e+00> : vector<29x464xf32>
    %47 = tpu.matmul %46, %44, %cst_42 {dimension_numbers = #tpu.dot_dimension_numbers<[1], [0], [0], [1], [0, 0, 1, 1], [], []>} : vector<29x59xbf16>, vector<59x464xbf16>, vector<29x464xf32> -> vector<29x464xf32>
    %c1_43 = arith.constant 1 : index
    %c0_44 = arith.constant 0 : index
    %c0_45 = arith.constant 0 : index
    %48 = vector.load %arg4[%c1_43, %c0_44, %c0_45] : memref<2x29x59xbf16, #tpu.memory_space<vmem>>, vector<1x29x59xbf16>
    %49 = vector.shape_cast %48 : vector<1x29x59xbf16> to vector<29x59xbf16>
    %cst_46 = arith.constant dense<0.000000e+00> : vector<29x464xf32>
    %50 = tpu.matmul %49, %44, %cst_46 {dimension_numbers = #tpu.dot_dimension_numbers<[1], [0], [0], [1], [0, 0, 1, 1], [], []>} : vector<29x59xbf16>, vector<59x464xbf16>, vector<29x464xf32> -> vector<29x464xf32>
    %51 = arith.maximumf %47, %50 : vector<29x464xf32>
    %52 = arith.truncf %51 : vector<29x464xf32> to vector<29x464xbf16>
    %c0_47 = arith.constant 0 : index
    %c0_48 = arith.constant 0 : index
    %53 = vector.load %arg6[%c0_47, %c0_48] : memref<1x104xf32, #tpu.memory_space<vmem>>, vector<1x104xf32>
    %54 = vector.extract_strided_slice %52 {offsets = [0, 0], sizes = [27, 464], strides = [1, 1]} : vector<29x464xbf16> to vector<27x464xbf16>
    %c0_49 = arith.constant 0 : index
    %c0_50 = arith.constant 0 : index
    %c0_51 = arith.constant 0 : index
    %55 = vector.load %arg5[%c0_49, %c0_50, %c0_51] : memref<6x464x104xbf16, #tpu.memory_space<vmem>>, vector<1x464x104xbf16>
    %56 = vector.shape_cast %55 : vector<1x464x104xbf16> to vector<464x104xbf16>
    %cst_52 = arith.constant dense<0.000000e+00> : vector<27x104xf32>
    %57 = tpu.matmul %54, %56, %cst_52 {dimension_numbers = #tpu.dot_dimension_numbers<[1], [0], [0], [1], [0, 0, 1, 1], [], []>} : vector<27x464xbf16>, vector<464x104xbf16>, vector<27x104xf32> -> vector<27x104xf32>
    %58 = vector.extract_strided_slice %52 {offsets = [1, 0], sizes = [27, 464], strides = [1, 1]} : vector<29x464xbf16> to vector<27x464xbf16>
    %c1_53 = arith.constant 1 : index
    %c0_54 = arith.constant 0 : index
    %c0_55 = arith.constant 0 : index
    %59 = vector.load %arg5[%c1_53, %c0_54, %c0_55] : memref<6x464x104xbf16, #tpu.memory_space<vmem>>, vector<1x464x104xbf16>
    %60 = vector.shape_cast %59 : vector<1x464x104xbf16> to vector<464x104xbf16>
    %cst_56 = arith.constant dense<0.000000e+00> : vector<27x104xf32>
    %61 = tpu.matmul %58, %60, %cst_56 {dimension_numbers = #tpu.dot_dimension_numbers<[1], [0], [0], [1], [0, 0, 1, 1], [], []>} : vector<27x464xbf16>, vector<464x104xbf16>, vector<27x104xf32> -> vector<27x104xf32>
    %62 = arith.addf %57, %61 : vector<27x104xf32>
    %63 = vector.extract_strided_slice %52 {offsets = [2, 0], sizes = [27, 464], strides = [1, 1]} : vector<29x464xbf16> to vector<27x464xbf16>
    %c2_57 = arith.constant 2 : index
    %c0_58 = arith.constant 0 : index
    %c0_59 = arith.constant 0 : index
    %64 = vector.load %arg5[%c2_57, %c0_58, %c0_59] : memref<6x464x104xbf16, #tpu.memory_space<vmem>>, vector<1x464x104xbf16>
    %65 = vector.shape_cast %64 : vector<1x464x104xbf16> to vector<464x104xbf16>
    %cst_60 = arith.constant dense<0.000000e+00> : vector<27x104xf32>
    %66 = tpu.matmul %63, %65, %cst_60 {dimension_numbers = #tpu.dot_dimension_numbers<[1], [0], [0], [1], [0, 0, 1, 1], [], []>} : vector<27x464xbf16>, vector<464x104xbf16>, vector<27x104xf32> -> vector<27x104xf32>
    %67 = arith.addf %62, %66 : vector<27x104xf32>
    %68 = vector.broadcast %53 : vector<1x104xf32> to vector<27x104xf32>
    %69 = arith.addf %67, %68 : vector<27x104xf32>
    %cst_61 = arith.constant 0.000000e+00 : f32
    %70 = vector.broadcast %cst_61 : f32 to vector<27x104xf32>
    %71 = arith.maximumf %69, %70 : vector<27x104xf32>
    %72 = vector.extract_strided_slice %52 {offsets = [0, 0], sizes = [27, 464], strides = [1, 1]} : vector<29x464xbf16> to vector<27x464xbf16>
    %c3_62 = arith.constant 3 : index
    %c0_63 = arith.constant 0 : index
    %c0_64 = arith.constant 0 : index
    %73 = vector.load %arg5[%c3_62, %c0_63, %c0_64] : memref<6x464x104xbf16, #tpu.memory_space<vmem>>, vector<1x464x104xbf16>
    %74 = vector.shape_cast %73 : vector<1x464x104xbf16> to vector<464x104xbf16>
    %cst_65 = arith.constant dense<0.000000e+00> : vector<27x104xf32>
    %75 = tpu.matmul %72, %74, %cst_65 {dimension_numbers = #tpu.dot_dimension_numbers<[1], [0], [0], [1], [0, 0, 1, 1], [], []>} : vector<27x464xbf16>, vector<464x104xbf16>, vector<27x104xf32> -> vector<27x104xf32>
    %76 = vector.extract_strided_slice %52 {offsets = [1, 0], sizes = [27, 464], strides = [1, 1]} : vector<29x464xbf16> to vector<27x464xbf16>
    %c4_66 = arith.constant 4 : index
    %c0_67 = arith.constant 0 : index
    %c0_68 = arith.constant 0 : index
    %77 = vector.load %arg5[%c4_66, %c0_67, %c0_68] : memref<6x464x104xbf16, #tpu.memory_space<vmem>>, vector<1x464x104xbf16>
    %78 = vector.shape_cast %77 : vector<1x464x104xbf16> to vector<464x104xbf16>
    %cst_69 = arith.constant dense<0.000000e+00> : vector<27x104xf32>
    %79 = tpu.matmul %76, %78, %cst_69 {dimension_numbers = #tpu.dot_dimension_numbers<[1], [0], [0], [1], [0, 0, 1, 1], [], []>} : vector<27x464xbf16>, vector<464x104xbf16>, vector<27x104xf32> -> vector<27x104xf32>
    %80 = arith.addf %75, %79 : vector<27x104xf32>
    %81 = vector.extract_strided_slice %52 {offsets = [2, 0], sizes = [27, 464], strides = [1, 1]} : vector<29x464xbf16> to vector<27x464xbf16>
    %c5_70 = arith.constant 5 : index
    %c0_71 = arith.constant 0 : index
    %c0_72 = arith.constant 0 : index
    %82 = vector.load %arg5[%c5_70, %c0_71, %c0_72] : memref<6x464x104xbf16, #tpu.memory_space<vmem>>, vector<1x464x104xbf16>
    %83 = vector.shape_cast %82 : vector<1x464x104xbf16> to vector<464x104xbf16>
    %cst_73 = arith.constant dense<0.000000e+00> : vector<27x104xf32>
    %84 = tpu.matmul %81, %83, %cst_73 {dimension_numbers = #tpu.dot_dimension_numbers<[1], [0], [0], [1], [0, 0, 1, 1], [], []>} : vector<27x464xbf16>, vector<464x104xbf16>, vector<27x104xf32> -> vector<27x104xf32>
    %85 = arith.addf %80, %84 : vector<27x104xf32>
    %86 = vector.broadcast %53 : vector<1x104xf32> to vector<27x104xf32>
    %87 = arith.addf %85, %86 : vector<27x104xf32>
    %cst_74 = arith.constant 0.000000e+00 : f32
    %88 = vector.broadcast %cst_74 : f32 to vector<27x104xf32>
    %89 = arith.maximumf %87, %88 : vector<27x104xf32>
    %90 = arith.maximumf %71, %89 : vector<27x104xf32>
    %91 = arith.truncf %90 : vector<27x104xf32> to vector<27x104xbf16>
    %c0_75 = arith.constant 0 : index
    %c0_76 = arith.constant 0 : index
    %c0_77 = arith.constant 0 : index
    %92 = vector.load %arg7[%c0_75, %c0_76, %c0_77] : memref<2x13x27xbf16, #tpu.memory_space<vmem>>, vector<1x13x27xbf16>
    %93 = vector.shape_cast %92 : vector<1x13x27xbf16> to vector<13x27xbf16>
    %cst_78 = arith.constant dense<0.000000e+00> : vector<13x104xf32>
    %94 = tpu.matmul %93, %91, %cst_78 {dimension_numbers = #tpu.dot_dimension_numbers<[1], [0], [0], [1], [0, 0, 1, 1], [], []>} : vector<13x27xbf16>, vector<27x104xbf16>, vector<13x104xf32> -> vector<13x104xf32>
    %c1_79 = arith.constant 1 : index
    %c0_80 = arith.constant 0 : index
    %c0_81 = arith.constant 0 : index
    %95 = vector.load %arg7[%c1_79, %c0_80, %c0_81] : memref<2x13x27xbf16, #tpu.memory_space<vmem>>, vector<1x13x27xbf16>
    %96 = vector.shape_cast %95 : vector<1x13x27xbf16> to vector<13x27xbf16>
    %cst_82 = arith.constant dense<0.000000e+00> : vector<13x104xf32>
    %97 = tpu.matmul %96, %91, %cst_82 {dimension_numbers = #tpu.dot_dimension_numbers<[1], [0], [0], [1], [0, 0, 1, 1], [], []>} : vector<13x27xbf16>, vector<27x104xbf16>, vector<13x104xf32> -> vector<13x104xf32>
    %98 = arith.maximumf %94, %97 : vector<13x104xf32>
    %99 = arith.truncf %98 : vector<13x104xf32> to vector<13x104xbf16>
    %c0_83 = arith.constant 0 : index
    %c0_84 = arith.constant 0 : index
    %100 = vector.load %arg9[%c0_83, %c0_84] : memref<1x20xf32, #tpu.memory_space<vmem>>, vector<1x20xf32>
    %101 = vector.extract_strided_slice %99 {offsets = [0, 0], sizes = [11, 104], strides = [1, 1]} : vector<13x104xbf16> to vector<11x104xbf16>
    %c0_85 = arith.constant 0 : index
    %c0_86 = arith.constant 0 : index
    %c0_87 = arith.constant 0 : index
    %102 = vector.load %arg8[%c0_85, %c0_86, %c0_87] : memref<6x104x20xbf16, #tpu.memory_space<vmem>>, vector<1x104x20xbf16>
    %103 = vector.shape_cast %102 : vector<1x104x20xbf16> to vector<104x20xbf16>
    %cst_88 = arith.constant dense<0.000000e+00> : vector<11x20xf32>
    %104 = tpu.matmul %101, %103, %cst_88 {dimension_numbers = #tpu.dot_dimension_numbers<[1], [0], [0], [1], [0, 0, 1, 1], [], []>} : vector<11x104xbf16>, vector<104x20xbf16>, vector<11x20xf32> -> vector<11x20xf32>
    %105 = vector.extract_strided_slice %99 {offsets = [1, 0], sizes = [11, 104], strides = [1, 1]} : vector<13x104xbf16> to vector<11x104xbf16>
    %c1_89 = arith.constant 1 : index
    %c0_90 = arith.constant 0 : index
    %c0_91 = arith.constant 0 : index
    %106 = vector.load %arg8[%c1_89, %c0_90, %c0_91] : memref<6x104x20xbf16, #tpu.memory_space<vmem>>, vector<1x104x20xbf16>
    %107 = vector.shape_cast %106 : vector<1x104x20xbf16> to vector<104x20xbf16>
    %cst_92 = arith.constant dense<0.000000e+00> : vector<11x20xf32>
    %108 = tpu.matmul %105, %107, %cst_92 {dimension_numbers = #tpu.dot_dimension_numbers<[1], [0], [0], [1], [0, 0, 1, 1], [], []>} : vector<11x104xbf16>, vector<104x20xbf16>, vector<11x20xf32> -> vector<11x20xf32>
    %109 = arith.addf %104, %108 : vector<11x20xf32>
    %110 = vector.extract_strided_slice %99 {offsets = [2, 0], sizes = [11, 104], strides = [1, 1]} : vector<13x104xbf16> to vector<11x104xbf16>
    %c2_93 = arith.constant 2 : index
    %c0_94 = arith.constant 0 : index
    %c0_95 = arith.constant 0 : index
    %111 = vector.load %arg8[%c2_93, %c0_94, %c0_95] : memref<6x104x20xbf16, #tpu.memory_space<vmem>>, vector<1x104x20xbf16>
    %112 = vector.shape_cast %111 : vector<1x104x20xbf16> to vector<104x20xbf16>
    %cst_96 = arith.constant dense<0.000000e+00> : vector<11x20xf32>
    %113 = tpu.matmul %110, %112, %cst_96 {dimension_numbers = #tpu.dot_dimension_numbers<[1], [0], [0], [1], [0, 0, 1, 1], [], []>} : vector<11x104xbf16>, vector<104x20xbf16>, vector<11x20xf32> -> vector<11x20xf32>
    %114 = arith.addf %109, %113 : vector<11x20xf32>
    %115 = vector.broadcast %100 : vector<1x20xf32> to vector<11x20xf32>
    %116 = arith.addf %114, %115 : vector<11x20xf32>
    %cst_97 = arith.constant 0.000000e+00 : f32
    %117 = vector.broadcast %cst_97 : f32 to vector<11x20xf32>
    %118 = arith.maximumf %116, %117 : vector<11x20xf32>
    %119 = vector.extract_strided_slice %99 {offsets = [0, 0], sizes = [11, 104], strides = [1, 1]} : vector<13x104xbf16> to vector<11x104xbf16>
    %c3_98 = arith.constant 3 : index
    %c0_99 = arith.constant 0 : index
    %c0_100 = arith.constant 0 : index
    %120 = vector.load %arg8[%c3_98, %c0_99, %c0_100] : memref<6x104x20xbf16, #tpu.memory_space<vmem>>, vector<1x104x20xbf16>
    %121 = vector.shape_cast %120 : vector<1x104x20xbf16> to vector<104x20xbf16>
    %cst_101 = arith.constant dense<0.000000e+00> : vector<11x20xf32>
    %122 = tpu.matmul %119, %121, %cst_101 {dimension_numbers = #tpu.dot_dimension_numbers<[1], [0], [0], [1], [0, 0, 1, 1], [], []>} : vector<11x104xbf16>, vector<104x20xbf16>, vector<11x20xf32> -> vector<11x20xf32>
    %123 = vector.extract_strided_slice %99 {offsets = [1, 0], sizes = [11, 104], strides = [1, 1]} : vector<13x104xbf16> to vector<11x104xbf16>
    %c4_102 = arith.constant 4 : index
    %c0_103 = arith.constant 0 : index
    %c0_104 = arith.constant 0 : index
    %124 = vector.load %arg8[%c4_102, %c0_103, %c0_104] : memref<6x104x20xbf16, #tpu.memory_space<vmem>>, vector<1x104x20xbf16>
    %125 = vector.shape_cast %124 : vector<1x104x20xbf16> to vector<104x20xbf16>
    %cst_105 = arith.constant dense<0.000000e+00> : vector<11x20xf32>
    %126 = tpu.matmul %123, %125, %cst_105 {dimension_numbers = #tpu.dot_dimension_numbers<[1], [0], [0], [1], [0, 0, 1, 1], [], []>} : vector<11x104xbf16>, vector<104x20xbf16>, vector<11x20xf32> -> vector<11x20xf32>
    %127 = arith.addf %122, %126 : vector<11x20xf32>
    %128 = vector.extract_strided_slice %99 {offsets = [2, 0], sizes = [11, 104], strides = [1, 1]} : vector<13x104xbf16> to vector<11x104xbf16>
    %c5_106 = arith.constant 5 : index
    %c0_107 = arith.constant 0 : index
    %c0_108 = arith.constant 0 : index
    %129 = vector.load %arg8[%c5_106, %c0_107, %c0_108] : memref<6x104x20xbf16, #tpu.memory_space<vmem>>, vector<1x104x20xbf16>
    %130 = vector.shape_cast %129 : vector<1x104x20xbf16> to vector<104x20xbf16>
    %cst_109 = arith.constant dense<0.000000e+00> : vector<11x20xf32>
    %131 = tpu.matmul %128, %130, %cst_109 {dimension_numbers = #tpu.dot_dimension_numbers<[1], [0], [0], [1], [0, 0, 1, 1], [], []>} : vector<11x104xbf16>, vector<104x20xbf16>, vector<11x20xf32> -> vector<11x20xf32>
    %132 = arith.addf %127, %131 : vector<11x20xf32>
    %133 = vector.broadcast %100 : vector<1x20xf32> to vector<11x20xf32>
    %134 = arith.addf %132, %133 : vector<11x20xf32>
    %cst_110 = arith.constant 0.000000e+00 : f32
    %135 = vector.broadcast %cst_110 : f32 to vector<11x20xf32>
    %136 = arith.maximumf %134, %135 : vector<11x20xf32>
    %137 = arith.maximumf %118, %136 : vector<11x20xf32>
    %138 = arith.truncf %137 : vector<11x20xf32> to vector<11x20xbf16>
    %c0_111 = arith.constant 0 : index
    %c0_112 = arith.constant 0 : index
    %c0_113 = arith.constant 0 : index
    %139 = vector.load %arg10[%c0_111, %c0_112, %c0_113] : memref<2x5x11xbf16, #tpu.memory_space<vmem>>, vector<1x5x11xbf16>
    %140 = vector.shape_cast %139 : vector<1x5x11xbf16> to vector<5x11xbf16>
    %cst_114 = arith.constant dense<0.000000e+00> : vector<5x20xf32>
    %141 = tpu.matmul %140, %138, %cst_114 {dimension_numbers = #tpu.dot_dimension_numbers<[1], [0], [0], [1], [0, 0, 1, 1], [], []>} : vector<5x11xbf16>, vector<11x20xbf16>, vector<5x20xf32> -> vector<5x20xf32>
    %c1_115 = arith.constant 1 : index
    %c0_116 = arith.constant 0 : index
    %c0_117 = arith.constant 0 : index
    %142 = vector.load %arg10[%c1_115, %c0_116, %c0_117] : memref<2x5x11xbf16, #tpu.memory_space<vmem>>, vector<1x5x11xbf16>
    %143 = vector.shape_cast %142 : vector<1x5x11xbf16> to vector<5x11xbf16>
    %cst_118 = arith.constant dense<0.000000e+00> : vector<5x20xf32>
    %144 = tpu.matmul %143, %138, %cst_118 {dimension_numbers = #tpu.dot_dimension_numbers<[1], [0], [0], [1], [0, 0, 1, 1], [], []>} : vector<5x11xbf16>, vector<11x20xbf16>, vector<5x20xf32> -> vector<5x20xf32>
    %145 = arith.maximumf %141, %144 : vector<5x20xf32>
    %146 = vector.extract_strided_slice %145 {offsets = [0, 0], sizes = [1, 20], strides = [1, 1]} : vector<5x20xf32> to vector<1x20xf32>
    %c0_119 = arith.constant 0 : index
    %c0_120 = arith.constant 0 : index
    %147 = vector.load %arg18[%c0_119, %c0_120] : memref<2x100xf32, #tpu.memory_space<vmem>>, vector<1x20xf32>
    tpu.vector_store %arg18[%c0_119, %c0_120], %146 {strides = array<i32>} : memref<2x100xf32, #tpu.memory_space<vmem>>, vector<1x20xf32>,
    %148 = vector.extract_strided_slice %145 {offsets = [1, 0], sizes = [1, 20], strides = [1, 1]} : vector<5x20xf32> to vector<1x20xf32>
    %c0_121 = arith.constant 0 : index
    %c20 = arith.constant 20 : index
    %149 = vector.load %arg18[%c0_121, %c20] : memref<2x100xf32, #tpu.memory_space<vmem>>, vector<1x20xf32>
    tpu.vector_store %arg18[%c0_121, %c20], %148 {strides = array<i32>} : memref<2x100xf32, #tpu.memory_space<vmem>>, vector<1x20xf32>,
    %150 = vector.extract_strided_slice %145 {offsets = [2, 0], sizes = [1, 20], strides = [1, 1]} : vector<5x20xf32> to vector<1x20xf32>
    %c0_122 = arith.constant 0 : index
    %c40 = arith.constant 40 : index
    %151 = vector.load %arg18[%c0_122, %c40] : memref<2x100xf32, #tpu.memory_space<vmem>>, vector<1x20xf32>
    tpu.vector_store %arg18[%c0_122, %c40], %150 {strides = array<i32>} : memref<2x100xf32, #tpu.memory_space<vmem>>, vector<1x20xf32>,
    %152 = vector.extract_strided_slice %145 {offsets = [3, 0], sizes = [1, 20], strides = [1, 1]} : vector<5x20xf32> to vector<1x20xf32>
    %c0_123 = arith.constant 0 : index
    %c60 = arith.constant 60 : index
    %153 = vector.load %arg18[%c0_123, %c60] : memref<2x100xf32, #tpu.memory_space<vmem>>, vector<1x20xf32>
    tpu.vector_store %arg18[%c0_123, %c60], %152 {strides = array<i32>} : memref<2x100xf32, #tpu.memory_space<vmem>>, vector<1x20xf32>,
    %154 = vector.extract_strided_slice %145 {offsets = [4, 0], sizes = [1, 20], strides = [1, 1]} : vector<5x20xf32> to vector<1x20xf32>
    %c0_124 = arith.constant 0 : index
    %c80 = arith.constant 80 : index
    %155 = vector.load %arg18[%c0_124, %c80] : memref<2x100xf32, #tpu.memory_space<vmem>>, vector<1x20xf32>
    tpu.vector_store %arg18[%c0_124, %c80], %154 {strides = array<i32>} : memref<2x100xf32, #tpu.memory_space<vmem>>, vector<1x20xf32>,
    %c0_125 = arith.constant 0 : index
    %c0_126 = arith.constant 0 : index
    %156 = vector.load %arg3[%c0_125, %c0_126] : memref<1x464xf32, #tpu.memory_space<vmem>>, vector<1x464xf32>
    %c1_127 = arith.constant 1 : index
    %c0_128 = arith.constant 0 : index
    %c0_129 = arith.constant 0 : index
    %157 = vector.load %arg1[%c1_127, %c0_128, %c0_129] : memref<2x61x183xbf16, #tpu.memory_space<vmem>>, vector<1x59x183xbf16>
    %158 = vector.shape_cast %157 : vector<1x59x183xbf16> to vector<59x183xbf16>
    %c0_130 = arith.constant 0 : index
    %c0_131 = arith.constant 0 : index
    %c0_132 = arith.constant 0 : index
    %159 = vector.load %arg2[%c0_130, %c0_131, %c0_132] : memref<6x183x464xbf16, #tpu.memory_space<vmem>>, vector<1x183x464xbf16>
    %160 = vector.shape_cast %159 : vector<1x183x464xbf16> to vector<183x464xbf16>
    %cst_133 = arith.constant dense<0.000000e+00> : vector<59x464xf32>
    %161 = tpu.matmul %158, %160, %cst_133 {dimension_numbers = #tpu.dot_dimension_numbers<[1], [0], [0], [1], [0, 0, 1, 1], [], []>} : vector<59x183xbf16>, vector<183x464xbf16>, vector<59x464xf32> -> vector<59x464xf32>
    %c1_134 = arith.constant 1 : index
    %c1_135 = arith.constant 1 : index
    %c0_136 = arith.constant 0 : index
    %162 = vector.load %arg1[%c1_134, %c1_135, %c0_136] : memref<2x61x183xbf16, #tpu.memory_space<vmem>>, vector<1x59x183xbf16>
    %163 = vector.shape_cast %162 : vector<1x59x183xbf16> to vector<59x183xbf16>
    %c1_137 = arith.constant 1 : index
    %c0_138 = arith.constant 0 : index
    %c0_139 = arith.constant 0 : index
    %164 = vector.load %arg2[%c1_137, %c0_138, %c0_139] : memref<6x183x464xbf16, #tpu.memory_space<vmem>>, vector<1x183x464xbf16>
    %165 = vector.shape_cast %164 : vector<1x183x464xbf16> to vector<183x464xbf16>
    %cst_140 = arith.constant dense<0.000000e+00> : vector<59x464xf32>
    %166 = tpu.matmul %163, %165, %cst_140 {dimension_numbers = #tpu.dot_dimension_numbers<[1], [0], [0], [1], [0, 0, 1, 1], [], []>} : vector<59x183xbf16>, vector<183x464xbf16>, vector<59x464xf32> -> vector<59x464xf32>
    %167 = arith.addf %161, %166 : vector<59x464xf32>
    %c1_141 = arith.constant 1 : index
    %c2_142 = arith.constant 2 : index
    %c0_143 = arith.constant 0 : index
    %168 = vector.load %arg1[%c1_141, %c2_142, %c0_143] : memref<2x61x183xbf16, #tpu.memory_space<vmem>>, vector<1x59x183xbf16>
    %169 = vector.shape_cast %168 : vector<1x59x183xbf16> to vector<59x183xbf16>
    %c2_144 = arith.constant 2 : index
    %c0_145 = arith.constant 0 : index
    %c0_146 = arith.constant 0 : index
    %170 = vector.load %arg2[%c2_144, %c0_145, %c0_146] : memref<6x183x464xbf16, #tpu.memory_space<vmem>>, vector<1x183x464xbf16>
    %171 = vector.shape_cast %170 : vector<1x183x464xbf16> to vector<183x464xbf16>
    %cst_147 = arith.constant dense<0.000000e+00> : vector<59x464xf32>
    %172 = tpu.matmul %169, %171, %cst_147 {dimension_numbers = #tpu.dot_dimension_numbers<[1], [0], [0], [1], [0, 0, 1, 1], [], []>} : vector<59x183xbf16>, vector<183x464xbf16>, vector<59x464xf32> -> vector<59x464xf32>
    %173 = arith.addf %167, %172 : vector<59x464xf32>
    %174 = vector.broadcast %156 : vector<1x464xf32> to vector<59x464xf32>
    %175 = arith.addf %173, %174 : vector<59x464xf32>
    %cst_148 = arith.constant 0.000000e+00 : f32
    %176 = vector.broadcast %cst_148 : f32 to vector<59x464xf32>
    %177 = arith.maximumf %175, %176 : vector<59x464xf32>
    %c1_149 = arith.constant 1 : index
    %c0_150 = arith.constant 0 : index
    %c0_151 = arith.constant 0 : index
    %178 = vector.load %arg1[%c1_149, %c0_150, %c0_151] : memref<2x61x183xbf16, #tpu.memory_space<vmem>>, vector<1x59x183xbf16>
    %179 = vector.shape_cast %178 : vector<1x59x183xbf16> to vector<59x183xbf16>
    %c3_152 = arith.constant 3 : index
    %c0_153 = arith.constant 0 : index
    %c0_154 = arith.constant 0 : index
    %180 = vector.load %arg2[%c3_152, %c0_153, %c0_154] : memref<6x183x464xbf16, #tpu.memory_space<vmem>>, vector<1x183x464xbf16>
    %181 = vector.shape_cast %180 : vector<1x183x464xbf16> to vector<183x464xbf16>
    %cst_155 = arith.constant dense<0.000000e+00> : vector<59x464xf32>
    %182 = tpu.matmul %179, %181, %cst_155 {dimension_numbers = #tpu.dot_dimension_numbers<[1], [0], [0], [1], [0, 0, 1, 1], [], []>} : vector<59x183xbf16>, vector<183x464xbf16>, vector<59x464xf32> -> vector<59x464xf32>
    %c1_156 = arith.constant 1 : index
    %c1_157 = arith.constant 1 : index
    %c0_158 = arith.constant 0 : index
    %183 = vector.load %arg1[%c1_156, %c1_157, %c0_158] : memref<2x61x183xbf16, #tpu.memory_space<vmem>>, vector<1x59x183xbf16>
    %184 = vector.shape_cast %183 : vector<1x59x183xbf16> to vector<59x183xbf16>
    %c4_159 = arith.constant 4 : index
    %c0_160 = arith.constant 0 : index
    %c0_161 = arith.constant 0 : index
    %185 = vector.load %arg2[%c4_159, %c0_160, %c0_161] : memref<6x183x464xbf16, #tpu.memory_space<vmem>>, vector<1x183x464xbf16>
    %186 = vector.shape_cast %185 : vector<1x183x464xbf16> to vector<183x464xbf16>
    %cst_162 = arith.constant dense<0.000000e+00> : vector<59x464xf32>
    %187 = tpu.matmul %184, %186, %cst_162 {dimension_numbers = #tpu.dot_dimension_numbers<[1], [0], [0], [1], [0, 0, 1, 1], [], []>} : vector<59x183xbf16>, vector<183x464xbf16>, vector<59x464xf32> -> vector<59x464xf32>
    %188 = arith.addf %182, %187 : vector<59x464xf32>
    %c1_163 = arith.constant 1 : index
    %c2_164 = arith.constant 2 : index
    %c0_165 = arith.constant 0 : index
    %189 = vector.load %arg1[%c1_163, %c2_164, %c0_165] : memref<2x61x183xbf16, #tpu.memory_space<vmem>>, vector<1x59x183xbf16>
    %190 = vector.shape_cast %189 : vector<1x59x183xbf16> to vector<59x183xbf16>
    %c5_166 = arith.constant 5 : index
    %c0_167 = arith.constant 0 : index
    %c0_168 = arith.constant 0 : index
    %191 = vector.load %arg2[%c5_166, %c0_167, %c0_168] : memref<6x183x464xbf16, #tpu.memory_space<vmem>>, vector<1x183x464xbf16>
    %192 = vector.shape_cast %191 : vector<1x183x464xbf16> to vector<183x464xbf16>
    %cst_169 = arith.constant dense<0.000000e+00> : vector<59x464xf32>
    %193 = tpu.matmul %190, %192, %cst_169 {dimension_numbers = #tpu.dot_dimension_numbers<[1], [0], [0], [1], [0, 0, 1, 1], [], []>} : vector<59x183xbf16>, vector<183x464xbf16>, vector<59x464xf32> -> vector<59x464xf32>
    %194 = arith.addf %188, %193 : vector<59x464xf32>
    %195 = vector.broadcast %156 : vector<1x464xf32> to vector<59x464xf32>
    %196 = arith.addf %194, %195 : vector<59x464xf32>
    %cst_170 = arith.constant 0.000000e+00 : f32
    %197 = vector.broadcast %cst_170 : f32 to vector<59x464xf32>
    %198 = arith.maximumf %196, %197 : vector<59x464xf32>
    %199 = arith.maximumf %177, %198 : vector<59x464xf32>
    %200 = arith.truncf %199 : vector<59x464xf32> to vector<59x464xbf16>
    %c0_171 = arith.constant 0 : index
    %c0_172 = arith.constant 0 : index
    %c0_173 = arith.constant 0 : index
    %201 = vector.load %arg4[%c0_171, %c0_172, %c0_173] : memref<2x29x59xbf16, #tpu.memory_space<vmem>>, vector<1x29x59xbf16>
    %202 = vector.shape_cast %201 : vector<1x29x59xbf16> to vector<29x59xbf16>
    %cst_174 = arith.constant dense<0.000000e+00> : vector<29x464xf32>
    %203 = tpu.matmul %202, %200, %cst_174 {dimension_numbers = #tpu.dot_dimension_numbers<[1], [0], [0], [1], [0, 0, 1, 1], [], []>} : vector<29x59xbf16>, vector<59x464xbf16>, vector<29x464xf32> -> vector<29x464xf32>
    %c1_175 = arith.constant 1 : index
    %c0_176 = arith.constant 0 : index
    %c0_177 = arith.constant 0 : index
    %204 = vector.load %arg4[%c1_175, %c0_176, %c0_177] : memref<2x29x59xbf16, #tpu.memory_space<vmem>>, vector<1x29x59xbf16>
    %205 = vector.shape_cast %204 : vector<1x29x59xbf16> to vector<29x59xbf16>
    %cst_178 = arith.constant dense<0.000000e+00> : vector<29x464xf32>
    %206 = tpu.matmul %205, %200, %cst_178 {dimension_numbers = #tpu.dot_dimension_numbers<[1], [0], [0], [1], [0, 0, 1, 1], [], []>} : vector<29x59xbf16>, vector<59x464xbf16>, vector<29x464xf32> -> vector<29x464xf32>
    %207 = arith.maximumf %203, %206 : vector<29x464xf32>
    %208 = arith.truncf %207 : vector<29x464xf32> to vector<29x464xbf16>
    %c0_179 = arith.constant 0 : index
    %c0_180 = arith.constant 0 : index
    %209 = vector.load %arg6[%c0_179, %c0_180] : memref<1x104xf32, #tpu.memory_space<vmem>>, vector<1x104xf32>
    %210 = vector.extract_strided_slice %208 {offsets = [0, 0], sizes = [27, 464], strides = [1, 1]} : vector<29x464xbf16> to vector<27x464xbf16>
    %c0_181 = arith.constant 0 : index
    %c0_182 = arith.constant 0 : index
    %c0_183 = arith.constant 0 : index
    %211 = vector.load %arg5[%c0_181, %c0_182, %c0_183] : memref<6x464x104xbf16, #tpu.memory_space<vmem>>, vector<1x464x104xbf16>
    %212 = vector.shape_cast %211 : vector<1x464x104xbf16> to vector<464x104xbf16>
    %cst_184 = arith.constant dense<0.000000e+00> : vector<27x104xf32>
    %213 = tpu.matmul %210, %212, %cst_184 {dimension_numbers = #tpu.dot_dimension_numbers<[1], [0], [0], [1], [0, 0, 1, 1], [], []>} : vector<27x464xbf16>, vector<464x104xbf16>, vector<27x104xf32> -> vector<27x104xf32>
    %214 = vector.extract_strided_slice %208 {offsets = [1, 0], sizes = [27, 464], strides = [1, 1]} : vector<29x464xbf16> to vector<27x464xbf16>
    %c1_185 = arith.constant 1 : index
    %c0_186 = arith.constant 0 : index
    %c0_187 = arith.constant 0 : index
    %215 = vector.load %arg5[%c1_185, %c0_186, %c0_187] : memref<6x464x104xbf16, #tpu.memory_space<vmem>>, vector<1x464x104xbf16>
    %216 = vector.shape_cast %215 : vector<1x464x104xbf16> to vector<464x104xbf16>
    %cst_188 = arith.constant dense<0.000000e+00> : vector<27x104xf32>
    %217 = tpu.matmul %214, %216, %cst_188 {dimension_numbers = #tpu.dot_dimension_numbers<[1], [0], [0], [1], [0, 0, 1, 1], [], []>} : vector<27x464xbf16>, vector<464x104xbf16>, vector<27x104xf32> -> vector<27x104xf32>
    %218 = arith.addf %213, %217 : vector<27x104xf32>
    %219 = vector.extract_strided_slice %208 {offsets = [2, 0], sizes = [27, 464], strides = [1, 1]} : vector<29x464xbf16> to vector<27x464xbf16>
    %c2_189 = arith.constant 2 : index
    %c0_190 = arith.constant 0 : index
    %c0_191 = arith.constant 0 : index
    %220 = vector.load %arg5[%c2_189, %c0_190, %c0_191] : memref<6x464x104xbf16, #tpu.memory_space<vmem>>, vector<1x464x104xbf16>
    %221 = vector.shape_cast %220 : vector<1x464x104xbf16> to vector<464x104xbf16>
    %cst_192 = arith.constant dense<0.000000e+00> : vector<27x104xf32>
    %222 = tpu.matmul %219, %221, %cst_192 {dimension_numbers = #tpu.dot_dimension_numbers<[1], [0], [0], [1], [0, 0, 1, 1], [], []>} : vector<27x464xbf16>, vector<464x104xbf16>, vector<27x104xf32> -> vector<27x104xf32>
    %223 = arith.addf %218, %222 : vector<27x104xf32>
    %224 = vector.broadcast %209 : vector<1x104xf32> to vector<27x104xf32>
    %225 = arith.addf %223, %224 : vector<27x104xf32>
    %cst_193 = arith.constant 0.000000e+00 : f32
    %226 = vector.broadcast %cst_193 : f32 to vector<27x104xf32>
    %227 = arith.maximumf %225, %226 : vector<27x104xf32>
    %228 = vector.extract_strided_slice %208 {offsets = [0, 0], sizes = [27, 464], strides = [1, 1]} : vector<29x464xbf16> to vector<27x464xbf16>
    %c3_194 = arith.constant 3 : index
    %c0_195 = arith.constant 0 : index
    %c0_196 = arith.constant 0 : index
    %229 = vector.load %arg5[%c3_194, %c0_195, %c0_196] : memref<6x464x104xbf16, #tpu.memory_space<vmem>>, vector<1x464x104xbf16>
    %230 = vector.shape_cast %229 : vector<1x464x104xbf16> to vector<464x104xbf16>
    %cst_197 = arith.constant dense<0.000000e+00> : vector<27x104xf32>
    %231 = tpu.matmul %228, %230, %cst_197 {dimension_numbers = #tpu.dot_dimension_numbers<[1], [0], [0], [1], [0, 0, 1, 1], [], []>} : vector<27x464xbf16>, vector<464x104xbf16>, vector<27x104xf32> -> vector<27x104xf32>
    %232 = vector.extract_strided_slice %208 {offsets = [1, 0], sizes = [27, 464], strides = [1, 1]} : vector<29x464xbf16> to vector<27x464xbf16>
    %c4_198 = arith.constant 4 : index
    %c0_199 = arith.constant 0 : index
    %c0_200 = arith.constant 0 : index
    %233 = vector.load %arg5[%c4_198, %c0_199, %c0_200] : memref<6x464x104xbf16, #tpu.memory_space<vmem>>, vector<1x464x104xbf16>
    %234 = vector.shape_cast %233 : vector<1x464x104xbf16> to vector<464x104xbf16>
    %cst_201 = arith.constant dense<0.000000e+00> : vector<27x104xf32>
    %235 = tpu.matmul %232, %234, %cst_201 {dimension_numbers = #tpu.dot_dimension_numbers<[1], [0], [0], [1], [0, 0, 1, 1], [], []>} : vector<27x464xbf16>, vector<464x104xbf16>, vector<27x104xf32> -> vector<27x104xf32>
    %236 = arith.addf %231, %235 : vector<27x104xf32>
    %237 = vector.extract_strided_slice %208 {offsets = [2, 0], sizes = [27, 464], strides = [1, 1]} : vector<29x464xbf16> to vector<27x464xbf16>
    %c5_202 = arith.constant 5 : index
    %c0_203 = arith.constant 0 : index
    %c0_204 = arith.constant 0 : index
    %238 = vector.load %arg5[%c5_202, %c0_203, %c0_204] : memref<6x464x104xbf16, #tpu.memory_space<vmem>>, vector<1x464x104xbf16>
    %239 = vector.shape_cast %238 : vector<1x464x104xbf16> to vector<464x104xbf16>
    %cst_205 = arith.constant dense<0.000000e+00> : vector<27x104xf32>
    %240 = tpu.matmul %237, %239, %cst_205 {dimension_numbers = #tpu.dot_dimension_numbers<[1], [0], [0], [1], [0, 0, 1, 1], [], []>} : vector<27x464xbf16>, vector<464x104xbf16>, vector<27x104xf32> -> vector<27x104xf32>
    %241 = arith.addf %236, %240 : vector<27x104xf32>
    %242 = vector.broadcast %209 : vector<1x104xf32> to vector<27x104xf32>
    %243 = arith.addf %241, %242 : vector<27x104xf32>
    %cst_206 = arith.constant 0.000000e+00 : f32
    %244 = vector.broadcast %cst_206 : f32 to vector<27x104xf32>
    %245 = arith.maximumf %243, %244 : vector<27x104xf32>
    %246 = arith.maximumf %227, %245 : vector<27x104xf32>
    %247 = arith.truncf %246 : vector<27x104xf32> to vector<27x104xbf16>
    %c0_207 = arith.constant 0 : index
    %c0_208 = arith.constant 0 : index
    %c0_209 = arith.constant 0 : index
    %248 = vector.load %arg7[%c0_207, %c0_208, %c0_209] : memref<2x13x27xbf16, #tpu.memory_space<vmem>>, vector<1x13x27xbf16>
    %249 = vector.shape_cast %248 : vector<1x13x27xbf16> to vector<13x27xbf16>
    %cst_210 = arith.constant dense<0.000000e+00> : vector<13x104xf32>
    %250 = tpu.matmul %249, %247, %cst_210 {dimension_numbers = #tpu.dot_dimension_numbers<[1], [0], [0], [1], [0, 0, 1, 1], [], []>} : vector<13x27xbf16>, vector<27x104xbf16>, vector<13x104xf32> -> vector<13x104xf32>
    %c1_211 = arith.constant 1 : index
    %c0_212 = arith.constant 0 : index
    %c0_213 = arith.constant 0 : index
    %251 = vector.load %arg7[%c1_211, %c0_212, %c0_213] : memref<2x13x27xbf16, #tpu.memory_space<vmem>>, vector<1x13x27xbf16>
    %252 = vector.shape_cast %251 : vector<1x13x27xbf16> to vector<13x27xbf16>
    %cst_214 = arith.constant dense<0.000000e+00> : vector<13x104xf32>
    %253 = tpu.matmul %252, %247, %cst_214 {dimension_numbers = #tpu.dot_dimension_numbers<[1], [0], [0], [1], [0, 0, 1, 1], [], []>} : vector<13x27xbf16>, vector<27x104xbf16>, vector<13x104xf32> -> vector<13x104xf32>
    %254 = arith.maximumf %250, %253 : vector<13x104xf32>
    %255 = arith.truncf %254 : vector<13x104xf32> to vector<13x104xbf16>
    %c0_215 = arith.constant 0 : index
    %c0_216 = arith.constant 0 : index
    %256 = vector.load %arg9[%c0_215, %c0_216] : memref<1x20xf32, #tpu.memory_space<vmem>>, vector<1x20xf32>
    %257 = vector.extract_strided_slice %255 {offsets = [0, 0], sizes = [11, 104], strides = [1, 1]} : vector<13x104xbf16> to vector<11x104xbf16>
    %c0_217 = arith.constant 0 : index
    %c0_218 = arith.constant 0 : index
    %c0_219 = arith.constant 0 : index
    %258 = vector.load %arg8[%c0_217, %c0_218, %c0_219] : memref<6x104x20xbf16, #tpu.memory_space<vmem>>, vector<1x104x20xbf16>
    %259 = vector.shape_cast %258 : vector<1x104x20xbf16> to vector<104x20xbf16>
    %cst_220 = arith.constant dense<0.000000e+00> : vector<11x20xf32>
    %260 = tpu.matmul %257, %259, %cst_220 {dimension_numbers = #tpu.dot_dimension_numbers<[1], [0], [0], [1], [0, 0, 1, 1], [], []>} : vector<11x104xbf16>, vector<104x20xbf16>, vector<11x20xf32> -> vector<11x20xf32>
    %261 = vector.extract_strided_slice %255 {offsets = [1, 0], sizes = [11, 104], strides = [1, 1]} : vector<13x104xbf16> to vector<11x104xbf16>
    %c1_221 = arith.constant 1 : index
    %c0_222 = arith.constant 0 : index
    %c0_223 = arith.constant 0 : index
    %262 = vector.load %arg8[%c1_221, %c0_222, %c0_223] : memref<6x104x20xbf16, #tpu.memory_space<vmem>>, vector<1x104x20xbf16>
    %263 = vector.shape_cast %262 : vector<1x104x20xbf16> to vector<104x20xbf16>
    %cst_224 = arith.constant dense<0.000000e+00> : vector<11x20xf32>
    %264 = tpu.matmul %261, %263, %cst_224 {dimension_numbers = #tpu.dot_dimension_numbers<[1], [0], [0], [1], [0, 0, 1, 1], [], []>} : vector<11x104xbf16>, vector<104x20xbf16>, vector<11x20xf32> -> vector<11x20xf32>
    %265 = arith.addf %260, %264 : vector<11x20xf32>
    %266 = vector.extract_strided_slice %255 {offsets = [2, 0], sizes = [11, 104], strides = [1, 1]} : vector<13x104xbf16> to vector<11x104xbf16>
    %c2_225 = arith.constant 2 : index
    %c0_226 = arith.constant 0 : index
    %c0_227 = arith.constant 0 : index
    %267 = vector.load %arg8[%c2_225, %c0_226, %c0_227] : memref<6x104x20xbf16, #tpu.memory_space<vmem>>, vector<1x104x20xbf16>
    %268 = vector.shape_cast %267 : vector<1x104x20xbf16> to vector<104x20xbf16>
    %cst_228 = arith.constant dense<0.000000e+00> : vector<11x20xf32>
    %269 = tpu.matmul %266, %268, %cst_228 {dimension_numbers = #tpu.dot_dimension_numbers<[1], [0], [0], [1], [0, 0, 1, 1], [], []>} : vector<11x104xbf16>, vector<104x20xbf16>, vector<11x20xf32> -> vector<11x20xf32>
    %270 = arith.addf %265, %269 : vector<11x20xf32>
    %271 = vector.broadcast %256 : vector<1x20xf32> to vector<11x20xf32>
    %272 = arith.addf %270, %271 : vector<11x20xf32>
    %cst_229 = arith.constant 0.000000e+00 : f32
    %273 = vector.broadcast %cst_229 : f32 to vector<11x20xf32>
    %274 = arith.maximumf %272, %273 : vector<11x20xf32>
    %275 = vector.extract_strided_slice %255 {offsets = [0, 0], sizes = [11, 104], strides = [1, 1]} : vector<13x104xbf16> to vector<11x104xbf16>
    %c3_230 = arith.constant 3 : index
    %c0_231 = arith.constant 0 : index
    %c0_232 = arith.constant 0 : index
    %276 = vector.load %arg8[%c3_230, %c0_231, %c0_232] : memref<6x104x20xbf16, #tpu.memory_space<vmem>>, vector<1x104x20xbf16>
    %277 = vector.shape_cast %276 : vector<1x104x20xbf16> to vector<104x20xbf16>
    %cst_233 = arith.constant dense<0.000000e+00> : vector<11x20xf32>
    %278 = tpu.matmul %275, %277, %cst_233 {dimension_numbers = #tpu.dot_dimension_numbers<[1], [0], [0], [1], [0, 0, 1, 1], [], []>} : vector<11x104xbf16>, vector<104x20xbf16>, vector<11x20xf32> -> vector<11x20xf32>
    %279 = vector.extract_strided_slice %255 {offsets = [1, 0], sizes = [11, 104], strides = [1, 1]} : vector<13x104xbf16> to vector<11x104xbf16>
    %c4_234 = arith.constant 4 : index
    %c0_235 = arith.constant 0 : index
    %c0_236 = arith.constant 0 : index
    %280 = vector.load %arg8[%c4_234, %c0_235, %c0_236] : memref<6x104x20xbf16, #tpu.memory_space<vmem>>, vector<1x104x20xbf16>
    %281 = vector.shape_cast %280 : vector<1x104x20xbf16> to vector<104x20xbf16>
    %cst_237 = arith.constant dense<0.000000e+00> : vector<11x20xf32>
    %282 = tpu.matmul %279, %281, %cst_237 {dimension_numbers = #tpu.dot_dimension_numbers<[1], [0], [0], [1], [0, 0, 1, 1], [], []>} : vector<11x104xbf16>, vector<104x20xbf16>, vector<11x20xf32> -> vector<11x20xf32>
    %283 = arith.addf %278, %282 : vector<11x20xf32>
    %284 = vector.extract_strided_slice %255 {offsets = [2, 0], sizes = [11, 104], strides = [1, 1]} : vector<13x104xbf16> to vector<11x104xbf16>
    %c5_238 = arith.constant 5 : index
    %c0_239 = arith.constant 0 : index
    %c0_240 = arith.constant 0 : index
    %285 = vector.load %arg8[%c5_238, %c0_239, %c0_240] : memref<6x104x20xbf16, #tpu.memory_space<vmem>>, vector<1x104x20xbf16>
    %286 = vector.shape_cast %285 : vector<1x104x20xbf16> to vector<104x20xbf16>
    %cst_241 = arith.constant dense<0.000000e+00> : vector<11x20xf32>
    %287 = tpu.matmul %284, %286, %cst_241 {dimension_numbers = #tpu.dot_dimension_numbers<[1], [0], [0], [1], [0, 0, 1, 1], [], []>} : vector<11x104xbf16>, vector<104x20xbf16>, vector<11x20xf32> -> vector<11x20xf32>
    %288 = arith.addf %283, %287 : vector<11x20xf32>
    %289 = vector.broadcast %256 : vector<1x20xf32> to vector<11x20xf32>
    %290 = arith.addf %288, %289 : vector<11x20xf32>
    %cst_242 = arith.constant 0.000000e+00 : f32
    %291 = vector.broadcast %cst_242 : f32 to vector<11x20xf32>
    %292 = arith.maximumf %290, %291 : vector<11x20xf32>
    %293 = arith.maximumf %274, %292 : vector<11x20xf32>
    %294 = arith.truncf %293 : vector<11x20xf32> to vector<11x20xbf16>
    %c0_243 = arith.constant 0 : index
    %c0_244 = arith.constant 0 : index
    %c0_245 = arith.constant 0 : index
    %295 = vector.load %arg10[%c0_243, %c0_244, %c0_245] : memref<2x5x11xbf16, #tpu.memory_space<vmem>>, vector<1x5x11xbf16>
    %296 = vector.shape_cast %295 : vector<1x5x11xbf16> to vector<5x11xbf16>
    %cst_246 = arith.constant dense<0.000000e+00> : vector<5x20xf32>
    %297 = tpu.matmul %296, %294, %cst_246 {dimension_numbers = #tpu.dot_dimension_numbers<[1], [0], [0], [1], [0, 0, 1, 1], [], []>} : vector<5x11xbf16>, vector<11x20xbf16>, vector<5x20xf32> -> vector<5x20xf32>
    %c1_247 = arith.constant 1 : index
    %c0_248 = arith.constant 0 : index
    %c0_249 = arith.constant 0 : index
    %298 = vector.load %arg10[%c1_247, %c0_248, %c0_249] : memref<2x5x11xbf16, #tpu.memory_space<vmem>>, vector<1x5x11xbf16>
    %299 = vector.shape_cast %298 : vector<1x5x11xbf16> to vector<5x11xbf16>
    %cst_250 = arith.constant dense<0.000000e+00> : vector<5x20xf32>
    %300 = tpu.matmul %299, %294, %cst_250 {dimension_numbers = #tpu.dot_dimension_numbers<[1], [0], [0], [1], [0, 0, 1, 1], [], []>} : vector<5x11xbf16>, vector<11x20xbf16>, vector<5x20xf32> -> vector<5x20xf32>
    %301 = arith.maximumf %297, %300 : vector<5x20xf32>
    %302 = vector.extract_strided_slice %301 {offsets = [0, 0], sizes = [1, 20], strides = [1, 1]} : vector<5x20xf32> to vector<1x20xf32>
    %c1_251 = arith.constant 1 : index
    %c0_252 = arith.constant 0 : index
    %303 = vector.load %arg18[%c1_251, %c0_252] : memref<2x100xf32, #tpu.memory_space<vmem>>, vector<1x20xf32>
    tpu.vector_store %arg18[%c1_251, %c0_252], %302 {strides = array<i32>} : memref<2x100xf32, #tpu.memory_space<vmem>>, vector<1x20xf32>,
    %304 = vector.extract_strided_slice %301 {offsets = [1, 0], sizes = [1, 20], strides = [1, 1]} : vector<5x20xf32> to vector<1x20xf32>
    %c1_253 = arith.constant 1 : index
    %c20_254 = arith.constant 20 : index
    %305 = vector.load %arg18[%c1_253, %c20_254] : memref<2x100xf32, #tpu.memory_space<vmem>>, vector<1x20xf32>
    tpu.vector_store %arg18[%c1_253, %c20_254], %304 {strides = array<i32>} : memref<2x100xf32, #tpu.memory_space<vmem>>, vector<1x20xf32>,
    %306 = vector.extract_strided_slice %301 {offsets = [2, 0], sizes = [1, 20], strides = [1, 1]} : vector<5x20xf32> to vector<1x20xf32>
    %c1_255 = arith.constant 1 : index
    %c40_256 = arith.constant 40 : index
    %307 = vector.load %arg18[%c1_255, %c40_256] : memref<2x100xf32, #tpu.memory_space<vmem>>, vector<1x20xf32>
    tpu.vector_store %arg18[%c1_255, %c40_256], %306 {strides = array<i32>} : memref<2x100xf32, #tpu.memory_space<vmem>>, vector<1x20xf32>,
    %308 = vector.extract_strided_slice %301 {offsets = [3, 0], sizes = [1, 20], strides = [1, 1]} : vector<5x20xf32> to vector<1x20xf32>
    %c1_257 = arith.constant 1 : index
    %c60_258 = arith.constant 60 : index
    %309 = vector.load %arg18[%c1_257, %c60_258] : memref<2x100xf32, #tpu.memory_space<vmem>>, vector<1x20xf32>
    tpu.vector_store %arg18[%c1_257, %c60_258], %308 {strides = array<i32>} : memref<2x100xf32, #tpu.memory_space<vmem>>, vector<1x20xf32>,
    %310 = vector.extract_strided_slice %301 {offsets = [4, 0], sizes = [1, 20], strides = [1, 1]} : vector<5x20xf32> to vector<1x20xf32>
    %c1_259 = arith.constant 1 : index
    %c80_260 = arith.constant 80 : index
    %311 = vector.load %arg18[%c1_259, %c80_260] : memref<2x100xf32, #tpu.memory_space<vmem>>, vector<1x20xf32>
    tpu.vector_store %arg18[%c1_259, %c80_260], %310 {strides = array<i32>} : memref<2x100xf32, #tpu.memory_space<vmem>>, vector<1x20xf32>,
    %c0_261 = arith.constant 0 : index
    %c0_262 = arith.constant 0 : index
    %312 = vector.load %arg18[%c0_261, %c0_262] : memref<2x100xf32, #tpu.memory_space<vmem>>, vector<2x100xf32>
    %313 = arith.truncf %312 : vector<2x100xf32> to vector<2x100xbf16>
    %c0_263 = arith.constant 0 : index
    %c0_264 = arith.constant 0 : index
    %314 = vector.load %arg11[%c0_263, %c0_264] : memref<100x128xbf16, #tpu.memory_space<vmem>>, vector<100x128xbf16>
    %cst_265 = arith.constant dense<0.000000e+00> : vector<2x128xf32>
    %315 = tpu.matmul %313, %314, %cst_265 {dimension_numbers = #tpu.dot_dimension_numbers<[1], [0], [0], [1], [0, 0, 1, 1], [], []>} : vector<2x100xbf16>, vector<100x128xbf16>, vector<2x128xf32> -> vector<2x128xf32>
    %c0_266 = arith.constant 0 : index
    %c0_267 = arith.constant 0 : index
    %316 = vector.load %arg12[%c0_266, %c0_267] : memref<1x128xf32, #tpu.memory_space<vmem>>, vector<1x128xf32>
    %317 = vector.broadcast %316 : vector<1x128xf32> to vector<2x128xf32>
    %318 = arith.addf %315, %317 : vector<2x128xf32>
    %cst_268 = arith.constant 0.000000e+00 : f32
    %319 = vector.broadcast %cst_268 : f32 to vector<2x128xf32>
    %320 = arith.maximumf %318, %319 : vector<2x128xf32>
    %321 = arith.truncf %320 : vector<2x128xf32> to vector<2x128xbf16>
    %c0_269 = arith.constant 0 : index
    %c0_270 = arith.constant 0 : index
    %322 = vector.load %arg13[%c0_269, %c0_270] : memref<128x32xbf16, #tpu.memory_space<vmem>>, vector<128x32xbf16>
    %cst_271 = arith.constant dense<0.000000e+00> : vector<2x32xf32>
    %323 = tpu.matmul %321, %322, %cst_271 {dimension_numbers = #tpu.dot_dimension_numbers<[1], [0], [0], [1], [0, 0, 1, 1], [], []>} : vector<2x128xbf16>, vector<128x32xbf16>, vector<2x32xf32> -> vector<2x32xf32>
    %c0_272 = arith.constant 0 : index
    %c0_273 = arith.constant 0 : index
    %324 = vector.load %arg14[%c0_272, %c0_273] : memref<1x32xf32, #tpu.memory_space<vmem>>, vector<1x32xf32>
    %325 = vector.broadcast %324 : vector<1x32xf32> to vector<2x32xf32>
    %326 = arith.addf %323, %325 : vector<2x32xf32>
    %cst_274 = arith.constant 0.000000e+00 : f32
    %327 = vector.broadcast %cst_274 : f32 to vector<2x32xf32>
    %328 = arith.maximumf %326, %327 : vector<2x32xf32>
    %329 = arith.truncf %328 : vector<2x32xf32> to vector<2x32xbf16>
    %c0_275 = arith.constant 0 : index
    %c0_276 = arith.constant 0 : index
    %330 = vector.load %arg15[%c0_275, %c0_276] : memref<32x1xbf16, #tpu.memory_space<vmem>>, vector<32x1xbf16>
    %cst_277 = arith.constant dense<0.000000e+00> : vector<2x1xf32>
    %331 = tpu.matmul %329, %330, %cst_277 {dimension_numbers = #tpu.dot_dimension_numbers<[1], [0], [0], [1], [0, 0, 1, 1], [], []>} : vector<2x32xbf16>, vector<32x1xbf16>, vector<2x1xf32> -> vector<2x1xf32>
    %c0_278 = arith.constant 0 : index
    %c0_279 = arith.constant 0 : index
    %332 = vector.load %arg16[%c0_278, %c0_279] : memref<1x1xf32, #tpu.memory_space<vmem>>, vector<1x1xf32>
    %333 = vector.broadcast %332 : vector<1x1xf32> to vector<2x1xf32>
    %334 = arith.addf %331, %333 : vector<2x1xf32>
    %c0_280 = arith.constant 0 : index
    %c0_281 = arith.constant 0 : index
    %335 = vector.load %arg17[%c0_280, %c0_281] : memref<2x1xf32, #tpu.memory_space<vmem>>, vector<2x1xf32>
    tpu.vector_store %arg17[%c0_280, %c0_281], %334 {strides = array<i32>} : memref<2x1xf32, #tpu.memory_space<vmem>>, vector<2x1xf32>,
    return
  }
  func.func @transform_0(%arg0: i32) -> (i32, i32, i32) {
    %c0_i32 = arith.constant 0 : i32
    %c0_i32_0 = arith.constant 0 : i32
    %c0_i32_1 = arith.constant 0 : i32
    return %arg0, %c0_i32, %c0_i32_0 : i32, i32, i32
  }
  func.func @transform_1(%arg0: i32) -> (i32, i32, i32) {
    %c0_i32 = arith.constant 0 : i32
    %c0_i32_0 = arith.constant 0 : i32
    %c0_i32_1 = arith.constant 0 : i32
    %c0_i32_2 = arith.constant 0 : i32
    return %c0_i32, %c0_i32_0, %c0_i32_1 : i32, i32, i32
  }
  func.func @transform_2(%arg0: i32) -> (i32, i32) {
    %c0_i32 = arith.constant 0 : i32
    %c0_i32_0 = arith.constant 0 : i32
    %c0_i32_1 = arith.constant 0 : i32
    return %c0_i32, %c0_i32_0 : i32, i32
  }
  func.func @transform_3(%arg0: i32) -> (i32, i32, i32) {
    %c0_i32 = arith.constant 0 : i32
    %c0_i32_0 = arith.constant 0 : i32
    %c0_i32_1 = arith.constant 0 : i32
    %c0_i32_2 = arith.constant 0 : i32
    return %c0_i32, %c0_i32_0, %c0_i32_1 : i32, i32, i32
  }
  func.func @transform_4(%arg0: i32) -> (i32, i32, i32) {
    %c0_i32 = arith.constant 0 : i32
    %c0_i32_0 = arith.constant 0 : i32
    %c0_i32_1 = arith.constant 0 : i32
    %c0_i32_2 = arith.constant 0 : i32
    return %c0_i32, %c0_i32_0, %c0_i32_1 : i32, i32, i32
  }
  func.func @transform_5(%arg0: i32) -> (i32, i32) {
    %c0_i32 = arith.constant 0 : i32
    %c0_i32_0 = arith.constant 0 : i32
    %c0_i32_1 = arith.constant 0 : i32
    return %c0_i32, %c0_i32_0 : i32, i32
  }
  func.func @transform_6(%arg0: i32) -> (i32, i32, i32) {
    %c0_i32 = arith.constant 0 : i32
    %c0_i32_0 = arith.constant 0 : i32
    %c0_i32_1 = arith.constant 0 : i32
    %c0_i32_2 = arith.constant 0 : i32
    return %c0_i32, %c0_i32_0, %c0_i32_1 : i32, i32, i32
  }
  func.func @transform_7(%arg0: i32) -> (i32, i32, i32) {
    %c0_i32 = arith.constant 0 : i32
    %c0_i32_0 = arith.constant 0 : i32
    %c0_i32_1 = arith.constant 0 : i32
    %c0_i32_2 = arith.constant 0 : i32
    return %c0_i32, %c0_i32_0, %c0_i32_1 : i32, i32, i32
  }
  func.func @transform_8(%arg0: i32) -> (i32, i32) {
    %c0_i32 = arith.constant 0 : i32
    %c0_i32_0 = arith.constant 0 : i32
    %c0_i32_1 = arith.constant 0 : i32
    return %c0_i32, %c0_i32_0 : i32, i32
  }
  func.func @transform_9(%arg0: i32) -> (i32, i32, i32) {
    %c0_i32 = arith.constant 0 : i32
    %c0_i32_0 = arith.constant 0 : i32
    %c0_i32_1 = arith.constant 0 : i32
    %c0_i32_2 = arith.constant 0 : i32
    return %c0_i32, %c0_i32_0, %c0_i32_1 : i32, i32, i32
  }
  func.func @transform_10(%arg0: i32) -> (i32, i32) {
    %c0_i32 = arith.constant 0 : i32
    %c0_i32_0 = arith.constant 0 : i32
    %c0_i32_1 = arith.constant 0 : i32
    return %c0_i32, %c0_i32_0 : i32, i32
  }
  func.func @transform_11(%arg0: i32) -> (i32, i32) {
    %c0_i32 = arith.constant 0 : i32
    %c0_i32_0 = arith.constant 0 : i32
    %c0_i32_1 = arith.constant 0 : i32
    return %c0_i32, %c0_i32_0 : i32, i32
  }
  func.func @transform_12(%arg0: i32) -> (i32, i32) {
    %c0_i32 = arith.constant 0 : i32
    %c0_i32_0 = arith.constant 0 : i32
    %c0_i32_1 = arith.constant 0 : i32
    return %c0_i32, %c0_i32_0 : i32, i32
  }
  func.func @transform_13(%arg0: i32) -> (i32, i32) {
    %c0_i32 = arith.constant 0 : i32
    %c0_i32_0 = arith.constant 0 : i32
    %c0_i32_1 = arith.constant 0 : i32
    return %c0_i32, %c0_i32_0 : i32, i32
  }
  func.func @transform_14(%arg0: i32) -> (i32, i32) {
    %c0_i32 = arith.constant 0 : i32
    %c0_i32_0 = arith.constant 0 : i32
    %c0_i32_1 = arith.constant 0 : i32
    return %c0_i32, %c0_i32_0 : i32, i32
  }
  func.func @transform_15(%arg0: i32) -> (i32, i32) {
    %c0_i32 = arith.constant 0 : i32
    %c0_i32_0 = arith.constant 0 : i32
    %c0_i32_1 = arith.constant 0 : i32
    return %c0_i32, %c0_i32_0 : i32, i32
  }
  func.func @transform_16(%arg0: i32) -> (i32, i32) {
    %c0_i32 = arith.constant 0 : i32
    %c0_i32_0 = arith.constant 0 : i32
    return %arg0, %c0_i32 : i32, i32
  }
}

</mosaic_0001>

<bundles_post_ra>
// kernel: simple_conv_net_forward.1
= control target key start
LH: loop header
LB: loop body
LE: loop exit
PB: predicated region body
PF: predicated region fallthrough
CT: control target
= control target key end

     0   :  { %vm500_vm0 = vcmask 1042432   ;;  %vm501_vm1 = vcmask 1043456   ;;  %v17772_v47 = vmov 65535   ;;  %vm190_vm2 = vsmask.f32 7424  ;;  %s17776_s25 = smov 40   ;;  %s22878_s1 = inlined_call_operand.vmem [shape: bf16[6,183,464], index: 1, kind: input, shape index: {}]   ;;  %s22879_s0 = inlined_call_operand.vmem [shape: bf16[2,61,183], index: 0, kind: input, shape index: {}]   ;;  %s22880_s2 = inlined_call_operand.vmem [shape: f32[1,464], index: 2, kind: input, shape index: {}]   ;;  %s22881_s3 = inlined_call_operand.vmem [shape: bf16[2,29,59], index: 3, kind: input, shape index: {}]   ;;  %s22882_s4 = inlined_call_operand.vmem [shape: bf16[6,464,104], index: 4, kind: input, shape index: {}]   ;;  %s22883_s6 = inlined_call_operand.vmem [shape: bf16[2,13,27], index: 6, kind: input, shape index: {}]   ;;  %s22884_s7 = inlined_call_operand.vmem [shape: bf16[6,104,20], index: 7, kind: input, shape index: {}]   ;;  %s22885_s5 = inlined_call_operand.vmem [shape: f32[1,104], index: 5, kind: input, shape index: {}]   ;;  %s22886_s8 = inlined_call_operand.vmem [shape: f32[1,20], index: 8, kind: input, shape index: {}]   ;;  %s22887_s9 = inlined_call_operand.vmem [shape: bf16[2,5,11], index: 9, kind: input, shape index: {}]   ;;  %s22888_s10 = inlined_call_operand.vmem [shape: bf16[100,128], index: 10, kind: input, shape index: {}]   ;;  %s22889_s12 = inlined_call_operand.vmem [shape: bf16[128,32], index: 12, kind: input, shape index: {}]   ;;  %s22890_s11 = inlined_call_operand.vmem [shape: f32[1,128], index: 11, kind: input, shape index: {}]   ;;  %s22891_s14 = inlined_call_operand.vmem [shape: bf16[32,1], index: 14, kind: input, shape index: {}]   ;;  %s22892_s15 = inlined_call_operand.<no memory space> [shape: f32[1,1], index: 15, kind: input, shape index: {}]   ;;  %s22893_s13 = inlined_call_operand.vmem [shape: f32[1,32], index: 13, kind: input, shape index: {}]   ;;  %s22894_s16 = inlined_call_operand.vmem [shape: f32[2,1], index: 16, kind: output, shape index: {}]  }
   0x1   :  { %22902 = sst [smem:[#allocation4_spill]] %s22878_s1  ;;  %v57_v36 = vld [vmem:[%s22879_s0] sm:$0xff]  ;;  %v17979_v37 = vld [vmem:[%s22879_s0 + $0x8] sm:$0xff]  ;;  %v17987_v39 = vld [vmem:[%s22879_s0 + $0x14] ss:$8 sps:$4 sm:$0xff]   ;;  %v502_v48 = vsel %vm500_vm0, 4294967295, %v17772_v47 }
   0x2   :  { %s22903_s23 = sld [smem:[#allocation4_spill]]  ;;  %v17982_v38 = vcombine.high %v57_v36, %v17979_v37  ;;  %v17996_v42 = vcombine.low %v57_v36, %v17979_v37  ;;  %v211_v45 = vshll.u32 %v17987_v39, 16  ;;  %v18018_v54 = vld [vmem:[%s22879_s0 + $0x10] ss:$8 sps:$4 sm:$0xff]   ;;  %v18031_v62 = vsel %vm501_vm1, %v502_v48, 0  ;;  %s17777_s26 = smov 20  }
   0x3   :  { %vm487_vm3 = vcmask 449536   ;;  %v18111_v36 = vld [vmem:[%s22879_s0 + $0x30] sm:$0xff]  ;;  %vm1121_vm4 = vcmask 1046528   ;;  %vm3127_vm5 = vcmask 1044480   ;;  %vm3128_vm6 = vcmask 1045504   ;;  %s17778_s1 = smov 60  }
   0x4   :  { %v204_v43 = vshrl.u32 %v17982_v38, 16  ;;  %v206_v44 = vshll.u32 %v17982_v38, 16  ;;  %v213_v52 = vrot.slane %v211_v45, 1  ;;  %v194_v55 = vshll.u32 %v17996_v42, 16 }
   0x5   :  { %vm3120_vm7 = vcmask 482304   ;;  %vm3758_vm8 = vcmask 654336   ;;  %vm17775_vm9 = vmmov 0   ;;  %vm5538_vm10 = vcmask 220160  }
   0x6   :  { %v208_v51 = vrot.slane %v206_v44, 1  ;;  %vm5715_vm11 = vcmask 850944   ;;  %vm6263_vm12 = vcmask 89088   ;;  %vm6356_vm13 = vcmask 155648  }
   0x7   :  { %vm6362_vm14 = vcmask 320673   ;;  %vm6367_vm15 = vcmask 485698   ;;  %vm6372_vm0 = vcmask 650723  }
   0x8   :  { %v16435_v0 = vld [vmem:[%s22903_s23 + $0x174] ss:$16 sps:$4 sm:$0xff]   ;;  %v16437_v1 = vld [vmem:[%s22903_s23 + $0x17c] ss:$16 sps:$4 sm:$0xff]   ;;  %v16439_v2 = vld [vmem:[%s22903_s23 + $0x170] ss:$16 sps:$4 sm:$0xff]   ;;  %v209_v60 = vor.u32 %v208_v51, %v204_v43 }
   0x9   :  { %516 = vmatprep.subr.bf16.mxu0 %v16435_v0  ;;  %v16440_v3 = vld [vmem:[%s22903_s23 + $0x178] ss:$16 sps:$4 sm:$0xff]   ;;  %589 = vmatprep.subr.bf16.mxu1 %v16437_v1  ;;  %v16441_v4 = vld [vmem:[%s22903_s23 + $0x194] ss:$16 sps:$4 sm:$0xff]   ;;  %v16443_v5 = vld [vmem:[%s22903_s23 + $0x19c] ss:$16 sps:$4 sm:$0xff]  }
   0xa   :  { %517 = vmatpush1.bf16.msra.mxu0 %v16439_v2  ;;  %590 = vmatpush1.bf16.msra.mxu1 %v16440_v3  ;;  %v16445_v6 = vld [vmem:[%s22903_s23 + $0x190] ss:$16 sps:$4 sm:$0xff]   ;;  %v16446_v7 = vld [vmem:[%s22903_s23 + $0x198] ss:$16 sps:$4 sm:$0xff]   ;;  %v16447_v8 = vld [vmem:[%s22903_s23 + $0x1b4] ss:$16 sps:$4 sm:$0xff]   ;;  %v18037_v1 = vsel %vm190_vm2, %v209_v60, %v213_v52 }
   0xb   :  { %518 = vmatprep.subr.bf16.mxu0 %v16441_v4  ;;  %591 = vmatprep.subr.bf16.mxu1 %v16443_v5  ;;  %v16449_v9 = vld [vmem:[%s22903_s23 + $0x1bc] ss:$16 sps:$4 sm:$0xff]   ;;  %v16451_v10 = vld [vmem:[%s22903_s23 + $0x1b0] ss:$16 sps:$4 sm:$0xff]   ;;  %v16452_v11 = vld [vmem:[%s22903_s23 + $0x1b8] ss:$16 sps:$4 sm:$0xff]  }
   0xc   :  { %v16453_v12 = vld [vmem:[%s22903_s23 + $0x1d4] ss:$16 sps:$4 sm:$0xff]   ;;  %v16455_v13 = vld [vmem:[%s22903_s23 + $0x1dc] ss:$16 sps:$4 sm:$0xff]   ;;  %v16457_v14 = vld [vmem:[%s22903_s23 + $0x1d0] ss:$16 sps:$4 sm:$0xff]   ;;  %13063 = vmatprep.mubr.msk.bf16.mxu0 %vm487_vm3, %v18037_v1  ;;  %13067 = vmatprep.mubr.msk.bf16.mxu1 %vm487_vm3, %v18037_v1 }
   0xd   :  { %v16458_v15 = vld [vmem:[%s22903_s23 + $0x1d8] ss:$16 sps:$4 sm:$0xff]   ;;  %v16459_v16 = vld [vmem:[%s22903_s23 + $0x1f4] ss:$16 sps:$4 sm:$0xff]   ;;  %v16461_v17 = vld [vmem:[%s22903_s23 + $0x1fc] ss:$16 sps:$4 sm:$0xff]  }
   0xe   :  { %519 = vmatpush1.bf16.msra.mxu0 %v16445_v6  ;;  %592 = vmatpush1.bf16.msra.mxu1 %v16446_v7  ;;  %v16463_v18 = vld [vmem:[%s22903_s23 + $0x1f0] ss:$16 sps:$4 sm:$0xff]   ;;  %v16464_v19 = vld [vmem:[%s22903_s23 + $0x1f8] ss:$16 sps:$4 sm:$0xff]   ;;  %v16465_v20 = vld [vmem:[%s22903_s23 + $0x214] ss:$16 sps:$4 sm:$0xff]  }
   0xf   :  { %520 = vmatprep.subr.bf16.mxu0 %v16447_v8  ;;  %593 = vmatprep.subr.bf16.mxu1 %v16449_v9  ;;  %v16467_v21 = vld [vmem:[%s22903_s23 + $0x21c] ss:$16 sps:$4 sm:$0xff]   ;;  %v16469_v22 = vld [vmem:[%s22903_s23 + $0x210] ss:$16 sps:$4 sm:$0xff]   ;;  %v16470_v23 = vld [vmem:[%s22903_s23 + $0x218] ss:$16 sps:$4 sm:$0xff]  }
  0x10   :  { %v16471_v24 = vld [vmem:[%s22903_s23 + $0x234] ss:$16 sps:$4 sm:$0xff]   ;;  %v16473_v25 = vld [vmem:[%s22903_s23 + $0x23c] ss:$16 sps:$4 sm:$0xff]   ;;  %v16475_v26 = vld [vmem:[%s22903_s23 + $0x230] ss:$16 sps:$4 sm:$0xff]  }
  0x11   :  { %v16476_v27 = vld [vmem:[%s22903_s23 + $0x238] ss:$16 sps:$4 sm:$0xff]   ;;  %v16477_v28 = vld [vmem:[%s22903_s23 + $0x254] ss:$16 sps:$4 sm:$0xff]   ;;  %v16479_v29 = vld [vmem:[%s22903_s23 + $0x25c] ss:$16 sps:$4 sm:$0xff]  }
  0x12   :  { %521 = vmatpush1.bf16.msra.mxu0 %v16451_v10  ;;  %594 = vmatpush1.bf16.msra.mxu1 %v16452_v11  ;;  %v16481_v30 = vld [vmem:[%s22903_s23 + $0x250] ss:$16 sps:$4 sm:$0xff]   ;;  %v16482_v31 = vld [vmem:[%s22903_s23 + $0x258] ss:$16 sps:$4 sm:$0xff]   ;;  %v16483_v32 = vld [vmem:[%s22903_s23 + $0x274] ss:$16 sps:$4 sm:$0xff]  }
  0x13   :  { %522 = vmatprep.subr.bf16.mxu0 %v16453_v12  ;;  %595 = vmatprep.subr.bf16.mxu1 %v16455_v13  ;;  %v16485_v33 = vld [vmem:[%s22903_s23 + $0x27c] ss:$16 sps:$4 sm:$0xff]   ;;  %v16487_v34 = vld [vmem:[%s22903_s23 + $0x270] ss:$16 sps:$4 sm:$0xff]   ;;  %v16488_v35 = vld [vmem:[%s22903_s23 + $0x278] ss:$16 sps:$4 sm:$0xff]  }
  0x14   :  { %v16489_v40 = vld [vmem:[%s22903_s23 + $0x294] ss:$16 sps:$4 sm:$0xff]   ;;  %v16491_v41 = vld [vmem:[%s22903_s23 + $0x29c] ss:$16 sps:$4 sm:$0xff]   ;;  %v16493_v50 = vld [vmem:[%s22903_s23 + $0x290] ss:$16 sps:$4 sm:$0xff]  }
  0x15   :  { %v13005_v46 = vld [vmem:[%s22903_s23 + $0x2d0] sm:$0xff]  ;;  %v13006_v49 = vld [vmem:[%s22903_s23 + $0x2d8] sm:$0xff]  ;;  %v192_v3 = vshrl.u32 %v17996_v42, 16  ;;  %v196_v4 = vrot.slane %v194_v55, 1  ;;  %v199_v5 = vshll.u32 %v18018_v54, 16 }
  0x16   :  { %523 = vmatpush1.bf16.msra.mxu0 %v16457_v14  ;;  %596 = vmatpush1.bf16.msra.mxu1 %v16458_v15  ;;  %v16494_v53 = vld [vmem:[%s22903_s23 + $0x298] ss:$16 sps:$4 sm:$0xff]   ;;  %v16495_v56 = vld [vmem:[%s22903_s23 + $0x2b4] ss:$16 sps:$4 sm:$0xff]   ;;  %v16497_v57 = vld [vmem:[%s22903_s23 + $0x2bc] ss:$16 sps:$4 sm:$0xff]   ;;  %v13060_v58 = vcombine.high %v13005_v46, %v13005_v46  ;;  %v13062_v59 = vcombine.high %v13006_v49, %v13006_v49  ;;  %v13059_v0 = vcombine.low %v13005_v46, %v13005_v46 }
  0x17   :  { %524 = vmatprep.subr.bf16.mxu0 %v16459_v16  ;;  %597 = vmatprep.subr.bf16.mxu1 %v16461_v17  ;;  %v16499_v61 = vld [vmem:[%s22903_s23 + $0x2b0] ss:$16 sps:$4 sm:$0xff]   ;;  %v16500_v63 = vld [vmem:[%s22903_s23 + $0x2b8] ss:$16 sps:$4 sm:$0xff]   ;;  %v13061_v2 = vcombine.low %v13006_v49, %v13006_v49  ;;  %v197_v10 = vor.u32 %v196_v4, %v192_v3  ;;  %v201_v11 = vrot.slane %v199_v5, 1  ;;  %v223_v17 = vshrl.u32 %v17987_v39, 16 }
  0x18   :  { %v508_v6 = vand.u32 %v13060_v58, %v18031_v62  ;;  %v514_v7 = vand.u32 %v13062_v59, %v18031_v62  ;;  %v505_v8 = vand.u32 %v13059_v0, %v18031_v62  ;;  %v16510_v12 = vld [vmem:[%s22903_s23 + $0x4] ss:$16 sps:$4 sm:$0xff]   ;;  %v16513_v13 = vld [vmem:[%s22903_s23 + $0xc] ss:$16 sps:$4 sm:$0xff]   ;;  %v16508_v14 = vld [vmem:[%s22903_s23] ss:$16 sps:$4 sm:$0xff]  }
  0x19   :  { %v511_v9 = vand.u32 %v13061_v2, %v18031_v62  ;;  %v16511_v15 = vld [vmem:[%s22903_s23 + $0x8] ss:$16 sps:$4 sm:$0xff]   ;;  %v16518_v16 = vld [vmem:[%s22903_s23 + $0x24] ss:$16 sps:$4 sm:$0xff]   ;;  %v16533_v48 = vld [vmem:[%s22903_s23 + $0x6c] ss:$16 sps:$4 sm:$0xff]  }
  0x1a   :  { %525 = vmatpush1.bf16.msra.mxu0 %v16463_v18  ;;  %598 = vmatpush1.bf16.msra.mxu1 %v16464_v19  ;;  %v18066_v18 = vsel %vm190_vm2, %v197_v10, %v201_v11  ;;  %v16521_v19 = vld [vmem:[%s22903_s23 + $0x2c] ss:$16 sps:$4 sm:$0xff]   ;;  %v16531_v55 = vld [vmem:[%s22903_s23 + $0x68] ss:$16 sps:$4 sm:$0xff]   ;;  %v16536_v59 = vld [vmem:[%s22903_s23 + $0x84] ss:$16 sps:$4 sm:$0xff]  }
  0x1b   :  { %526 = vmatprep.subr.bf16.mxu0 %v16465_v20  ;;  %599 = vmatprep.subr.bf16.mxu1 %v16467_v21  ;;  %v18074_v20 = vld [vmem:[%s22879_s0 + $0x24] ss:$8 sps:$4 sm:$0xff]   ;;  %v215_v21 = vshrl.u32 %v18018_v54, 16  ;;  %v16534_v0 = vld [vmem:[%s22903_s23 + $0x80] ss:$16 sps:$4 sm:$0xff]  }
  0x1c   :  { %v16539_v60 = vld [vmem:[%s22903_s23 + $0x8c] ss:$16 sps:$4 sm:$0xff]   ;;  %v16537_v2 = vld [vmem:[%s22903_s23 + $0x88] ss:$16 sps:$4 sm:$0xff]   ;;  %v16542_v4 = vld [vmem:[%s22903_s23 + $0xa4] ss:$16 sps:$4 sm:$0xff]  }
  0x1d   :  { %v16545_v5 = vld [vmem:[%s22903_s23 + $0xac] ss:$16 sps:$4 sm:$0xff]   ;;  %v16550_v10 = vld [vmem:[%s22903_s23 + $0xc4] ss:$16 sps:$4 sm:$0xff]  }
  0x1e   :  { %527 = vmatpush1.bf16.msra.mxu0 %v16469_v22  ;;  %600 = vmatpush1.bf16.msra.mxu1 %v16470_v23  ;;  %v16516_v22 = vld [vmem:[%s22903_s23 + $0x20] ss:$16 sps:$4 sm:$0xff]   ;;  %v16519_v23 = vld [vmem:[%s22903_s23 + $0x28] ss:$16 sps:$4 sm:$0xff]  }
  0x1f   :  { %528 = vmatprep.subr.bf16.mxu0 %v16471_v24  ;;  %601 = vmatprep.subr.bf16.mxu1 %v16473_v25  ;;  %v225_v24 = vor.u32 %v223_v17, %v213_v52  ;;  %v227_v25 = vshll.u32 %v18074_v20, 16  ;;  %v16555_v17 = vld [vmem:[%s22903_s23 + $0xe0] ss:$16 sps:$4 sm:$0xff]  }
  0x22   :  { %529 = vmatpush1.bf16.msra.mxu0 %v16475_v26  ;;  %602 = vmatpush1.bf16.msra.mxu1 %v16476_v27  ;;  %v18089_v26 = vld [vmem:[%s22879_s0 + $0x20] ss:$8 sps:$4 sm:$0xff]   ;;  %v16524_v27 = vld [vmem:[%s22903_s23 + $0x44] ss:$16 sps:$4 sm:$0xff]  }
  0x23   :  { %530 = vmatprep.subr.bf16.mxu0 %v16477_v28  ;;  %603 = vmatprep.subr.bf16.mxu1 %v16479_v29  ;;  %v16527_v28 = vld [vmem:[%s22903_s23 + $0x4c] ss:$16 sps:$4 sm:$0xff]   ;;  %v229_v29 = vrot.slane %v227_v25, 1  ;;  %v231_v46 = vshrl.u32 %v18089_v26, 16  ;;  %v16571_v25 = vld [vmem:[%s22903_s23 + $0x124] ss:$16 sps:$4 sm:$0xff]  }
  0x26   :  { %531 = vmatpush1.bf16.msra.mxu0 %v16481_v30  ;;  %604 = vmatpush1.bf16.msra.mxu1 %v16482_v31  ;;  %v16522_v30 = vld [vmem:[%s22903_s23 + $0x40] ss:$16 sps:$4 sm:$0xff]   ;;  %v16525_v31 = vld [vmem:[%s22903_s23 + $0x48] ss:$16 sps:$4 sm:$0xff]  }
  0x27   :  { %532 = vmatprep.subr.bf16.mxu0 %v16483_v32  ;;  %605 = vmatprep.subr.bf16.mxu1 %v16485_v33  ;;  %v217_v32 = vor.u32 %v215_v21, %v201_v11  ;;  %v219_v33 = vshll.u32 %v18089_v26, 16  ;;  %v16553_v11 = vld [vmem:[%s22903_s23 + $0xcc] ss:$16 sps:$4 sm:$0xff]   ;;  %v16564_v21 = vld [vmem:[%s22903_s23 + $0x104] ss:$16 sps:$4 sm:$0xff]  }
  0x29   :  { %v221_v43 = vrot.slane %v219_v33, 1  ;;  %v16580_v33 = vld [vmem:[%s22903_s23 + $0x14c] ss:$16 sps:$4 sm:$0xff]  }
  0x2a   :  { %533 = vmatpush1.bf16.msra.mxu0 %v16487_v34  ;;  %606 = vmatpush1.bf16.msra.mxu1 %v16488_v35  ;;  %v239_v34 = vshrl.u32 %v18074_v20, 16  ;;  %v18106_v35 = vsel %vm190_vm2, %v225_v24, %v229_v29  ;;  %v16565_v24 = vld [vmem:[%s22903_s23 + $0x108] ss:$16 sps:$4 sm:$0xff]  }
  0x2b   :  { %534 = vmatprep.subr.bf16.mxu0 %v16489_v40  ;;  %607 = vmatprep.subr.bf16.mxu1 %v16491_v41  ;;  %v64_v40 = vld [vmem:[%s22879_s0 + $0x38] sm:$0x33]  ;;  %v16530_v41 = vld [vmem:[%s22903_s23 + $0x64] ss:$16 sps:$4 sm:$0xff]   ;;  %v18134_v49 = vsel %vm190_vm2, %v217_v32, %v221_v43 }
  0x2c   :  { %v18120_v44 = vcombine.high %v18111_v36, %v64_v40  ;;  %v18123_v45 = vcombine.low %v18111_v36, %v64_v40  ;;  %v16577_v32 = vld [vmem:[%s22903_s23 + $0x144] ss:$16 sps:$4 sm:$0xff]  }
  0x2e   :  { %535 = vmatpush1.bf16.msra.mxu0 %v16493_v50  ;;  %608 = vmatpush1.bf16.msra.mxu1 %v16494_v53  ;;  %v241_v50 = vor.u32 %v239_v34, %v229_v29  ;;  %v243_v51 = vshll.u32 %v18120_v44, 16  ;;  %v235_v52 = vshll.u32 %v18123_v45, 16  ;;  %v16528_v53 = vld [vmem:[%s22903_s23 + $0x60] ss:$16 sps:$4 sm:$0xff]   ;;  %v110_v29 = vld [vmem:[%s22903_s23 + $0x168] sm:$0xff] }
  0x2f   :  { %536 = vmatprep.subr.bf16.mxu0 %v16495_v56  ;;  %609 = vmatprep.subr.bf16.mxu1 %v16497_v57  ;;  %v233_v57 = vor.u32 %v231_v46, %v221_v43  ;;  %v13118_v40 = vcombine.high %v110_v29, %v110_v29  ;;  %v16578_v43 = vld [vmem:[%s22903_s23 + $0x148] ss:$16 sps:$4 sm:$0xff]  }
  0x30   :  { %v245_v56 = vrot.slane %v243_v51, 1  ;;  %v237_v58 = vrot.slane %v235_v52, 1 }
  0x31   :  { %v914_v51 = vand.u32 %v13118_v40, %v18031_v62  ;;  %v16627_v40 = vld [vmem:[%s22903_s23 + $0x3c0] ss:$16 sps:$4 sm:$0xff]  }
  0x32   :  { %537 = vmatpush1.bf16.msra.mxu0 %v16499_v61  ;;  %610 = vmatpush1.bf16.msra.mxu1 %v16500_v63  ;;  %v18153_v61 = vsel %vm190_vm2, %v241_v50, %v245_v56  ;;  %v250_v63 = vshrl.u32 %v18120_v44, 16  ;;  %v18167_v3 = vsel %vm190_vm2, %v233_v57, %v237_v58  ;;  %v16585_v57 = vld [vmem:[%s22903_s23 + $0x2e0] ss:$16 sps:$4 sm:$0xff]  }
  0x33   :  { %538 = vmatprep.subr.bf16.mxu0 %v508_v6  ;;  %611 = vmatprep.subr.bf16.mxu1 %v514_v7  ;;  %v16540_v7 = vld [vmem:[%s22903_s23 + $0xa0] ss:$16 sps:$4 sm:$0xff]  }
  0x34   :  { %v18175_v6 = vor.u32 %v250_v63, %v245_v56  ;;  %v16590_v56 = vld [vmem:[%s22903_s23 + $0x2ec] ss:$16 sps:$4 sm:$0xff]   ;;  %v16591_v63 = vld [vmem:[%s22903_s23 + $0x300] ss:$16 sps:$4 sm:$0xff]  }
  0x36   :  { %539 = vmatpush1.bf16.msra.mxu0 %v505_v8  ;;  %612 = vmatpush1.bf16.msra.mxu1 %v511_v9  ;;  %v247_v8 = vshrl.u32 %v18123_v45, 16  ;;  %v16543_v9 = vld [vmem:[%s22903_s23 + $0xa8] ss:$16 sps:$4 sm:$0xff]  }
  0x37   :  { %916 = vmatprep.subr.bf16.mxu0 %v16510_v12  ;;  %989 = vmatprep.subr.bf16.mxu1 %v16513_v13  ;;  %v16548_v12 = vld [vmem:[%s22903_s23 + $0xc0] ss:$16 sps:$4 sm:$0xff]  }
  0x38   :  { %v18199_v13 = vor.u32 %v247_v8, %v237_v58  ;;  %v16588_v58 = vld [vmem:[%s22903_s23 + $0x2e8] ss:$16 sps:$4 sm:$0xff]   ;;  %v16605_v8 = vld [vmem:[%s22903_s23 + $0x344] ss:$16 sps:$4 sm:$0xff]  }
  0x39   :  { %549 = vmatmul.mubr.bf16.vlgmr.msra.gmra.mrb[0].mxu0 %v18066_v18  ;;  %622 = vmatmul.mubr.bf16.vlgmr.msra.gmra.mrb[0].mxu1 %v18066_v18 }
  0x3a   :  { %917 = vmatpush1.bf16.msra.mxu0 %v16508_v14  ;;  %990 = vmatpush1.bf16.msra.mxu1 %v16511_v15  ;;  %v16551_v14 = vld [vmem:[%s22903_s23 + $0xc8] ss:$16 sps:$4 sm:$0xff]   ;;  %v16557_v15 = vld [vmem:[%s22903_s23 + $0xe4] ss:$16 sps:$4 sm:$0xff]  }
  0x3b   :  { %918 = vmatprep.subr.bf16.mxu0 %v16518_v16  ;;  %991 = vmatprep.subr.bf16.mxu1 %v16521_v19  ;;  %v16560_v16 = vld [vmem:[%s22903_s23 + $0xec] ss:$16 sps:$4 sm:$0xff]   ;;  %v16558_v19 = vld [vmem:[%s22903_s23 + $0xe8] ss:$16 sps:$4 sm:$0xff]  }
  0x3c   :  { %13064 = vmatprep.mubr.msk.bf16.mxu0 %vm487_vm3, %v18106_v35  ;;  %13068 = vmatprep.mubr.msk.bf16.mxu1 %vm487_vm3, %v18106_v35 }
  0x3e   :  { %919 = vmatpush1.bf16.msra.mxu0 %v16516_v22  ;;  %992 = vmatpush1.bf16.msra.mxu1 %v16519_v23  ;;  %v16567_v22 = vld [vmem:[%s22903_s23 + $0x10c] ss:$16 sps:$4 sm:$0xff]   ;;  %v16562_v23 = vld [vmem:[%s22903_s23 + $0x100] ss:$16 sps:$4 sm:$0xff]  }
  0x3f   :  { %920 = vmatprep.subr.bf16.mxu0 %v16524_v27  ;;  %993 = vmatprep.subr.bf16.mxu1 %v16527_v28  ;;  %v16574_v27 = vld [vmem:[%s22903_s23 + $0x12c] ss:$16 sps:$4 sm:$0xff]   ;;  %v109_v28 = vld [vmem:[%s22903_s23 + $0x160] sm:$0xff] }
  0x40   :  { %v13116_v34 = vcombine.high %v109_v28, %v109_v28  ;;  %v13115_v46 = vcombine.low %v109_v28, %v109_v28  ;;  %v16621_v28 = vld [vmem:[%s22903_s23 + $0x3a0] ss:$16 sps:$4 sm:$0xff]  }
  0x41   :  { %559 = vmatmul.mubr.bf16.gmra.mrb[4].mxu0 %v18134_v49  ;;  %632 = vmatmul.mubr.bf16.gmra.mrb[4].mxu1 %v18134_v49 }
  0x42   :  { %921 = vmatpush1.bf16.msra.mxu0 %v16522_v30  ;;  %994 = vmatpush1.bf16.msra.mxu1 %v16525_v31  ;;  %v16569_v30 = vld [vmem:[%s22903_s23 + $0x120] ss:$16 sps:$4 sm:$0xff]   ;;  %v16572_v31 = vld [vmem:[%s22903_s23 + $0x128] ss:$16 sps:$4 sm:$0xff]   ;;  %v908_v50 = vand.u32 %v13116_v34, %v18031_v62  ;;  %v905_v52 = vand.u32 %v13115_v46, %v18031_v62  ;;  %v16638_v46 = vld [vmem:[%s22903_s23 + $0x3ec] ss:$16 sps:$4 sm:$0xff]  }
  0x43   :  { %922 = vmatprep.subr.bf16.mxu0 %v16530_v41  ;;  %995 = vmatprep.subr.bf16.mxu1 %v16533_v48  ;;  %v16575_v41 = vld [vmem:[%s22903_s23 + $0x140] ss:$16 sps:$4 sm:$0xff]   ;;  %v13117_v48 = vcombine.low %v110_v29, %v110_v29 }
  0x44   :  { %13065 = vmatprep.mubr.msk.bf16.mxu0 %vm487_vm3, %v18153_v61  ;;  %13069 = vmatprep.mubr.msk.bf16.mxu1 %vm487_vm3, %v18153_v61 }
  0x46   :  { %923 = vmatpush1.bf16.msra.mxu0 %v16528_v53  ;;  %996 = vmatpush1.bf16.msra.mxu1 %v16531_v55  ;;  %v911_v53 = vand.u32 %v13117_v48, %v18031_v62  ;;  %v16587_v55 = vld [vmem:[%s22903_s23 + $0x2e4] ss:$16 sps:$4 sm:$0xff]   ;;  %v16633_v48 = vld [vmem:[%s22903_s23 + $0x3e0] ss:$16 sps:$4 sm:$0xff]  }
  0x47   :  { %924 = vmatprep.subr.bf16.mxu0 %v16536_v59  ;;  %997 = vmatprep.subr.bf16.mxu1 %v16539_v60  ;;  %v16593_v59 = vld [vmem:[%s22903_s23 + $0x304] ss:$16 sps:$4 sm:$0xff]   ;;  %v16596_v60 = vld [vmem:[%s22903_s23 + $0x30c] ss:$16 sps:$4 sm:$0xff]  }
  0x49   :  { %569 = vmatmul.mubr.bf16.gmra.mrb[8].mxu0 %v18167_v3  ;;  %642 = vmatmul.mubr.bf16.gmra.mrb[8].mxu1 %v18167_v3 }
  0x4a   :  { %925 = vmatpush1.bf16.msra.mxu0 %v16534_v0  ;;  %998 = vmatpush1.bf16.msra.mxu1 %v16537_v2  ;;  %v16594_v0 = vld [vmem:[%s22903_s23 + $0x308] ss:$16 sps:$4 sm:$0xff]   ;;  %v16599_v2 = vld [vmem:[%s22903_s23 + $0x324] ss:$16 sps:$4 sm:$0xff]  }
  0x4b   :  { %926 = vmatprep.subr.bf16.mxu0 %v16542_v4  ;;  %999 = vmatprep.subr.bf16.mxu1 %v16545_v5  ;;  %v16602_v4 = vld [vmem:[%s22903_s23 + $0x32c] ss:$16 sps:$4 sm:$0xff]   ;;  %v16597_v5 = vld [vmem:[%s22903_s23 + $0x320] ss:$16 sps:$4 sm:$0xff]  }
  0x4c   :  { %13066 = vmatprep.mubr.msk.bf16.mxu0 %vm487_vm3, %v18175_v6  ;;  %13070 = vmatprep.mubr.msk.bf16.mxu1 %vm487_vm3, %v18175_v6 }
  0x4e   :  { %927 = vmatpush1.bf16.msra.mxu0 %v16540_v7  ;;  %1000 = vmatpush1.bf16.msra.mxu1 %v16543_v9  ;;  %v16600_v7 = vld [vmem:[%s22903_s23 + $0x328] ss:$16 sps:$4 sm:$0xff]   ;;  %v16608_v9 = vld [vmem:[%s22903_s23 + $0x34c] ss:$16 sps:$4 sm:$0xff]  }
  0x4f   :  { %928 = vmatprep.subr.bf16.mxu0 %v16550_v10  ;;  %1001 = vmatprep.subr.bf16.mxu1 %v16553_v11  ;;  %v16603_v10 = vld [vmem:[%s22903_s23 + $0x340] ss:$16 sps:$4 sm:$0xff]   ;;  %v16606_v11 = vld [vmem:[%s22903_s23 + $0x348] ss:$16 sps:$4 sm:$0xff]  }
  0x51   :  { %579 = vmatmul.mubr.bf16.gmra.mrb[12].mxu0 %v18199_v13  ;;  %652 = vmatmul.mubr.bf16.gmra.mrb[12].mxu1 %v18199_v13 }
  0x52   :  { %929 = vmatpush1.bf16.msra.mxu0 %v16548_v12  ;;  %1002 = vmatpush1.bf16.msra.mxu1 %v16551_v14  ;;  %v16611_v12 = vld [vmem:[%s22903_s23 + $0x364] ss:$16 sps:$4 sm:$0xff]   ;;  %v16614_v14 = vld [vmem:[%s22903_s23 + $0x36c] ss:$16 sps:$4 sm:$0xff]  }
  0x53   :  { %930 = vmatprep.subr.bf16.mxu0 %v16557_v15  ;;  %1003 = vmatprep.subr.bf16.mxu1 %v16560_v16  ;;  %v16609_v15 = vld [vmem:[%s22903_s23 + $0x360] ss:$16 sps:$4 sm:$0xff]   ;;  %v16612_v16 = vld [vmem:[%s22903_s23 + $0x368] ss:$16 sps:$4 sm:$0xff]  }
  0x54   :  { %13119 = vmatprep.mubr.msk.bf16.mxu0 %vm487_vm3, %v17982_v38  ;;  %13123 = vmatprep.mubr.msk.bf16.mxu1 %vm487_vm3, %v17982_v38 }
  0x56   :  { %931 = vmatpush1.bf16.msra.mxu0 %v16555_v17  ;;  %1004 = vmatpush1.bf16.msra.mxu1 %v16558_v19  ;;  %v18343_v17 = vld [vmem:[%s22879_s0] sm:$0xee] }
  0x57   :  { %932 = vmatprep.subr.bf16.mxu0 %v16564_v21  ;;  %1005 = vmatprep.subr.bf16.mxu1 %v16567_v22  ;;  %v16617_v19 = vld [vmem:[%s22903_s23 + $0x384] ss:$16 sps:$4 sm:$0xff]   ;;  %v16620_v21 = vld [vmem:[%s22903_s23 + $0x38c] ss:$16 sps:$4 sm:$0xff]   ;;  %v16615_v22 = vld [vmem:[%s22903_s23 + $0x380] ss:$16 sps:$4 sm:$0xff]  }
  0x5a   :  { %933 = vmatpush1.bf16.msra.mxu0 %v16562_v23  ;;  %1006 = vmatpush1.bf16.msra.mxu1 %v16565_v24  ;;  %v13174_v23 = vcombine.high %v18343_v17, %v17979_v37  ;;  %v16618_v24 = vld [vmem:[%s22903_s23 + $0x388] ss:$16 sps:$4 sm:$0xff]  }
  0x5b   :  { %934 = vmatprep.subr.bf16.mxu0 %v16571_v25  ;;  %1007 = vmatprep.subr.bf16.mxu1 %v16574_v27  ;;  %v16623_v25 = vld [vmem:[%s22903_s23 + $0x3a4] ss:$16 sps:$4 sm:$0xff]   ;;  %v16626_v27 = vld [vmem:[%s22903_s23 + $0x3ac] ss:$16 sps:$4 sm:$0xff]  }
  0x5c   :  { %v1125_v29 = vrot.slane %v13174_v23, 1  ;;  %v16668_v23 = vld [vmem:[%s22903_s23 + $0x5ec] ss:$16 sps:$4 sm:$0xff]  }
  0x5e   :  { %935 = vmatpush1.bf16.msra.mxu0 %v16569_v30  ;;  %1008 = vmatpush1.bf16.msra.mxu1 %v16572_v31  ;;  %v1126_v30 = vrot.slane %v17987_v39, 1  ;;  %v16624_v31 = vld [vmem:[%s22903_s23 + $0x3a8] ss:$16 sps:$4 sm:$0xff]  }
  0x5f   :  { %936 = vmatprep.subr.bf16.mxu0 %v16577_v32  ;;  %1009 = vmatprep.subr.bf16.mxu1 %v16580_v33  ;;  %v16629_v32 = vld [vmem:[%s22903_s23 + $0x3c4] ss:$16 sps:$4 sm:$0xff]   ;;  %v16632_v33 = vld [vmem:[%s22903_s23 + $0x3cc] ss:$16 sps:$4 sm:$0xff]  }
  0x60   :  { %v18389_v34 = vsel %vm1121_vm4, %v1125_v29, %v1126_v30  ;;  %v16671_v29 = vld [vmem:[%s22903_s23 + $0x604] ss:$16 sps:$4 sm:$0xff]  }
  0x62   :  { %937 = vmatpush1.bf16.msra.mxu0 %v16575_v41  ;;  %1010 = vmatpush1.bf16.msra.mxu1 %v16578_v43  ;;  %v16630_v41 = vld [vmem:[%s22903_s23 + $0x3c8] ss:$16 sps:$4 sm:$0xff]   ;;  %v16635_v43 = vld [vmem:[%s22903_s23 + $0x3e4] ss:$16 sps:$4 sm:$0xff]  }
  0x63   :  { %938 = vmatprep.subr.bf16.mxu0 %v908_v50  ;;  %1011 = vmatprep.subr.bf16.mxu1 %v914_v51  ;;  %v16636_v50 = vld [vmem:[%s22903_s23 + $0x3e8] ss:$16 sps:$4 sm:$0xff]   ;;  %v16641_v51 = vld [vmem:[%s22903_s23 + $0x404] ss:$16 sps:$4 sm:$0xff]  }
  0x66   :  { %939 = vmatpush1.bf16.msra.mxu0 %v905_v52  ;;  %1012 = vmatpush1.bf16.msra.mxu1 %v911_v53  ;;  %v16644_v52 = vld [vmem:[%s22903_s23 + $0x40c] ss:$16 sps:$4 sm:$0xff]   ;;  %v13171_v53 = vld [vmem:[%s22903_s23 + $0x440] sm:$0xff] }
  0x67   :  { %1394 = vmatprep.subr.bf16.mxu0 %v16587_v55  ;;  %1467 = vmatprep.subr.bf16.mxu1 %v16590_v56  ;;  %v13172_v55 = vld [vmem:[%s22903_s23 + $0x448] sm:$0xff]  ;;  %v16639_v56 = vld [vmem:[%s22903_s23 + $0x400] ss:$16 sps:$4 sm:$0xff]  }
  0x69   :  { %949 = vmatmul.mubr.bf16.vlgmr.msra.gmra.mrb[0].mxu0 %v17996_v42  ;;  %1022 = vmatmul.mubr.bf16.vlgmr.msra.gmra.mrb[0].mxu1 %v17996_v42 }
  0x6a   :  { %1395 = vmatpush1.bf16.msra.mxu0 %v16585_v57  ;;  %1468 = vmatpush1.bf16.msra.mxu1 %v16588_v58  ;;  %v16642_v57 = vld [vmem:[%s22903_s23 + $0x408] ss:$16 sps:$4 sm:$0xff]   ;;  %v16647_v58 = vld [vmem:[%s22903_s23 + $0x424] ss:$16 sps:$4 sm:$0xff]  }
  0x6b   :  { %1396 = vmatprep.subr.bf16.mxu0 %v16593_v59  ;;  %1469 = vmatprep.subr.bf16.mxu1 %v16596_v60  ;;  %v16650_v59 = vld [vmem:[%s22903_s23 + $0x42c] ss:$16 sps:$4 sm:$0xff]   ;;  %v13222_v60 = vcombine.high %v13171_v53, %v13171_v53 }
  0x6c   :  { %13120 = vmatprep.mubr.msk.bf16.mxu0 %vm487_vm3, %v17987_v39  ;;  %13124 = vmatprep.mubr.msk.bf16.mxu1 %vm487_vm3, %v17987_v39  ;;  %v16674_v39 = vld [vmem:[%s22903_s23 + $0x60c] ss:$16 sps:$4 sm:$0xff]  }
  0x6e   :  { %1397 = vmatpush1.bf16.msra.mxu0 %v16591_v63  ;;  %1470 = vmatpush1.bf16.msra.mxu1 %v16594_v0  ;;  %v13224_v63 = vcombine.high %v13172_v55, %v13172_v55  ;;  %v16645_v0 = vld [vmem:[%s22903_s23 + $0x420] ss:$16 sps:$4 sm:$0xff]  }
  0x6f   :  { %1398 = vmatprep.subr.bf16.mxu0 %v16599_v2  ;;  %1471 = vmatprep.subr.bf16.mxu1 %v16602_v4  ;;  %v16648_v2 = vld [vmem:[%s22903_s23 + $0x428] ss:$16 sps:$4 sm:$0xff]   ;;  %v13221_v4 = vcombine.low %v13171_v53, %v13171_v53 }
  0x71   :  { %959 = vmatmul.mubr.bf16.gmra.mrb[4].mxu0 %v18018_v54  ;;  %1032 = vmatmul.mubr.bf16.gmra.mrb[4].mxu1 %v18018_v54 }
  0x72   :  { %1399 = vmatpush1.bf16.msra.mxu0 %v16597_v5  ;;  %1472 = vmatpush1.bf16.msra.mxu1 %v16600_v7  ;;  %v13223_v5 = vcombine.low %v13172_v55, %v13172_v55  ;;  %v13173_v7 = vcombine.low %v18343_v17, %v17979_v37  ;;  %v16662_v37 = vld [vmem:[%s22903_s23 + $0x5cc] ss:$16 sps:$4 sm:$0xff]   ;;  %v16660_v17 = vld [vmem:[%s22903_s23 + $0x5c8] ss:$16 sps:$4 sm:$0xff]  }
  0x73   :  { %1400 = vmatprep.subr.bf16.mxu0 %v16605_v8  ;;  %1473 = vmatprep.subr.bf16.mxu1 %v16608_v9  ;;  %v1386_v8 = vand.u32 %v13222_v60, %v18031_v62  ;;  %v1392_v9 = vand.u32 %v13224_v63, %v18031_v62  ;;  %v16686_v55 = vld [vmem:[%s22903_s23 + $0x648] ss:$16 sps:$4 sm:$0xff]   ;;  %v16697_v60 = vld [vmem:[%s22903_s23 + $0x684] ss:$16 sps:$4 sm:$0xff]   ;;  %v16700_v63 = vld [vmem:[%s22903_s23 + $0x68c] ss:$16 sps:$4 sm:$0xff]  }
  0x74   :  { %13121 = vmatprep.mubr.msk.bf16.mxu0 %vm487_vm3, %v18074_v20  ;;  %13125 = vmatprep.mubr.msk.bf16.mxu1 %vm487_vm3, %v18074_v20 }
  0x76   :  { %1401 = vmatpush1.bf16.msra.mxu0 %v16603_v10  ;;  %1474 = vmatpush1.bf16.msra.mxu1 %v16606_v11  ;;  %v1383_v10 = vand.u32 %v13221_v4, %v18031_v62  ;;  %v1389_v11 = vand.u32 %v13223_v5, %v18031_v62  ;;  %v16703_v4 = vld [vmem:[%s22903_s23 + $0x6a4] ss:$16 sps:$4 sm:$0xff]   ;;  %v16706_v5 = vld [vmem:[%s22903_s23 + $0x6ac] ss:$16 sps:$4 sm:$0xff]  }
  0x77   :  { %1402 = vmatprep.subr.bf16.mxu0 %v16611_v12  ;;  %1475 = vmatprep.subr.bf16.mxu1 %v16614_v14  ;;  %v1122_v12 = vrot.slane %v13173_v7, 1  ;;  %v1123_v14 = vrot.slane %v18018_v54, 1  ;;  %v1130_v54 = vrot.slane %v18074_v20, 1  ;;  %v16663_v20 = vld [vmem:[%s22903_s23 + $0x5e0] ss:$16 sps:$4 sm:$0xff]  }
  0x78   :  { %v16701_v7 = vld [vmem:[%s22903_s23 + $0x6a0] ss:$16 sps:$4 sm:$0xff]  }
  0x79   :  { %969 = vmatmul.mubr.bf16.gmra.mrb[8].mxu0 %v18089_v26  ;;  %1042 = vmatmul.mubr.bf16.gmra.mrb[8].mxu1 %v18089_v26 }
  0x7a   :  { %1403 = vmatpush1.bf16.msra.mxu0 %v16609_v15  ;;  %1476 = vmatpush1.bf16.msra.mxu1 %v16612_v16  ;;  %v16659_v15 = vld [vmem:[%s22903_s23 + $0x5c4] ss:$16 sps:$4 sm:$0xff]   ;;  %v16657_v16 = vld [vmem:[%s22903_s23 + $0x5c0] ss:$16 sps:$4 sm:$0xff]  }
  0x7b   :  { %1404 = vmatprep.subr.bf16.mxu0 %v16617_v19  ;;  %1477 = vmatprep.subr.bf16.mxu1 %v16620_v21  ;;  %v18464_v19 = vsel %vm1121_vm4, %v1122_v12, %v1123_v14  ;;  %v16665_v21 = vld [vmem:[%s22903_s23 + $0x5e4] ss:$16 sps:$4 sm:$0xff]   ;;  %v16710_v12 = vld [vmem:[%s22903_s23 + $0x6c8] ss:$16 sps:$4 sm:$0xff]  }
  0x7c   :  { %13122 = vmatprep.mubr.msk.bf16.mxu0 %vm487_vm3, %v18120_v44  ;;  %13126 = vmatprep.mubr.msk.bf16.mxu1 %vm487_vm3, %v18120_v44 }
  0x7e   :  { %1405 = vmatpush1.bf16.msra.mxu0 %v16615_v22  ;;  %1478 = vmatpush1.bf16.msra.mxu1 %v16618_v24  ;;  %v1063_v22 = vld [vmem:[%s22879_s0 + $0x38] sm:$0x77]  ;;  %v18483_v24 = vsel %vm1121_vm4, %v1126_v30, %v1130_v54 }
  0x7f   :  { %1406 = vmatprep.subr.bf16.mxu0 %v16623_v25  ;;  %1479 = vmatprep.subr.bf16.mxu1 %v16626_v27  ;;  %v13176_v25 = vcombine.high %v18111_v36, %v1063_v22  ;;  %v16666_v27 = vld [vmem:[%s22903_s23 + $0x5e8] ss:$16 sps:$4 sm:$0xff]  }
  0x81   :  { %979 = vmatmul.mubr.bf16.gmra.mrb[12].mxu0 %v18123_v45  ;;  %1052 = vmatmul.mubr.bf16.gmra.mrb[12].mxu1 %v18123_v45  ;;  %v18503_v30 = vrot.slane %v13176_v25, 1  ;;  %v16722_v25 = vld [vmem:[%s22903_s23 + $0x708] ss:$16 sps:$4 sm:$0xff]  }
  0x82   :  { %1407 = vmatpush1.bf16.msra.mxu0 %v16621_v28  ;;  %1480 = vmatpush1.bf16.msra.mxu1 %v16624_v31  ;;  %v1128_v28 = vrot.slane %v18089_v26, 1  ;;  %v16669_v26 = vld [vmem:[%s22903_s23 + $0x600] ss:$16 sps:$4 sm:$0xff]  }
  0x83   :  { %1408 = vmatprep.subr.bf16.mxu0 %v16629_v32  ;;  %1481 = vmatprep.subr.bf16.mxu1 %v16632_v33  ;;  %v16672_v32 = vld [vmem:[%s22903_s23 + $0x608] ss:$16 sps:$4 sm:$0xff]   ;;  %v16677_v33 = vld [vmem:[%s22903_s23 + $0x624] ss:$16 sps:$4 sm:$0xff]  }
  0x84   :  { %13225 = vmatprep.mubr.msk.bf16.mxu0 %vm487_vm3, %v18389_v34  ;;  %13229 = vmatprep.mubr.msk.bf16.mxu1 %vm487_vm3, %v18389_v34  ;;  %v18506_v31 = vsel %vm1121_vm4, %v1123_v14, %v1128_v28  ;;  %v16715_v14 = vld [vmem:[%s22903_s23 + $0x6e4] ss:$16 sps:$4 sm:$0xff]  }
  0x86   :  { %1409 = vmatpush1.bf16.msra.mxu0 %v16627_v40  ;;  %1482 = vmatpush1.bf16.msra.mxu1 %v16630_v41  ;;  %v13175_v40 = vcombine.low %v18111_v36, %v1063_v22  ;;  %v16680_v41 = vld [vmem:[%s22903_s23 + $0x62c] ss:$16 sps:$4 sm:$0xff]   ;;  %v16678_v36 = vld [vmem:[%s22903_s23 + $0x628] ss:$16 sps:$4 sm:$0xff]  }
  0x87   :  { %1410 = vmatprep.subr.bf16.mxu0 %v16635_v43  ;;  %1483 = vmatprep.subr.bf16.mxu1 %v16638_v46  ;;  %v16675_v43 = vld [vmem:[%s22903_s23 + $0x620] ss:$16 sps:$4 sm:$0xff]   ;;  %v18525_v46 = vsel %vm1121_vm4, %v1130_v54, %v18503_v30  ;;  %v16721_v54 = vld [vmem:[%s22903_s23 + $0x704] ss:$16 sps:$4 sm:$0xff]  }
  0x8a   :  { %1411 = vmatpush1.bf16.msra.mxu0 %v16633_v48  ;;  %1484 = vmatpush1.bf16.msra.mxu1 %v16636_v50  ;;  %v18530_v48 = vrot.slane %v13175_v40, 1  ;;  %v16685_v50 = vld [vmem:[%s22903_s23 + $0x644] ss:$16 sps:$4 sm:$0xff]   ;;  %v16734_v40 = vld [vmem:[%s22903_s23 + $0x45c] ss:$16 sps:$4 sm:$0xff]  }
  0x8b   :  { %1412 = vmatprep.subr.bf16.mxu0 %v16641_v51  ;;  %1485 = vmatprep.subr.bf16.mxu1 %v16644_v52  ;;  %v16688_v51 = vld [vmem:[%s22903_s23 + $0x64c] ss:$16 sps:$4 sm:$0xff]   ;;  %v16683_v52 = vld [vmem:[%s22903_s23 + $0x640] ss:$16 sps:$4 sm:$0xff]  }
  0x8c   :  { %v18547_v53 = vsel %vm1121_vm4, %v1128_v28, %v18530_v48 }
  0x8e   :  { %1413 = vmatpush1.bf16.msra.mxu0 %v16639_v56  ;;  %1486 = vmatpush1.bf16.msra.mxu1 %v16642_v57  ;;  %v16691_v56 = vld [vmem:[%s22903_s23 + $0x664] ss:$16 sps:$4 sm:$0xff]   ;;  %v16694_v57 = vld [vmem:[%s22903_s23 + $0x66c] ss:$16 sps:$4 sm:$0xff]  }
  0x8f   :  { %1414 = vmatprep.subr.bf16.mxu0 %v16647_v58  ;;  %1487 = vmatprep.subr.bf16.mxu1 %v16650_v59  ;;  %v16689_v58 = vld [vmem:[%s22903_s23 + $0x660] ss:$16 sps:$4 sm:$0xff]   ;;  %v16692_v59 = vld [vmem:[%s22903_s23 + $0x668] ss:$16 sps:$4 sm:$0xff]  }
  0x92   :  { %1415 = vmatpush1.bf16.msra.mxu0 %v16645_v0  ;;  %1488 = vmatpush1.bf16.msra.mxu1 %v16648_v2  ;;  %v16695_v0 = vld [vmem:[%s22903_s23 + $0x680] ss:$16 sps:$4 sm:$0xff]   ;;  %v16698_v2 = vld [vmem:[%s22903_s23 + $0x688] ss:$16 sps:$4 sm:$0xff]  }
  0x93   :  { %1416 = vmatprep.subr.bf16.mxu0 %v1386_v8  ;;  %1489 = vmatprep.subr.bf16.mxu1 %v1392_v9  ;;  %v16704_v8 = vld [vmem:[%s22903_s23 + $0x6a8] ss:$16 sps:$4 sm:$0xff]   ;;  %v16709_v9 = vld [vmem:[%s22903_s23 + $0x6c4] ss:$16 sps:$4 sm:$0xff]  }
  0x96   :  { %1417 = vmatpush1.bf16.msra.mxu0 %v1383_v10  ;;  %1490 = vmatpush1.bf16.msra.mxu1 %v1389_v11  ;;  %v16712_v10 = vld [vmem:[%s22903_s23 + $0x6cc] ss:$16 sps:$4 sm:$0xff]   ;;  %v16707_v11 = vld [vmem:[%s22903_s23 + $0x6c0] ss:$16 sps:$4 sm:$0xff]  }
  0x97   :  { %1993 = vmatprep.subr.bf16.mxu0 %v16659_v15  ;;  %2066 = vmatprep.subr.bf16.mxu1 %v16662_v37  ;;  %v13323_v15 = vld [vmem:[%s22903_s23 + $0x720] sm:$0xff]  ;;  %v13324_v37 = vld [vmem:[%s22903_s23 + $0x728] sm:$0xff] }
  0x98   :  { %v13370_v22 = vcombine.high %v13323_v15, %v13323_v15  ;;  %v13371_v28 = vcombine.low %v13324_v37, %v13324_v37 }
  0x99   :  { %1427 = vmatmul.mubr.bf16.vlgmr.msra.gmra.mrb[0].mxu0 %v18464_v19  ;;  %1500 = vmatmul.mubr.bf16.vlgmr.msra.gmra.mrb[0].mxu1 %v18464_v19 }
  0x9a   :  { %1994 = vmatpush1.bf16.msra.mxu0 %v16657_v16  ;;  %2067 = vmatpush1.bf16.msra.mxu1 %v16660_v17  ;;  %v16713_v16 = vld [vmem:[%s22903_s23 + $0x6e0] ss:$16 sps:$4 sm:$0xff]   ;;  %v16716_v17 = vld [vmem:[%s22903_s23 + $0x6e8] ss:$16 sps:$4 sm:$0xff]  }
  0x9b   :  { %1995 = vmatprep.subr.bf16.mxu0 %v16665_v21  ;;  %2068 = vmatprep.subr.bf16.mxu1 %v16668_v23  ;;  %v16724_v21 = vld [vmem:[%s22903_s23 + $0x70c] ss:$16 sps:$4 sm:$0xff]   ;;  %v13372_v23 = vcombine.high %v13324_v37, %v13324_v37  ;;  %v16777_v37 = vld [vmem:[%s22903_s23 + $0x550] ss:$16 sps:$4 sm:$0xff]  }
  0x9c   :  { %13226 = vmatprep.mubr.msk.bf16.mxu0 %vm487_vm3, %v18483_v24  ;;  %13230 = vmatprep.mubr.msk.bf16.mxu1 %vm487_vm3, %v18483_v24 }
  0x9e   :  { %1996 = vmatpush1.bf16.msra.mxu0 %v16663_v20  ;;  %2069 = vmatpush1.bf16.msra.mxu1 %v16666_v27  ;;  %v16719_v20 = vld [vmem:[%s22903_s23 + $0x700] ss:$16 sps:$4 sm:$0xff]   ;;  %v13369_v27 = vcombine.low %v13323_v15, %v13323_v15  ;;  %v16782_v15 = vld [vmem:[%s22903_s23 + $0x55c] ss:$16 sps:$4 sm:$0xff]  }
  0x9f   :  { %1997 = vmatprep.subr.bf16.mxu0 %v16671_v29  ;;  %2070 = vmatprep.subr.bf16.mxu1 %v16674_v39  ;;  %v1985_v29 = vand.u32 %v13370_v22, %v18031_v62  ;;  %v1991_v39 = vand.u32 %v13372_v23, %v18031_v62  ;;  %v16786_v22 = vld [vmem:[%s22903_s23 + $0x578] ss:$16 sps:$4 sm:$0xff]   ;;  %v16791_v23 = vld [vmem:[%s22903_s23 + $0x594] ss:$16 sps:$4 sm:$0xff]  }
  0xa1   :  { %1437 = vmatmul.mubr.bf16.gmra.mrb[4].mxu0 %v18506_v31  ;;  %1510 = vmatmul.mubr.bf16.gmra.mrb[4].mxu1 %v18506_v31 }
  0xa2   :  { %1998 = vmatpush1.bf16.msra.mxu0 %v16669_v26  ;;  %2071 = vmatpush1.bf16.msra.mxu1 %v16672_v32  ;;  %v16731_v26 = vld [vmem:[%s22903_s23 + $0x454] ss:$16 sps:$4 sm:$0xff]   ;;  %v1982_v32 = vand.u32 %v13369_v27, %v18031_v62 }
  0xa3   :  { %1999 = vmatprep.subr.bf16.mxu0 %v16677_v33  ;;  %2072 = vmatprep.subr.bf16.mxu1 %v16680_v41  ;;  %v1988_v33 = vand.u32 %v13371_v28, %v18031_v62  ;;  %v16729_v41 = vld [vmem:[%s22903_s23 + $0x450] ss:$16 sps:$4 sm:$0xff]  }
  0xa4   :  { %13227 = vmatprep.mubr.msk.bf16.mxu0 %vm487_vm3, %v18525_v46  ;;  %13231 = vmatprep.mubr.msk.bf16.mxu1 %vm487_vm3, %v18525_v46  ;;  %v16789_v28 = vld [vmem:[%s22903_s23 + $0x590] ss:$16 sps:$4 sm:$0xff]  }
  0xa6   :  { %2000 = vmatpush1.bf16.msra.mxu0 %v16675_v43  ;;  %2073 = vmatpush1.bf16.msra.mxu1 %v16678_v36  ;;  %v16732_v43 = vld [vmem:[%s22903_s23 + $0x458] ss:$16 sps:$4 sm:$0xff]   ;;  %v16737_v36 = vld [vmem:[%s22903_s23 + $0x474] ss:$16 sps:$4 sm:$0xff]  }
  0xa7   :  { %2001 = vmatprep.subr.bf16.mxu0 %v16685_v50  ;;  %2074 = vmatprep.subr.bf16.mxu1 %v16688_v51  ;;  %v16740_v50 = vld [vmem:[%s22903_s23 + $0x47c] ss:$16 sps:$4 sm:$0xff]   ;;  %v16735_v51 = vld [vmem:[%s22903_s23 + $0x470] ss:$16 sps:$4 sm:$0xff]  }
  0xa9   :  { %1447 = vmatmul.mubr.bf16.gmra.mrb[8].mxu0 %v18547_v53  ;;  %1520 = vmatmul.mubr.bf16.gmra.mrb[8].mxu1 %v18547_v53 }
  0xaa   :  { %2002 = vmatpush1.bf16.msra.mxu0 %v16683_v52  ;;  %2075 = vmatpush1.bf16.msra.mxu1 %v16686_v55  ;;  %v16738_v52 = vld [vmem:[%s22903_s23 + $0x478] ss:$16 sps:$4 sm:$0xff]   ;;  %v16743_v55 = vld [vmem:[%s22903_s23 + $0x494] ss:$16 sps:$4 sm:$0xff]  }
  0xab   :  { %2003 = vmatprep.subr.bf16.mxu0 %v16691_v56  ;;  %2076 = vmatprep.subr.bf16.mxu1 %v16694_v57  ;;  %v16746_v56 = vld [vmem:[%s22903_s23 + $0x49c] ss:$16 sps:$4 sm:$0xff]   ;;  %v16741_v57 = vld [vmem:[%s22903_s23 + $0x490] ss:$16 sps:$4 sm:$0xff]  }
  0xac   :  { %13228 = vmatprep.mubr.msk.bf16.mxu0 %vm487_vm3, %v18503_v30  ;;  %13232 = vmatprep.mubr.msk.bf16.mxu1 %vm487_vm3, %v18503_v30 }
  0xae   :  { %2004 = vmatpush1.bf16.msra.mxu0 %v16689_v58  ;;  %2077 = vmatpush1.bf16.msra.mxu1 %v16692_v59  ;;  %v16749_v58 = vld [vmem:[%s22903_s23 + $0x4b4] ss:$16 sps:$4 sm:$0xff]   ;;  %v16752_v59 = vld [vmem:[%s22903_s23 + $0x4bc] ss:$16 sps:$4 sm:$0xff]  }
  0xaf   :  { %2005 = vmatprep.subr.bf16.mxu0 %v16697_v60  ;;  %2078 = vmatprep.subr.bf16.mxu1 %v16700_v63  ;;  %v16747_v60 = vld [vmem:[%s22903_s23 + $0x4b0] ss:$16 sps:$4 sm:$0xff]   ;;  %v16755_v63 = vld [vmem:[%s22903_s23 + $0x4d4] ss:$16 sps:$4 sm:$0xff]  }
  0xb1   :  { %1457 = vmatmul.mubr.bf16.gmra.mrb[12].mxu0 %v18530_v48  ;;  %1530 = vmatmul.mubr.bf16.gmra.mrb[12].mxu1 %v18530_v48 }
  0xb2   :  { %2006 = vmatpush1.bf16.msra.mxu0 %v16695_v0  ;;  %2079 = vmatpush1.bf16.msra.mxu1 %v16698_v2  ;;  %v16758_v0 = vld [vmem:[%s22903_s23 + $0x4dc] ss:$16 sps:$4 sm:$0xff]   ;;  %v16753_v2 = vld [vmem:[%s22903_s23 + $0x4d0] ss:$16 sps:$4 sm:$0xff]  }
  0xb3   :  { %2007 = vmatprep.subr.bf16.mxu0 %v16703_v4  ;;  %2080 = vmatprep.subr.bf16.mxu1 %v16706_v5  ;;  %v16756_v4 = vld [vmem:[%s22903_s23 + $0x4d8] ss:$16 sps:$4 sm:$0xff]   ;;  %v16764_v5 = vld [vmem:[%s22903_s23 + $0x4fc] ss:$16 sps:$4 sm:$0xff]  }
  0xb4   :  { %13373 = vmatprep.mubr.msk.bf16.mxu0 %vm487_vm3, %v18037_v1  ;;  %13377 = vmatprep.mubr.msk.bf16.mxu1 %vm487_vm3, %v18037_v1  ;;  %v16718_v1 = vld [vmem:[%s22903_s23 + $0x6ec] ss:$16 sps:$4 sm:$0xff]  }
  0xb6   :  { %2008 = vmatpush1.bf16.msra.mxu0 %v16701_v7  ;;  %2081 = vmatpush1.bf16.msra.mxu1 %v16704_v8  ;;  %v16759_v7 = vld [vmem:[%s22903_s23 + $0x4f0] ss:$16 sps:$4 sm:$0xff]   ;;  %v16767_v8 = vld [vmem:[%s22903_s23 + $0x514] ss:$16 sps:$4 sm:$0xff]  }
  0xb7   :  { %2009 = vmatprep.subr.bf16.mxu0 %v16709_v9  ;;  %2082 = vmatprep.subr.bf16.mxu1 %v16712_v10  ;;  %v16770_v9 = vld [vmem:[%s22903_s23 + $0x51c] ss:$16 sps:$4 sm:$0xff]   ;;  %v16765_v10 = vld [vmem:[%s22903_s23 + $0x510] ss:$16 sps:$4 sm:$0xff]  }
  0xba   :  { %2010 = vmatpush1.bf16.msra.mxu0 %v16707_v11  ;;  %2083 = vmatpush1.bf16.msra.mxu1 %v16710_v12  ;;  %v16768_v11 = vld [vmem:[%s22903_s23 + $0x518] ss:$16 sps:$4 sm:$0xff]   ;;  %v16776_v12 = vld [vmem:[%s22903_s23 + $0x53c] ss:$16 sps:$4 sm:$0xff]  }
  0xbb   :  { %2011 = vmatprep.subr.bf16.mxu0 %v16715_v14  ;;  %2084 = vmatprep.subr.bf16.mxu1 %v16718_v1  ;;  %v16771_v14 = vld [vmem:[%s22903_s23 + $0x530] ss:$16 sps:$4 sm:$0xff]   ;;  %v16779_v1 = vld [vmem:[%s22903_s23 + $0x554] ss:$16 sps:$4 sm:$0xff]  }
  0xbe   :  { %2012 = vmatpush1.bf16.msra.mxu0 %v16713_v16  ;;  %2085 = vmatpush1.bf16.msra.mxu1 %v16716_v17  ;;  %v16780_v16 = vld [vmem:[%s22903_s23 + $0x558] ss:$16 sps:$4 sm:$0xff]   ;;  %v16788_v17 = vld [vmem:[%s22903_s23 + $0x57c] ss:$16 sps:$4 sm:$0xff]  }
  0xbf   :  { %2013 = vmatprep.subr.bf16.mxu0 %v16721_v54  ;;  %2086 = vmatprep.subr.bf16.mxu1 %v16724_v21  ;;  %v13277_v54 = vld [vmem:[%s22903_s23 + $0x5b0] sm:$0xff]  ;;  %v13278_v21 = vld [vmem:[%s22903_s23 + $0x5b8] sm:$0xff] }
  0xc0   :  { %v13428_v27 = vcombine.high %v13278_v21, %v13278_v21 }
  0xc2   :  { %2014 = vmatpush1.bf16.msra.mxu0 %v16719_v20  ;;  %2087 = vmatpush1.bf16.msra.mxu1 %v16722_v25  ;;  %v16794_v20 = vld [vmem:[%s22903_s23 + $0x59c] ss:$16 sps:$4 sm:$0xff]   ;;  %v13426_v25 = vcombine.high %v13277_v54, %v13277_v54 }
  0xc3   :  { %2015 = vmatprep.subr.bf16.mxu0 %v1985_v29  ;;  %2088 = vmatprep.subr.bf16.mxu1 %v1991_v39  ;;  %v16792_v29 = vld [vmem:[%s22903_s23 + $0x598] ss:$16 sps:$4 sm:$0xff]   ;;  %v13425_v39 = vcombine.low %v13277_v54, %v13277_v54  ;;  %v16852_v54 = vld [vmem:[%s22903_s23 + $0x83c] ss:$16 sps:$4 sm:$0xff]  }
  0xc6   :  { %2016 = vmatpush1.bf16.msra.mxu0 %v1982_v32  ;;  %2089 = vmatpush1.bf16.msra.mxu1 %v1988_v33  ;;  %v2373_v32 = vand.u32 %v13426_v25, %v18031_v62  ;;  %v2379_v33 = vand.u32 %v13428_v27, %v18031_v62  ;;  %v16856_v25 = vld [vmem:[%s22903_s23 + $0x858] ss:$16 sps:$4 sm:$0xff]   ;;  %v16861_v27 = vld [vmem:[%s22903_s23 + $0x874] ss:$16 sps:$4 sm:$0xff]  }
  0xc7   :  { %2381 = vmatprep.subr.bf16.mxu0 %v16731_v26  ;;  %2454 = vmatprep.subr.bf16.mxu1 %v16734_v40  ;;  %v13427_v26 = vcombine.low %v13278_v21, %v13278_v21  ;;  %v16801_v40 = vld [vmem:[%s22903_s23 + $0x734] ss:$16 sps:$4 sm:$0xff]   ;;  %v16847_v21 = vld [vmem:[%s22903_s23 + $0x830] ss:$16 sps:$4 sm:$0xff]  }
  0xc9   :  { %2026 = vmatmul.mubr.bf16.vlgmr.msra.gmra.mrb[16].mxu0 %v18066_v18  ;;  %2099 = vmatmul.mubr.bf16.vlgmr.msra.gmra.mrb[16].mxu1 %v18066_v18  ;;  %v16744_v18 = vld [vmem:[%s22903_s23 + $0x498] ss:$16 sps:$4 sm:$0xff]  }
  0xca   :  { %2382 = vmatpush1.bf16.msra.mxu0 %v16729_v41  ;;  %2455 = vmatpush1.bf16.msra.mxu1 %v16732_v43  ;;  %v16804_v41 = vld [vmem:[%s22903_s23 + $0x73c] ss:$16 sps:$4 sm:$0xff]   ;;  %v2370_v43 = vand.u32 %v13425_v39, %v18031_v62 }
  0xcb   :  { %2383 = vmatprep.subr.bf16.mxu0 %v16737_v36  ;;  %2456 = vmatprep.subr.bf16.mxu1 %v16740_v50  ;;  %v2376_v36 = vand.u32 %v13427_v26, %v18031_v62  ;;  %v16799_v50 = vld [vmem:[%s22903_s23 + $0x730] ss:$16 sps:$4 sm:$0xff]  }
  0xcc   :  { %13374 = vmatprep.mubr.msk.bf16.mxu0 %vm487_vm3, %v18106_v35  ;;  %13378 = vmatprep.mubr.msk.bf16.mxu1 %vm487_vm3, %v18106_v35  ;;  %v16750_v35 = vld [vmem:[%s22903_s23 + $0x4b8] ss:$16 sps:$4 sm:$0xff]   ;;  %v16859_v26 = vld [vmem:[%s22903_s23 + $0x870] ss:$16 sps:$4 sm:$0xff]  }
  0xce   :  { %2384 = vmatpush1.bf16.msra.mxu0 %v16735_v51  ;;  %2457 = vmatpush1.bf16.msra.mxu1 %v16738_v52  ;;  %v16802_v51 = vld [vmem:[%s22903_s23 + $0x738] ss:$16 sps:$4 sm:$0xff]   ;;  %v16807_v52 = vld [vmem:[%s22903_s23 + $0x754] ss:$16 sps:$4 sm:$0xff]  }
  0xcf   :  { %2385 = vmatprep.subr.bf16.mxu0 %v16743_v55  ;;  %2458 = vmatprep.subr.bf16.mxu1 %v16746_v56  ;;  %v16810_v55 = vld [vmem:[%s22903_s23 + $0x75c] ss:$16 sps:$4 sm:$0xff]   ;;  %v16805_v56 = vld [vmem:[%s22903_s23 + $0x750] ss:$16 sps:$4 sm:$0xff]  }
  0xd1   :  { %2036 = vmatmul.mubr.bf16.gmra.mrb[20].mxu0 %v18134_v49  ;;  %2109 = vmatmul.mubr.bf16.gmra.mrb[20].mxu1 %v18134_v49  ;;  %v16761_v49 = vld [vmem:[%s22903_s23 + $0x4f4] ss:$16 sps:$4 sm:$0xff]  }
  0xd2   :  { %2386 = vmatpush1.bf16.msra.mxu0 %v16741_v57  ;;  %2459 = vmatpush1.bf16.msra.mxu1 %v16744_v18  ;;  %v16808_v57 = vld [vmem:[%s22903_s23 + $0x758] ss:$16 sps:$4 sm:$0xff]   ;;  %v16813_v18 = vld [vmem:[%s22903_s23 + $0x774] ss:$16 sps:$4 sm:$0xff]  }
  0xd3   :  { %2387 = vmatprep.subr.bf16.mxu0 %v16749_v58  ;;  %2460 = vmatprep.subr.bf16.mxu1 %v16752_v59  ;;  %v16816_v58 = vld [vmem:[%s22903_s23 + $0x77c] ss:$16 sps:$4 sm:$0xff]   ;;  %v16811_v59 = vld [vmem:[%s22903_s23 + $0x770] ss:$16 sps:$4 sm:$0xff]  }
  0xd4   :  { %13375 = vmatprep.mubr.msk.bf16.mxu0 %vm487_vm3, %v18153_v61  ;;  %13379 = vmatprep.mubr.msk.bf16.mxu1 %vm487_vm3, %v18153_v61  ;;  %v16762_v61 = vld [vmem:[%s22903_s23 + $0x4f8] ss:$16 sps:$4 sm:$0xff]  }
  0xd6   :  { %2388 = vmatpush1.bf16.msra.mxu0 %v16747_v60  ;;  %2461 = vmatpush1.bf16.msra.mxu1 %v16750_v35  ;;  %v17764_v60 = vld [vmem:[%s22879_s0 + $0x14] ss:$8 sps:$4 sm:$0xff]  }
  0xd7   :  { %2389 = vmatprep.subr.bf16.mxu0 %v16755_v63  ;;  %2462 = vmatprep.subr.bf16.mxu1 %v16758_v0  ;;  %v16819_v35 = vld [vmem:[%s22903_s23 + $0x794] ss:$16 sps:$4 sm:$0xff]   ;;  %v16822_v63 = vld [vmem:[%s22903_s23 + $0x79c] ss:$16 sps:$4 sm:$0xff]   ;;  %v16817_v0 = vld [vmem:[%s22903_s23 + $0x790] ss:$16 sps:$4 sm:$0xff]  }
  0xd9   :  { %2046 = vmatmul.mubr.bf16.gmra.mrb[24].mxu0 %v18167_v3  ;;  %2119 = vmatmul.mubr.bf16.gmra.mrb[24].mxu1 %v18167_v3  ;;  %v16773_v3 = vld [vmem:[%s22903_s23 + $0x534] ss:$16 sps:$4 sm:$0xff]  }
  0xda   :  { %2390 = vmatpush1.bf16.msra.mxu0 %v16753_v2  ;;  %2463 = vmatpush1.bf16.msra.mxu1 %v16756_v4  ;;  %v16820_v2 = vld [vmem:[%s22903_s23 + $0x798] ss:$16 sps:$4 sm:$0xff]   ;;  %v16825_v4 = vld [vmem:[%s22903_s23 + $0x7b4] ss:$16 sps:$4 sm:$0xff]  }
  0xdb   :  { %2391 = vmatprep.subr.bf16.mxu0 %v16761_v49  ;;  %2464 = vmatprep.subr.bf16.mxu1 %v16764_v5  ;;  %v16828_v49 = vld [vmem:[%s22903_s23 + $0x7bc] ss:$16 sps:$4 sm:$0xff]   ;;  %v17765_v5 = vld [vmem:[%s22879_s0 + $0x10] ss:$8 sps:$4 sm:$0xff]  }
  0xdc   :  { %13376 = vmatprep.mubr.msk.bf16.mxu0 %vm487_vm3, %v18175_v6  ;;  %13380 = vmatprep.mubr.msk.bf16.mxu1 %vm487_vm3, %v18175_v6  ;;  %v16774_v6 = vld [vmem:[%s22903_s23 + $0x538] ss:$16 sps:$4 sm:$0xff]  }
  0xde   :  { %2392 = vmatpush1.bf16.msra.mxu0 %v16759_v7  ;;  %2465 = vmatpush1.bf16.msra.mxu1 %v16762_v61  ;;  %v16823_v7 = vld [vmem:[%s22903_s23 + $0x7b0] ss:$16 sps:$4 sm:$0xff]   ;;  %v16826_v61 = vld [vmem:[%s22903_s23 + $0x7b8] ss:$16 sps:$4 sm:$0xff]  }
  0xdf   :  { %2393 = vmatprep.subr.bf16.mxu0 %v16767_v8  ;;  %2466 = vmatprep.subr.bf16.mxu1 %v16770_v9  ;;  %v17766_v8 = vld [vmem:[%s22879_s0 + $0x24] ss:$8 sps:$4 sm:$0xff]  }
  0xe0   :  { %v16831_v9 = vld [vmem:[%s22903_s23 + $0x7d4] ss:$16 sps:$4 sm:$0xff]  }
  0xe1   :  { %2056 = vmatmul.mubr.bf16.gmra.mrb[28].mxu0 %v18199_v13  ;;  %2129 = vmatmul.mubr.bf16.gmra.mrb[28].mxu1 %v18199_v13  ;;  %v16785_v13 = vld [vmem:[%s22903_s23 + $0x574] ss:$16 sps:$4 sm:$0xff]  }
  0xe2   :  { %2394 = vmatpush1.bf16.msra.mxu0 %v16765_v10  ;;  %2467 = vmatpush1.bf16.msra.mxu1 %v16768_v11  ;;  %v16834_v10 = vld [vmem:[%s22903_s23 + $0x7dc] ss:$16 sps:$4 sm:$0xff]   ;;  %v16829_v11 = vld [vmem:[%s22903_s23 + $0x7d0] ss:$16 sps:$4 sm:$0xff]  }
  0xe3   :  { %2395 = vmatprep.subr.bf16.mxu0 %v16773_v3  ;;  %2468 = vmatprep.subr.bf16.mxu1 %v16776_v12  ;;  %v16832_v3 = vld [vmem:[%s22903_s23 + $0x7d8] ss:$16 sps:$4 sm:$0xff]   ;;  %v16837_v12 = vld [vmem:[%s22903_s23 + $0x7f4] ss:$16 sps:$4 sm:$0xff]  }
  0xe4   :  { %13429 = vmatprep.mubr.msk.bf16.mxu0 %vm487_vm3, %v17982_v38  ;;  %13433 = vmatprep.mubr.msk.bf16.mxu1 %vm487_vm3, %v17982_v38  ;;  %v16783_v38 = vld [vmem:[%s22903_s23 + $0x570] ss:$16 sps:$4 sm:$0xff]  }
  0xe6   :  { %2396 = vmatpush1.bf16.msra.mxu0 %v16771_v14  ;;  %2469 = vmatpush1.bf16.msra.mxu1 %v16774_v6  ;;  %v16840_v14 = vld [vmem:[%s22903_s23 + $0x7fc] ss:$16 sps:$4 sm:$0xff]   ;;  %v17767_v6 = vld [vmem:[%s22879_s0 + $0x20] ss:$8 sps:$4 sm:$0xff]  }
  0xe7   :  { %2397 = vmatprep.subr.bf16.mxu0 %v16779_v1  ;;  %2470 = vmatprep.subr.bf16.mxu1 %v16782_v15  ;;  %v16835_v1 = vld [vmem:[%s22903_s23 + $0x7f0] ss:$16 sps:$4 sm:$0xff]   ;;  %v16838_v15 = vld [vmem:[%s22903_s23 + $0x7f8] ss:$16 sps:$4 sm:$0xff]  }
  0xea   :  { %2398 = vmatpush1.bf16.msra.mxu0 %v16777_v37  ;;  %2471 = vmatpush1.bf16.msra.mxu1 %v16780_v16  ;;  %v16843_v37 = vld [vmem:[%s22903_s23 + $0x814] ss:$16 sps:$4 sm:$0xff]   ;;  %v16846_v16 = vld [vmem:[%s22903_s23 + $0x81c] ss:$16 sps:$4 sm:$0xff]  }
  0xeb   :  { %2399 = vmatprep.subr.bf16.mxu0 %v16785_v13  ;;  %2472 = vmatprep.subr.bf16.mxu1 %v16788_v17  ;;  %v16841_v13 = vld [vmem:[%s22903_s23 + $0x810] ss:$16 sps:$4 sm:$0xff]   ;;  %v16849_v17 = vld [vmem:[%s22903_s23 + $0x834] ss:$16 sps:$4 sm:$0xff]  }
  0xee   :  { %2400 = vmatpush1.bf16.msra.mxu0 %v16783_v38  ;;  %2473 = vmatpush1.bf16.msra.mxu1 %v16786_v22  ;;  %v16850_v38 = vld [vmem:[%s22903_s23 + $0x838] ss:$16 sps:$4 sm:$0xff]   ;;  %v16858_v22 = vld [vmem:[%s22903_s23 + $0x85c] ss:$16 sps:$4 sm:$0xff]  }
  0xef   :  { %2401 = vmatprep.subr.bf16.mxu0 %v16791_v23  ;;  %2474 = vmatprep.subr.bf16.mxu1 %v16794_v20  ;;  %v13481_v23 = vld [vmem:[%s22903_s23 + $0x890] sm:$0xff] }
  0xf0   :  { %v16853_v20 = vld [vmem:[%s22903_s23 + $0x850] ss:$16 sps:$4 sm:$0xff]  }
  0xf2   :  { %2402 = vmatpush1.bf16.msra.mxu0 %v16789_v28  ;;  %2475 = vmatpush1.bf16.msra.mxu1 %v16792_v29  ;;  %v16864_v28 = vld [vmem:[%s22903_s23 + $0x87c] ss:$16 sps:$4 sm:$0xff]   ;;  %v13528_v29 = vcombine.high %v13481_v23, %v13481_v23 }
  0xf3   :  { %2403 = vmatprep.subr.bf16.mxu0 %v2373_v32  ;;  %2476 = vmatprep.subr.bf16.mxu1 %v2379_v33  ;;  %v16862_v32 = vld [vmem:[%s22903_s23 + $0x878] ss:$16 sps:$4 sm:$0xff]   ;;  %v13527_v33 = vcombine.low %v13481_v23, %v13481_v23 }
  0xf6   :  { %2404 = vmatpush1.bf16.msra.mxu0 %v2370_v43  ;;  %2477 = vmatpush1.bf16.msra.mxu1 %v2376_v36  ;;  %v2805_v36 = vand.u32 %v13527_v33, %v18031_v62 }
  0xf7   :  { %2816 = vmatprep.subr.bf16.mxu0 %v16801_v40  ;;  %2889 = vmatprep.subr.bf16.mxu1 %v16804_v41  ;;  %v2808_v41 = vand.u32 %v13528_v29, %v18031_v62 }
  0xf9   :  { %2414 = vmatmul.mubr.bf16.vlgmr.msra.gmra.mrb[16].mxu0 %v17996_v42  ;;  %2487 = vmatmul.mubr.bf16.vlgmr.msra.gmra.mrb[16].mxu1 %v17996_v42  ;;  %v16814_v42 = vld [vmem:[%s22903_s23 + $0x778] ss:$16 sps:$4 sm:$0xff]  }
  0xfa   :  { %2817 = vmatpush1.bf16.msra.mxu0 %v16799_v50  ;;  %2890 = vmatpush1.bf16.msra.mxu1 %v16802_v51 }
  0xfb   :  { %2818 = vmatprep.subr.bf16.mxu0 %v16807_v52  ;;  %2891 = vmatprep.subr.bf16.mxu1 %v16810_v55 }
  0xfc   :  { %13430 = vmatprep.mubr.msk.bf16.mxu0 %vm487_vm3, %v17764_v60  ;;  %13434 = vmatprep.mubr.msk.bf16.mxu1 %vm487_vm3, %v17764_v60 }
  0xfe   :  { %2819 = vmatpush1.bf16.msra.mxu0 %v16805_v56  ;;  %2892 = vmatpush1.bf16.msra.mxu1 %v16808_v57 }
  0xff   :  { %2820 = vmatprep.subr.bf16.mxu0 %v16813_v18  ;;  %2893 = vmatprep.subr.bf16.mxu1 %v16816_v58 }
 0x101   :  { %2424 = vmatmul.mubr.bf16.gmra.mrb[20].mxu0 %v17765_v5  ;;  %2497 = vmatmul.mubr.bf16.gmra.mrb[20].mxu1 %v17765_v5 }
 0x102   :  { %2821 = vmatpush1.bf16.msra.mxu0 %v16811_v59  ;;  %2894 = vmatpush1.bf16.msra.mxu1 %v16814_v42 }
 0x103   :  { %2822 = vmatprep.subr.bf16.mxu0 %v16819_v35  ;;  %2895 = vmatprep.subr.bf16.mxu1 %v16822_v63 }
 0x104   :  { %13431 = vmatprep.mubr.msk.bf16.mxu0 %vm487_vm3, %v17766_v8  ;;  %13435 = vmatprep.mubr.msk.bf16.mxu1 %vm487_vm3, %v17766_v8 }
 0x106   :  { %2823 = vmatpush1.bf16.msra.mxu0 %v16817_v0  ;;  %2896 = vmatpush1.bf16.msra.mxu1 %v16820_v2 }
 0x107   :  { %2824 = vmatprep.subr.bf16.mxu0 %v16825_v4  ;;  %2897 = vmatprep.subr.bf16.mxu1 %v16828_v49 }
 0x109   :  { %2434 = vmatmul.mubr.bf16.gmra.mrb[24].mxu0 %v17767_v6  ;;  %2507 = vmatmul.mubr.bf16.gmra.mrb[24].mxu1 %v17767_v6 }
 0x10a   :  { %2825 = vmatpush1.bf16.msra.mxu0 %v16823_v7  ;;  %2898 = vmatpush1.bf16.msra.mxu1 %v16826_v61 }
 0x10b   :  { %2826 = vmatprep.subr.bf16.mxu0 %v16831_v9  ;;  %2899 = vmatprep.subr.bf16.mxu1 %v16834_v10 }
 0x10c   :  { %13432 = vmatprep.mubr.msk.bf16.mxu0 %vm487_vm3, %v18120_v44  ;;  %13436 = vmatprep.mubr.msk.bf16.mxu1 %vm487_vm3, %v18120_v44  ;;  %v16844_v44 = vld [vmem:[%s22903_s23 + $0x818] ss:$16 sps:$4 sm:$0xff]  }
 0x10e   :  { %2827 = vmatpush1.bf16.msra.mxu0 %v16829_v11  ;;  %2900 = vmatpush1.bf16.msra.mxu1 %v16832_v3 }
 0x10f   :  { %2828 = vmatprep.subr.bf16.mxu0 %v16837_v12  ;;  %2901 = vmatprep.subr.bf16.mxu1 %v16840_v14  ;;  %v1573_v14 = vlaneseq }
 0x111   :  { %2444 = vmatmul.mubr.bf16.gmra.mrb[28].mxu0 %v18123_v45  ;;  %2517 = vmatmul.mubr.bf16.gmra.mrb[28].mxu1 %v18123_v45  ;;  %v16855_v45 = vld [vmem:[%s22903_s23 + $0x854] ss:$16 sps:$4 sm:$0xff]   ;;  %v19022_v6 = vshrl.u32 %v1573_v14, 7 }
 0x112   :  { %2829 = vmatpush1.bf16.msra.mxu0 %v16835_v1  ;;  %2902 = vmatpush1.bf16.msra.mxu1 %v16838_v15 }
 0x113   :  { %2830 = vmatprep.subr.bf16.mxu0 %v16843_v37  ;;  %2903 = vmatprep.subr.bf16.mxu1 %v16846_v16  ;;  %v22897_v1 = vsub.s32 0, %v19022_v6  ;;  %v22899_v15 = vsub.s32 2, %v19022_v6  ;;  %v56_v37 = vld [vmem:[%s22880_s2] sm:$0xf]  ;;  %v22896_v16 = vsub.s32 1, %v19022_v6 }
 0x114   :  { %13531 = vmatprep.mubr.msk.bf16.mxu0 %vm487_vm3, %v18389_v34  ;;  %13535 = vmatprep.mubr.msk.bf16.mxu1 %vm487_vm3, %v18389_v34  ;;  %v13482_v34 = vld [vmem:[%s22903_s23 + $0x898] sm:$0xff] }
 0x115   :  { %v13530_v39 = vcombine.high %v13482_v34, %v13482_v34  ;;  %v13529_v40 = vcombine.low %v13482_v34, %v13482_v34 }
 0x116   :  { %2831 = vmatpush1.bf16.msra.mxu0 %v16841_v13  ;;  %2904 = vmatpush1.bf16.msra.mxu1 %v16844_v44  ;;  %v22898_v13 = vsub.s32 3, %v19022_v6  ;;  %v22900_v44 = vmov 0  }
 0x117   :  { %2832 = vmatprep.subr.bf16.mxu0 %v16849_v17  ;;  %2905 = vmatprep.subr.bf16.mxu1 %v16852_v54  ;;  %v2814_v43 = vand.u32 %v13530_v39, %v18031_v62  ;;  %v2811_v50 = vand.u32 %v13529_v40, %v18031_v62  ;;  %v19035_v17 = vrot.slane %v56_v37, %v22897_v1 }
 0x118   :  { %v19039_v54 = vrot.slane %v56_v37, %v22899_v15 }
 0x11a   :  { %2833 = vmatpush1.bf16.msra.mxu0 %v16847_v21  ;;  %2906 = vmatpush1.bf16.msra.mxu1 %v16850_v38  ;;  %v19043_v21 = vrot.slane %v56_v37, %v22896_v16  ;;  %v19047_v38 = vrot.slane %v56_v37, %v22898_v13 }
 0x11b   :  { %2834 = vmatprep.subr.bf16.mxu0 %v16855_v45  ;;  %2907 = vmatprep.subr.bf16.mxu1 %v16858_v22 }
 0x11e   :  { %2835 = vmatpush1.bf16.msra.mxu0 %v16853_v20  ;;  %2908 = vmatpush1.bf16.msra.mxu1 %v16856_v25 }
 0x11f   :  { %2836 = vmatprep.subr.bf16.mxu0 %v16861_v27  ;;  %2909 = vmatprep.subr.bf16.mxu1 %v16864_v28 }
 0x122   :  { %2837 = vmatpush1.bf16.msra.mxu0 %v16859_v26  ;;  %2910 = vmatpush1.bf16.msra.mxu1 %v16862_v32 }
 0x123   :  { %2838 = vmatprep.subr.bf16.mxu0 %v2808_v41  ;;  %2911 = vmatprep.subr.bf16.mxu1 %v2814_v43 }
 0x126   :  { %2839 = vmatpush1.bf16.msra.mxu0 %v2805_v36  ;;  %2912 = vmatpush1.bf16.msra.mxu1 %v2811_v50 }
 0x129   :  { %2849 = vmatmul.mubr.bf16.vlgmr.msra.gmra.mrb[16].mxu0 %v18464_v19  ;;  %2922 = vmatmul.mubr.bf16.vlgmr.msra.gmra.mrb[16].mxu1 %v18464_v19 }
 0x12a   :  { %13532 = vmatprep.mubr.msk.bf16.mxu0 %vm487_vm3, %v18483_v24  ;;  %13536 = vmatprep.mubr.msk.bf16.mxu1 %vm487_vm3, %v18483_v24 }
 0x131   :  { %2859 = vmatmul.mubr.bf16.gmra.mrb[20].mxu0 %v18506_v31  ;;  %2932 = vmatmul.mubr.bf16.gmra.mrb[20].mxu1 %v18506_v31 }
 0x132   :  { %13533 = vmatprep.mubr.msk.bf16.mxu0 %vm487_vm3, %v18525_v46  ;;  %13537 = vmatprep.mubr.msk.bf16.mxu1 %vm487_vm3, %v18525_v46 }
 0x139   :  { %2869 = vmatmul.mubr.bf16.gmra.mrb[24].mxu0 %v18547_v53  ;;  %2942 = vmatmul.mubr.bf16.gmra.mrb[24].mxu1 %v18547_v53 }
 0x13a   :  { %13534 = vmatprep.mubr.msk.bf16.mxu0 %vm487_vm3, %v18503_v30  ;;  %13538 = vmatprep.mubr.msk.bf16.mxu1 %vm487_vm3, %v18503_v30 }
 0x141   :  { %2879 = vmatmul.mubr.bf16.gmra.mrb[28].mxu0 %v18530_v48  ;;  %2952 = vmatmul.mubr.bf16.gmra.mrb[28].mxu1 %v18530_v48 }
 0x142   :  { %3175 = vmatprep.mubr.bf16.mxu0 %v22900_v44  ;;  %3228 = vmatprep.mubr.bf16.mxu1 %v22900_v44 }
 0x16c   :  { %v1428_v19 = vpop.f32.mrb[0].mxu0  ;;  %v1501_v24 = vpop.f32.mrb[0].mxu1 }
 0x16d   :  { %v1430_v31 = vpop.f32.mrb[1].mxu0  ;;  %v1503_v51 = vpop.f32.mrb[1].mxu1  ;;  %v19050_v45 = vadd.f32 %v19035_v17, %v1428_v19  ;;  %v19053_v22 = vadd.f32 %v19039_v54, %v1501_v24 }
 0x16e   :  { %v1432_v52 = vpop.f32.mrb[2].mxu0  ;;  %v1505_v46 = vpop.f32.mrb[2].mxu1  ;;  %v19056_v23 = vadd.f32 %v19043_v21, %v1430_v31  ;;  %v19059_v34 = vadd.f32 %v19047_v38, %v1503_v51 }
 0x16f   :  { %v1434_v55 = vpop.f32.mrb[3].mxu0  ;;  %v1507_v56 = vpop.f32.mrb[3].mxu1  ;;  %v19062_v20 = vadd.f32 %v19035_v17, %v1432_v52  ;;  %v19065_v25 = vadd.f32 %v19039_v54, %v1505_v46  ;;  %v1625_v29 = vmax.f32 %v19050_v45, 0.0  ;;  %v1627_v33 = vmax.f32 %v19053_v22, 0.0 }
 0x170   :  { %v19068_v27 = vadd.f32 %v19043_v21, %v1434_v55  ;;  %v19071_v28 = vadd.f32 %v19047_v38, %v1507_v56  ;;  %v1626_v40 = vmax.f32 %v19056_v23, 0.0  ;;  %v1628_v41 = vmax.f32 %v19059_v34, 0.0 }
 0x171   :  { %v1629_v43 = vmax.f32 %v19062_v20, 0.0  ;;  %v1631_v36 = vmax.f32 %v19065_v25, 0.0 }
 0x172   :  { %v1630_v31 = vmax.f32 %v19068_v27, 0.0 }
 0x174   :  { %v1438_v57 = vpop.f32.mrb[4].mxu0  ;;  %v1511_v53 = vpop.f32.mrb[4].mxu1 }
 0x175   :  { %v1440_v18 = vpop.f32.mrb[5].mxu0  ;;  %v1513_v58 = vpop.f32.mrb[5].mxu1  ;;  %v19075_v39 = vadd.f32 %v19035_v17, %v1438_v57  ;;  %v19078_v26 = vadd.f32 %v19039_v54, %v1511_v53 }
 0x176   :  { %v1442_v59 = vpop.f32.mrb[6].mxu0  ;;  %v1515_v42 = vpop.f32.mrb[6].mxu1  ;;  %v19081_v32 = vadd.f32 %v19043_v21, %v1440_v18  ;;  %v19089_v50 = vadd.f32 %v19047_v38, %v1513_v58 }
 0x177   :  { %v1444_v60 = vpop.f32.mrb[7].mxu0  ;;  %v1517_v30 = vpop.f32.mrb[7].mxu1  ;;  %v19092_v19 = vadd.f32 %v19035_v17, %v1442_v59  ;;  %v19095_v24 = vadd.f32 %v19039_v54, %v1515_v42 }
 0x178   :  { %v19100_v52 = vadd.f32 %v19043_v21, %v1444_v60  ;;  %v19103_v46 = vadd.f32 %v19047_v38, %v1517_v30 }
 0x17c   :  { %v1448_v35 = vpop.f32.mrb[8].mxu0  ;;  %v1521_v63 = vpop.f32.mrb[8].mxu1 }
 0x17d   :  { %v1450_v0 = vpop.f32.mrb[9].mxu0  ;;  %v1523_v48 = vpop.f32.mrb[9].mxu1  ;;  %v19109_v53 = vadd.f32 %v19035_v17, %v1448_v35  ;;  %v19112_v18 = vadd.f32 %v19039_v54, %v1521_v63 }
 0x17e   :  { %v1452_v2 = vpop.f32.mrb[10].mxu0  ;;  %v1525_v4 = vpop.f32.mrb[10].mxu1  ;;  %v19115_v58 = vadd.f32 %v19043_v21, %v1450_v0  ;;  %v19118_v59 = vadd.f32 %v19047_v38, %v1523_v48 }
 0x17f   :  { %v19002_v49 = vpop.f32.mrb[11].mxu0  ;;  %v19004_v5 = vpop.f32.mrb[11].mxu1  ;;  %v19121_v42 = vadd.f32 %v19035_v17, %v1452_v2  ;;  %v19127_v35 = vadd.f32 %v19039_v54, %v1525_v4 }
 0x180   :  { %v19133_v48 = vadd.f32 %v19043_v21, %v19002_v49  ;;  %v19137_v2 = vadd.f32 %v19047_v38, %v19004_v5  ;;  %v3129_v49 = vsel %vm3127_vm5, 4294967295, %v17772_v47  ;;  %vm12955_vm5 = vcmask 1024  }
 0x181   :  { %v19188_v15 = vsel %vm3128_vm6, %v3129_v49, 0 }
 0x184   :  { %v19006_v7 = vpop.f32.mrb[12].mxu0  ;;  %v19008_v61 = vpop.f32.mrb[12].mxu1 }
 0x185   :  { %v19010_v8 = vpop.f32.mrb[13].mxu0  ;;  %v19012_v9 = vpop.f32.mrb[13].mxu1  ;;  %v19142_v16 = vadd.f32 %v19035_v17, %v19006_v7  ;;  %v19146_v4 = vadd.f32 %v19039_v54, %v19008_v61 }
 0x186   :  { %v19014_v10 = vpop.f32.mrb[14].mxu0  ;;  %v19016_v11 = vpop.f32.mrb[14].mxu1  ;;  %v19150_v1 = vadd.f32 %v19043_v21, %v19010_v8  ;;  %v19159_v7 = vadd.f32 %v19047_v38, %v19012_v9 }
 0x187   :  { %v19018_v3 = vpop.f32.mrb[15].mxu0  ;;  %v19020_v12 = vpop.f32.mrb[15].mxu1  ;;  %v19163_v61 = vadd.f32 %v19035_v17, %v19014_v10  ;;  %v19169_v5 = vadd.f32 %v19039_v54, %v19016_v11 }
 0x188   :  { %v19173_v44 = vadd.f32 %v19043_v21, %v19018_v3  ;;  %v19180_v13 = vadd.f32 %v19047_v38, %v19020_v12 }
 0x1fc   :  { %v2850_v10 = vpop.f32.mrb[16].mxu0  ;;  %v2923_v0 = vpop.f32.mrb[16].mxu1 }
 0x1fd   :  { %v2994_v12 = vadd.f32 %v2850_v10, %v19035_v17  ;;  %v2996_v63 = vadd.f32 %v2923_v0, %v19039_v54  ;;  %v2852_v14 = vpop.f32.mrb[17].mxu0  ;;  %v2925_v47 = vpop.f32.mrb[17].mxu1 }
 0x1fe   :  { %v2995_v11 = vadd.f32 %v2852_v14, %v19043_v21  ;;  %v2997_v8 = vadd.f32 %v2925_v47, %v19047_v38  ;;  %v2854_v30 = vpop.f32.mrb[18].mxu0  ;;  %v2927_v3 = vpop.f32.mrb[18].mxu1 }
 0x1ff   :  { %v3026_v60 = vmax.f32 %v2994_v12, 0.0  ;;  %v3028_v37 = vmax.f32 %v2996_v63, 0.0  ;;  %v2998_v9 = vadd.f32 %v2854_v30, %v19035_v17  ;;  %v3000_v49 = vadd.f32 %v2927_v3, %v19039_v54  ;;  %v2856_v57 = vpop.f32.mrb[19].mxu0  ;;  %v2929_v56 = vpop.f32.mrb[19].mxu1 }
 0x200   :  { %v3027_v55 = vmax.f32 %v2995_v11, 0.0  ;;  %v3029_v10 = vmax.f32 %v2997_v8, 0.0  ;;  %v2999_v0 = vadd.f32 %v2856_v57, %v19043_v21  ;;  %v3001_v51 = vadd.f32 %v2929_v56, %v19047_v38 }
 0x201   :  { %v3058_v14 = vmax.f32 %v1625_v29, %v3026_v60  ;;  %v3060_v47 = vmax.f32 %v1627_v33, %v3028_v37  ;;  %v3030_v12 = vmax.f32 %v2998_v9, 0.0  ;;  %v3032_v63 = vmax.f32 %v3000_v49, 0.0 }
 0x202   :  { %v3059_v30 = vmax.f32 %v1626_v40, %v3027_v55  ;;  %v3061_v3 = vmax.f32 %v1628_v41, %v3029_v10  ;;  %v3031_v11 = vmax.f32 %v2999_v0, 0.0  ;;  %v3033_v8 = vmax.f32 %v3001_v51, 0.0 }
 0x203   :  { %v3062_v57 = vmax.f32 %v1629_v43, %v3030_v12  ;;  %v3064_v45 = vmax.f32 %v1631_v36, %v3032_v63  ;;  %v22904_v29 = vmax.f32 %v19071_v28, 0.0 }
 0x204   :  { %v3063_v22 = vmax.f32 %v1630_v31, %v3031_v11  ;;  %v2860_v56 = vpop.f32.mrb[20].mxu0  ;;  %v2933_v23 = vpop.f32.mrb[20].mxu1  ;;  %v22906_v11 = vmax.f32 %v19078_v26, 0.0  ;;  %v22910_v26 = vmax.f32 %v19095_v24, 0.0 }
 0x205   :  { %v3065_v33 = vmax.f32 %v22904_v29, %v3033_v8  ;;  %v19214_v40 = vpack.c.bf16 %v3062_v57, %v3058_v14  ;;  %v19216_v34 = vpack.c.bf16 %v3064_v45, %v3060_v47  ;;  %v3002_v41 = vadd.f32 %v2860_v56, %v19035_v17  ;;  %v2862_v43 = vpop.f32.mrb[21].mxu0  ;;  %v2935_v51 = vpop.f32.mrb[21].mxu1 }
 0x206   :  { %v3004_v20 = vadd.f32 %v2933_v23, %v19039_v54  ;;  %v3003_v25 = vadd.f32 %v2862_v43, %v19043_v21  ;;  %v3005_v27 = vadd.f32 %v2935_v51, %v19047_v38  ;;  %v2864_v36 = vpop.f32.mrb[22].mxu0  ;;  %v2937_v31 = vpop.f32.mrb[22].mxu1  ;;  %v19222_v28 = vpack.c.bf16 %v3063_v22, %v3059_v30 }
 0x207   :  { %v19224_v55 = vpack.c.bf16 %v3065_v33, %v3061_v3  ;;  %v3034_v60 = vmax.f32 %v3002_v41, 0.0  ;;  %v3006_v9 = vadd.f32 %v2864_v36, %v19035_v17  ;;  %v3008_v49 = vadd.f32 %v2937_v31, %v19039_v54  ;;  %v2866_v10 = vpop.f32.mrb[23].mxu0  ;;  %v2939_v0 = vpop.f32.mrb[23].mxu1 }
 0x208   :  { %v3036_v37 = vmax.f32 %v3004_v20, 0.0  ;;  %v3035_v14 = vmax.f32 %v3003_v25, 0.0  ;;  %v3037_v47 = vmax.f32 %v3005_v27, 0.0  ;;  %v3007_v12 = vadd.f32 %v2866_v10, %v19043_v21  ;;  %3143 = vmatprep.subr.bf16.mxu0 %v19222_v28 }
 0x209   :  { %v3009_v63 = vadd.f32 %v2939_v0, %v19047_v38  ;;  %3196 = vmatprep.subr.bf16.mxu1 %v19224_v55  ;;  %v22905_v30 = vmax.f32 %v19075_v39, 0.0  ;;  %v3038_v57 = vmax.f32 %v3006_v9, 0.0  ;;  %v3040_v45 = vmax.f32 %v3008_v49, 0.0  ;;  %3144 = vmatpush1.bf16.msra.mxu0 %v19214_v40 }
 0x20a   :  { %v3068_v8 = vmax.f32 %v22906_v11, %v3036_v37  ;;  %3197 = vmatpush1.bf16.msra.mxu1 %v19216_v34  ;;  %v22907_v22 = vmax.f32 %v19081_v32, 0.0  ;;  %v22908_v33 = vmax.f32 %v19089_v50, 0.0  ;;  %v3039_v23 = vmax.f32 %v3007_v12, 0.0 }
 0x20b   :  { %v3066_v3 = vmax.f32 %v22905_v30, %v3034_v60  ;;  %v3041_v41 = vmax.f32 %v3009_v63, 0.0  ;;  %v22909_v39 = vmax.f32 %v19092_v19, 0.0  ;;  %v3072_v43 = vmax.f32 %v22910_v26, %v3040_v45 }
 0x20c   :  { %v3067_v29 = vmax.f32 %v22907_v22, %v3035_v14  ;;  %v3069_v56 = vmax.f32 %v22908_v33, %v3037_v47  ;;  %v22911_v51 = vmax.f32 %v19100_v52, 0.0  ;;  %v22912_v27 = vmax.f32 %v19103_v46, 0.0  ;;  %v2870_v31 = vpop.f32.mrb[24].mxu0  ;;  %v2943_v32 = vpop.f32.mrb[24].mxu1 }
 0x20d   :  { %v3070_v20 = vmax.f32 %v22909_v39, %v3038_v57  ;;  %v19252_v50 = vpack.c.bf16 %v3072_v43, %v3068_v8  ;;  %v3010_v37 = vadd.f32 %v2870_v31, %v19035_v17  ;;  %v3012_v19 = vadd.f32 %v2943_v32, %v19039_v54  ;;  %v2872_v9 = vpop.f32.mrb[25].mxu0  ;;  %v2945_v49 = vpop.f32.mrb[25].mxu1 }
 0x20e   :  { %v3071_v25 = vmax.f32 %v22911_v51, %v3039_v23  ;;  %v3073_v36 = vmax.f32 %v22912_v27, %v3041_v41  ;;  %v3011_v24 = vadd.f32 %v2872_v9, %v19043_v21  ;;  %v3013_v52 = vadd.f32 %v2945_v49, %v19047_v38  ;;  %v2874_v10 = vpop.f32.mrb[26].mxu0  ;;  %v2947_v0 = vpop.f32.mrb[26].mxu1 }
 0x20f   :  { %v19250_v60 = vpack.c.bf16 %v3070_v20, %v3066_v3  ;;  %v3042_v47 = vmax.f32 %v3010_v37, 0.0  ;;  %v3044_v12 = vmax.f32 %v3012_v19, 0.0  ;;  %v3014_v63 = vadd.f32 %v2874_v10, %v19035_v17  ;;  %v2876_v3 = vpop.f32.mrb[27].mxu0  ;;  %v2949_v11 = vpop.f32.mrb[27].mxu1 }
 0x210   :  { %v19258_v46 = vpack.c.bf16 %v3071_v25, %v3067_v29  ;;  %v19260_v14 = vpack.c.bf16 %v3073_v36, %v3069_v56  ;;  %v3016_v30 = vadd.f32 %v2947_v0, %v19039_v54  ;;  %v3043_v8 = vmax.f32 %v3011_v24, 0.0 }
 0x211   :  { %v3045_v57 = vmax.f32 %v3013_v52, 0.0  ;;  %v3015_v45 = vadd.f32 %v2876_v3, %v19043_v21  ;;  %v3017_v22 = vadd.f32 %v2949_v11, %v19047_v38  ;;  %v22913_v29 = vmax.f32 %v19109_v53, 0.0 }
 0x212   :  { %3145 = vmatprep.subr.bf16.mxu0 %v19258_v46  ;;  %3198 = vmatprep.subr.bf16.mxu1 %v19260_v14  ;;  %v22914_v56 = vmax.f32 %v19112_v18, 0.0  ;;  %v3046_v41 = vmax.f32 %v3014_v63, 0.0  ;;  %v3048_v39 = vmax.f32 %v3016_v30, 0.0  ;;  %v22915_v20 = vmax.f32 %v19115_v58, 0.0 }
 0x213   :  { %v3074_v33 = vmax.f32 %v22913_v29, %v3042_v47  ;;  %3146 = vmatpush1.bf16.msra.mxu0 %v19250_v60  ;;  %3199 = vmatpush1.bf16.msra.mxu1 %v19252_v50  ;;  %v22916_v43 = vmax.f32 %v19118_v59, 0.0  ;;  %v3047_v25 = vmax.f32 %v3015_v45, 0.0  ;;  %v3049_v27 = vmax.f32 %v3017_v22, 0.0 }
 0x214   :  { %v3076_v23 = vmax.f32 %v22914_v56, %v3044_v12  ;;  %v3075_v26 = vmax.f32 %v22915_v20, %v3043_v8  ;;  %v22917_v53 = vmax.f32 %v19121_v42, 0.0  ;;  %v22918_v18 = vmax.f32 %v19127_v35, 0.0  ;;  %v2880_v49 = vpop.f32.mrb[28].mxu0  ;;  %v2953_v58 = vpop.f32.mrb[28].mxu1 }
 0x215   :  { %v3077_v51 = vmax.f32 %v22916_v43, %v3045_v57  ;;  %v22919_v32 = vmax.f32 %v19133_v48, 0.0  ;;  %v22920_v19 = vmax.f32 %v19137_v2, 0.0  ;;  %v3018_v52 = vadd.f32 %v2880_v49, %v19035_v17  ;;  %v2882_v10 = vpop.f32.mrb[29].mxu0  ;;  %v2955_v0 = vpop.f32.mrb[29].mxu1 }
 0x216   :  { %v3078_v36 = vmax.f32 %v22917_v53, %v3046_v41  ;;  %v3080_v31 = vmax.f32 %v22918_v18, %v3048_v39  ;;  %v3020_v42 = vadd.f32 %v2953_v58, %v19039_v54  ;;  %v3019_v35 = vadd.f32 %v2882_v10, %v19043_v21  ;;  %v2884_v47 = vpop.f32.mrb[30].mxu0  ;;  %v2957_v12 = vpop.f32.mrb[30].mxu1  ;;  %v16883_v10 = vld [vmem:[%s22882_s4 + $0x198] sm:$0xff]  }
 0x217   :  { %v3079_v37 = vmax.f32 %v22919_v32, %v3047_v25  ;;  %v3081_v9 = vmax.f32 %v22920_v19, %v3049_v27  ;;  %v3021_v48 = vadd.f32 %v2955_v0, %v19047_v38  ;;  %v3050_v30 = vmax.f32 %v3018_v52, 0.0  ;;  %v2886_v57 = vpop.f32.mrb[31].mxu0  ;;  %v2959_v45 = vpop.f32.mrb[31].mxu1  ;;  %v16881_v52 = vld [vmem:[%s22882_s4 + $0x130] sm:$0xff]   ;;  %v16884_v0 = vld [vmem:[%s22882_s4 + $0x138] sm:$0xff]  }
 0x218   :  { %v19286_v24 = vpack.c.bf16 %v3078_v36, %v3074_v33  ;;  %v19288_v59 = vpack.c.bf16 %v3080_v31, %v3076_v23  ;;  %v3052_v3 = vmax.f32 %v3020_v42, 0.0  ;;  %v3022_v11 = vadd.f32 %v2884_v47, %v19035_v17  ;;  %v16882_v42 = vld [vmem:[%s22882_s4 + $0xf0] sm:$0xff]   ;;  %v16887_v47 = vld [vmem:[%s22882_s4 + $0x140] sm:$0xff]  }
 0x219   :  { %v3099_v2 = vpack.c.bf16 %v3079_v37, %v3075_v26  ;;  %v3101_v63 = vpack.c.bf16 %v3081_v9, %v3077_v51  ;;  %v3024_v8 = vadd.f32 %v2957_v12, %v19039_v54  ;;  %v3051_v22 = vmax.f32 %v3019_v35, 0.0  ;;  %v16885_v35 = vld [vmem:[%s22882_s4 + $0xf8] sm:$0xff]   ;;  %v16888_v12 = vld [vmem:[%s22882_s4 + $0x100] sm:$0xff]  }
 0x21a   :  { %v3053_v29 = vmax.f32 %v3021_v48, 0.0  ;;  %v3023_v33 = vadd.f32 %v2886_v57, %v19043_v21  ;;  %v3025_v56 = vadd.f32 %v2959_v45, %v19047_v38  ;;  %v22921_v23 = vmax.f32 %v19142_v16, 0.0  ;;  %v16886_v48 = vld [vmem:[%s22882_s4 + $0x1a0] sm:$0xff]   ;;  %v16895_v57 = vld [vmem:[%s22882_s4 + $0x1b8] sm:$0xff]  }
 0x21b   :  { %3147 = vmatprep.subr.bf16.mxu0 %v3099_v2  ;;  %3200 = vmatprep.subr.bf16.mxu1 %v3101_v63  ;;  %v22922_v39 = vmax.f32 %v19146_v4, 0.0  ;;  %v3054_v26 = vmax.f32 %v3022_v11, 0.0  ;;  %v3056_v17 = vmax.f32 %v3024_v8, 0.0  ;;  %v22923_v54 = vmax.f32 %v19150_v1, 0.0  ;;  %v16893_v11 = vld [vmem:[%s22882_s4 + $0x150] sm:$0xff]   ;;  %v16896_v45 = vld [vmem:[%s22882_s4 + $0x158] sm:$0xff]  }
 0x21c   :  { %v3082_v41 = vmax.f32 %v22921_v23, %v3050_v30  ;;  %3148 = vmatpush1.bf16.msra.mxu0 %v19286_v24  ;;  %3201 = vmatpush1.bf16.msra.mxu1 %v19288_v59  ;;  %v22924_v21 = vmax.f32 %v19159_v7, 0.0  ;;  %v3055_v51 = vmax.f32 %v3023_v33, 0.0  ;;  %v3057_v25 = vmax.f32 %v3025_v56, 0.0  ;;  %v16891_v30 = vld [vmem:[%s22882_s4 + $0x108] sm:$0xff]   ;;  %v16894_v8 = vld [vmem:[%s22882_s4 + $0x110] sm:$0xff]   ;;  %v16899_v33 = vld [vmem:[%s22882_s4 + $0x160] sm:$0xff]  }
 0x21d   :  { %v3084_v20 = vmax.f32 %v22922_v39, %v3052_v3  ;;  %v3083_v43 = vmax.f32 %v22923_v54, %v3051_v22  ;;  %v22925_v16 = vmax.f32 %v19163_v61, 0.0  ;;  %v22926_v4 = vmax.f32 %v19169_v5, 0.0  ;;  %v16869_v5 = vld [vmem:[%s22881_s3] sm:$0xff]   ;;  %v16892_v3 = vld [vmem:[%s22882_s4 + $0x1b0] sm:$0xff]   ;;  %v16897_v22 = vld [vmem:[%s22882_s4 + $0x118] sm:$0xff]  }
 0x21e   :  { %v3085_v38 = vmax.f32 %v22924_v21, %v3053_v29  ;;  %v22927_v36 = vmax.f32 %v19173_v44, 0.0  ;;  %v22928_v31 = vmax.f32 %v19180_v13, 0.0  ;;  %v16870_v13 = vld [vmem:[%s22881_s3 + $0x8] sm:$0x7f]   ;;  %v22929_v58 = vmov 0   ;;  %v16898_v29 = vld [vmem:[%s22882_s4 + $0x1c0] sm:$0xff]  }
 0x21f   :  { %v3086_v27 = vmax.f32 %v22925_v16, %v3054_v26  ;;  %v3088_v53 = vmax.f32 %v22926_v4, %v3056_v17  ;;  %v16900_v56 = vld [vmem:[%s22882_s4 + $0x120] sm:$0xff]   ;;  %v16901_v23 = vld [vmem:[%s22882_s4 + $0x1c8] sm:$0xff]  }
 0x220   :  { %v3087_v18 = vmax.f32 %v22927_v36, %v3055_v51  ;;  %v3089_v32 = vmax.f32 %v22928_v31, %v3057_v25 }
 0x221   :  { %v3102_v1 = vpack.c.bf16 %v3086_v27, %v3082_v41  ;;  %v3104_v37 = vpack.c.bf16 %v3088_v53, %v3084_v20  ;;  %v16902_v41 = vld [vmem:[%s22882_s4 + $0x40] sm:$0xff]  }
 0x222   :  { %v3103_v19 = vpack.c.bf16 %v3087_v18, %v3083_v43  ;;  %v3105_v7 = vpack.c.bf16 %v3089_v32, %v3085_v38 }
 0x223   :  { %v3132_v61 = vand.u32 %v19188_v15, %v3102_v1  ;;  %v3138_v44 = vand.u32 %v19188_v15, %v3104_v37 }
 0x224   :  { %v3135_v9 = vand.u32 %v19188_v15, %v3103_v19  ;;  %v3141_v49 = vand.u32 %v19188_v15, %v3105_v7 }
 0x226   :  { %3149 = vmatprep.subr.bf16.mxu0 %v3135_v9  ;;  %3202 = vmatprep.subr.bf16.mxu1 %v3141_v49 }
 0x227   :  { %3150 = vmatpush1.bf16.msra.mxu0 %v3132_v61  ;;  %3203 = vmatpush1.bf16.msra.mxu1 %v3138_v44 }
 0x228   :  { %3270 = vmatprep.subr.bf16.mxu0 %v19222_v28  ;;  %3323 = vmatprep.subr.bf16.mxu1 %v19224_v55  ;;  %v16874_v28 = vld [vmem:[%s22882_s4 + $0x170] sm:$0xff]   ;;  %v16872_v55 = vld [vmem:[%s22881_s3 + $0x18] sm:$0x7f]  }
 0x22a   :  { %13541 = vmatmul.mubr.msk.bf16.vlgmr.msra.gmra.mrb[32].mxu0 %vm3120_vm7, %v16869_v5  ;;  %13543 = vmatmul.mubr.msk.bf16.vlgmr.msra.gmra.mrb[32].mxu1 %vm3120_vm7, %v16869_v5 }
 0x22b   :  { %3271 = vmatpush1.bf16.msra.mxu0 %v19214_v40  ;;  %3324 = vmatpush1.bf16.msra.mxu1 %v19216_v34  ;;  %v16871_v40 = vld [vmem:[%s22881_s3 + $0x10] sm:$0xff]   ;;  %v16873_v34 = vld [vmem:[%s22882_s4 + $0x168] sm:$0xff]  }
 0x22c   :  { %3272 = vmatprep.subr.bf16.mxu0 %v19258_v46  ;;  %3325 = vmatprep.subr.bf16.mxu1 %v19260_v14  ;;  %v16877_v46 = vld [vmem:[%s22882_s4 + $0x188] sm:$0xff]  }
 0x22d   :  { %3185 = vmatprep.mubr.bf16.mxu0 %v22929_v58  ;;  %3238 = vmatprep.mubr.bf16.mxu1 %v22929_v58  ;;  %v16878_v14 = vld [vmem:[%s22882_s4 + $0x128] sm:$0xff]  }
 0x22f   :  { %3273 = vmatpush1.bf16.msra.mxu0 %v19250_v60  ;;  %3326 = vmatpush1.bf16.msra.mxu1 %v19252_v50  ;;  %v16875_v60 = vld [vmem:[%s22882_s4 + $0x178] sm:$0xff]   ;;  %v16876_v50 = vld [vmem:[%s22882_s4 + $0x180] sm:$0xff]  }
 0x230   :  { %3274 = vmatprep.subr.bf16.mxu0 %v3099_v2  ;;  %3327 = vmatprep.subr.bf16.mxu1 %v3101_v63  ;;  %v16889_v2 = vld [vmem:[%s22882_s4 + $0x1a8] sm:$0xff]  }
 0x231   :  { %v16890_v63 = vld [vmem:[%s22882_s4 + $0x148] sm:$0xff]  }
 0x232   :  { %13542 = vmatmul.mubr.msk.bf16.gmra.mrb[36].mxu0 %vm3120_vm7, %v16870_v13  ;;  %13544 = vmatmul.mubr.msk.bf16.gmra.mrb[36].mxu1 %vm3120_vm7, %v16870_v13 }
 0x233   :  { %3275 = vmatpush1.bf16.msra.mxu0 %v19286_v24  ;;  %3328 = vmatpush1.bf16.msra.mxu1 %v19288_v59  ;;  %v16879_v24 = vld [vmem:[%s22882_s4 + $0xe8] sm:$0xff]   ;;  %v16880_v59 = vld [vmem:[%s22882_s4 + $0x190] sm:$0xff]  }
 0x234   :  { %3276 = vmatprep.subr.bf16.mxu0 %v3135_v9  ;;  %3329 = vmatprep.subr.bf16.mxu1 %v3141_v49 }
 0x235   :  { %3302 = vmatprep.mubr.bf16.mxu0 %v22929_v58  ;;  %3355 = vmatprep.mubr.bf16.mxu1 %v22929_v58 }
 0x237   :  { %3277 = vmatpush1.bf16.msra.mxu0 %v3132_v61  ;;  %3330 = vmatpush1.bf16.msra.mxu1 %v3138_v44 }
 0x238   :  { %3814 = vmatprep.subr.bf16.mxu1 %v22929_v58  ;;  %15381 = vmatprep.subr.bf16.mxu0 %v16878_v14 }
 0x23a   :  { %13551 = vmatmul.mubr.msk.bf16.vlgmr.msra.gmra.mrb[40].mxu0 %vm3120_vm7, %v16871_v40  ;;  %13553 = vmatmul.mubr.msk.bf16.vlgmr.msra.gmra.mrb[40].mxu1 %vm3120_vm7, %v16871_v40 }
 0x23b   :  { %3312 = vmatprep.mubr.bf16.mxu0 %v22929_v58  ;;  %3365 = vmatprep.mubr.bf16.mxu1 %v22929_v58 }
 0x23c   :  { %3815 = vmatpush1.bf16.msra.mxu1 %v16873_v34  ;;  %15382 = vmatpush3.bf16.msra.mxu0 %v16879_v24 }
 0x23d   :  { %3816 = vmatprep.subr.bf16.mxu1 %v22929_v58  ;;  %15383 = vmatprep.subr.bf16.mxu0 %v16881_v52 }
 0x240   :  { %3817 = vmatpush1.bf16.msra.mxu1 %v16874_v28  ;;  %15384 = vmatpush3.bf16.msra.mxu0 %v16882_v42 }
 0x241   :  { %3818 = vmatprep.subr.bf16.mxu1 %v22929_v58  ;;  %15385 = vmatprep.subr.bf16.mxu0 %v16884_v0 }
 0x242   :  { %13552 = vmatmul.mubr.msk.bf16.gmra.mrb[44].mxu0 %vm3120_vm7, %v16872_v55  ;;  %13554 = vmatmul.mubr.msk.bf16.gmra.mrb[44].mxu1 %vm3120_vm7, %v16872_v55 }
 0x244   :  { %3819 = vmatpush1.bf16.msra.mxu1 %v16875_v60  ;;  %15386 = vmatpush3.bf16.msra.mxu0 %v16885_v35 }
 0x245   :  { %3820 = vmatprep.subr.bf16.mxu1 %v22929_v58  ;;  %15387 = vmatprep.subr.bf16.mxu0 %v16887_v47 }
 0x248   :  { %3821 = vmatpush1.bf16.msra.mxu1 %v16876_v50  ;;  %15388 = vmatpush3.bf16.msra.mxu0 %v16888_v12 }
 0x249   :  { %3822 = vmatprep.subr.bf16.mxu1 %v22929_v58  ;;  %15389 = vmatprep.subr.bf16.mxu0 %v16890_v63 }
 0x24c   :  { %3823 = vmatpush1.bf16.msra.mxu1 %v16877_v46  ;;  %15390 = vmatpush3.bf16.msra.mxu0 %v16891_v30 }
 0x24d   :  { %3824 = vmatprep.subr.bf16.mxu1 %v22929_v58  ;;  %15391 = vmatprep.subr.bf16.mxu0 %v16893_v11 }
 0x250   :  { %3825 = vmatpush1.bf16.msra.mxu1 %v16880_v59  ;;  %15392 = vmatpush3.bf16.msra.mxu0 %v16894_v8 }
 0x251   :  { %3826 = vmatprep.subr.bf16.mxu1 %v22929_v58  ;;  %15393 = vmatprep.subr.bf16.mxu0 %v16896_v45 }
 0x254   :  { %3827 = vmatpush1.bf16.msra.mxu1 %v16883_v10  ;;  %15394 = vmatpush3.bf16.msra.mxu0 %v16897_v22 }
 0x255   :  { %3828 = vmatprep.subr.bf16.mxu1 %v22929_v58  ;;  %15395 = vmatprep.subr.bf16.mxu0 %v16899_v33 }
 0x258   :  { %3829 = vmatpush1.bf16.msra.mxu1 %v16886_v48  ;;  %15396 = vmatpush3.bf16.msra.mxu0 %v16900_v56 }
 0x259   :  { %3830 = vmatprep.subr.bf16.mxu1 %v22929_v58  ;;  %15409 = vmatprep.subr.bf16.mxu0 %v16902_v41 }
 0x25c   :  { %3831 = vmatpush1.bf16.msra.mxu1 %v16889_v2 }
 0x25d   :  { %3832 = vmatprep.subr.bf16.mxu1 %v22929_v58 }
 0x260   :  { %3833 = vmatpush1.bf16.msra.mxu1 %v16892_v3 }
 0x261   :  { %3834 = vmatprep.subr.bf16.mxu1 %v22929_v58 }
 0x264   :  { %3835 = vmatpush1.bf16.msra.mxu1 %v16895_v57 }
 0x265   :  { %3836 = vmatprep.subr.bf16.mxu1 %v22929_v58 }
 0x268   :  { %3837 = vmatpush1.bf16.msra.mxu1 %v16898_v29 }
 0x269   :  { %3838 = vmatprep.subr.bf16.mxu1 %v22929_v58 }
 0x26c   :  { %3839 = vmatpush1.bf16.msra.mxu1 %v16901_v23 }
 0x26d   :  { %4090 = vmatprep.subr.bf16.mxu1 %v22929_v58 }
 0x2fd   :  { %v3230_v39 = vpop.f32.mrb[32].mxu1  ;;  %v3177_v20 = vpop.f32.mrb[32].mxu0 }
 0x2fe   :  { %v3232_v26 = vpop.f32.mrb[33].mxu1  ;;  %v3179_v17 = vpop.f32.mrb[33].mxu0 }
 0x2ff   :  { %v3234_v54 = vpop.f32.mrb[34].mxu1  ;;  %v3181_v43 = vpop.f32.mrb[34].mxu0 }
 0x300   :  { %v3236_v21 = vpop.f32.mrb[35].mxu1  ;;  %v3183_v38 = vpop.f32.mrb[35].mxu0 }
 0x305   :  { %v3240_v51 = vpop.f32.mrb[36].mxu1  ;;  %v3187_v25 = vpop.f32.mrb[36].mxu0 }
 0x306   :  { %v3242_v16 = vpop.f32.mrb[37].mxu1  ;;  %v3189_v27 = vpop.f32.mrb[37].mxu0 }
 0x307   :  { %v3244_v4 = vpop.f32.mrb[38].mxu1  ;;  %v3191_v53 = vpop.f32.mrb[38].mxu0 }
 0x308   :  { %v3246_v36 = vpop.f32.mrb[39].mxu1  ;;  %v3193_v18 = vpop.f32.mrb[39].mxu0 }
 0x30d   :  { %v3304_v31 = vpop.f32.mrb[40].mxu0  ;;  %v3357_v32 = vpop.f32.mrb[40].mxu1 }
 0x30e   :  { %v3376_v1 = vmax.f32 %v3177_v20, %v3304_v31  ;;  %v3378_v37 = vmax.f32 %v3230_v39, %v3357_v32  ;;  %v3306_v19 = vpop.f32.mrb[41].mxu0  ;;  %v3359_v7 = vpop.f32.mrb[41].mxu1 }
 0x30f   :  { %v3377_v9 = vmax.f32 %v3179_v17, %v3306_v19  ;;  %v3379_v49 = vmax.f32 %v3232_v26, %v3359_v7  ;;  %v3308_v5 = vpop.f32.mrb[42].mxu0  ;;  %v3361_v61 = vpop.f32.mrb[42].mxu1 }
 0x310   :  { %v3380_v44 = vmax.f32 %v3181_v43, %v3308_v5  ;;  %v3382_v13 = vmax.f32 %v3234_v54, %v3361_v61  ;;  %v3310_v40 = vpop.f32.mrb[43].mxu0  ;;  %v3363_v34 = vpop.f32.mrb[43].mxu1 }
 0x311   :  { %v3381_v28 = vmax.f32 %v3183_v38, %v3310_v40  ;;  %v3383_v55 = vmax.f32 %v3236_v21, %v3363_v34 }
 0x312   :  { %v19460_v60 = vpack.c.bf16 %v3380_v44, %v3376_v1  ;;  %v19462_v50 = vpack.c.bf16 %v3382_v13, %v3378_v37 }
 0x313   :  { %v19464_v46 = vpack.c.bf16 %v3381_v28, %v3377_v9  ;;  %v19466_v14 = vpack.c.bf16 %v3383_v55, %v3379_v49  ;;  %v16903_v9 = vld [vmem:[%s22882_s4] sm:$0xff]   ;;  %v16905_v28 = vld [vmem:[%s22882_s4 + $0x48] sm:$0xff]  }
 0x314   :  { %v3521_v57 = vshll.u32 %v19460_v60, 16  ;;  %v3545_v45 = vshll.u32 %v19462_v50, 16  ;;  %v3519_v17 = vshrl.u32 %v19460_v60, 16  ;;  %v16904_v49 = vld [vmem:[%s22882_s4 + $0x80] sm:$0xff]   ;;  %v16906_v55 = vld [vmem:[%s22882_s4 + $0x8] sm:$0xff]  }
 0x315   :  { %v3314_v24 = vpop.f32.mrb[44].mxu0  ;;  %v3367_v59 = vpop.f32.mrb[44].mxu1  ;;  %v3533_v35 = vshll.u32 %v19464_v46, 16  ;;  %v3557_v63 = vshll.u32 %v19466_v14, 16  ;;  %v3531_v23 = vshrl.u32 %v19464_v46, 16 }
 0x316   :  { %v3384_v52 = vmax.f32 %v3187_v25, %v3314_v24  ;;  %v3386_v42 = vmax.f32 %v3240_v51, %v3367_v59  ;;  %v3316_v10 = vpop.f32.mrb[45].mxu0  ;;  %v3369_v0 = vpop.f32.mrb[45].mxu1  ;;  %v3523_v54 = vrot.slane %v3521_v57, 1  ;;  %v3547_v21 = vrot.slane %v3545_v45, 1  ;;  %v16907_v24 = vld [vmem:[%s22882_s4 + $0x88] sm:$0xff]   ;;  %v16908_v59 = vld [vmem:[%s22882_s4 + $0x50] sm:$0xff]  }
 0x317   :  { %v3385_v48 = vmax.f32 %v3189_v27, %v3316_v10  ;;  %v3387_v47 = vmax.f32 %v3242_v16, %v3369_v0  ;;  %v3318_v12 = vpop.f32.mrb[46].mxu0  ;;  %v3371_v2 = vpop.f32.mrb[46].mxu1  ;;  %v3535_v41 = vrot.slane %v3533_v35, 1  ;;  %v3559_v26 = vrot.slane %v3557_v63, 1  ;;  %v16909_v10 = vld [vmem:[%s22882_s4 + $0x10] sm:$0xff]   ;;  %v16914_v63 = vld [vmem:[%s22882_s4 + $0x60] sm:$0xff]  }
 0x318   :  { %v3388_v30 = vmax.f32 %v3191_v53, %v3318_v12  ;;  %v3390_v3 = vmax.f32 %v3244_v4, %v3371_v2  ;;  %v3320_v11 = vpop.f32.mrb[47].mxu0  ;;  %v3373_v8 = vpop.f32.mrb[47].mxu1  ;;  %v3555_v25 = vshrl.u32 %v19466_v14, 16  ;;  %v3524_v19 = vor.u32 %v3523_v54, %v3519_v17  ;;  %v16910_v0 = vld [vmem:[%s22882_s4 + $0x90] sm:$0xff]   ;;  %v16912_v12 = vld [vmem:[%s22882_s4 + $0x18] sm:$0xff]   ;;  %v16919_v57 = vld [vmem:[%s22882_s4 + $0xa8] sm:$0xff]  }
 0x319   :  { %v3389_v22 = vmax.f32 %v3193_v18, %v3320_v11  ;;  %v3391_v29 = vmax.f32 %v3246_v36, %v3373_v8  ;;  %v3536_v4 = vor.u32 %v3535_v41, %v3531_v23  ;;  %v3543_v36 = vshrl.u32 %v19462_v50, 16  ;;  %v16913_v2 = vld [vmem:[%s22882_s4 + $0x98] sm:$0xff]   ;;  %v16917_v11 = vld [vmem:[%s22882_s4 + $0x68] sm:$0xff]   ;;  %v16920_v45 = vld [vmem:[%s22882_s4 + $0x70] sm:$0xff]  }
 0x31a   :  { %v19472_v33 = vpack.c.bf16 %v3388_v30, %v3384_v52  ;;  %v19474_v56 = vpack.c.bf16 %v3390_v3, %v3386_v42  ;;  %v3560_v32 = vor.u32 %v3559_v26, %v3555_v25  ;;  %v16915_v30 = vld [vmem:[%s22882_s4 + $0x20] sm:$0xff]   ;;  %v16918_v8 = vld [vmem:[%s22882_s4 + $0x28] sm:$0xff]   ;;  %v16923_v23 = vld [vmem:[%s22882_s4 + $0x78] sm:$0xff]  }
 0x31b   :  { %v19477_v39 = vpack.c.bf16 %v3389_v22, %v3385_v48  ;;  %v19479_v20 = vpack.c.bf16 %v3391_v29, %v3387_v47  ;;  %v3548_v7 = vor.u32 %v3547_v21, %v3543_v36  ;;  %v16911_v47 = vld [vmem:[%s22882_s4 + $0x58] sm:$0xff]   ;;  %v16916_v3 = vld [vmem:[%s22882_s4 + $0xa0] sm:$0xff]   ;;  %v16921_v22 = vld [vmem:[%s22882_s4 + $0x30] sm:$0xff]  }
 0x31c   :  { %v3526_v43 = vshll.u32 %v19472_v33, 16  ;;  %v3550_v38 = vshll.u32 %v19474_v56, 16  ;;  %v3566_v52 = vshrl.u32 %v19472_v33, 16  ;;  %v3572_v42 = vshrl.u32 %v19474_v56, 16  ;;  %v16922_v29 = vld [vmem:[%s22882_s4 + $0xb0] sm:$0xff]   ;;  %v16924_v41 = vld [vmem:[%s22882_s4 + $0x38] sm:$0xff]  }
 0x31d   :  { %v3538_v51 = vshll.u32 %v19477_v39, 16  ;;  %v3562_v16 = vshll.u32 %v19479_v20, 16  ;;  %v3569_v27 = vshrl.u32 %v19477_v39, 16  ;;  %v3575_v37 = vshrl.u32 %v19479_v20, 16  ;;  %v16925_v26 = vld [vmem:[%s22882_s4 + $0xb8] sm:$0xff]   ;;  %v16926_v17 = vld [vmem:[%s22882_s4 + $0x210] sm:$0xff]  }
 0x31e   :  { %v3528_v53 = vrot.slane %v3526_v43, 1  ;;  %v3552_v18 = vrot.slane %v3550_v38, 1  ;;  %v16927_v54 = vld [vmem:[%s22882_s4 + $0xc0] sm:$0xff]   ;;  %v16928_v43 = vld [vmem:[%s22882_s4 + $0x1d0] sm:$0xff]   ;;  %v16929_v21 = vld [vmem:[%s22882_s4 + $0x218] sm:$0xff]  }
 0x31f   :  { %v3540_v31 = vrot.slane %v3538_v51, 1  ;;  %v3564_v1 = vrot.slane %v3562_v16, 1  ;;  %v16930_v38 = vld [vmem:[%s22882_s4 + $0xc8] sm:$0xff]   ;;  %v16931_v51 = vld [vmem:[%s22882_s4 + $0x1d8] sm:$0xff]   ;;  %v16932_v25 = vld [vmem:[%s22882_s4 + $0x220] sm:$0xff]   ;;  %v19627_v16 = vrot.slane %v19477_v39, 1 }
 0x320   :  { %v19510_v40 = vsel %vm190_vm2, %v3524_v19, %v3528_v53  ;;  %v19513_v34 = vsel %vm190_vm2, %v3548_v7, %v3552_v18  ;;  %v19542_v35 = vor.u32 %v3566_v52, %v3528_v53  ;;  %v19544_v48 = vor.u32 %v3572_v42, %v3552_v18  ;;  %v16935_v36 = vld [vmem:[%s22882_s4 + $0x228] sm:$0xff]   ;;  %v16940_v19 = vld [vmem:[%s22882_s4 + $0x1f0] sm:$0xff]   ;;  %v16942_v7 = vld [vmem:[%s22882_s4 + $0x3e0] sm:$0xff]  }
 0x321   :  { %v19497_v5 = vsel %vm190_vm2, %v3536_v4, %v3540_v31  ;;  %v19500_v61 = vsel %vm190_vm2, %v3560_v32, %v3564_v1  ;;  %v19502_v44 = vor.u32 %v3569_v27, %v3540_v31  ;;  %v19504_v13 = vor.u32 %v3575_v37, %v3564_v1  ;;  %v16933_v27 = vld [vmem:[%s22882_s4 + $0xd0] sm:$0xff]   ;;  %v16934_v4 = vld [vmem:[%s22882_s4 + $0x1e0] sm:$0xff]   ;;  %v16936_v31 = vld [vmem:[%s22882_s4 + $0xd8] sm:$0xff]  }
 0x322   :  { %3797 = vmatprep.mubr.bf16.mxu0 %v19497_v5  ;;  %13642 = vmatprep.mubr.msk.bf16.mxu1 %vm3758_vm8, %v19500_v61  ;;  %v4209_v53 = vrot.slane %v19464_v46, 1  ;;  %v16937_v32 = vld [vmem:[%s22882_s4 + $0x1e8] sm:$0xff]   ;;  %v16938_v1 = vld [vmem:[%s22882_s4 + $0x230] sm:$0xff]   ;;  %v16939_v37 = vld [vmem:[%s22882_s4 + $0xe0] sm:$0xff]  }
 0x323   :  { %3798 = vmatmul.mubr.bf16.vlgmr.msra.gmra.mrb[48].mxu0 %v19510_v40  ;;  %3847 = vmatmul.mubr.bf16.vlgmr.msra.gmra.mrb[48].mxu1 %v19513_v34  ;;  %v16947_v52 = vld [vmem:[%s22882_s4 + $0x200] sm:$0xff]   ;;  %v16950_v42 = vld [vmem:[%s22882_s4 + $0x3f0] sm:$0xff]  }
 0x324   :  { %15410 = vmatpush3.bf16.msra.mxu0 %v16903_v9  ;;  %4091 = vmatpush1.bf16.msra.mxu1 %v16904_v49  ;;  %v19643_v18 = vsel %vm1121_vm4, %v4209_v53, %v19627_v16  ;;  %v16941_v9 = vld [vmem:[%s22882_s4 + $0x238] sm:$0xff]   ;;  %v16944_v49 = vld [vmem:[%s22882_s4 + $0x3a0] sm:$0xff]  }
 0x325   :  { %3805 = vmatprep.mubr.bf16.mxu0 %v19502_v44  ;;  %13643 = vmatprep.mubr.msk.bf16.mxu1 %vm3758_vm8, %v19504_v13  ;;  %v16970_v53 = vld [vmem:[%s22882_s4 + $0x280] sm:$0xff]  }
 0x326   :  { %15411 = vmatprep.subr.bf16.mxu0 %v16905_v28  ;;  %4092 = vmatprep.subr.bf16.mxu1 %v22929_v58  ;;  %v16943_v28 = vld [vmem:[%s22882_s4 + $0x1f8] sm:$0xff]  }
 0x328   :  { %15412 = vmatpush3.bf16.msra.mxu0 %v16906_v55  ;;  %4093 = vmatpush1.bf16.msra.mxu1 %v16907_v24  ;;  %v16946_v55 = vld [vmem:[%s22882_s4 + $0x3e8] sm:$0xff]   ;;  %v16945_v24 = vld [vmem:[%s22882_s4 + $0x240] sm:$0xff]  }
 0x329   :  { %15413 = vmatprep.subr.bf16.mxu0 %v16908_v59  ;;  %4094 = vmatprep.subr.bf16.mxu1 %v22929_v58  ;;  %v16948_v59 = vld [vmem:[%s22882_s4 + $0x3a8] sm:$0xff]  }
 0x32b   :  { %3806 = vmatmul.mubr.bf16.gmra.mrb[52].mxu0 %v19542_v35  ;;  %3855 = vmatmul.mubr.bf16.gmra.mrb[52].mxu1 %v19544_v48 }
 0x32c   :  { %15414 = vmatpush3.bf16.msra.mxu0 %v16909_v10  ;;  %4095 = vmatpush1.bf16.msra.mxu1 %v16910_v0  ;;  %v16949_v10 = vld [vmem:[%s22882_s4 + $0x248] sm:$0xff]   ;;  %v16952_v0 = vld [vmem:[%s22882_s4 + $0x3b0] sm:$0xff]  }
 0x32d   :  { %4073 = vmatprep.mubr.bf16.mxu0 %v19464_v46  ;;  %13673 = vmatprep.mubr.msk.bf16.mxu1 %vm3758_vm8, %v19466_v14 }
 0x32e   :  { %15415 = vmatprep.subr.bf16.mxu0 %v16911_v47  ;;  %4096 = vmatprep.subr.bf16.mxu1 %v22929_v58  ;;  %v16951_v47 = vld [vmem:[%s22882_s4 + $0x208] sm:$0xff]  }
 0x330   :  { %15416 = vmatpush3.bf16.msra.mxu0 %v16912_v12  ;;  %4097 = vmatpush1.bf16.msra.mxu1 %v16913_v2  ;;  %v16953_v12 = vld [vmem:[%s22882_s4 + $0x3f8] sm:$0xff]   ;;  %v19707_v2 = vrot.slane %v19472_v33, 1 }
 0x331   :  { %15417 = vmatprep.subr.bf16.mxu0 %v16914_v63  ;;  %4098 = vmatprep.subr.bf16.mxu1 %v22929_v58  ;;  %v16955_v63 = vld [vmem:[%s22882_s4 + $0x3b8] sm:$0xff]  }
 0x334   :  { %15418 = vmatpush3.bf16.msra.mxu0 %v16915_v30  ;;  %4099 = vmatpush1.bf16.msra.mxu1 %v16916_v3  ;;  %v4206_v30 = vrot.slane %v19460_v60, 1  ;;  %v16954_v3 = vld [vmem:[%s22882_s4 + $0x250] sm:$0xff]  }
 0x335   :  { %15419 = vmatprep.subr.bf16.mxu0 %v16917_v11  ;;  %4100 = vmatprep.subr.bf16.mxu1 %v22929_v58  ;;  %v16956_v11 = vld [vmem:[%s22882_s4 + $0x400] sm:$0xff]  }
 0x338   :  { %15420 = vmatpush3.bf16.msra.mxu0 %v16918_v8  ;;  %4101 = vmatpush1.bf16.msra.mxu1 %v16919_v57  ;;  %v16958_v8 = vld [vmem:[%s22882_s4 + $0x3c0] sm:$0xff]   ;;  %v16957_v57 = vld [vmem:[%s22882_s4 + $0x258] sm:$0xff]  }
 0x339   :  { %15421 = vmatprep.subr.bf16.mxu0 %v16920_v45  ;;  %4102 = vmatprep.subr.bf16.mxu1 %v22929_v58  ;;  %v16959_v45 = vld [vmem:[%s22882_s4 + $0x408] sm:$0xff]  }
 0x33c   :  { %15422 = vmatpush3.bf16.msra.mxu0 %v16921_v22  ;;  %4103 = vmatpush1.bf16.msra.mxu1 %v16922_v29  ;;  %v19738_v22 = vrot.slane %v19479_v20, 1  ;;  %v16961_v29 = vld [vmem:[%s22882_s4 + $0x3c8] sm:$0xff]  }
 0x33d   :  { %15423 = vmatprep.subr.bf16.mxu0 %v16923_v23  ;;  %4104 = vmatprep.subr.bf16.mxu1 %v22929_v58  ;;  %v16960_v23 = vld [vmem:[%s22882_s4 + $0x260] sm:$0xff]  }
 0x340   :  { %15424 = vmatpush3.bf16.msra.mxu0 %v16924_v41  ;;  %4105 = vmatpush1.bf16.msra.mxu1 %v16925_v26  ;;  %v4215_v41 = vrot.slane %v19466_v14, 1  ;;  %v16962_v26 = vld [vmem:[%s22882_s4 + $0x410] sm:$0xff]  }
 0x341   :  { %4106 = vmatprep.subr.bf16.mxu1 %v22929_v58  ;;  %15437 = vmatprep.subr.bf16.mxu0 %v16926_v17 }
 0x342   :  { %v19754_v17 = vsel %vm1121_vm4, %v4215_v41, %v19738_v22  ;;  %v17001_v41 = vld [vmem:[%s22882_s4 + $0x2e0] sm:$0xff]  }
 0x343   :  { %4074 = vmatmul.mubr.bf16.vlgmr.msra.gmra.mrb[56].mxu0 %v19460_v60 }
 0x344   :  { %4081 = vmatprep.mubr.bf16.mxu0 %v19477_v39  ;;  %4107 = vmatpush1.bf16.msra.mxu1 %v16927_v54  ;;  %v16964_v54 = vld [vmem:[%s22882_s4 + $0x3d0] sm:$0xff]  }
 0x345   :  { %15438 = vmatpush3.bf16.msra.mxu0 %v16928_v43  ;;  %4108 = vmatprep.subr.bf16.mxu1 %v22929_v58  ;;  %v16963_v43 = vld [vmem:[%s22882_s4 + $0x268] sm:$0xff]  }
 0x346   :  { %15439 = vmatprep.subr.bf16.mxu0 %v16929_v21  ;;  %v16965_v21 = vld [vmem:[%s22882_s4 + $0x418] sm:$0xff]  }
 0x348   :  { %4109 = vmatpush1.bf16.msra.mxu1 %v16930_v38  ;;  %v16967_v38 = vld [vmem:[%s22882_s4 + $0x3d8] sm:$0xff]  }
 0x349   :  { %15440 = vmatpush3.bf16.msra.mxu0 %v16931_v51  ;;  %4110 = vmatprep.subr.bf16.mxu1 %v22929_v58  ;;  %v16966_v51 = vld [vmem:[%s22882_s4 + $0x270] sm:$0xff]  }
 0x34a   :  { %15441 = vmatprep.subr.bf16.mxu0 %v16932_v25  ;;  %v16969_v25 = vld [vmem:[%s22882_s4 + $0x420] sm:$0xff]  }
 0x34b   :  { %4082 = vmatmul.mubr.bf16.gmra.mrb[60].mxu0 %v19472_v33 }
 0x34c   :  { %4111 = vmatpush1.bf16.msra.mxu1 %v16933_v27  ;;  %4436 = vmatprep.mubr.bf16.mxu0 %v19643_v18  ;;  %v16968_v27 = vld [vmem:[%s22882_s4 + $0x278] sm:$0xff]  }
 0x34d   :  { %15442 = vmatpush3.bf16.msra.mxu0 %v16934_v4  ;;  %4112 = vmatprep.subr.bf16.mxu1 %v22929_v58  ;;  %v16971_v4 = vld [vmem:[%s22882_s4 + $0x428] sm:$0xff]  }
 0x34e   :  { %15443 = vmatprep.subr.bf16.mxu0 %v16935_v36  ;;  %v16975_v36 = vld [vmem:[%s22882_s4 + $0x438] sm:$0xff]  }
 0x350   :  { %4113 = vmatpush1.bf16.msra.mxu1 %v16936_v31  ;;  %v16974_v31 = vld [vmem:[%s22882_s4 + $0x290] sm:$0xff]  }
 0x351   :  { %15444 = vmatpush3.bf16.msra.mxu0 %v16937_v32  ;;  %4114 = vmatprep.subr.bf16.mxu1 %v22929_v58  ;;  %v16979_v32 = vld [vmem:[%s22882_s4 + $0x448] sm:$0xff]  }
 0x352   :  { %15445 = vmatprep.subr.bf16.mxu0 %v16938_v1  ;;  %v16978_v1 = vld [vmem:[%s22882_s4 + $0x2a0] sm:$0xff]  }
 0x354   :  { %4115 = vmatpush1.bf16.msra.mxu1 %v16939_v37  ;;  %v16981_v37 = vld [vmem:[%s22882_s4 + $0x450] sm:$0xff]  }
 0x355   :  { %15446 = vmatpush3.bf16.msra.mxu0 %v16940_v19  ;;  %15465 = vmatprep.subr.bf16.mxu1 %v16942_v7  ;;  %v16980_v19 = vld [vmem:[%s22882_s4 + $0x2a8] sm:$0xff]   ;;  %v16983_v7 = vld [vmem:[%s22882_s4 + $0x458] sm:$0xff]  }
 0x356   :  { %15447 = vmatprep.subr.bf16.mxu0 %v16941_v9  ;;  %v16982_v9 = vld [vmem:[%s22882_s4 + $0x2b0] sm:$0xff]  }
 0x357   :  { %4123 = vmatmul.mubr.bf16.vlgmr.msra.gmra.mrb[56].mxu1 %v19462_v50 }
 0x358   :  { %13674 = vmatprep.mubr.msk.bf16.mxu1 %vm3758_vm8, %v19479_v20  ;;  %15466 = vmatpush3.bf16.msra.mxu1 %v16944_v49  ;;  %v16984_v49 = vld [vmem:[%s22882_s4 + $0x2f8] sm:$0xff]  }
 0x359   :  { %15448 = vmatpush3.bf16.msra.mxu0 %v16943_v28  ;;  %15467 = vmatprep.subr.bf16.mxu1 %v16946_v55  ;;  %v19848_v28 = vrot.slane %v19474_v56, 1  ;;  %v16985_v55 = vld [vmem:[%s22882_s4 + $0x460] sm:$0xff]  }
 0x35a   :  { %15449 = vmatprep.subr.bf16.mxu0 %v16945_v24  ;;  %v4212_v24 = vrot.slane %v19462_v50, 1 }
 0x35c   :  { %15468 = vmatpush3.bf16.msra.mxu1 %v16948_v59  ;;  %v16986_v59 = vld [vmem:[%s22882_s4 + $0x2b8] sm:$0xff]  }
 0x35d   :  { %15450 = vmatpush3.bf16.msra.mxu0 %v16947_v52  ;;  %15469 = vmatprep.subr.bf16.mxu1 %v16950_v42  ;;  %v16987_v52 = vld [vmem:[%s22882_s4 + $0x300] sm:$0xff]   ;;  %v19863_v42 = vsel %vm1121_vm4, %v4212_v24, %v19848_v28  ;;  %v17038_v24 = vld [vmem:[%s22882_s4 + $0x390] sm:$0xff]  }
 0x35e   :  { %15451 = vmatprep.subr.bf16.mxu0 %v16949_v10  ;;  %v16988_v10 = vld [vmem:[%s22882_s4 + $0x468] sm:$0xff]  }
 0x35f   :  { %4131 = vmatmul.mubr.bf16.gmra.mrb[60].mxu1 %v19474_v56 }
 0x360   :  { %15470 = vmatpush3.bf16.msra.mxu1 %v16952_v0  ;;  %4844 = vmatprep.mubr.bf16.mxu1 %v19497_v5  ;;  %v19723_v5 = vsel %vm1121_vm4, %v4206_v30, %v19707_v2  ;;  %v16989_v0 = vld [vmem:[%s22882_s4 + $0x2c0] sm:$0xff]   ;;  %v16993_v30 = vld [vmem:[%s22882_s4 + $0x310] sm:$0xff]  }
 0x361   :  { %15452 = vmatpush3.bf16.msra.mxu0 %v16951_v47  ;;  %15471 = vmatprep.subr.bf16.mxu1 %v16953_v12  ;;  %v16990_v47 = vld [vmem:[%s22882_s4 + $0x308] sm:$0xff]   ;;  %v16991_v12 = vld [vmem:[%s22882_s4 + $0x470] sm:$0xff]  }
 0x362   :  { %4453 = vmatprep.subr.bf16.mxu0 %v22929_v58 }
 0x364   :  { %4437 = vmatmul.mubr.bf16.vlgmr.msra.gmra.mrb[64].mxu0 %v19723_v5  ;;  %15472 = vmatpush3.bf16.msra.mxu1 %v16955_v63  ;;  %v16992_v63 = vld [vmem:[%s22882_s4 + $0x2c8] sm:$0xff]  }
 0x365   :  { %4444 = vmatprep.mubr.bf16.mxu0 %v19627_v16  ;;  %4454 = vmatpush1.bf16.msra.mxu0 %v16954_v3  ;;  %v16994_v3 = vld [vmem:[%s22882_s4 + $0x478] sm:$0xff]  }
 0x366   :  { %4455 = vmatprep.subr.bf16.mxu0 %v22929_v58  ;;  %15473 = vmatprep.subr.bf16.mxu1 %v16956_v11  ;;  %v16995_v11 = vld [vmem:[%s22882_s4 + $0x2d0] sm:$0xff]  }
 0x368   :  { %15474 = vmatpush3.bf16.msra.mxu1 %v16958_v8  ;;  %v16996_v8 = vld [vmem:[%s22882_s4 + $0x318] sm:$0xff]  }
 0x369   :  { %4456 = vmatpush1.bf16.msra.mxu0 %v16957_v57  ;;  %15475 = vmatprep.subr.bf16.mxu1 %v16959_v45  ;;  %v16997_v57 = vld [vmem:[%s22882_s4 + $0x480] sm:$0xff]   ;;  %v17000_v45 = vld [vmem:[%s22882_s4 + $0x4c8] sm:$0xff]  }
 0x36a   :  { %4457 = vmatprep.subr.bf16.mxu0 %v22929_v58 }
 0x36c   :  { %4445 = vmatmul.mubr.bf16.gmra.mrb[68].mxu0 %v19707_v2  ;;  %15476 = vmatpush3.bf16.msra.mxu1 %v16961_v29  ;;  %v16999_v29 = vld [vmem:[%s22882_s4 + $0x320] sm:$0xff]  }
 0x36d   :  { %4458 = vmatpush1.bf16.msra.mxu0 %v16960_v23  ;;  %13762 = vmatprep.mubr.msk.bf16.mxu0 %vm3758_vm8, %v19754_v17  ;;  %v17002_v23 = vld [vmem:[%s22882_s4 + $0x488] sm:$0xff]  }
 0x36e   :  { %4459 = vmatprep.subr.bf16.mxu0 %v22929_v58  ;;  %15477 = vmatprep.subr.bf16.mxu1 %v16962_v26  ;;  %v17004_v26 = vld [vmem:[%s22882_s4 + $0x4d0] sm:$0xff]  }
 0x370   :  { %15478 = vmatpush3.bf16.msra.mxu1 %v16964_v54  ;;  %v17003_v54 = vld [vmem:[%s22882_s4 + $0x328] sm:$0xff]  }
 0x371   :  { %4460 = vmatpush1.bf16.msra.mxu0 %v16963_v43  ;;  %15479 = vmatprep.subr.bf16.mxu1 %v16965_v21  ;;  %v17006_v43 = vld [vmem:[%s22882_s4 + $0x490] sm:$0xff]   ;;  %v17005_v21 = vld [vmem:[%s22882_s4 + $0x2e8] sm:$0xff]  }
 0x372   :  { %4461 = vmatprep.subr.bf16.mxu0 %v22929_v58 }
 0x374   :  { %15480 = vmatpush3.bf16.msra.mxu1 %v16967_v38  ;;  %v17008_v38 = vld [vmem:[%s22882_s4 + $0x4d8] sm:$0xff]  }
 0x375   :  { %4462 = vmatpush1.bf16.msra.mxu0 %v16966_v51  ;;  %4861 = vmatprep.subr.bf16.mxu1 %v22929_v58  ;;  %v17009_v51 = vld [vmem:[%s22882_s4 + $0x2f0] sm:$0xff]  }
 0x376   :  { %4463 = vmatprep.subr.bf16.mxu0 %v22929_v58 }
 0x377   :  { %4845 = vmatmul.mubr.bf16.vlgmr.msra.gmra.mrb[64].mxu1 %v19510_v40  ;;  %v16973_v40 = vld [vmem:[%s22882_s4 + $0x430] sm:$0xff]  }
 0x378   :  { %4852 = vmatprep.mubr.bf16.mxu1 %v19502_v44  ;;  %4862 = vmatpush1.bf16.msra.mxu1 %v16969_v25  ;;  %v16972_v44 = vld [vmem:[%s22882_s4 + $0x288] sm:$0xff]   ;;  %v17011_v25 = vld [vmem:[%s22882_s4 + $0x4e0] sm:$0xff]  }
 0x379   :  { %4464 = vmatpush1.bf16.msra.mxu0 %v16968_v27  ;;  %4863 = vmatprep.subr.bf16.mxu1 %v22929_v58  ;;  %v17013_v27 = vld [vmem:[%s22882_s4 + $0x4a0] sm:$0xff]  }
 0x37a   :  { %4465 = vmatprep.subr.bf16.mxu0 %v22929_v58 }
 0x37c   :  { %4864 = vmatpush1.bf16.msra.mxu1 %v16971_v4  ;;  %v17012_v4 = vld [vmem:[%s22882_s4 + $0x338] sm:$0xff]  }
 0x37d   :  { %4466 = vmatpush1.bf16.msra.mxu0 %v16970_v53  ;;  %4865 = vmatprep.subr.bf16.mxu1 %v22929_v58  ;;  %v17014_v53 = vld [vmem:[%s22882_s4 + $0x4e8] sm:$0xff]  }
 0x37e   :  { %4467 = vmatprep.subr.bf16.mxu0 %v22929_v58 }
 0x37f   :  { %4853 = vmatmul.mubr.bf16.gmra.mrb[68].mxu1 %v19542_v35  ;;  %v16977_v35 = vld [vmem:[%s22882_s4 + $0x440] sm:$0xff]  }
 0x380   :  { %4866 = vmatpush1.bf16.msra.mxu1 %v16973_v40  ;;  %13910 = vmatprep.mubr.msk.bf16.mxu1 %vm3758_vm8, %v19500_v61  ;;  %v16976_v61 = vld [vmem:[%s22882_s4 + $0x298] sm:$0xff]   ;;  %v17017_v40 = vld [vmem:[%s22882_s4 + $0x4f0] sm:$0xff]  }
 0x381   :  { %4468 = vmatpush1.bf16.msra.mxu0 %v16972_v44  ;;  %4867 = vmatprep.subr.bf16.mxu1 %v22929_v58  ;;  %v17020_v44 = vld [vmem:[%s22882_s4 + $0x4f8] sm:$0xff]  }
 0x382   :  { %4469 = vmatprep.subr.bf16.mxu0 %v22929_v58 }
 0x384   :  { %4868 = vmatpush1.bf16.msra.mxu1 %v16975_v36  ;;  %v17022_v36 = vld [vmem:[%s22882_s4 + $0x4b8] sm:$0xff]  }
 0x385   :  { %4470 = vmatpush1.bf16.msra.mxu0 %v16974_v31  ;;  %4869 = vmatprep.subr.bf16.mxu1 %v22929_v58  ;;  %v17021_v31 = vld [vmem:[%s22882_s4 + $0x350] sm:$0xff]  }
 0x386   :  { %4471 = vmatprep.subr.bf16.mxu0 %v22929_v58 }
 0x388   :  { %4870 = vmatpush1.bf16.msra.mxu1 %v16977_v35  ;;  %v17023_v35 = vld [vmem:[%s22882_s4 + $0x500] sm:$0xff]  }
 0x389   :  { %4472 = vmatpush1.bf16.msra.mxu0 %v16976_v61  ;;  %4871 = vmatprep.subr.bf16.mxu1 %v22929_v58  ;;  %v17027_v61 = vld [vmem:[%s22882_s4 + $0x508] sm:$0xff]  }
 0x38a   :  { %4473 = vmatprep.subr.bf16.mxu0 %v22929_v58 }
 0x38c   :  { %4872 = vmatpush1.bf16.msra.mxu1 %v16979_v32  ;;  %v17026_v32 = vld [vmem:[%s22882_s4 + $0x360] sm:$0xff]  }
 0x38d   :  { %4474 = vmatpush1.bf16.msra.mxu0 %v16978_v1  ;;  %4873 = vmatprep.subr.bf16.mxu1 %v22929_v58  ;;  %v17029_v1 = vld [vmem:[%s22882_s4 + $0x510] sm:$0xff]  }
 0x38e   :  { %4475 = vmatprep.subr.bf16.mxu0 %v22929_v58 }
 0x390   :  { %4874 = vmatpush1.bf16.msra.mxu1 %v16981_v37  ;;  %v17028_v37 = vld [vmem:[%s22882_s4 + $0x368] sm:$0xff]  }
 0x391   :  { %4476 = vmatpush1.bf16.msra.mxu0 %v16980_v19  ;;  %4875 = vmatprep.subr.bf16.mxu1 %v22929_v58  ;;  %v17033_v19 = vld [vmem:[%s22882_s4 + $0x520] sm:$0xff]  }
 0x392   :  { %4477 = vmatprep.subr.bf16.mxu0 %v22929_v58 }
 0x394   :  { %4876 = vmatpush1.bf16.msra.mxu1 %v16983_v7  ;;  %v17032_v7 = vld [vmem:[%s22882_s4 + $0x378] sm:$0xff]  }
 0x395   :  { %4478 = vmatpush1.bf16.msra.mxu0 %v16982_v9  ;;  %4877 = vmatprep.subr.bf16.mxu1 %v22929_v58  ;;  %v17037_v9 = vld [vmem:[%s22882_s4 + $0x530] sm:$0xff]  }
 0x396   :  { %15493 = vmatprep.subr.bf16.mxu0 %v16984_v49  ;;  %v17036_v49 = vld [vmem:[%s22882_s4 + $0x388] sm:$0xff]  }
 0x398   :  { %4486 = vmatmul.mubr.bf16.vlgmr.msra.gmra.mrb[72].mxu0 %v19863_v42  ;;  %4878 = vmatpush1.bf16.msra.mxu1 %v16985_v55  ;;  %v17039_v55 = vld [vmem:[%s22882_s4 + $0x538] sm:$0xff]  }
 0x399   :  { %13763 = vmatprep.mubr.msk.bf16.mxu0 %vm3758_vm8, %v19738_v22  ;;  %15494 = vmatpush3.bf16.msra.mxu0 %v16986_v59  ;;  %v17041_v59 = vld [vmem:[%s22882_s4 + $0x540] sm:$0xff]  }
 0x39a   :  { %4879 = vmatprep.subr.bf16.mxu1 %v22929_v58  ;;  %15495 = vmatprep.subr.bf16.mxu0 %v16987_v52  ;;  %v17040_v52 = vld [vmem:[%s22882_s4 + $0x398] sm:$0xff]  }
 0x39c   :  { %4880 = vmatpush1.bf16.msra.mxu1 %v16988_v10  ;;  %v17042_v10 = vld [vmem:[%s22882_s4 + $0x548] sm:$0xff]  }
 0x39d   :  { %15496 = vmatpush3.bf16.msra.mxu0 %v16989_v0  ;;  %4881 = vmatprep.subr.bf16.mxu1 %v22929_v58  ;;  %v17043_v0 = vld [vmem:[%s22882_s4 + $0x550] sm:$0xff]  }
 0x39e   :  { %15497 = vmatprep.subr.bf16.mxu0 %v16990_v47  ;;  %v17044_v47 = vld [vmem:[%s22882_s4 + $0x558] sm:$0xff]  }
 0x3a0   :  { %4494 = vmatmul.mubr.bf16.gmra.mrb[76].mxu0 %v19848_v28  ;;  %4882 = vmatpush1.bf16.msra.mxu1 %v16991_v12 }
 0x3a1   :  { %15498 = vmatpush3.bf16.msra.mxu0 %v16992_v63  ;;  %5116 = vmatprep.mubr.bf16.mxu0 %v19464_v46  ;;  %v16998_v46 = vld [vmem:[%s22882_s4 + $0x2d8] sm:$0xff]  }
 0x3a2   :  { %4883 = vmatprep.subr.bf16.mxu1 %v22929_v58  ;;  %15499 = vmatprep.subr.bf16.mxu0 %v16993_v30 }
 0x3a4   :  { %4884 = vmatpush1.bf16.msra.mxu1 %v16994_v3 }
 0x3a5   :  { %15500 = vmatpush3.bf16.msra.mxu0 %v16995_v11  ;;  %4885 = vmatprep.subr.bf16.mxu1 %v22929_v58 }
 0x3a6   :  { %15501 = vmatprep.subr.bf16.mxu0 %v16996_v8 }
 0x3a8   :  { %4886 = vmatpush1.bf16.msra.mxu1 %v16997_v57  ;;  %v17046_v57 = vld [vmem:[%s22882_s4 + $0x568] sm:$0xff]  }
 0x3a9   :  { %15502 = vmatpush3.bf16.msra.mxu0 %v16998_v46  ;;  %15521 = vmatprep.subr.bf16.mxu1 %v17000_v45 }
 0x3aa   :  { %15503 = vmatprep.subr.bf16.mxu0 %v16999_v29 }
 0x3ab   :  { %4894 = vmatmul.mubr.bf16.vlgmr.msra.gmra.mrb[72].mxu1 %v19513_v34  ;;  %v17010_v34 = vld [vmem:[%s22882_s4 + $0x498] sm:$0xff]  }
 0x3ac   :  { %13911 = vmatprep.mubr.msk.bf16.mxu1 %vm3758_vm8, %v19504_v13  ;;  %15522 = vmatpush3.bf16.msra.mxu1 %v17002_v23  ;;  %v17007_v13 = vld [vmem:[%s22882_s4 + $0x330] sm:$0xff]  }
 0x3ad   :  { %15504 = vmatpush3.bf16.msra.mxu0 %v17001_v41  ;;  %15523 = vmatprep.subr.bf16.mxu1 %v17004_v26 }
 0x3ae   :  { %15505 = vmatprep.subr.bf16.mxu0 %v17003_v54 }
 0x3b0   :  { %15524 = vmatpush3.bf16.msra.mxu1 %v17006_v43 }
 0x3b1   :  { %15506 = vmatpush3.bf16.msra.mxu0 %v17005_v21  ;;  %15525 = vmatprep.subr.bf16.mxu1 %v17008_v38 }
 0x3b2   :  { %15507 = vmatprep.subr.bf16.mxu0 %v17007_v13 }
 0x3b3   :  { %4902 = vmatmul.mubr.bf16.gmra.mrb[76].mxu1 %v19544_v48  ;;  %v17016_v48 = vld [vmem:[%s22882_s4 + $0x4a8] sm:$0xff]  }
 0x3b4   :  { %15526 = vmatpush3.bf16.msra.mxu1 %v17010_v34  ;;  %5447 = vmatprep.mubr.bf16.mxu1 %v19643_v18  ;;  %v17015_v18 = vld [vmem:[%s22882_s4 + $0x340] sm:$0xff]  }
 0x3b5   :  { %15508 = vmatpush3.bf16.msra.mxu0 %v17009_v51  ;;  %15527 = vmatprep.subr.bf16.mxu1 %v17011_v25 }
 0x3b6   :  { %5133 = vmatprep.subr.bf16.mxu0 %v22929_v58 }
 0x3b8   :  { %5117 = vmatmul.mubr.bf16.vlgmr.msra.gmra.mrb[80].mxu0 %v19460_v60  ;;  %15528 = vmatpush3.bf16.msra.mxu1 %v17013_v27  ;;  %v17019_v60 = vld [vmem:[%s22882_s4 + $0x4b0] sm:$0xff]  }
 0x3b9   :  { %5124 = vmatprep.mubr.bf16.mxu0 %v19477_v39  ;;  %5134 = vmatpush1.bf16.msra.mxu0 %v17012_v4  ;;  %v17018_v39 = vld [vmem:[%s22882_s4 + $0x348] sm:$0xff]  }
 0x3ba   :  { %5135 = vmatprep.subr.bf16.mxu0 %v22929_v58  ;;  %15529 = vmatprep.subr.bf16.mxu1 %v17014_v53 }
 0x3bc   :  { %15530 = vmatpush3.bf16.msra.mxu1 %v17016_v48 }
 0x3bd   :  { %5136 = vmatpush1.bf16.msra.mxu0 %v17015_v18  ;;  %15531 = vmatprep.subr.bf16.mxu1 %v17017_v40 }
 0x3be   :  { %5137 = vmatprep.subr.bf16.mxu0 %v22929_v58 }
 0x3c0   :  { %5125 = vmatmul.mubr.bf16.gmra.mrb[84].mxu0 %v19472_v33  ;;  %15532 = vmatpush3.bf16.msra.mxu1 %v17019_v60  ;;  %v17025_v33 = vld [vmem:[%s22882_s4 + $0x4c0] sm:$0xff]  }
 0x3c1   :  { %5138 = vmatpush1.bf16.msra.mxu0 %v17018_v39  ;;  %13941 = vmatprep.mubr.msk.bf16.mxu0 %vm3758_vm8, %v19466_v14  ;;  %v17024_v14 = vld [vmem:[%s22882_s4 + $0x358] sm:$0xff]  }
 0x3c2   :  { %5139 = vmatprep.subr.bf16.mxu0 %v22929_v58  ;;  %15533 = vmatprep.subr.bf16.mxu1 %v17020_v44 }
 0x3c4   :  { %15534 = vmatpush3.bf16.msra.mxu1 %v17022_v36 }
 0x3c5   :  { %5140 = vmatpush1.bf16.msra.mxu0 %v17021_v31  ;;  %15535 = vmatprep.subr.bf16.mxu1 %v17023_v35 }
 0x3c6   :  { %5141 = vmatprep.subr.bf16.mxu0 %v22929_v58 }
 0x3c8   :  { %15536 = vmatpush3.bf16.msra.mxu1 %v17025_v33 }
 0x3c9   :  { %5142 = vmatpush1.bf16.msra.mxu0 %v17024_v14  ;;  %5464 = vmatprep.subr.bf16.mxu1 %v22929_v58 }
 0x3ca   :  { %5143 = vmatprep.subr.bf16.mxu0 %v22929_v58 }
 0x3cb   :  { %5448 = vmatmul.mubr.bf16.vlgmr.msra.gmra.mrb[80].mxu1 %v19723_v5  ;;  %v17031_v5 = vld [vmem:[%s22882_s4 + $0x518] sm:$0xff]  }
 0x3cc   :  { %5455 = vmatprep.mubr.bf16.mxu1 %v19627_v16  ;;  %5465 = vmatpush1.bf16.msra.mxu1 %v17027_v61  ;;  %v17030_v16 = vld [vmem:[%s22882_s4 + $0x370] sm:$0xff]  }
 0x3cd   :  { %5144 = vmatpush1.bf16.msra.mxu0 %v17026_v32  ;;  %5466 = vmatprep.subr.bf16.mxu1 %v22929_v58 }
 0x3ce   :  { %5145 = vmatprep.subr.bf16.mxu0 %v22929_v58 }
 0x3d0   :  { %5467 = vmatpush1.bf16.msra.mxu1 %v17029_v1 }
 0x3d1   :  { %5146 = vmatpush1.bf16.msra.mxu0 %v17028_v37  ;;  %5468 = vmatprep.subr.bf16.mxu1 %v22929_v58 }
 0x3d2   :  { %5147 = vmatprep.subr.bf16.mxu0 %v22929_v58 }
 0x3d3   :  { %5456 = vmatmul.mubr.bf16.gmra.mrb[84].mxu1 %v19707_v2  ;;  %v17035_v2 = vld [vmem:[%s22882_s4 + $0x528] sm:$0xff]  }
 0x3d4   :  { %5469 = vmatpush1.bf16.msra.mxu1 %v17031_v5  ;;  %14030 = vmatprep.mubr.msk.bf16.mxu1 %vm3758_vm8, %v19754_v17  ;;  %v17034_v17 = vld [vmem:[%s22882_s4 + $0x380] sm:$0xff]  }
 0x3d5   :  { %5148 = vmatpush1.bf16.msra.mxu0 %v17030_v16  ;;  %5470 = vmatprep.subr.bf16.mxu1 %v22929_v58 }
 0x3d6   :  { %5149 = vmatprep.subr.bf16.mxu0 %v22929_v58 }
 0x3d8   :  { %5471 = vmatpush1.bf16.msra.mxu1 %v17033_v19 }
 0x3d9   :  { %5150 = vmatpush1.bf16.msra.mxu0 %v17032_v7  ;;  %5472 = vmatprep.subr.bf16.mxu1 %v22929_v58 }
 0x3da   :  { %5151 = vmatprep.subr.bf16.mxu0 %v22929_v58 }
 0x3dc   :  { %5473 = vmatpush1.bf16.msra.mxu1 %v17035_v2 }
 0x3dd   :  { %5152 = vmatpush1.bf16.msra.mxu0 %v17034_v17  ;;  %5474 = vmatprep.subr.bf16.mxu1 %v22929_v58 }
 0x3de   :  { %5153 = vmatprep.subr.bf16.mxu0 %v22929_v58 }
 0x3e0   :  { %5475 = vmatpush1.bf16.msra.mxu1 %v17037_v9 }
 0x3e1   :  { %5154 = vmatpush1.bf16.msra.mxu0 %v17036_v49  ;;  %5476 = vmatprep.subr.bf16.mxu1 %v22929_v58 }
 0x3e2   :  { %5155 = vmatprep.subr.bf16.mxu0 %v22929_v58 }
 0x3e4   :  { %5477 = vmatpush1.bf16.msra.mxu1 %v17039_v55 }
 0x3e5   :  { %5156 = vmatpush1.bf16.msra.mxu0 %v17038_v24  ;;  %5478 = vmatprep.subr.bf16.mxu1 %v22929_v58 }
 0x3e6   :  { %5157 = vmatprep.subr.bf16.mxu0 %v22929_v58 }
 0x3e8   :  { %5479 = vmatpush1.bf16.msra.mxu1 %v17041_v59 }
 0x3e9   :  { %5158 = vmatpush1.bf16.msra.mxu0 %v17040_v52  ;;  %5480 = vmatprep.subr.bf16.mxu1 %v22929_v58 }
 0x3ec   :  { %5166 = vmatmul.mubr.bf16.vlgmr.msra.gmra.mrb[88].mxu0 %v19462_v50  ;;  %5481 = vmatpush1.bf16.msra.mxu1 %v17042_v10  ;;  %v17045_v50 = vld [vmem:[%s22882_s4 + $0x560] sm:$0xff]  }
 0x3ed   :  { %13942 = vmatprep.mubr.msk.bf16.mxu0 %vm3758_vm8, %v19479_v20  ;;  %5482 = vmatprep.subr.bf16.mxu1 %v22929_v58 }
 0x3f0   :  { %5483 = vmatpush1.bf16.msra.mxu1 %v17043_v0 }
 0x3f1   :  { %5484 = vmatprep.subr.bf16.mxu1 %v22929_v58 }
 0x3f4   :  { %5174 = vmatmul.mubr.bf16.gmra.mrb[92].mxu0 %v19474_v56  ;;  %5485 = vmatpush1.bf16.msra.mxu1 %v17044_v47 }
 0x3f5   :  { %5486 = vmatprep.subr.bf16.mxu1 %v22929_v58 }
 0x3f6   :  { %v15397_v12 = vpop.f32.mrb[48].mxu0  ;;  %v3848_v20 = vpop.f32.mrb[48].mxu1 }
 0x3f7   :  { %v15398_v63 = vpop.f32.mrb[49].mxu0  ;;  %v3850_v30 = vpop.f32.mrb[49].mxu1 }
 0x3f8   :  { %v15399_v3 = vadd.f32 %v15398_v63, %v15397_v12  ;;  %5487 = vmatpush1.bf16.msra.mxu1 %v17045_v50  ;;  %v15400_v11 = vpop.f32.mrb[50].mxu0  ;;  %v3851_v8 = vpop.f32.mrb[50].mxu1 }
 0x3f9   :  { %v15401_v56 = vpop.f32.mrb[51].mxu0  ;;  %v3853_v46 = vpop.f32.mrb[51].mxu1  ;;  %5488 = vmatprep.subr.bf16.mxu1 %v22929_v58 }
 0x3fa   :  { %v3849_v45 = vadd.f32 %v15399_v3, %v3848_v20  ;;  %v15402_v29 = vadd.f32 %v15401_v56, %v15400_v11 }
 0x3fc   :  { %v3852_v23 = vadd.f32 %v15402_v29, %v3851_v8  ;;  %5489 = vmatpush1.bf16.msra.mxu1 %v17046_v57 }
 0x3fe   :  { %v15403_v41 = vpop.f32.mrb[52].mxu0  ;;  %v3856_v26 = vpop.f32.mrb[52].mxu1 }
 0x3ff   :  { %5497 = vmatmul.mubr.bf16.vlgmr.msra.gmra.mrb[88].mxu1 %v19863_v42  ;;  %v15404_v54 = vpop.f32.mrb[53].mxu0  ;;  %v3858_v43 = vpop.f32.mrb[53].mxu1 }
 0x400   :  { %v15405_v21 = vadd.f32 %v15404_v54, %v15403_v41  ;;  %14031 = vmatprep.mubr.msk.bf16.mxu1 %vm3758_vm8, %v19738_v22  ;;  %v15406_v38 = vpop.f32.mrb[54].mxu0  ;;  %v3859_v13 = vpop.f32.mrb[54].mxu1 }
 0x401   :  { %v15407_v34 = vpop.f32.mrb[55].mxu0  ;;  %v3861_v51 = vpop.f32.mrb[55].mxu1 }
 0x402   :  { %v3857_v25 = vadd.f32 %v15405_v21, %v3856_v26  ;;  %v15408_v27 = vadd.f32 %v15407_v34, %v15406_v38  ;;  %v17774_v21 = vmov 0.0  }
 0x403   :  { %15853 = vmatprep.subr.bf16.mxu0 %v17774_v21  ;;  %15887 = vmatprep.subr.bf16.mxu1 %v17774_v21 }
 0x404   :  { %v3860_v4 = vadd.f32 %v15408_v27, %v3859_v13  ;;  %15857 = vmatprep.mubr.msk.bf16.mxu0 %vm17775_vm9, %v17774_v21 }
 0x407   :  { %5505 = vmatmul.mubr.bf16.gmra.mrb[92].mxu1 %v19848_v28 }
 0x408   :  { %15901 = vmatprep.mubr.msk.bf16.mxu1 %vm17775_vm9, %v17774_v21 }
 0x416   :  { %v15425_v53 = vpop.f32.mrb[56].mxu0 }
 0x417   :  { %v15426_v48 = vpop.f32.mrb[57].mxu0 }
 0x418   :  { %v15427_v18 = vadd.f32 %v15426_v48, %v15425_v53  ;;  %v15428_v40 = vpop.f32.mrb[58].mxu0 }
 0x419   :  { %v15429_v42 = vpop.f32.mrb[59].mxu0 }
 0x41a   :  { %v15430_v60 = vadd.f32 %v15429_v42, %v15428_v40  ;;  %v4076_v39 = vadd.f32 %v15427_v18, %v3849_v45 }
 0x41c   :  { %v4079_v44 = vadd.f32 %v15430_v60, %v3852_v23 }
 0x41e   :  { %v15431_v36 = vpop.f32.mrb[60].mxu0 }
 0x41f   :  { %v15432_v31 = vpop.f32.mrb[61].mxu0 }
 0x420   :  { %v15433_v22 = vadd.f32 %v15432_v31, %v15431_v36  ;;  %v15434_v35 = vpop.f32.mrb[62].mxu0  ;;  %v17049_v36 = vld [vmem:[%s22884_s7] sm:$0xff]  }
 0x421   :  { %v15435_v33 = vpop.f32.mrb[63].mxu0  ;;  %15888 = vmatpush3.bf16.msra.mxu1 %v17049_v36 }
 0x422   :  { %v15436_v14 = vadd.f32 %v15435_v33, %v15434_v35  ;;  %v4084_v61 = vadd.f32 %v15433_v22, %v3857_v25  ;;  %v17050_v22 = vld [vmem:[%s22884_s7 + $0x8] sm:$0xff]   ;;  %15889 = vmatprep.subr.bf16.mxu1 %v17774_v21  ;;  %v17052_v35 = vld [vmem:[%s22884_s7 + $0x10] sm:$0xff]  }
 0x424   :  { %v4087_v32 = vadd.f32 %v15436_v14, %v3860_v4 }
 0x425   :  { %15890 = vmatpush3.bf16.msra.mxu1 %v17050_v22  ;;  %v13764_v22 = vld [vmem:[%s22885_s5] ss:$0 sm:$0xff] }
 0x426   :  { %15891 = vmatprep.subr.bf16.mxu1 %v17774_v21 }
 0x429   :  { %15892 = vmatpush3.bf16.msra.mxu1 %v17052_v35 }
 0x42a   :  { %v4124_v1 = vpop.f32.mrb[56].mxu1  ;;  %15893 = vmatprep.subr.bf16.mxu1 %v17774_v21 }
 0x42b   :  { %v4125_v37 = vadd.f32 %v4124_v1, %v4076_v39  ;;  %v4126_v5 = vpop.f32.mrb[57].mxu1 }
 0x42c   :  { %v4127_v28 = vpop.f32.mrb[58].mxu1  ;;  %v17054_v5 = vld [vmem:[%s22884_s7 + $0x18] sm:$0xff]  }
 0x42d   :  { %v4128_v16 = vadd.f32 %v4127_v28, %v4079_v44  ;;  %v4129_v19 = vpop.f32.mrb[59].mxu1  ;;  %15894 = vmatpush3.bf16.msra.mxu1 %v17054_v5 }
 0x42e   :  { %15895 = vmatprep.subr.bf16.mxu1 %v17774_v21 }
 0x432   :  { %v4132_v7 = vpop.f32.mrb[60].mxu1 }
 0x433   :  { %v4133_v2 = vadd.f32 %v4132_v7, %v4084_v61  ;;  %v4134_v17 = vpop.f32.mrb[61].mxu1 }
 0x434   :  { %v4135_v9 = vpop.f32.mrb[62].mxu1 }
 0x435   :  { %v4136_v49 = vadd.f32 %v4135_v9, %v4087_v32  ;;  %v4137_v55 = vpop.f32.mrb[63].mxu1 }
 0x437   :  { %v15453_v24 = vpop.f32.mrb[64].mxu0 }
 0x438   :  { %v15454_v59 = vpop.f32.mrb[65].mxu0 }
 0x439   :  { %v15455_v52 = vadd.f32 %v15454_v59, %v15453_v24  ;;  %v15456_v10 = vpop.f32.mrb[66].mxu0 }
 0x43a   :  { %v15457_v0 = vpop.f32.mrb[67].mxu0 }
 0x43b   :  { %v15458_v47 = vadd.f32 %v15457_v0, %v15456_v10 }
 0x43f   :  { %v15459_v50 = vpop.f32.mrb[68].mxu0 }
 0x440   :  { %v15460_v12 = vpop.f32.mrb[69].mxu0 }
 0x441   :  { %v15461_v20 = vadd.f32 %v15460_v12, %v15459_v50  ;;  %v15462_v63 = vpop.f32.mrb[70].mxu0 }
 0x442   :  { %v15463_v30 = vpop.f32.mrb[71].mxu0 }
 0x443   :  { %v15464_v3 = vadd.f32 %v15463_v30, %v15462_v63 }
 0x44a   :  { %v15481_v11 = vpop.f32.mrb[64].mxu1 }
 0x44b   :  { %v15482_v8 = vpop.f32.mrb[65].mxu1 }
 0x44c   :  { %v15483_v57 = vadd.f32 %v15482_v8, %v15481_v11  ;;  %v15484_v56 = vpop.f32.mrb[66].mxu1 }
 0x44d   :  { %v15485_v46 = vpop.f32.mrb[67].mxu1 }
 0x44e   :  { %v15486_v45 = vadd.f32 %v15485_v46, %v15484_v56 }
 0x452   :  { %v15487_v29 = vpop.f32.mrb[68].mxu1 }
 0x453   :  { %v15488_v23 = vpop.f32.mrb[69].mxu1 }
 0x454   :  { %v15489_v41 = vadd.f32 %v15488_v23, %v15487_v29  ;;  %v15490_v26 = vpop.f32.mrb[70].mxu1 }
 0x455   :  { %v15491_v54 = vpop.f32.mrb[71].mxu1 }
 0x456   :  { %v15492_v43 = vadd.f32 %v15491_v54, %v15490_v26 }
 0x46b   :  { %v4487_v38 = vpop.f32.mrb[72].mxu0 }
 0x46c   :  { %v4488_v13 = vadd.f32 %v15455_v52, %v4487_v38  ;;  %v4489_v34 = vpop.f32.mrb[73].mxu0 }
 0x46d   :  { %v4490_v51 = vpop.f32.mrb[74].mxu0 }
 0x46e   :  { %v20106_v25 = vadd.f32 %v4488_v13, %v4125_v37  ;;  %v4491_v27 = vadd.f32 %v15458_v47, %v4490_v51  ;;  %v4492_v4 = vpop.f32.mrb[75].mxu0 }
 0x470   :  { %v20108_v53 = vadd.f32 %v4491_v27, %v4128_v16 }
 0x473   :  { %v4495_v48 = vpop.f32.mrb[76].mxu0 }
 0x474   :  { %v4496_v18 = vadd.f32 %v15461_v20, %v4495_v48  ;;  %v4497_v40 = vpop.f32.mrb[77].mxu0 }
 0x475   :  { %v4498_v42 = vpop.f32.mrb[78].mxu0 }
 0x476   :  { %v20110_v60 = vadd.f32 %v4496_v18, %v4133_v2  ;;  %v4499_v39 = vadd.f32 %v15464_v3, %v4498_v42  ;;  %v4500_v44 = vpop.f32.mrb[79].mxu0 }
 0x478   :  { %v20115_v31 = vadd.f32 %v4499_v39, %v4136_v49 }
 0x47e   :  { %v4895_v33 = vpop.f32.mrb[72].mxu1 }
 0x47f   :  { %v4896_v14 = vadd.f32 %v15483_v57, %v4895_v33  ;;  %v4897_v61 = vpop.f32.mrb[73].mxu1 }
 0x480   :  { %v4898_v32 = vpop.f32.mrb[74].mxu1 }
 0x481   :  { %v4899_v1 = vadd.f32 %v15486_v45, %v4898_v32  ;;  %v4900_v37 = vpop.f32.mrb[75].mxu1  ;;  %v4512_v32 = vadd.f32 %v13764_v22, %v20106_v25 }
 0x486   :  { %v4903_v28 = vpop.f32.mrb[76].mxu1 }
 0x487   :  { %v4904_v16 = vadd.f32 %v15489_v41, %v4903_v28  ;;  %v4905_v19 = vpop.f32.mrb[77].mxu1  ;;  %v4513_v28 = vadd.f32 %v13764_v22, %v20108_v53  ;;  %v4515_v53 = vadd.f32 %v13764_v22, %v20115_v31  ;;  %v17047_v31 = vld [vmem:[%s22883_s6] sm:$0x7f]  }
 0x488   :  { %v4906_v7 = vpop.f32.mrb[78].mxu1 }
 0x489   :  { %v4907_v2 = vadd.f32 %v15492_v43, %v4906_v7  ;;  %v4908_v17 = vpop.f32.mrb[79].mxu1  ;;  %v4516_v7 = vmax.f32 %v4512_v32, 0.0  ;;  %v17062_v32 = vld [vmem:[%s22884_s7 + $0xd0] sm:$0xff]  }
 0x48b   :  { %v15509_v9 = vpop.f32.mrb[80].mxu0 }
 0x48c   :  { %v15510_v49 = vpop.f32.mrb[81].mxu0 }
 0x48d   :  { %v15511_v55 = vadd.f32 %v15510_v49, %v15509_v9  ;;  %v15512_v24 = vpop.f32.mrb[82].mxu0  ;;  %v4517_v49 = vmax.f32 %v4513_v28, 0.0 }
 0x48e   :  { %v15513_v59 = vpop.f32.mrb[83].mxu0 }
 0x48f   :  { %v15514_v52 = vadd.f32 %v15513_v59, %v15512_v24  ;;  %v5119_v10 = vadd.f32 %v15511_v55, %v4896_v14 }
 0x491   :  { %v5122_v0 = vadd.f32 %v15514_v52, %v4899_v1 }
 0x493   :  { %v15515_v47 = vpop.f32.mrb[84].mxu0 }
 0x494   :  { %v15516_v50 = vpop.f32.mrb[85].mxu0 }
 0x495   :  { %v15517_v12 = vadd.f32 %v15516_v50, %v15515_v47  ;;  %v15518_v20 = vpop.f32.mrb[86].mxu0 }
 0x496   :  { %v15519_v63 = vpop.f32.mrb[87].mxu0 }
 0x497   :  { %v15520_v30 = vadd.f32 %v15519_v63, %v15518_v20  ;;  %v5127_v3 = vadd.f32 %v15517_v12, %v4904_v16 }
 0x499   :  { %v5130_v11 = vadd.f32 %v15520_v30, %v4907_v2 }
 0x49e   :  { %v15537_v8 = vpop.f32.mrb[80].mxu1 }
 0x49f   :  { %v15538_v57 = vpop.f32.mrb[81].mxu1 }
 0x4a0   :  { %v15539_v56 = vadd.f32 %v15538_v57, %v15537_v8  ;;  %v15540_v46 = vpop.f32.mrb[82].mxu1  ;;  %v4519_v57 = vmax.f32 %v4515_v53, 0.0  ;;  %v17078_v53 = vld [vmem:[%s22884_s7 + $0x10c] sm:$0xff]  }
 0x4a1   :  { %v15541_v45 = vpop.f32.mrb[83].mxu1 }
 0x4a2   :  { %v15542_v29 = vadd.f32 %v15541_v45, %v15540_v46 }
 0x4a6   :  { %v15543_v23 = vpop.f32.mrb[84].mxu1 }
 0x4a7   :  { %v15544_v41 = vpop.f32.mrb[85].mxu1 }
 0x4a8   :  { %v15545_v26 = vadd.f32 %v15544_v41, %v15543_v23  ;;  %v15546_v54 = vpop.f32.mrb[86].mxu1  ;;  %v17048_v23 = vld [vmem:[%s22883_s6 + $0x8] sm:$0x7f]   ;;  %v17051_v41 = vld [vmem:[%s22884_s7 + $0x34] sm:$0xff]  }
 0x4a9   :  { %v15547_v43 = vpop.f32.mrb[87].mxu1 }
 0x4aa   :  { %v15548_v38 = vadd.f32 %v15547_v43, %v15546_v54  ;;  %v17055_v54 = vld [vmem:[%s22884_s7 + $0x44] sm:$0xff]  }
 0x4ab   :  { %v17056_v43 = vld [vmem:[%s22884_s7 + $0x20] sm:$0xff]  }
 0x4ac   :  { %15896 = vmatpush3.bf16.msra.mxu1 %v17056_v43 }
 0x4ad   :  { %15897 = vmatprep.subr.bf16.mxu1 %v17774_v21 }
 0x4bf   :  { %v5167_v13 = vpop.f32.mrb[88].mxu0 }
 0x4c0   :  { %v5168_v34 = vadd.f32 %v5167_v13, %v5119_v10  ;;  %v5169_v51 = vpop.f32.mrb[89].mxu0  ;;  %v17058_v13 = vld [vmem:[%s22884_s7 + $0x28] sm:$0xff]  }
 0x4c1   :  { %v5170_v27 = vpop.f32.mrb[90].mxu0  ;;  %15898 = vmatpush3.bf16.msra.mxu1 %v17058_v13  ;;  %v17060_v51 = vld [vmem:[%s22884_s7 + $0x30] ss:$0 sps:$4 sm:$0xff]  }
 0x4c2   :  { %v5171_v4 = vadd.f32 %v5170_v27, %v5122_v0  ;;  %v5172_v48 = vpop.f32.mrb[91].mxu0  ;;  %v4514_v0 = vadd.f32 %v13764_v22, %v20110_v60  ;;  %15899 = vmatprep.subr.bf16.mxu1 %v17774_v21  ;;  %v17061_v27 = vld [vmem:[%s22884_s7 + $0x5c] sm:$0xff]  }
 0x4c3   :  { %v17063_v48 = vld [vmem:[%s22884_s7 + $0x64] ss:$0 sps:$4 sm:$0xff]  }
 0x4c7   :  { %v5175_v18 = vpop.f32.mrb[92].mxu0 }
 0x4c8   :  { %v5176_v40 = vadd.f32 %v5175_v18, %v5127_v3  ;;  %v5177_v42 = vpop.f32.mrb[93].mxu0  ;;  %v4518_v3 = vmax.f32 %v4514_v0, 0.0  ;;  %v5720_v18 = vsel %vm501_vm1, %v17063_v48, 0  ;;  %v17093_v48 = vld [vmem:[%s22884_s7 + $0xcc] ss:$0 sps:$4 sm:$0xff]  }
 0x4c9   :  { %v5178_v39 = vpop.f32.mrb[94].mxu0 }
 0x4ca   :  { %v5179_v44 = vadd.f32 %v5178_v39, %v5130_v11  ;;  %v5180_v36 = vpop.f32.mrb[95].mxu0 }
 0x4d2   :  { %v5498_v35 = vpop.f32.mrb[88].mxu1 }
 0x4d3   :  { %v5499_v33 = vadd.f32 %v15539_v56, %v5498_v35  ;;  %v5500_v14 = vpop.f32.mrb[89].mxu1 }
 0x4d4   :  { %v5501_v61 = vpop.f32.mrb[90].mxu1 }
 0x4d5   :  { %v5513_v1 = vadd.f32 %v5499_v33, %v5168_v34  ;;  %v5502_v37 = vadd.f32 %v15542_v29, %v5501_v61  ;;  %v5503_v5 = vpop.f32.mrb[91].mxu1  ;;  %v17059_v34 = vld [vmem:[%s22884_s7 + $0x54] sm:$0xff]  }
 0x4d6   :  { %v17064_v5 = vld [vmem:[%s22884_s7 + $0xd8] sm:$0xff]  }
 0x4d7   :  { %v5517_v16 = vadd.f32 %v13764_v22, %v5513_v1  ;;  %v5514_v19 = vadd.f32 %v5502_v37, %v5171_v4  ;;  %v5805_v4 = vsel %vm501_vm1, %v17060_v51, 0 }
 0x4d8   :  { %15900 = vmatpush3.bf16.msra.mxu1 %v5805_v4  ;;  %v17089_v4 = vld [vmem:[%s22884_s7 + $0xc4] sm:$0xff]  }
 0x4d9   :  { %v5521_v2 = vmax.f32 %v5517_v16, 0.0  ;;  %v5518_v17 = vadd.f32 %v13764_v22, %v5514_v19  ;;  %15923 = vmatprep.subr.bf16.mxu1 %v17774_v21  ;;  %v17065_v19 = vld [vmem:[%s22884_s7 + $0x68] sm:$0xff]  }
 0x4da   :  { %v5506_v9 = vpop.f32.mrb[92].mxu1 }
 0x4db   :  { %v5525_v55 = vmax.f32 %v4516_v7, %v5521_v2  ;;  %v5522_v24 = vmax.f32 %v5518_v17, 0.0  ;;  %v5507_v59 = vadd.f32 %v15545_v26, %v5506_v9  ;;  %v5508_v52 = vpop.f32.mrb[93].mxu1  ;;  %v17053_v26 = vld [vmem:[%s22884_s7 + $0x3c] sm:$0xff]   ;;  %v17067_v17 = vld [vmem:[%s22884_s7 + $0x70] sm:$0xff]   ;;  %v17068_v9 = vld [vmem:[%s22884_s7 + $0xe8] sm:$0xff]  }
 0x4dc   :  { %v5509_v10 = vpop.f32.mrb[94].mxu1  ;;  %v17066_v2 = vld [vmem:[%s22884_s7 + $0xe0] sm:$0xff]  }
 0x4dd   :  { %v5526_v25 = vmax.f32 %v4517_v49, %v5522_v24  ;;  %v5515_v47 = vadd.f32 %v5507_v59, %v5176_v40  ;;  %v5510_v50 = vadd.f32 %v15548_v38, %v5509_v10  ;;  %v5511_v12 = vpop.f32.mrb[95].mxu1  ;;  %v17057_v38 = vld [vmem:[%s22884_s7 + $0x4c] sm:$0xff]   ;;  %v17069_v49 = vld [vmem:[%s22884_s7 + $0x78] sm:$0xff]   ;;  %v17071_v24 = vld [vmem:[%s22884_s7 + $0x80] sm:$0xff]  }
 0x4de   :  { %v17072_v59 = vld [vmem:[%s22884_s7 + $0xf8] sm:$0xff]   ;;  %v17074_v52 = vld [vmem:[%s22884_s7 + $0x100] ss:$0 sps:$4 sm:$0xff]   ;;  %v17073_v10 = vld [vmem:[%s22884_s7 + $0x88] sm:$0xff]  }
 0x4df   :  { %v5519_v20 = vadd.f32 %v13764_v22, %v5515_v47  ;;  %v5516_v63 = vadd.f32 %v5510_v50, %v5179_v44  ;;  %v5529_v30 = vpack.c.bf16 %v5526_v25, %v5525_v55  ;;  %v17070_v55 = vld [vmem:[%s22884_s7 + $0xf0] sm:$0xff]   ;;  %v6030_v0 = vsel %vm501_vm1, %v17074_v52, 0  ;;  %v17077_v47 = vld [vmem:[%s22884_s7 + $0x98] ss:$0 sps:$4 sm:$0xff]   ;;  %v17076_v50 = vld [vmem:[%s22884_s7 + $0x104] sm:$0xff]  }
 0x4e0   :  { %v17075_v25 = vld [vmem:[%s22884_s7 + $0x90] sm:$0xff]   ;;  %v5907_v12 = vsel %vm501_vm1, %v17077_v47, 0 }
 0x4e1   :  { %v5523_v11 = vmax.f32 %v5519_v20, 0.0  ;;  %v5520_v8 = vadd.f32 %v13764_v22, %v5516_v63  ;;  %15854 = vmatpush3.bf16.msra.mxu0 %v5529_v30  ;;  %v17079_v20 = vld [vmem:[%s22884_s7 + $0x9c] sm:$0xff]  }
 0x4e2   :  { %15855 = vmatprep.subr.bf16.mxu0 %v17774_v21 }
 0x4e3   :  { %v5527_v56 = vmax.f32 %v4518_v3, %v5523_v11  ;;  %v5524_v46 = vmax.f32 %v5520_v8, 0.0  ;;  %v17081_v3 = vld [vmem:[%s22884_s7 + $0xa4] sm:$0xff]  }
 0x4e4   :  { %v20292_v11 = vld [vmem:[%s22879_s0 + $0x40] sm:$0xff]  ;;  %v20297_v8 = vld [vmem:[%s22879_s0 + $0x48] sm:$0xff] }
 0x4e5   :  { %v5528_v45 = vmax.f32 %v4519_v57, %v5524_v46  ;;  %v17082_v57 = vld [vmem:[%s22884_s7 + $0x11c] sm:$0xff]   ;;  %v17083_v46 = vld [vmem:[%s22884_s7 + $0xac] sm:$0xff]  }
 0x4e7   :  { %v5530_v60 = vpack.c.bf16 %v5528_v45, %v5527_v56  ;;  %v20306_v56 = vcombine.high %v20292_v11, %v20297_v8  ;;  %v17084_v45 = vld [vmem:[%s22884_s7 + $0x124] sm:$0xff]  }
 0x4e9   :  { %v5543_v29 = vand.u32 %v5530_v60, %v19188_v15  ;;  %v20319_v60 = vld [vmem:[%s22879_s0 + $0x54] ss:$8 sps:$4 sm:$0xff]  }
 0x4ea   :  { %v6533_v43 = vshll.u32 %v20319_v60, 16 }
 0x4eb   :  { %15856 = vmatpush3.bf16.msra.mxu0 %v5543_v29 }
 0x4ec   :  { %15861 = vmatprep.subr.bf16.mxu0 %v17774_v21 }
 0x4ee   :  { %15858 = vmatmul.mubr.msk.bf16.vlgmr.msra.gmra.mrb[96].mxu0 %vm5538_vm10, %v17047_v31  ;;  %v17085_v31 = vld [vmem:[%s22884_s7 + $0xb4] sm:$0xff]  }
 0x4ef   :  { %15862 = vmatpush3.bf16.msra.mxu0 %v5529_v30  ;;  %15865 = vmatprep.mubr.msk.bf16.mxu0 %vm17775_vm9, %v17774_v21  ;;  %v17080_v30 = vld [vmem:[%s22884_s7 + $0x114] sm:$0xff]  }
 0x4f0   :  { %15863 = vmatprep.subr.bf16.mxu0 %v17774_v21 }
 0x4f3   :  { %15864 = vmatpush3.bf16.msra.mxu0 %v5543_v29  ;;  %v6528_v29 = vshll.u32 %v20306_v56, 16 }
 0x4f4   :  { %15869 = vmatprep.subr.bf16.mxu0 %v17774_v21 }
 0x4f6   :  { %15866 = vmatmul.mubr.msk.bf16.vlgmr.msra.gmra.mrb[100].mxu0 %vm5538_vm10, %v17048_v23  ;;  %v17086_v23 = vld [vmem:[%s22884_s7 + $0x12c] sm:$0xff]  }
 0x4f7   :  { %15870 = vmatpush3.bf16.msra.mxu0 %v17051_v41  ;;  %15883 = vmatprep.mubr.msk.bf16.mxu0 %vm17775_vm9, %v17774_v21  ;;  %v17088_v41 = vld [vmem:[%s22884_s7 + $0x134] ss:$0 sps:$4 sm:$0xff]  }
 0x4f8   :  { %15871 = vmatprep.subr.bf16.mxu0 %v17774_v21  ;;  %v6210_v13 = vsel %vm501_vm1, %v17088_v41, 0 }
 0x4fb   :  { %15872 = vmatpush3.bf16.msra.mxu0 %v17053_v26  ;;  %v6526_v26 = vshrl.u32 %v20306_v56, 16 }
 0x4fc   :  { %15873 = vmatprep.subr.bf16.mxu0 %v17774_v21 }
 0x4ff   :  { %15874 = vmatpush3.bf16.msra.mxu0 %v17055_v54  ;;  %v6530_v54 = vrot.slane %v6528_v29, 1  ;;  %v17131_v29 = vld [vmem:[%s22903_s23 + $0xc] ss:$16 sps:$4 sm:$0xff]  }
 0x500   :  { %15875 = vmatprep.subr.bf16.mxu0 %v17774_v21 }
 0x501   :  { %v6531_v51 = vor.u32 %v6530_v54, %v6526_v26  ;;  %v17129_v26 = vld [vmem:[%s22903_s23 + $0x8] ss:$16 sps:$4 sm:$0xff]  }
 0x503   :  { %15876 = vmatpush3.bf16.msra.mxu0 %v17057_v38  ;;  %v17087_v38 = vld [vmem:[%s22884_s7 + $0xbc] sm:$0xff]  }
 0x504   :  { %15877 = vmatprep.subr.bf16.mxu0 %v17774_v21 }
 0x507   :  { %15878 = vmatpush3.bf16.msra.mxu0 %v17059_v34  ;;  %v17092_v34 = vld [vmem:[%s22903_s23 + $0x17c] ss:$16 sps:$4 sm:$0xff]  }
 0x508   :  { %15879 = vmatprep.subr.bf16.mxu0 %v17774_v21 }
 0x50b   :  { %15880 = vmatpush3.bf16.msra.mxu0 %v17061_v27  ;;  %v20344_v27 = vrot.slane %v6533_v43, 1 }
 0x50c   :  { %15881 = vmatprep.subr.bf16.mxu0 %v17774_v21 }
 0x50f   :  { %15882 = vmatpush3.bf16.msra.mxu0 %v5720_v18  ;;  %v17090_v18 = vld [vmem:[%s22903_s23 + $0x178] ss:$16 sps:$4 sm:$0xff]  }
 0x510   :  { %15905 = vmatprep.subr.bf16.mxu0 %v17774_v21 }
 0x5c1   :  { %v5579_v40 = vpop.f32.mrb[96].mxu0 }
 0x5c2   :  { %v15859_v42 = vpop.f32.mrb[97].mxu0 }
 0x5c3   :  { %v5582_v39 = vpop.f32.mrb[98].mxu0  ;;  %v20361_v42 = vsel %vm190_vm2, %v6531_v51, %v20344_v27 }
 0x5c4   :  { %v15860_v44 = vpop.f32.mrb[99].mxu0 }
 0x5c5   :  { %v17094_v44 = vld [vmem:[%s22903_s23 + $0x198] ss:$16 sps:$4 sm:$0xff]  }
 0x5c9   :  { %v5631_v36 = vpop.f32.mrb[100].mxu0 }
 0x5ca   :  { %v5638_v22 = vmax.f32 %v5579_v40, %v5631_v36  ;;  %v15867_v35 = vpop.f32.mrb[101].mxu0  ;;  %v17096_v40 = vld [vmem:[%s22903_s23 + $0x19c] ss:$16 sps:$4 sm:$0xff]  }
 0x5cb   :  { %v5634_v33 = vpop.f32.mrb[102].mxu0  ;;  %v17099_v36 = vld [vmem:[%s22903_s23 + $0x1bc] ss:$16 sps:$4 sm:$0xff]  }
 0x5cc   :  { %v5639_v14 = vmax.f32 %v5582_v39, %v5634_v33  ;;  %v15868_v61 = vpop.f32.mrb[103].mxu0  ;;  %v6113_v39 = vsel %vm501_vm1, %v17093_v48, 0  ;;  %v17102_v35 = vld [vmem:[%s22903_s23 + $0x1dc] ss:$16 sps:$4 sm:$0xff]   ;;  %v17100_v33 = vld [vmem:[%s22903_s23 + $0x1d8] ss:$16 sps:$4 sm:$0xff]  }
 0x5cd   :  { %v17103_v61 = vld [vmem:[%s22903_s23 + $0x1f8] ss:$16 sps:$4 sm:$0xff]  }
 0x5ce   :  { %v20199_v1 = vpack.c.bf16 %v5639_v14, %v5638_v22  ;;  %v17097_v22 = vld [vmem:[%s22903_s23 + $0x1b8] ss:$16 sps:$4 sm:$0xff]   ;;  %v17105_v14 = vld [vmem:[%s22903_s23 + $0x1fc] ss:$16 sps:$4 sm:$0xff]  }
 0x5d0   :  { %15902 = vmatmul.mubr.msk.bf16.vlgmr.msra.gmra.mrb[96].mxu1 %vm5715_vm11, %v20199_v1  ;;  %v5672_v37 = vshll.u32 %v20199_v1, 16  ;;  %v5670_v28 = vshrl.u32 %v20199_v1, 16  ;;  %v5863_v63 = vrot.slane %v20199_v1, 1 }
 0x5d1   :  { %15924 = vmatpush3.bf16.msra.mxu1 %v17062_v32  ;;  %15937 = vmatprep.mubr.msk.bf16.mxu1 %vm17775_vm9, %v17774_v21  ;;  %v17108_v32 = vld [vmem:[%s22903_s23 + $0x21c] ss:$16 sps:$4 sm:$0xff]  }
 0x5d2   :  { %15925 = vmatprep.subr.bf16.mxu1 %v17774_v21  ;;  %v5674_v16 = vrot.slane %v5672_v37, 1  ;;  %v17111_v37 = vld [vmem:[%s22903_s23 + $0x23c] ss:$16 sps:$4 sm:$0xff]  }
 0x5d4   :  { %v5675_v7 = vor.u32 %v5674_v16, %v5670_v28  ;;  %v17114_v28 = vld [vmem:[%s22903_s23 + $0x25c] ss:$16 sps:$4 sm:$0xff]   ;;  %v17112_v16 = vld [vmem:[%s22903_s23 + $0x258] ss:$16 sps:$4 sm:$0xff]  }
 0x5d5   :  { %15926 = vmatpush3.bf16.msra.mxu1 %v17064_v5  ;;  %v17109_v5 = vld [vmem:[%s22903_s23 + $0x238] ss:$16 sps:$4 sm:$0xff]  }
 0x5d6   :  { %15884 = vmatmul.mubr.msk.bf16.vlgmr.msra.gmra.mrb[104].mxu0 %vm5715_vm11, %v5675_v7  ;;  %15927 = vmatprep.subr.bf16.mxu1 %v17774_v21 }
 0x5d7   :  { %15906 = vmatpush3.bf16.msra.mxu0 %v17065_v19  ;;  %15919 = vmatprep.mubr.msk.bf16.mxu0 %vm17775_vm9, %v17774_v21  ;;  %v17117_v19 = vld [vmem:[%s22903_s23 + $0x27c] ss:$16 sps:$4 sm:$0xff]  }
 0x5d8   :  { %15907 = vmatprep.subr.bf16.mxu0 %v17774_v21 }
 0x5d9   :  { %15928 = vmatpush3.bf16.msra.mxu1 %v17066_v2  ;;  %v20420_v2 = vcombine.low %v20292_v11, %v20297_v8 }
 0x5da   :  { %15929 = vmatprep.subr.bf16.mxu1 %v17774_v21 }
 0x5db   :  { %15908 = vmatpush3.bf16.msra.mxu0 %v17067_v17  ;;  %v17120_v17 = vld [vmem:[%s22903_s23 + $0x29c] ss:$16 sps:$4 sm:$0xff]   ;;  %v6514_v47 = vshrl.u32 %v20420_v2, 16 }
 0x5dc   :  { %15909 = vmatprep.subr.bf16.mxu0 %v17774_v21 }
 0x5dd   :  { %15930 = vmatpush3.bf16.msra.mxu1 %v17068_v9  ;;  %v14208_v9 = vld [vmem:[%s22903_s23 + $0x2d8] sm:$0xff] }
 0x5de   :  { %15931 = vmatprep.subr.bf16.mxu1 %v17774_v21  ;;  %v14264_v52 = vcombine.high %v14208_v9, %v14208_v9 }
 0x5df   :  { %15910 = vmatpush3.bf16.msra.mxu0 %v17069_v49  ;;  %v17118_v49 = vld [vmem:[%s22903_s23 + $0x298] ss:$16 sps:$4 sm:$0xff]  }
 0x5e0   :  { %15911 = vmatprep.subr.bf16.mxu0 %v17774_v21 }
 0x5e1   :  { %15932 = vmatpush3.bf16.msra.mxu1 %v17070_v55  ;;  %v20434_v55 = vld [vmem:[%s22879_s0 + $0x50] ss:$8 sps:$4 sm:$0xff]  }
 0x5e2   :  { %15933 = vmatprep.subr.bf16.mxu1 %v17774_v21  ;;  %v6537_v43 = vshrl.u32 %v20434_v55, 16 }
 0x5e3   :  { %15912 = vmatpush3.bf16.msra.mxu0 %v17071_v24  ;;  %v6516_v24 = vshll.u32 %v20420_v2, 16 }
 0x5e4   :  { %15913 = vmatprep.subr.bf16.mxu0 %v17774_v21 }
 0x5e5   :  { %15934 = vmatpush3.bf16.msra.mxu1 %v17072_v59  ;;  %v17123_v59 = vld [vmem:[%s22903_s23 + $0x2bc] ss:$16 sps:$4 sm:$0xff]  }
 0x5e6   :  { %15935 = vmatprep.subr.bf16.mxu1 %v17774_v21 }
 0x5e7   :  { %15914 = vmatpush3.bf16.msra.mxu0 %v17073_v10  ;;  %v20443_v10 = vld [vmem:[%s22879_s0 + $0x64] ss:$8 sps:$4 sm:$0xff]  }
 0x5e8   :  { %15915 = vmatprep.subr.bf16.mxu0 %v17774_v21  ;;  %v6561_v51 = vshrl.u32 %v20443_v10, 16 }
 0x5e9   :  { %15936 = vmatpush3.bf16.msra.mxu1 %v6030_v0  ;;  %v17121_v0 = vld [vmem:[%s22903_s23 + $0x2b8] ss:$16 sps:$4 sm:$0xff]  }
 0x5ea   :  { %15959 = vmatprep.subr.bf16.mxu1 %v17774_v21 }
 0x5eb   :  { %15916 = vmatpush3.bf16.msra.mxu0 %v17075_v25  ;;  %v14263_v25 = vcombine.low %v14208_v9, %v14208_v9  ;;  %v17148_v9 = vld [vmem:[%s22903_s23 + $0xac] ss:$16 sps:$4 sm:$0xff]  }
 0x5ec   :  { %15938 = vmatmul.mubr.msk.bf16.vlgmr.msra.gmra.mrb[100].mxu1 %vm5715_vm11, %v5675_v7  ;;  %15917 = vmatprep.subr.bf16.mxu0 %v17774_v21  ;;  %v17115_v7 = vld [vmem:[%s22903_s23 + $0x278] ss:$16 sps:$4 sm:$0xff]  }
 0x5ed   :  { %15960 = vmatpush3.bf16.msra.mxu1 %v17076_v50  ;;  %15973 = vmatprep.mubr.msk.bf16.mxu1 %vm17775_vm9, %v17774_v21  ;;  %v6518_v50 = vrot.slane %v6516_v24, 1  ;;  %v6828_v11 = vand.u32 %v14263_v25, %v18031_v62  ;;  %v17146_v24 = vld [vmem:[%s22903_s23 + $0xa8] ss:$16 sps:$4 sm:$0xff]   ;;  %v17157_v25 = vld [vmem:[%s22903_s23 + $0xec] ss:$16 sps:$4 sm:$0xff]  }
 0x5ee   :  { %15961 = vmatprep.subr.bf16.mxu1 %v17774_v21 }
 0x5ef   :  { %15918 = vmatpush3.bf16.msra.mxu0 %v5907_v12  ;;  %v6521_v12 = vshll.u32 %v20434_v55, 16 }
 0x5f0   :  { %15941 = vmatprep.subr.bf16.mxu0 %v17774_v21 }
 0x5f1   :  { %15962 = vmatpush3.bf16.msra.mxu1 %v17078_v53  ;;  %v6831_v53 = vand.u32 %v14264_v52, %v18031_v62 }
 0x5f2   :  { %15920 = vmatmul.mubr.msk.bf16.vlgmr.msra.gmra.mrb[108].mxu0 %vm5715_vm11, %v5863_v63  ;;  %15963 = vmatprep.subr.bf16.mxu1 %v17774_v21 }
 0x5f3   :  { %15942 = vmatpush3.bf16.msra.mxu0 %v17079_v20  ;;  %15955 = vmatprep.mubr.msk.bf16.mxu0 %vm17775_vm9, %v17774_v21  ;;  %v6545_v20 = vshrl.u32 %v20319_v60, 16 }
 0x5f4   :  { %15943 = vmatprep.subr.bf16.mxu0 %v17774_v21 }
 0x5f5   :  { %15964 = vmatpush3.bf16.msra.mxu1 %v17080_v30  ;;  %v20456_v30 = vld [vmem:[%s22879_s0 + $0x70] sm:$0xff] }
 0x5f6   :  { %15965 = vmatprep.subr.bf16.mxu1 %v17774_v21 }
 0x5f7   :  { %15944 = vmatpush3.bf16.msra.mxu0 %v17081_v3  ;;  %v14162_v3 = vld [vmem:[%s22879_s0 + $0x78] sm:$0x33] }
 0x5f8   :  { %15945 = vmatprep.subr.bf16.mxu0 %v17774_v21  ;;  %v20472_v41 = vcombine.high %v20456_v30, %v14162_v3 }
 0x5f9   :  { %15966 = vmatpush3.bf16.msra.mxu1 %v17082_v57  ;;  %v6519_v57 = vor.u32 %v6518_v50, %v6514_v47  ;;  %v17155_v47 = vld [vmem:[%s22903_s23 + $0xe8] ss:$16 sps:$4 sm:$0xff]   ;;  %v17161_v50 = vld [vmem:[%s22903_s23 + $0x10c] ss:$16 sps:$4 sm:$0xff]  }
 0x5fa   :  { %15967 = vmatprep.subr.bf16.mxu1 %v17774_v21 }
 0x5fb   :  { %15946 = vmatpush3.bf16.msra.mxu0 %v17083_v46  ;;  %v6523_v46 = vrot.slane %v6521_v12, 1  ;;  %v17159_v12 = vld [vmem:[%s22903_s23 + $0x108] ss:$16 sps:$4 sm:$0xff]  }
 0x5fc   :  { %15947 = vmatprep.subr.bf16.mxu0 %v17774_v21 }
 0x5fd   :  { %15968 = vmatpush3.bf16.msra.mxu1 %v17084_v45  ;;  %v20465_v45 = vld [vmem:[%s22879_s0 + $0x60] ss:$8 sps:$4 sm:$0xff]   ;;  %v20478_v54 = vsel %vm190_vm2, %v6519_v57, %v6523_v46  ;;  %v6539_v48 = vor.u32 %v6537_v43, %v6523_v46  ;;  %v17176_v43 = vld [vmem:[%s22903_s23 + $0x30c] ss:$16 sps:$4 sm:$0xff]  }
 0x5fe   :  { %15969 = vmatprep.subr.bf16.mxu1 %v17774_v21  ;;  %v17166_v57 = vld [vmem:[%s22903_s23 + $0x148] ss:$16 sps:$4 sm:$0xff]  }
 0x5ff   :  { %15948 = vmatpush3.bf16.msra.mxu0 %v17085_v31  ;;  %v6547_v31 = vor.u32 %v6545_v20, %v20344_v27  ;;  %v6565_v27 = vshll.u32 %v20472_v41, 16  ;;  %v6434_v20 = vld [vmem:[%s22903_s23 + $0x168] sm:$0xff] }
 0x600   :  { %15949 = vmatprep.subr.bf16.mxu0 %v17774_v21  ;;  %v14319_v46 = vcombine.low %v6434_v20, %v6434_v20 }
 0x601   :  { %15970 = vmatpush3.bf16.msra.mxu1 %v17086_v23 }
 0x602   :  { %15971 = vmatprep.subr.bf16.mxu1 %v17774_v21 }
 0x603   :  { %15950 = vmatpush3.bf16.msra.mxu0 %v17087_v38  ;;  %v6541_v38 = vshll.u32 %v20465_v45, 16 }
 0x604   :  { %15951 = vmatprep.subr.bf16.mxu0 %v17774_v21 }
 0x605   :  { %15972 = vmatpush3.bf16.msra.mxu1 %v6210_v13  ;;  %v17136_v13 = vld [vmem:[%s22903_s23 + $0x2c] ss:$16 sps:$4 sm:$0xff]  }
 0x606   :  { %6906 = vmatprep.subr.bf16.mxu1 %v17092_v34 }
 0x607   :  { %15952 = vmatpush3.bf16.msra.mxu0 %v17089_v4  ;;  %v17134_v4 = vld [vmem:[%s22903_s23 + $0x28] ss:$16 sps:$4 sm:$0xff]  }
 0x608   :  { %15974 = vmatmul.mubr.msk.bf16.vlgmr.msra.gmra.mrb[104].mxu1 %vm5715_vm11, %v5863_v63  ;;  %15953 = vmatprep.subr.bf16.mxu0 %v17774_v21  ;;  %v6549_v63 = vshll.u32 %v20443_v10, 16 }
 0x609   :  { %6907 = vmatpush1.bf16.msra.mxu1 %v17090_v18  ;;  %14269 = vmatprep.mubr.msk.bf16.mxu1 %vm487_vm3, %v20361_v42  ;;  %v6543_v18 = vrot.slane %v6541_v38, 1  ;;  %v17174_v38 = vld [vmem:[%s22903_s23 + $0x308] ss:$16 sps:$4 sm:$0xff]  }
 0x60a   :  { %6908 = vmatprep.subr.bf16.mxu1 %v17096_v40  ;;  %v6551_v23 = vrot.slane %v6549_v63, 1  ;;  %v20497_v40 = vcombine.low %v20456_v30, %v14162_v3  ;;  %v17163_v63 = vld [vmem:[%s22903_s23 + $0x128] ss:$16 sps:$4 sm:$0xff]   ;;  %v17168_v3 = vld [vmem:[%s22903_s23 + $0x14c] ss:$16 sps:$4 sm:$0xff]  }
 0x60b   :  { %15954 = vmatpush3.bf16.msra.mxu0 %v6113_v39  ;;  %v17139_v39 = vld [vmem:[%s22903_s23 + $0x4c] ss:$16 sps:$4 sm:$0xff]  }
 0x60c   :  { %15977 = vmatprep.subr.bf16.mxu0 %v17774_v21  ;;  %v20486_v34 = vsel %vm190_vm2, %v6547_v31, %v6551_v23  ;;  %v7228_v31 = vand.u32 %v14319_v46, %v18031_v62 }
 0x60d   :  { %6909 = vmatpush1.bf16.msra.mxu1 %v17094_v44  ;;  %v6563_v44 = vor.u32 %v6561_v51, %v6551_v23  ;;  %v17173_v23 = vld [vmem:[%s22903_s23 + $0x2ec] ss:$16 sps:$4 sm:$0xff]   ;;  %v17177_v51 = vld [vmem:[%s22903_s23 + $0x328] ss:$16 sps:$4 sm:$0xff]  }
 0x60e   :  { %15956 = vmatmul.mubr.msk.bf16.vlgmr.msra.gmra.mrb[112].mxu0 %vm5715_vm11, %v20199_v1  ;;  %6910 = vmatprep.subr.bf16.mxu1 %v17099_v36  ;;  %v17106_v1 = vld [vmem:[%s22903_s23 + $0x218] ss:$16 sps:$4 sm:$0xff]   ;;  %v6567_v36 = vrot.slane %v6565_v27, 1  ;;  %v17182_v27 = vld [vmem:[%s22903_s23 + $0x34c] ss:$16 sps:$4 sm:$0xff]  }
 0x60f   :  { %15979 = vmatprep.mubr.msk.bf16.mxu0 %vm17775_vm9, %v17774_v21 }
 0x611   :  { %6911 = vmatpush1.bf16.msra.mxu1 %v17097_v22  ;;  %v17137_v22 = vld [vmem:[%s22903_s23 + $0x48] ss:$16 sps:$4 sm:$0xff]  }
 0x612   :  { %6912 = vmatprep.subr.bf16.mxu1 %v17102_v35  ;;  %v20506_v35 = vsel %vm190_vm2, %v6539_v48, %v6543_v18  ;;  %v17185_v48 = vld [vmem:[%s22903_s23 + $0x36c] ss:$16 sps:$4 sm:$0xff]  }
 0x615   :  { %6913 = vmatpush1.bf16.msra.mxu1 %v17100_v33  ;;  %v6553_v33 = vshrl.u32 %v20465_v45, 16 }
 0x616   :  { %6914 = vmatprep.subr.bf16.mxu1 %v17105_v14  ;;  %v6557_v14 = vshll.u32 %v20497_v40, 16 }
 0x619   :  { %6915 = vmatpush1.bf16.msra.mxu1 %v17103_v61  ;;  %v17142_v61 = vld [vmem:[%s22903_s23 + $0x6c] ss:$16 sps:$4 sm:$0xff]  }
 0x61a   :  { %6916 = vmatprep.subr.bf16.mxu1 %v17108_v32  ;;  %v20514_v32 = vsel %vm190_vm2, %v6563_v44, %v6567_v36  ;;  %v17188_v44 = vld [vmem:[%s22903_s23 + $0x38c] ss:$16 sps:$4 sm:$0xff]  }
 0x61d   :  { %6917 = vmatpush1.bf16.msra.mxu1 %v17106_v1  ;;  %v17140_v1 = vld [vmem:[%s22903_s23 + $0x68] ss:$16 sps:$4 sm:$0xff]  }
 0x61e   :  { %6918 = vmatprep.subr.bf16.mxu1 %v17111_v37  ;;  %v6555_v37 = vor.u32 %v6553_v33, %v6543_v18  ;;  %v14329_v18 = vld [vmem:[%s22879_s0 + $0x40] sm:$0xee]  ;;  %v17191_v33 = vld [vmem:[%s22903_s23 + $0x3ac] ss:$16 sps:$4 sm:$0xff]  }
 0x621   :  { %6919 = vmatpush1.bf16.msra.mxu1 %v17109_v5  ;;  %v6559_v5 = vrot.slane %v6557_v14, 1 }
 0x622   :  { %6920 = vmatprep.subr.bf16.mxu1 %v17114_v28  ;;  %v6572_v28 = vshrl.u32 %v20472_v41, 16 }
 0x625   :  { %6921 = vmatpush1.bf16.msra.mxu1 %v17112_v16  ;;  %v17145_v16 = vld [vmem:[%s22903_s23 + $0x8c] ss:$16 sps:$4 sm:$0xff]  }
 0x626   :  { %6922 = vmatprep.subr.bf16.mxu1 %v17117_v19  ;;  %v17143_v19 = vld [vmem:[%s22903_s23 + $0x88] ss:$16 sps:$4 sm:$0xff]  }
 0x629   :  { %6923 = vmatpush1.bf16.msra.mxu1 %v17115_v7  ;;  %v20530_v7 = vsel %vm190_vm2, %v6555_v37, %v6559_v5  ;;  %v17194_v37 = vld [vmem:[%s22903_s23 + $0x3cc] ss:$16 sps:$4 sm:$0xff]  }
 0x62a   :  { %6924 = vmatprep.subr.bf16.mxu1 %v17120_v17  ;;  %v20532_v17 = vor.u32 %v6572_v28, %v6567_v36  ;;  %v14378_v36 = vcombine.high %v14329_v18, %v20297_v8  ;;  %v17192_v28 = vld [vmem:[%s22903_s23 + $0x3c8] ss:$16 sps:$4 sm:$0xff]  }
 0x62c   :  { %v7440_v14 = vrot.slane %v14378_v36, 1 }
 0x62d   :  { %6925 = vmatpush1.bf16.msra.mxu1 %v17118_v49  ;;  %v6569_v49 = vshrl.u32 %v20497_v40, 16 }
 0x62e   :  { %6926 = vmatprep.subr.bf16.mxu1 %v17123_v59  ;;  %v17153_v59 = vld [vmem:[%s22903_s23 + $0xcc] ss:$16 sps:$4 sm:$0xff]  }
 0x62f   :  { %v20547_v52 = vor.u32 %v6569_v49, %v6559_v5  ;;  %v14376_v49 = vld [vmem:[%s22903_s23 + $0x448] sm:$0xff] }
 0x631   :  { %6927 = vmatpush1.bf16.msra.mxu1 %v17121_v0  ;;  %v17151_v0 = vld [vmem:[%s22903_s23 + $0xc8] ss:$16 sps:$4 sm:$0xff]  }
 0x632   :  { %6928 = vmatprep.subr.bf16.mxu1 %v6831_v53  ;;  %v17165_v53 = vld [vmem:[%s22903_s23 + $0x12c] ss:$16 sps:$4 sm:$0xff]  }
 0x635   :  { %6929 = vmatpush1.bf16.msra.mxu1 %v6828_v11  ;;  %v14320_v11 = vcombine.high %v6434_v20, %v6434_v20 }
 0x636   :  { %7306 = vmatprep.subr.bf16.mxu1 %v17131_v29 }
 0x637   :  { %v7231_v29 = vand.u32 %v14320_v11, %v18031_v62  ;;  %v7445_v11 = vrot.slane %v20443_v10, 1 }
 0x638   :  { %6939 = vmatmul.mubr.bf16.vlgmr.msra.gmra.mrb[108].mxu1 %v20478_v54 }
 0x639   :  { %7307 = vmatpush1.bf16.msra.mxu1 %v17129_v26  ;;  %14270 = vmatprep.mubr.msk.bf16.mxu1 %vm487_vm3, %v20486_v34  ;;  %v17171_v26 = vld [vmem:[%s22903_s23 + $0x2e8] ss:$16 sps:$4 sm:$0xff]  }
 0x63a   :  { %7308 = vmatprep.subr.bf16.mxu1 %v17136_v13  ;;  %v17179_v13 = vld [vmem:[%s22903_s23 + $0x32c] ss:$16 sps:$4 sm:$0xff]  }
 0x63d   :  { %7309 = vmatpush1.bf16.msra.mxu1 %v17134_v4  ;;  %v17180_v4 = vld [vmem:[%s22903_s23 + $0x348] ss:$16 sps:$4 sm:$0xff]  }
 0x63e   :  { %7310 = vmatprep.subr.bf16.mxu1 %v17139_v39  ;;  %v17183_v39 = vld [vmem:[%s22903_s23 + $0x368] ss:$16 sps:$4 sm:$0xff]  }
 0x640   :  { %6949 = vmatmul.mubr.bf16.gmra.mrb[112].mxu1 %v20506_v35 }
 0x641   :  { %7311 = vmatpush1.bf16.msra.mxu1 %v17137_v22  ;;  %14271 = vmatprep.mubr.msk.bf16.mxu1 %vm487_vm3, %v20514_v32  ;;  %v17186_v22 = vld [vmem:[%s22903_s23 + $0x388] ss:$16 sps:$4 sm:$0xff]  }
 0x642   :  { %7312 = vmatprep.subr.bf16.mxu1 %v17142_v61  ;;  %v7441_v61 = vrot.slane %v20319_v60, 1 }
 0x644   :  { %v20644_v5 = vsel %vm1121_vm4, %v7440_v14, %v7441_v61  ;;  %v17220_v14 = vld [vmem:[%s22903_s23 + $0x648] ss:$16 sps:$4 sm:$0xff]  }
 0x645   :  { %7313 = vmatpush1.bf16.msra.mxu1 %v17140_v1  ;;  %v17189_v1 = vld [vmem:[%s22903_s23 + $0x3a8] ss:$16 sps:$4 sm:$0xff]  }
 0x646   :  { %7314 = vmatprep.subr.bf16.mxu1 %v17145_v16  ;;  %v17197_v16 = vld [vmem:[%s22903_s23 + $0x3ec] ss:$16 sps:$4 sm:$0xff]  }
 0x648   :  { %6959 = vmatmul.mubr.bf16.gmra.mrb[116].mxu1 %v20530_v7 }
 0x649   :  { %7315 = vmatpush1.bf16.msra.mxu1 %v17143_v19  ;;  %14272 = vmatprep.mubr.msk.bf16.mxu1 %vm487_vm3, %v20532_v17  ;;  %v17195_v19 = vld [vmem:[%s22903_s23 + $0x3e8] ss:$16 sps:$4 sm:$0xff]  }
 0x64a   :  { %7316 = vmatprep.subr.bf16.mxu1 %v17148_v9  ;;  %v17200_v9 = vld [vmem:[%s22903_s23 + $0x40c] ss:$16 sps:$4 sm:$0xff]  }
 0x64d   :  { %7317 = vmatpush1.bf16.msra.mxu1 %v17146_v24  ;;  %v17198_v24 = vld [vmem:[%s22903_s23 + $0x408] ss:$16 sps:$4 sm:$0xff]  }
 0x64e   :  { %7318 = vmatprep.subr.bf16.mxu1 %v17153_v59  ;;  %v17203_v59 = vld [vmem:[%s22903_s23 + $0x42c] ss:$16 sps:$4 sm:$0xff]  }
 0x650   :  { %6969 = vmatmul.mubr.bf16.gmra.mrb[120].mxu1 %v20547_v52 }
 0x651   :  { %7319 = vmatpush1.bf16.msra.mxu1 %v17151_v0  ;;  %14325 = vmatprep.mubr.msk.bf16.mxu1 %vm487_vm3, %v20306_v56  ;;  %v14428_v0 = vcombine.high %v14376_v49, %v14376_v49 }
 0x652   :  { %7320 = vmatprep.subr.bf16.mxu1 %v17157_v25  ;;  %v17201_v25 = vld [vmem:[%s22903_s23 + $0x428] ss:$16 sps:$4 sm:$0xff]  }
 0x655   :  { %7321 = vmatpush1.bf16.msra.mxu1 %v17155_v47  ;;  %v14427_v47 = vcombine.low %v14376_v49, %v14376_v49  ;;  %v17228_v49 = vld [vmem:[%s22903_s23 + $0x68c] ss:$16 sps:$4 sm:$0xff]  }
 0x656   :  { %7322 = vmatprep.subr.bf16.mxu1 %v17161_v50  ;;  %v14377_v50 = vcombine.low %v14329_v18, %v20297_v8  ;;  %v14330_v8 = vld [vmem:[%s22879_s0 + $0x78] sm:$0x77] }
 0x658   :  { %v7437_v20 = vrot.slane %v14377_v50, 1  ;;  %v17229_v50 = vld [vmem:[%s22903_s23 + $0x6a8] ss:$16 sps:$4 sm:$0xff]  }
 0x659   :  { %7323 = vmatpush1.bf16.msra.mxu1 %v17159_v12  ;;  %v7707_v12 = vand.u32 %v14428_v0, %v18031_v62 }
 0x65a   :  { %7324 = vmatprep.subr.bf16.mxu1 %v17165_v53  ;;  %v7704_v53 = vand.u32 %v14427_v47, %v18031_v62  ;;  %v17231_v47 = vld [vmem:[%s22903_s23 + $0x6ac] ss:$16 sps:$4 sm:$0xff]  }
 0x65d   :  { %7325 = vmatpush1.bf16.msra.mxu1 %v17163_v63  ;;  %v7438_v63 = vrot.slane %v20434_v55, 1 }
 0x65e   :  { %7326 = vmatprep.subr.bf16.mxu1 %v17168_v3  ;;  %v17210_v3 = vld [vmem:[%s22903_s23 + $0x5cc] ss:$16 sps:$4 sm:$0xff]  }
 0x65f   :  { %v20688_v46 = vsel %vm1121_vm4, %v7437_v20, %v7438_v63  ;;  %v17239_v20 = vld [vmem:[%s22903_s23 + $0x6ec] ss:$16 sps:$4 sm:$0xff]  }
 0x661   :  { %7327 = vmatpush1.bf16.msra.mxu1 %v17166_v57  ;;  %v17208_v57 = vld [vmem:[%s22903_s23 + $0x5c8] ss:$16 sps:$4 sm:$0xff]  }
 0x662   :  { %7328 = vmatprep.subr.bf16.mxu1 %v7231_v29  ;;  %v17213_v29 = vld [vmem:[%s22903_s23 + $0x5ec] ss:$16 sps:$4 sm:$0xff]  }
 0x665   :  { %7329 = vmatpush1.bf16.msra.mxu1 %v7228_v31  ;;  %v20694_v31 = vsel %vm1121_vm4, %v7441_v61, %v7445_v11 }
 0x666   :  { %7782 = vmatprep.subr.bf16.mxu1 %v17173_v23  ;;  %v14380_v23 = vcombine.high %v20456_v30, %v14330_v8 }
 0x668   :  { %7339 = vmatmul.mubr.bf16.vlgmr.msra.gmra.mrb[108].mxu1 %v20420_v2 }
 0x669   :  { %7783 = vmatpush1.bf16.msra.mxu1 %v17171_v26  ;;  %14326 = vmatprep.mubr.msk.bf16.mxu1 %vm487_vm3, %v20319_v60  ;;  %v17211_v26 = vld [vmem:[%s22903_s23 + $0x5e8] ss:$16 sps:$4 sm:$0xff]  }
 0x66a   :  { %7784 = vmatprep.subr.bf16.mxu1 %v17176_v43  ;;  %v7443_v43 = vrot.slane %v20465_v45, 1 }
 0x66d   :  { %7785 = vmatpush1.bf16.msra.mxu1 %v17174_v38  ;;  %v17216_v38 = vld [vmem:[%s22903_s23 + $0x60c] ss:$16 sps:$4 sm:$0xff]  }
 0x66e   :  { %7786 = vmatprep.subr.bf16.mxu1 %v17179_v13  ;;  %v20707_v13 = vrot.slane %v14380_v23, 1 }
 0x670   :  { %7349 = vmatmul.mubr.bf16.gmra.mrb[112].mxu1 %v20434_v55  ;;  %v20721_v18 = vsel %vm1121_vm4, %v7445_v11, %v20707_v13  ;;  %v17242_v11 = vld [vmem:[%s22903_s23 + $0x70c] ss:$16 sps:$4 sm:$0xff]  }
 0x671   :  { %7787 = vmatpush1.bf16.msra.mxu1 %v17177_v51  ;;  %14327 = vmatprep.mubr.msk.bf16.mxu1 %vm487_vm3, %v20443_v10  ;;  %v17214_v51 = vld [vmem:[%s22903_s23 + $0x608] ss:$16 sps:$4 sm:$0xff]  }
 0x672   :  { %7788 = vmatprep.subr.bf16.mxu1 %v17182_v27  ;;  %v20713_v27 = vsel %vm1121_vm4, %v7438_v63, %v7443_v43  ;;  %v14528_v63 = vld [vmem:[%s22903_s23 + $0x728] sm:$0xff] }
 0x675   :  { %7789 = vmatpush1.bf16.msra.mxu1 %v17180_v4  ;;  %v14379_v4 = vcombine.low %v20456_v30, %v14330_v8  ;;  %v14576_v8 = vcombine.high %v14528_v63, %v14528_v63 }
 0x676   :  { %7790 = vmatprep.subr.bf16.mxu1 %v17185_v48  ;;  %v17219_v48 = vld [vmem:[%s22903_s23 + $0x62c] ss:$16 sps:$4 sm:$0xff]  }
 0x677   :  { %v20729_v30 = vrot.slane %v14379_v4, 1  ;;  %v8304_v23 = vand.u32 %v14576_v8, %v18031_v62 }
 0x678   :  { %7359 = vmatmul.mubr.bf16.gmra.mrb[116].mxu1 %v20465_v45 }
 0x679   :  { %7791 = vmatpush1.bf16.msra.mxu1 %v17183_v39  ;;  %14328 = vmatprep.mubr.msk.bf16.mxu1 %vm487_vm3, %v20472_v41  ;;  %v17217_v39 = vld [vmem:[%s22903_s23 + $0x628] ss:$16 sps:$4 sm:$0xff]   ;;  %v20739_v61 = vsel %vm1121_vm4, %v7443_v43, %v20729_v30 }
 0x67a   :  { %7792 = vmatprep.subr.bf16.mxu1 %v17188_v44  ;;  %v17222_v44 = vld [vmem:[%s22903_s23 + $0x64c] ss:$16 sps:$4 sm:$0xff]  }
 0x67d   :  { %7793 = vmatpush1.bf16.msra.mxu1 %v17186_v22 }
 0x67e   :  { %7794 = vmatprep.subr.bf16.mxu1 %v17191_v33 }
 0x680   :  { %7369 = vmatmul.mubr.bf16.gmra.mrb[120].mxu1 %v20497_v40 }
 0x681   :  { %7795 = vmatpush1.bf16.msra.mxu1 %v17189_v1  ;;  %14433 = vmatprep.mubr.msk.bf16.mxu1 %vm487_vm3, %v20644_v5 }
 0x682   :  { %7796 = vmatprep.subr.bf16.mxu1 %v17194_v37  ;;  %v17225_v37 = vld [vmem:[%s22903_s23 + $0x66c] ss:$16 sps:$4 sm:$0xff]  }
 0x685   :  { %7797 = vmatpush1.bf16.msra.mxu1 %v17192_v28 }
 0x686   :  { %7798 = vmatprep.subr.bf16.mxu1 %v17197_v16  ;;  %v17223_v16 = vld [vmem:[%s22903_s23 + $0x668] ss:$16 sps:$4 sm:$0xff]  }
 0x689   :  { %7799 = vmatpush1.bf16.msra.mxu1 %v17195_v19 }
 0x68a   :  { %7800 = vmatprep.subr.bf16.mxu1 %v17200_v9 }
 0x68d   :  { %7801 = vmatpush1.bf16.msra.mxu1 %v17198_v24 }
 0x68e   :  { %7802 = vmatprep.subr.bf16.mxu1 %v17203_v59 }
 0x691   :  { %7803 = vmatpush1.bf16.msra.mxu1 %v17201_v25  ;;  %v17226_v25 = vld [vmem:[%s22903_s23 + $0x688] ss:$16 sps:$4 sm:$0xff]  }
 0x692   :  { %7804 = vmatprep.subr.bf16.mxu1 %v7707_v12  ;;  %v17235_v12 = vld [vmem:[%s22903_s23 + $0x6cc] ss:$16 sps:$4 sm:$0xff]  }
 0x695   :  { %7805 = vmatpush1.bf16.msra.mxu1 %v7704_v53  ;;  %v17233_v53 = vld [vmem:[%s22903_s23 + $0x6c8] ss:$16 sps:$4 sm:$0xff]  }
 0x696   :  { %8379 = vmatprep.subr.bf16.mxu1 %v17210_v3  ;;  %v17237_v3 = vld [vmem:[%s22903_s23 + $0x6e8] ss:$16 sps:$4 sm:$0xff]  }
 0x698   :  { %7815 = vmatmul.mubr.bf16.vlgmr.msra.gmra.mrb[108].mxu1 %v20688_v46 }
 0x699   :  { %8380 = vmatpush1.bf16.msra.mxu1 %v17208_v57  ;;  %14434 = vmatprep.mubr.msk.bf16.mxu1 %vm487_vm3, %v20694_v31  ;;  %v17240_v57 = vld [vmem:[%s22903_s23 + $0x708] ss:$16 sps:$4 sm:$0xff]  }
 0x69a   :  { %8381 = vmatprep.subr.bf16.mxu1 %v17213_v29  ;;  %v14575_v29 = vcombine.low %v14528_v63, %v14528_v63 }
 0x69d   :  { %8382 = vmatpush1.bf16.msra.mxu1 %v17211_v26 }
 0x69e   :  { %8383 = vmatprep.subr.bf16.mxu1 %v17216_v38 }
 0x6a0   :  { %7825 = vmatmul.mubr.bf16.gmra.mrb[112].mxu1 %v20713_v27 }
 0x6a1   :  { %8384 = vmatpush1.bf16.msra.mxu1 %v17214_v51  ;;  %14435 = vmatprep.mubr.msk.bf16.mxu1 %vm487_vm3, %v20721_v18  ;;  %v8301_v51 = vand.u32 %v14575_v29, %v18031_v62 }
 0x6a2   :  { %8385 = vmatprep.subr.bf16.mxu1 %v17219_v48  ;;  %v17247_v48 = vld [vmem:[%s22903_s23 + $0x45c] ss:$16 sps:$4 sm:$0xff]  }
 0x6a3   :  { %v5841_v36 = vpop.f32.mrb[96].mxu1 }
 0x6a4   :  { %v15903_v22 = vpop.f32.mrb[97].mxu1 }
 0x6a5   :  { %8386 = vmatpush1.bf16.msra.mxu1 %v17217_v39  ;;  %v5844_v33 = vpop.f32.mrb[98].mxu1 }
 0x6a6   :  { %v15904_v1 = vpop.f32.mrb[99].mxu1  ;;  %8387 = vmatprep.subr.bf16.mxu1 %v17222_v44  ;;  %v17245_v44 = vld [vmem:[%s22903_s23 + $0x458] ss:$16 sps:$4 sm:$0xff]  }
 0x6a8   :  { %7835 = vmatmul.mubr.bf16.gmra.mrb[116].mxu1 %v20739_v61 }
 0x6a9   :  { %8388 = vmatpush1.bf16.msra.mxu1 %v17220_v14  ;;  %v5756_v28 = vpop.f32.mrb[104].mxu0  ;;  %14436 = vmatprep.mubr.msk.bf16.mxu1 %vm487_vm3, %v20707_v13 }
 0x6aa   :  { %v5842_v19 = vadd.f32 %v5841_v36, %v5756_v28  ;;  %v15885_v9 = vpop.f32.mrb[105].mxu0  ;;  %8389 = vmatprep.subr.bf16.mxu1 %v17225_v37  ;;  %v17248_v28 = vld [vmem:[%s22903_s23 + $0x478] ss:$16 sps:$4 sm:$0xff]  }
 0x6ab   :  { %v5759_v24 = vpop.f32.mrb[106].mxu0  ;;  %v17256_v9 = vld [vmem:[%s22903_s23 + $0x4bc] ss:$16 sps:$4 sm:$0xff]  }
 0x6ac   :  { %v5845_v59 = vadd.f32 %v5844_v33, %v5759_v24  ;;  %v15886_v0 = vpop.f32.mrb[107].mxu0  ;;  %v17250_v33 = vld [vmem:[%s22903_s23 + $0x47c] ss:$16 sps:$4 sm:$0xff]  }
 0x6ad   :  { %8390 = vmatpush1.bf16.msra.mxu1 %v17223_v16  ;;  %v17253_v16 = vld [vmem:[%s22903_s23 + $0x49c] ss:$16 sps:$4 sm:$0xff]  }
 0x6ae   :  { %8391 = vmatprep.subr.bf16.mxu1 %v17228_v49  ;;  %v17254_v49 = vld [vmem:[%s22903_s23 + $0x4b8] ss:$16 sps:$4 sm:$0xff]   ;;  %v17259_v24 = vld [vmem:[%s22903_s23 + $0x4dc] ss:$16 sps:$4 sm:$0xff]  }
 0x6af   :  { %v17262_v0 = vld [vmem:[%s22903_s23 + $0x4fc] ss:$16 sps:$4 sm:$0xff]  }
 0x6b0   :  { %7845 = vmatmul.mubr.bf16.gmra.mrb[120].mxu1 %v20729_v30 }
 0x6b1   :  { %8392 = vmatpush1.bf16.msra.mxu1 %v17226_v25  ;;  %14581 = vmatprep.mubr.msk.bf16.mxu1 %vm487_vm3, %v20361_v42  ;;  %v17260_v25 = vld [vmem:[%s22903_s23 + $0x4f8] ss:$16 sps:$4 sm:$0xff]  }
 0x6b2   :  { %8393 = vmatprep.subr.bf16.mxu1 %v17231_v47  ;;  %v17265_v47 = vld [vmem:[%s22903_s23 + $0x51c] ss:$16 sps:$4 sm:$0xff]  }
 0x6b5   :  { %8394 = vmatpush1.bf16.msra.mxu1 %v17229_v50 }
 0x6b6   :  { %8395 = vmatprep.subr.bf16.mxu1 %v17235_v12 }
 0x6b9   :  { %8396 = vmatpush1.bf16.msra.mxu1 %v17233_v53 }
 0x6ba   :  { %8397 = vmatprep.subr.bf16.mxu1 %v17239_v20  ;;  %v17263_v20 = vld [vmem:[%s22903_s23 + $0x518] ss:$16 sps:$4 sm:$0xff]  }
 0x6bd   :  { %8398 = vmatpush1.bf16.msra.mxu1 %v17237_v3  ;;  %v17268_v3 = vld [vmem:[%s22903_s23 + $0x53c] ss:$16 sps:$4 sm:$0xff]  }
 0x6be   :  { %8399 = vmatprep.subr.bf16.mxu1 %v17242_v11  ;;  %v14088_v11 = vld [vmem:[%s22886_s8] ss:$0 sm:$0xff] }
 0x6bf   :  { %v6066_v26 = vpop.f32.mrb[100].mxu1 }
 0x6c0   :  { %v15939_v43 = vpop.f32.mrb[101].mxu1 }
 0x6c1   :  { %v20787_v38 = vpop.f32.mrb[102].mxu1  ;;  %8400 = vmatpush1.bf16.msra.mxu1 %v17240_v57  ;;  %v17266_v57 = vld [vmem:[%s22903_s23 + $0x538] ss:$16 sps:$4 sm:$0xff]   ;;  %v17271_v43 = vld [vmem:[%s22903_s23 + $0x55c] ss:$16 sps:$4 sm:$0xff]  }
 0x6c2   :  { %v15940_v4 = vpop.f32.mrb[103].mxu1  ;;  %8401 = vmatprep.subr.bf16.mxu1 %v8304_v23 }
 0x6c5   :  { %v5943_v39 = vpop.f32.mrb[108].mxu0  ;;  %8402 = vmatpush1.bf16.msra.mxu1 %v8301_v51 }
 0x6c6   :  { %v5950_v36 = vadd.f32 %v5943_v39, %v5842_v19  ;;  %v15921_v22 = vpop.f32.mrb[109].mxu0  ;;  %8767 = vmatprep.subr.bf16.mxu1 %v17247_v48  ;;  %v17251_v19 = vld [vmem:[%s22903_s23 + $0x498] ss:$16 sps:$4 sm:$0xff]  }
 0x6c7   :  { %v5946_v14 = vpop.f32.mrb[110].mxu0  ;;  %v17269_v22 = vld [vmem:[%s22903_s23 + $0x558] ss:$16 sps:$4 sm:$0xff]  }
 0x6c8   :  { %v5951_v1 = vadd.f32 %v5946_v14, %v5845_v59  ;;  %v15922_v37 = vpop.f32.mrb[111].mxu0  ;;  %8412 = vmatmul.mubr.bf16.vlgmr.msra.gmra.mrb[124].mxu1 %v20478_v54  ;;  %v17257_v59 = vld [vmem:[%s22903_s23 + $0x4d8] ss:$16 sps:$4 sm:$0xff]   ;;  %v5958_v4 = vadd.f32 %v14088_v11, %v5950_v36 }
 0x6c9   :  { %8768 = vmatpush1.bf16.msra.mxu1 %v17245_v44  ;;  %14582 = vmatprep.mubr.msk.bf16.mxu1 %vm487_vm3, %v20486_v34  ;;  %v17274_v37 = vld [vmem:[%s22903_s23 + $0x57c] ss:$16 sps:$4 sm:$0xff]  }
 0x6ca   :  { %8769 = vmatprep.subr.bf16.mxu1 %v17250_v33  ;;  %v5959_v33 = vadd.f32 %v14088_v11, %v5951_v1  ;;  %v14482_v36 = vld [vmem:[%s22903_s23 + $0x5b8] sm:$0xff] }
 0x6cc   :  { %v5961_v1 = vmax.f32 %v5959_v33, 0.0  ;;  %v17295_v33 = vld [vmem:[%s22903_s23 + $0x1b0] ss:$16 sps:$4 sm:$0xff]  }
 0x6cd   :  { %8770 = vmatpush1.bf16.msra.mxu1 %v17248_v28  ;;  %v5960_v28 = vmax.f32 %v5958_v4, 0.0  ;;  %v17291_v4 = vld [vmem:[%s22903_s23 + $0x194] ss:$16 sps:$4 sm:$0xff]  }
 0x6ce   :  { %8771 = vmatprep.subr.bf16.mxu1 %v17253_v16 }
 0x6d0   :  { %8422 = vmatmul.mubr.bf16.gmra.mrb[128].mxu1 %v20506_v35 }
 0x6d1   :  { %8772 = vmatpush1.bf16.msra.mxu1 %v17251_v19  ;;  %14583 = vmatprep.mubr.msk.bf16.mxu1 %vm487_vm3, %v20514_v32  ;;  %v17272_v19 = vld [vmem:[%s22903_s23 + $0x578] ss:$16 sps:$4 sm:$0xff]  }
 0x6d2   :  { %8773 = vmatprep.subr.bf16.mxu1 %v17256_v9 }
 0x6d5   :  { %8774 = vmatpush1.bf16.msra.mxu1 %v17254_v49 }
 0x6d6   :  { %8775 = vmatprep.subr.bf16.mxu1 %v17259_v24  ;;  %v17277_v24 = vld [vmem:[%s22903_s23 + $0x59c] ss:$16 sps:$4 sm:$0xff]  }
 0x6d8   :  { %8432 = vmatmul.mubr.bf16.gmra.mrb[132].mxu1 %v20530_v7 }
 0x6d9   :  { %8776 = vmatpush1.bf16.msra.mxu1 %v17257_v59  ;;  %14584 = vmatprep.mubr.msk.bf16.mxu1 %vm487_vm3, %v20532_v17  ;;  %v14632_v59 = vcombine.high %v14482_v36, %v14482_v36 }
 0x6da   :  { %8777 = vmatprep.subr.bf16.mxu1 %v17262_v0 }
 0x6db   :  { %v6246_v50 = vpop.f32.mrb[104].mxu1 }
 0x6dc   :  { %v15975_v12 = vpop.f32.mrb[105].mxu1 }
 0x6dd   :  { %v6249_v53 = vpop.f32.mrb[106].mxu1  ;;  %8778 = vmatpush1.bf16.msra.mxu1 %v17260_v25  ;;  %v17275_v25 = vld [vmem:[%s22903_s23 + $0x598] ss:$16 sps:$4 sm:$0xff]   ;;  %v8692_v12 = vand.u32 %v14632_v59, %v18031_v62  ;;  %v17319_v59 = vld [vmem:[%s22903_s23 + $0x230] ss:$16 sps:$4 sm:$0xff]  }
 0x6de   :  { %v15976_v63 = vpop.f32.mrb[107].mxu1  ;;  %8779 = vmatprep.subr.bf16.mxu1 %v17265_v47  ;;  %v14631_v47 = vcombine.low %v14482_v36, %v14482_v36  ;;  %v17309_v36 = vld [vmem:[%s22903_s23 + $0x1f4] ss:$16 sps:$4 sm:$0xff]  }
 0x6df   :  { %v6262_v63 = vld [vmem:[%s22887_s9] sm:$0x7] }
 0x6e0   :  { %8442 = vmatmul.mubr.bf16.gmra.mrb[136].mxu1 %v20547_v52 }
 0x6e1   :  { %v6149_v8 = vpop.f32.mrb[112].mxu0  ;;  %8780 = vmatpush1.bf16.msra.mxu1 %v17263_v20  ;;  %14637 = vmatprep.mubr.msk.bf16.mxu1 %vm487_vm3, %v20306_v56  ;;  %v8689_v20 = vand.u32 %v14631_v47, %v18031_v62  ;;  %v17328_v47 = vld [vmem:[%s22903_s23 + $0x838] ss:$16 sps:$4 sm:$0xff]  }
 0x6e2   :  { %v6150_v29 = vadd.f32 %v6149_v8, %v6066_v26  ;;  %v15957_v23 = vpop.f32.mrb[113].mxu0  ;;  %8781 = vmatprep.subr.bf16.mxu1 %v17268_v3  ;;  %v17282_v3 = vld [vmem:[%s22903_s23 + $0x73c] ss:$16 sps:$4 sm:$0xff]   ;;  %v17280_v8 = vld [vmem:[%s22903_s23 + $0x738] ss:$16 sps:$4 sm:$0xff]  }
 0x6e3   :  { %v6152_v51 = vpop.f32.mrb[114].mxu0  ;;  %v17283_v23 = vld [vmem:[%s22903_s23 + $0x170] ss:$16 sps:$4 sm:$0xff]  }
 0x6e4   :  { %v6253_v48 = vadd.f32 %v6246_v50, %v6150_v29  ;;  %v6153_v39 = vadd.f32 %v6152_v51, %v20787_v38  ;;  %v15958_v44 = vpop.f32.mrb[115].mxu0  ;;  %v17286_v29 = vld [vmem:[%s22903_s23 + $0x758] ss:$16 sps:$4 sm:$0xff]   ;;  %v17294_v51 = vld [vmem:[%s22903_s23 + $0x77c] ss:$16 sps:$4 sm:$0xff]  }
 0x6e5   :  { %8782 = vmatpush1.bf16.msra.mxu1 %v17266_v57  ;;  %v17288_v57 = vld [vmem:[%s22903_s23 + $0x75c] ss:$16 sps:$4 sm:$0xff]   ;;  %v17297_v44 = vld [vmem:[%s22903_s23 + $0x1b4] ss:$16 sps:$4 sm:$0xff]  }
 0x6e6   :  { %v6255_v14 = vadd.f32 %v14088_v11, %v6253_v48  ;;  %v6254_v26 = vadd.f32 %v6249_v53, %v6153_v39  ;;  %8783 = vmatprep.subr.bf16.mxu1 %v17271_v43  ;;  %v14153_v43 = vld [vmem:[%s22887_s9 + $0x4] sm:$0x7]  ;;  %v17289_v48 = vld [vmem:[%s22903_s23 + $0x190] ss:$16 sps:$4 sm:$0xff]   ;;  %v17300_v39 = vld [vmem:[%s22903_s23 + $0x79c] ss:$16 sps:$4 sm:$0xff]  }
 0x6e8   :  { %v6257_v38 = vmax.f32 %v6255_v14, 0.0  ;;  %v6256_v16 = vadd.f32 %v14088_v11, %v6254_v26  ;;  %v17285_v11 = vld [vmem:[%s22903_s23 + $0x174] ss:$16 sps:$4 sm:$0xff]   ;;  %v17306_v14 = vld [vmem:[%s22903_s23 + $0x7bc] ss:$16 sps:$4 sm:$0xff]  }
 0x6e9   :  { %8784 = vmatpush1.bf16.msra.mxu1 %v17269_v22  ;;  %v17298_v22 = vld [vmem:[%s22903_s23 + $0x798] ss:$16 sps:$4 sm:$0xff]   ;;  %v17301_v26 = vld [vmem:[%s22903_s23 + $0x1d0] ss:$16 sps:$4 sm:$0xff]  }
 0x6ea   :  { %v6259_v9 = vmax.f32 %v5960_v28, %v6257_v38  ;;  %v6258_v49 = vmax.f32 %v6256_v16, 0.0  ;;  %8785 = vmatprep.subr.bf16.mxu1 %v17274_v37  ;;  %v17312_v37 = vld [vmem:[%s22903_s23 + $0x7dc] ss:$16 sps:$4 sm:$0xff]   ;;  %v17310_v28 = vld [vmem:[%s22903_s23 + $0x7d8] ss:$16 sps:$4 sm:$0xff]  }
 0x6eb   :  { %v17307_v38 = vld [vmem:[%s22903_s23 + $0x1f0] ss:$16 sps:$4 sm:$0xff]   ;;  %v17318_v16 = vld [vmem:[%s22903_s23 + $0x7fc] ss:$16 sps:$4 sm:$0xff]  }
 0x6ec   :  { %v6260_v0 = vmax.f32 %v5961_v1, %v6258_v49  ;;  %v17313_v1 = vld [vmem:[%s22903_s23 + $0x210] ss:$16 sps:$4 sm:$0xff]   ;;  %v17321_v49 = vld [vmem:[%s22903_s23 + $0x234] ss:$16 sps:$4 sm:$0xff]  }
 0x6ed   :  { %8786 = vmatpush1.bf16.msra.mxu1 %v17272_v19  ;;  %v17316_v19 = vld [vmem:[%s22903_s23 + $0x7f8] ss:$16 sps:$4 sm:$0xff]  }
 0x6ee   :  { %v6261_v50 = vpack.c.bf16 %v6260_v0, %v6259_v9  ;;  %8787 = vmatprep.subr.bf16.mxu1 %v17277_v24  ;;  %v17324_v9 = vld [vmem:[%s22903_s23 + $0x81c] ss:$16 sps:$4 sm:$0xff]   ;;  %v17322_v24 = vld [vmem:[%s22903_s23 + $0x818] ss:$16 sps:$4 sm:$0xff]  }
 0x6ef   :  { %v17330_v0 = vld [vmem:[%s22903_s23 + $0x83c] ss:$16 sps:$4 sm:$0xff]  }
 0x6f0   :  { %v6268_v53 = vand.u32 %v6261_v50, %v19188_v15  ;;  %v17325_v50 = vld [vmem:[%s22903_s23 + $0x250] ss:$16 sps:$4 sm:$0xff]  }
 0x6f1   :  { %8788 = vmatpush1.bf16.msra.mxu1 %v17275_v25  ;;  %v17327_v25 = vld [vmem:[%s22903_s23 + $0x254] ss:$16 sps:$4 sm:$0xff]  }
 0x6f2   :  { %15978 = vmatpush3.bf16.msra.mxu0 %v6268_v53  ;;  %8789 = vmatprep.subr.bf16.mxu1 %v8692_v12  ;;  %v17336_v12 = vld [vmem:[%s22903_s23 + $0x85c] ss:$16 sps:$4 sm:$0xff]  }
 0x6f3   :  { %15983 = vmatprep.subr.bf16.mxu0 %v17774_v21 }
 0x6f5   :  { %15980 = vmatmul.mubr.msk.bf16.vlgmr.msra.gmra.mrb[116].mxu0 %vm6263_vm12, %v6262_v63  ;;  %8790 = vmatpush1.bf16.msra.mxu1 %v8689_v20  ;;  %v14686_v20 = vld [vmem:[%s22903_s23 + $0x898] sm:$0xff] }
 0x6f6   :  { %15984 = vmatpush3.bf16.msra.mxu0 %v6268_v53  ;;  %9201 = vmatprep.subr.bf16.mxu1 %v17282_v3  ;;  %v17333_v53 = vld [vmem:[%s22903_s23 + $0x274] ss:$16 sps:$4 sm:$0xff]   ;;  %v17334_v63 = vld [vmem:[%s22903_s23 + $0x858] ss:$16 sps:$4 sm:$0xff]   ;;  %v17331_v3 = vld [vmem:[%s22903_s23 + $0x270] ss:$16 sps:$4 sm:$0xff]  }
 0x6f7   :  { %15985 = vmatprep.mubr.msk.bf16.mxu0 %vm17775_vm9, %v17774_v21  ;;  %6833 = vmatprep.subr.bf16.mxu0 %v17285_v11  ;;  %v17342_v11 = vld [vmem:[%s22903_s23 + $0x87c] ss:$16 sps:$4 sm:$0xff]  }
 0x6f8   :  { %8800 = vmatmul.mubr.bf16.vlgmr.msra.gmra.mrb[124].mxu1 %v20420_v2 }
 0x6f9   :  { %9202 = vmatpush1.bf16.msra.mxu1 %v17280_v8  ;;  %14638 = vmatprep.mubr.msk.bf16.mxu1 %vm487_vm3, %v20319_v60  ;;  %v17292_v60 = vld [vmem:[%s22903_s23 + $0x778] ss:$16 sps:$4 sm:$0xff]   ;;  %v14734_v8 = vcombine.high %v14686_v20, %v14686_v20 }
 0x6fa   :  { %9203 = vmatprep.subr.bf16.mxu1 %v17288_v57  ;;  %v17339_v57 = vld [vmem:[%s22903_s23 + $0x294] ss:$16 sps:$4 sm:$0xff]  }
 0x6fd   :  { %15986 = vmatmul.mubr.msk.bf16.vlgmr.msra.gmra.mrb[120].mxu0 %vm6263_vm12, %v14153_v43  ;;  %9204 = vmatpush1.bf16.msra.mxu1 %v17286_v29  ;;  %v14207_v29 = vld [vmem:[%s22903_s23 + $0x2d0] sm:$0xff]  ;;  %v14733_v43 = vcombine.low %v14686_v20, %v14686_v20 }
 0x6fe   :  { %6834 = vmatpush1.bf16.msra.mxu0 %v17283_v23  ;;  %9205 = vmatprep.subr.bf16.mxu1 %v17294_v51  ;;  %v17340_v23 = vld [vmem:[%s22903_s23 + $0x878] ss:$16 sps:$4 sm:$0xff]   ;;  %v17337_v51 = vld [vmem:[%s22903_s23 + $0x290] ss:$16 sps:$4 sm:$0xff]   ;;  %v17382_v20 = vld [vmem:[%s22903_s23 + $0x144] ss:$16 sps:$4 sm:$0xff]  }
 0x6ff   :  { %6835 = vmatprep.subr.bf16.mxu0 %v17291_v4  ;;  %14265 = vmatprep.mubr.msk.bf16.mxu0 %vm487_vm3, %v20361_v42  ;;  %v9126_v4 = vand.u32 %v14734_v8, %v18031_v62 }
 0x700   :  { %8810 = vmatmul.mubr.bf16.gmra.mrb[128].mxu1 %v20434_v55  ;;  %v17303_v55 = vld [vmem:[%s22903_s23 + $0x1d4] ss:$16 sps:$4 sm:$0xff]  }
 0x701   :  { %9206 = vmatpush1.bf16.msra.mxu1 %v17292_v60  ;;  %14639 = vmatprep.mubr.msk.bf16.mxu1 %vm487_vm3, %v20443_v10  ;;  %v17304_v10 = vld [vmem:[%s22903_s23 + $0x7b8] ss:$16 sps:$4 sm:$0xff]   ;;  %v17345_v60 = vld [vmem:[%s22903_s23 + $0x2b4] ss:$16 sps:$4 sm:$0xff]  }
 0x702   :  { %6836 = vmatpush1.bf16.msra.mxu0 %v17289_v48  ;;  %9207 = vmatprep.subr.bf16.mxu1 %v17300_v39  ;;  %v14262_v48 = vcombine.high %v14207_v29, %v14207_v29  ;;  %v9123_v39 = vand.u32 %v14733_v43, %v18031_v62  ;;  %v17390_v43 = vld [vmem:[%s22903_s23 + $0x304] ss:$16 sps:$4 sm:$0xff]  }
 0x703   :  { %6837 = vmatprep.subr.bf16.mxu0 %v17297_v44  ;;  %v17343_v44 = vld [vmem:[%s22903_s23 + $0x2b0] ss:$16 sps:$4 sm:$0xff]  }
 0x705   :  { %9208 = vmatpush1.bf16.msra.mxu1 %v17298_v22  ;;  %v14261_v22 = vcombine.low %v14207_v29, %v14207_v29  ;;  %v17387_v29 = vld [vmem:[%s22903_s23 + $0x2e4] ss:$16 sps:$4 sm:$0xff]  }
 0x706   :  { %6838 = vmatpush1.bf16.msra.mxu0 %v17295_v33  ;;  %9209 = vmatprep.subr.bf16.mxu1 %v17306_v14  ;;  %v6825_v33 = vand.u32 %v14262_v48, %v18031_v62  ;;  %v17391_v48 = vld [vmem:[%s22903_s23 + $0x320] ss:$16 sps:$4 sm:$0xff]  }
 0x707   :  { %6839 = vmatprep.subr.bf16.mxu0 %v17303_v55  ;;  %v6822_v14 = vand.u32 %v14261_v22, %v18031_v62  ;;  %v17352_v55 = vld [vmem:[%s22903_s23 + $0x4] ss:$16 sps:$4 sm:$0xff]   ;;  %v17394_v22 = vld [vmem:[%s22903_s23 + $0x340] ss:$16 sps:$4 sm:$0xff]  }
 0x708   :  { %8820 = vmatmul.mubr.bf16.gmra.mrb[132].mxu1 %v20465_v45  ;;  %v17315_v45 = vld [vmem:[%s22903_s23 + $0x214] ss:$16 sps:$4 sm:$0xff]  }
 0x709   :  { %9210 = vmatpush1.bf16.msra.mxu1 %v17304_v10  ;;  %14640 = vmatprep.mubr.msk.bf16.mxu1 %vm487_vm3, %v20472_v41  ;;  %v17350_v10 = vld [vmem:[%s22903_s23] ss:$16 sps:$4 sm:$0xff]  }
 0x70a   :  { %6840 = vmatpush1.bf16.msra.mxu0 %v17301_v26  ;;  %9211 = vmatprep.subr.bf16.mxu1 %v17312_v37  ;;  %v17355_v26 = vld [vmem:[%s22903_s23 + $0x24] ss:$16 sps:$4 sm:$0xff]   ;;  %v17353_v37 = vld [vmem:[%s22903_s23 + $0x20] ss:$16 sps:$4 sm:$0xff]  }
 0x70b   :  { %6841 = vmatprep.subr.bf16.mxu0 %v17309_v36  ;;  %v17358_v36 = vld [vmem:[%s22903_s23 + $0x44] ss:$16 sps:$4 sm:$0xff]  }
 0x70d   :  { %9212 = vmatpush1.bf16.msra.mxu1 %v17310_v28  ;;  %v17356_v28 = vld [vmem:[%s22903_s23 + $0x40] ss:$16 sps:$4 sm:$0xff]  }
 0x70e   :  { %6842 = vmatpush1.bf16.msra.mxu0 %v17307_v38  ;;  %9213 = vmatprep.subr.bf16.mxu1 %v17318_v16  ;;  %v17361_v38 = vld [vmem:[%s22903_s23 + $0x64] ss:$16 sps:$4 sm:$0xff]   ;;  %v17359_v16 = vld [vmem:[%s22903_s23 + $0x60] ss:$16 sps:$4 sm:$0xff]  }
 0x70f   :  { %6843 = vmatprep.subr.bf16.mxu0 %v17315_v45  ;;  %v17364_v45 = vld [vmem:[%s22903_s23 + $0x84] ss:$16 sps:$4 sm:$0xff]  }
 0x710   :  { %8830 = vmatmul.mubr.bf16.gmra.mrb[136].mxu1 %v20497_v40 }
 0x711   :  { %9214 = vmatpush1.bf16.msra.mxu1 %v17316_v19  ;;  %14739 = vmatprep.mubr.msk.bf16.mxu1 %vm487_vm3, %v20644_v5  ;;  %v17362_v19 = vld [vmem:[%s22903_s23 + $0x80] ss:$16 sps:$4 sm:$0xff]  }
 0x712   :  { %6844 = vmatpush1.bf16.msra.mxu0 %v17313_v1  ;;  %9215 = vmatprep.subr.bf16.mxu1 %v17324_v9  ;;  %v17367_v1 = vld [vmem:[%s22903_s23 + $0xa4] ss:$16 sps:$4 sm:$0xff]   ;;  %v17365_v9 = vld [vmem:[%s22903_s23 + $0xa0] ss:$16 sps:$4 sm:$0xff]  }
 0x713   :  { %6845 = vmatprep.subr.bf16.mxu0 %v17321_v49  ;;  %v17370_v49 = vld [vmem:[%s22903_s23 + $0xc4] ss:$16 sps:$4 sm:$0xff]  }
 0x715   :  { %9216 = vmatpush1.bf16.msra.mxu1 %v17322_v24  ;;  %v17368_v24 = vld [vmem:[%s22903_s23 + $0xc0] ss:$16 sps:$4 sm:$0xff]  }
 0x716   :  { %6846 = vmatpush1.bf16.msra.mxu0 %v17319_v59  ;;  %9217 = vmatprep.subr.bf16.mxu1 %v17330_v0  ;;  %v17373_v59 = vld [vmem:[%s22903_s23 + $0xe4] ss:$16 sps:$4 sm:$0xff]   ;;  %v17371_v0 = vld [vmem:[%s22903_s23 + $0xe0] ss:$16 sps:$4 sm:$0xff]  }
 0x717   :  { %6847 = vmatprep.subr.bf16.mxu0 %v17327_v25  ;;  %v17376_v25 = vld [vmem:[%s22903_s23 + $0x104] ss:$16 sps:$4 sm:$0xff]  }
 0x719   :  { %9218 = vmatpush1.bf16.msra.mxu1 %v17328_v47  ;;  %v17374_v47 = vld [vmem:[%s22903_s23 + $0x100] ss:$16 sps:$4 sm:$0xff]  }
 0x71a   :  { %6848 = vmatpush1.bf16.msra.mxu0 %v17325_v50  ;;  %9219 = vmatprep.subr.bf16.mxu1 %v17336_v12  ;;  %v17379_v50 = vld [vmem:[%s22903_s23 + $0x124] ss:$16 sps:$4 sm:$0xff]  }
 0x71b   :  { %6849 = vmatprep.subr.bf16.mxu0 %v17333_v53  ;;  %v6433_v12 = vld [vmem:[%s22903_s23 + $0x160] sm:$0xff] }
 0x71c   :  { %v17377_v53 = vld [vmem:[%s22903_s23 + $0x120] ss:$16 sps:$4 sm:$0xff]  }
 0x71d   :  { %9220 = vmatpush1.bf16.msra.mxu1 %v17334_v63  ;;  %v14318_v63 = vcombine.high %v6433_v12, %v6433_v12 }
 0x71e   :  { %6850 = vmatpush1.bf16.msra.mxu0 %v17331_v3  ;;  %9221 = vmatprep.subr.bf16.mxu1 %v17342_v11  ;;  %v17380_v3 = vld [vmem:[%s22903_s23 + $0x140] ss:$16 sps:$4 sm:$0xff]   ;;  %v14317_v11 = vcombine.low %v6433_v12, %v6433_v12 }
 0x71f   :  { %6851 = vmatprep.subr.bf16.mxu0 %v17339_v57  ;;  %v7225_v8 = vand.u32 %v14318_v63, %v18031_v62 }
 0x720   :  { %v7222_v57 = vand.u32 %v14317_v11, %v18031_v62 }
 0x721   :  { %9222 = vmatpush1.bf16.msra.mxu1 %v17340_v23  ;;  %v17385_v23 = vld [vmem:[%s22903_s23 + $0x2e0] ss:$16 sps:$4 sm:$0xff]  }
 0x722   :  { %6852 = vmatpush1.bf16.msra.mxu0 %v17337_v51  ;;  %9223 = vmatprep.subr.bf16.mxu1 %v9126_v4  ;;  %v17388_v51 = vld [vmem:[%s22903_s23 + $0x300] ss:$16 sps:$4 sm:$0xff]   ;;  %v21155_v4 = vld [vmem:[%s22879_s0 + $0x54] ss:$8 sps:$4 sm:$0xff]  }
 0x723   :  { %6853 = vmatprep.subr.bf16.mxu0 %v17345_v60  ;;  %v17393_v60 = vld [vmem:[%s22903_s23 + $0x324] ss:$16 sps:$4 sm:$0xff]  }
 0x725   :  { %9224 = vmatpush1.bf16.msra.mxu1 %v9123_v39  ;;  %v17396_v39 = vld [vmem:[%s22903_s23 + $0x344] ss:$16 sps:$4 sm:$0xff]  }
 0x726   :  { %6854 = vmatpush1.bf16.msra.mxu0 %v17343_v44  ;;  %v21171_v44 = vld [vmem:[%s22879_s0 + $0x50] ss:$8 sps:$4 sm:$0xff]  }
 0x727   :  { %6855 = vmatprep.subr.bf16.mxu0 %v6825_v33  ;;  %v21180_v33 = vld [vmem:[%s22879_s0 + $0x64] ss:$8 sps:$4 sm:$0xff]  }
 0x728   :  { %9234 = vmatmul.mubr.bf16.vlgmr.msra.gmra.mrb[124].mxu1 %v20688_v46 }
 0x729   :  { %14740 = vmatprep.mubr.msk.bf16.mxu1 %vm487_vm3, %v20694_v31 }
 0x72a   :  { %6856 = vmatpush1.bf16.msra.mxu0 %v6822_v14  ;;  %v17399_v14 = vld [vmem:[%s22903_s23 + $0x364] ss:$16 sps:$4 sm:$0xff]  }
 0x72b   :  { %7233 = vmatprep.subr.bf16.mxu0 %v17352_v55  ;;  %v17397_v55 = vld [vmem:[%s22903_s23 + $0x360] ss:$16 sps:$4 sm:$0xff]  }
 0x72d   :  { %6866 = vmatmul.mubr.bf16.vlgmr.msra.gmra.mrb[124].mxu0 %v20478_v54 }
 0x72e   :  { %7234 = vmatpush1.bf16.msra.mxu0 %v17350_v10  ;;  %14266 = vmatprep.mubr.msk.bf16.mxu0 %vm487_vm3, %v20486_v34  ;;  %v17402_v10 = vld [vmem:[%s22903_s23 + $0x384] ss:$16 sps:$4 sm:$0xff]  }
 0x72f   :  { %7235 = vmatprep.subr.bf16.mxu0 %v17355_v26 }
 0x730   :  { %9244 = vmatmul.mubr.bf16.gmra.mrb[128].mxu1 %v20713_v27 }
 0x731   :  { %14741 = vmatprep.mubr.msk.bf16.mxu1 %vm487_vm3, %v20721_v18 }
 0x732   :  { %7236 = vmatpush1.bf16.msra.mxu0 %v17353_v37 }
 0x733   :  { %7237 = vmatprep.subr.bf16.mxu0 %v17358_v36  ;;  %v21200_v36 = vld [vmem:[%s22879_s0 + $0x60] ss:$8 sps:$4 sm:$0xff]  }
 0x735   :  { %6876 = vmatmul.mubr.bf16.gmra.mrb[128].mxu0 %v20506_v35 }
 0x736   :  { %7238 = vmatpush1.bf16.msra.mxu0 %v17356_v28  ;;  %14267 = vmatprep.mubr.msk.bf16.mxu0 %vm487_vm3, %v20514_v32 }
 0x737   :  { %7239 = vmatprep.subr.bf16.mxu0 %v17361_v38  ;;  %v17400_v38 = vld [vmem:[%s22903_s23 + $0x380] ss:$16 sps:$4 sm:$0xff]  }
 0x738   :  { %9254 = vmatmul.mubr.bf16.gmra.mrb[132].mxu1 %v20739_v61 }
 0x739   :  { %14742 = vmatprep.mubr.msk.bf16.mxu1 %vm487_vm3, %v20707_v13 }
 0x73a   :  { %7240 = vmatpush1.bf16.msra.mxu0 %v17359_v16 }
 0x73b   :  { %7241 = vmatprep.subr.bf16.mxu0 %v17364_v45  ;;  %v17405_v45 = vld [vmem:[%s22903_s23 + $0x3a4] ss:$16 sps:$4 sm:$0xff]  }
 0x73d   :  { %6886 = vmatmul.mubr.bf16.gmra.mrb[132].mxu0 %v20530_v7 }
 0x73e   :  { %7242 = vmatpush1.bf16.msra.mxu0 %v17362_v19  ;;  %14268 = vmatprep.mubr.msk.bf16.mxu0 %vm487_vm3, %v20532_v17  ;;  %v17403_v19 = vld [vmem:[%s22903_s23 + $0x3a0] ss:$16 sps:$4 sm:$0xff]  }
 0x73f   :  { %7243 = vmatprep.subr.bf16.mxu0 %v17367_v1  ;;  %v17408_v1 = vld [vmem:[%s22903_s23 + $0x3c4] ss:$16 sps:$4 sm:$0xff]  }
 0x740   :  { %9264 = vmatmul.mubr.bf16.gmra.mrb[136].mxu1 %v20729_v30 }
 0x741   :  { %9535 = vmatprep.mubr.bf16.mxu1 %v22929_v58 }
 0x742   :  { %7244 = vmatpush1.bf16.msra.mxu0 %v17365_v9 }
 0x743   :  { %7245 = vmatprep.subr.bf16.mxu0 %v17370_v49 }
 0x745   :  { %6896 = vmatmul.mubr.bf16.gmra.mrb[136].mxu0 %v20547_v52 }
 0x746   :  { %7246 = vmatpush1.bf16.msra.mxu0 %v17368_v24  ;;  %14321 = vmatprep.mubr.msk.bf16.mxu0 %vm487_vm3, %v20306_v56 }
 0x747   :  { %7247 = vmatprep.subr.bf16.mxu0 %v17373_v59  ;;  %v17406_v59 = vld [vmem:[%s22903_s23 + $0x3c0] ss:$16 sps:$4 sm:$0xff]  }
 0x74a   :  { %7248 = vmatpush1.bf16.msra.mxu0 %v17371_v0 }
 0x74b   :  { %7249 = vmatprep.subr.bf16.mxu0 %v17376_v25  ;;  %v17411_v25 = vld [vmem:[%s22903_s23 + $0x3e4] ss:$16 sps:$4 sm:$0xff]  }
 0x74e   :  { %7250 = vmatpush1.bf16.msra.mxu0 %v17374_v47  ;;  %v17409_v47 = vld [vmem:[%s22903_s23 + $0x3e0] ss:$16 sps:$4 sm:$0xff]  }
 0x74f   :  { %7251 = vmatprep.subr.bf16.mxu0 %v17379_v50  ;;  %v17414_v50 = vld [vmem:[%s22903_s23 + $0x404] ss:$16 sps:$4 sm:$0xff]  }
 0x752   :  { %7252 = vmatpush1.bf16.msra.mxu0 %v17377_v53  ;;  %v14375_v53 = vld [vmem:[%s22903_s23 + $0x440] sm:$0xff] }
 0x753   :  { %7253 = vmatprep.subr.bf16.mxu0 %v17382_v20 }
 0x756   :  { %7254 = vmatpush1.bf16.msra.mxu0 %v17380_v3  ;;  %v17412_v3 = vld [vmem:[%s22903_s23 + $0x400] ss:$16 sps:$4 sm:$0xff]  }
 0x757   :  { %7255 = vmatprep.subr.bf16.mxu0 %v7225_v8  ;;  %v17417_v8 = vld [vmem:[%s22903_s23 + $0x424] ss:$16 sps:$4 sm:$0xff]  }
 0x75a   :  { %7256 = vmatpush1.bf16.msra.mxu0 %v7222_v57  ;;  %v14426_v57 = vcombine.high %v14375_v53, %v14375_v53 }
 0x75b   :  { %7709 = vmatprep.subr.bf16.mxu0 %v17387_v29  ;;  %v17415_v29 = vld [vmem:[%s22903_s23 + $0x420] ss:$16 sps:$4 sm:$0xff]  }
 0x75d   :  { %7266 = vmatmul.mubr.bf16.vlgmr.msra.gmra.mrb[124].mxu0 %v20420_v2 }
 0x75e   :  { %7710 = vmatpush1.bf16.msra.mxu0 %v17385_v23  ;;  %14322 = vmatprep.mubr.msk.bf16.mxu0 %vm487_vm3, %v21155_v4  ;;  %v14425_v23 = vcombine.low %v14375_v53, %v14375_v53  ;;  %v17435_v53 = vld [vmem:[%s22903_s23 + $0x660] ss:$16 sps:$4 sm:$0xff]  }
 0x75f   :  { %7711 = vmatprep.subr.bf16.mxu0 %v17390_v43  ;;  %v7701_v43 = vand.u32 %v14426_v57, %v18031_v62  ;;  %v17443_v57 = vld [vmem:[%s22903_s23 + $0x6a4] ss:$16 sps:$4 sm:$0xff]  }
 0x762   :  { %7712 = vmatpush1.bf16.msra.mxu0 %v17388_v51 }
 0x763   :  { %7713 = vmatprep.subr.bf16.mxu0 %v17393_v60 }
 0x765   :  { %7276 = vmatmul.mubr.bf16.gmra.mrb[128].mxu0 %v21171_v44 }
 0x766   :  { %7714 = vmatpush1.bf16.msra.mxu0 %v17391_v48  ;;  %14323 = vmatprep.mubr.msk.bf16.mxu0 %vm487_vm3, %v21180_v33 }
 0x767   :  { %7715 = vmatprep.subr.bf16.mxu0 %v17396_v39  ;;  %v7698_v39 = vand.u32 %v14425_v23, %v18031_v62  ;;  %v17446_v23 = vld [vmem:[%s22903_s23 + $0x6c4] ss:$16 sps:$4 sm:$0xff]  }
 0x76a   :  { %7716 = vmatpush1.bf16.msra.mxu0 %v17394_v22 }
 0x76b   :  { %7717 = vmatprep.subr.bf16.mxu0 %v17399_v14  ;;  %v21193_v26 = vpop.f32.mrb[108].mxu1  ;;  %v17422_v14 = vld [vmem:[%s22903_s23 + $0x5c4] ss:$16 sps:$4 sm:$0xff]  }
 0x76c   :  { %v21195_v37 = vpop.f32.mrb[109].mxu1 }
 0x76d   :  { %7286 = vmatmul.mubr.bf16.gmra.mrb[132].mxu0 %v21200_v36  ;;  %v21203_v28 = vpop.f32.mrb[110].mxu1 }
 0x76e   :  { %7718 = vmatpush1.bf16.msra.mxu0 %v17397_v55  ;;  %14324 = vmatprep.mubr.msk.bf16.mxu0 %vm487_vm3, %v20472_v41  ;;  %v21210_v16 = vpop.f32.mrb[111].mxu1  ;;  %v17420_v55 = vld [vmem:[%s22903_s23 + $0x5c0] ss:$16 sps:$4 sm:$0xff]  }
 0x76f   :  { %7719 = vmatprep.subr.bf16.mxu0 %v17402_v10  ;;  %v17425_v10 = vld [vmem:[%s22903_s23 + $0x5e4] ss:$16 sps:$4 sm:$0xff]  }
 0x772   :  { %7720 = vmatpush1.bf16.msra.mxu0 %v17400_v38  ;;  %v17423_v38 = vld [vmem:[%s22903_s23 + $0x5e0] ss:$16 sps:$4 sm:$0xff]  }
 0x773   :  { %7721 = vmatprep.subr.bf16.mxu0 %v17405_v45  ;;  %v21221_v9 = vpop.f32.mrb[112].mxu1  ;;  %v17428_v45 = vld [vmem:[%s22903_s23 + $0x604] ss:$16 sps:$4 sm:$0xff]  }
 0x774   :  { %v21223_v49 = vpop.f32.mrb[113].mxu1 }
 0x775   :  { %7296 = vmatmul.mubr.bf16.gmra.mrb[136].mxu0 %v20497_v40  ;;  %v21226_v24 = vpop.f32.mrb[114].mxu1 }
 0x776   :  { %7722 = vmatpush1.bf16.msra.mxu0 %v17403_v19  ;;  %14429 = vmatprep.mubr.msk.bf16.mxu0 %vm487_vm3, %v20644_v5  ;;  %v21233_v0 = vpop.f32.mrb[115].mxu1  ;;  %v17426_v19 = vld [vmem:[%s22903_s23 + $0x600] ss:$16 sps:$4 sm:$0xff]  }
 0x777   :  { %7723 = vmatprep.subr.bf16.mxu0 %v17408_v1  ;;  %v17431_v1 = vld [vmem:[%s22903_s23 + $0x624] ss:$16 sps:$4 sm:$0xff]  }
 0x77a   :  { %7724 = vmatpush1.bf16.msra.mxu0 %v17406_v59  ;;  %v17429_v59 = vld [vmem:[%s22903_s23 + $0x620] ss:$16 sps:$4 sm:$0xff]  }
 0x77b   :  { %7725 = vmatprep.subr.bf16.mxu0 %v17411_v25  ;;  %v21244_v12 = vpop.f32.mrb[116].mxu1  ;;  %v17434_v25 = vld [vmem:[%s22903_s23 + $0x644] ss:$16 sps:$4 sm:$0xff]  }
 0x77c   :  { %v21249_v20 = vpop.f32.mrb[117].mxu1 }
 0x77d   :  { %v21251_v63 = vpop.f32.mrb[118].mxu1 }
 0x77e   :  { %7726 = vmatpush1.bf16.msra.mxu0 %v17409_v47  ;;  %v21256_v11 = vpop.f32.mrb[119].mxu1  ;;  %v17432_v47 = vld [vmem:[%s22903_s23 + $0x640] ss:$16 sps:$4 sm:$0xff]  }
 0x77f   :  { %7727 = vmatprep.subr.bf16.mxu0 %v17414_v50  ;;  %v17437_v50 = vld [vmem:[%s22903_s23 + $0x664] ss:$16 sps:$4 sm:$0xff]  }
 0x782   :  { %7728 = vmatpush1.bf16.msra.mxu0 %v17412_v3  ;;  %v17440_v3 = vld [vmem:[%s22903_s23 + $0x684] ss:$16 sps:$4 sm:$0xff]  }
 0x783   :  { %7729 = vmatprep.subr.bf16.mxu0 %v17417_v8  ;;  %v21265_v51 = vpop.f32.mrb[120].mxu1  ;;  %v17438_v8 = vld [vmem:[%s22903_s23 + $0x680] ss:$16 sps:$4 sm:$0xff]  }
 0x784   :  { %v21267_v60 = vpop.f32.mrb[121].mxu1 }
 0x785   :  { %v21269_v48 = vpop.f32.mrb[122].mxu1 }
 0x786   :  { %7730 = vmatpush1.bf16.msra.mxu0 %v17415_v29  ;;  %v21272_v22 = vpop.f32.mrb[123].mxu1  ;;  %v17441_v29 = vld [vmem:[%s22903_s23 + $0x6a0] ss:$16 sps:$4 sm:$0xff]  }
 0x787   :  { %7731 = vmatprep.subr.bf16.mxu0 %v7701_v43  ;;  %v17444_v43 = vld [vmem:[%s22903_s23 + $0x6c0] ss:$16 sps:$4 sm:$0xff]  }
 0x78a   :  { %7732 = vmatpush1.bf16.msra.mxu0 %v7698_v39  ;;  %v17449_v39 = vld [vmem:[%s22903_s23 + $0x6e4] ss:$16 sps:$4 sm:$0xff]  }
 0x78b   :  { %8306 = vmatprep.subr.bf16.mxu0 %v17422_v14  ;;  %v14527_v14 = vld [vmem:[%s22903_s23 + $0x720] sm:$0xff] }
 0x78d   :  { %7742 = vmatmul.mubr.bf16.vlgmr.msra.gmra.mrb[124].mxu0 %v20688_v46 }
 0x78e   :  { %8307 = vmatpush1.bf16.msra.mxu0 %v17420_v55  ;;  %14430 = vmatprep.mubr.msk.bf16.mxu0 %vm487_vm3, %v20694_v31  ;;  %v17452_v55 = vld [vmem:[%s22903_s23 + $0x704] ss:$16 sps:$4 sm:$0xff]  }
 0x78f   :  { %8308 = vmatprep.subr.bf16.mxu0 %v17425_v10  ;;  %v14574_v10 = vcombine.high %v14527_v14, %v14527_v14 }
 0x792   :  { %8309 = vmatpush1.bf16.msra.mxu0 %v17423_v38  ;;  %v17450_v38 = vld [vmem:[%s22903_s23 + $0x700] ss:$16 sps:$4 sm:$0xff]  }
 0x793   :  { %8310 = vmatprep.subr.bf16.mxu0 %v17428_v45  ;;  %v14573_v45 = vcombine.low %v14527_v14, %v14527_v14 }
 0x795   :  { %7752 = vmatmul.mubr.bf16.gmra.mrb[128].mxu0 %v20713_v27 }
 0x796   :  { %8311 = vmatpush1.bf16.msra.mxu0 %v17426_v19  ;;  %14431 = vmatprep.mubr.msk.bf16.mxu0 %vm487_vm3, %v20721_v18  ;;  %v8298_v19 = vand.u32 %v14574_v10, %v18031_v62 }
 0x797   :  { %8312 = vmatprep.subr.bf16.mxu0 %v17431_v1  ;;  %v8295_v1 = vand.u32 %v14573_v45, %v18031_v62  ;;  %v17478_v45 = vld [vmem:[%s22903_s23 + $0x534] ss:$16 sps:$4 sm:$0xff]  }
 0x79a   :  { %8313 = vmatpush1.bf16.msra.mxu0 %v17429_v59  ;;  %v17457_v59 = vld [vmem:[%s22903_s23 + $0x454] ss:$16 sps:$4 sm:$0xff]  }
 0x79b   :  { %8314 = vmatprep.subr.bf16.mxu0 %v17434_v25  ;;  %v17455_v25 = vld [vmem:[%s22903_s23 + $0x450] ss:$16 sps:$4 sm:$0xff]  }
 0x79d   :  { %7762 = vmatmul.mubr.bf16.gmra.mrb[132].mxu0 %v20739_v61 }
 0x79e   :  { %8315 = vmatpush1.bf16.msra.mxu0 %v17432_v47  ;;  %14432 = vmatprep.mubr.msk.bf16.mxu0 %vm487_vm3, %v20707_v13  ;;  %v17460_v47 = vld [vmem:[%s22903_s23 + $0x474] ss:$16 sps:$4 sm:$0xff]  }
 0x79f   :  { %8316 = vmatprep.subr.bf16.mxu0 %v17437_v50  ;;  %v17458_v50 = vld [vmem:[%s22903_s23 + $0x470] ss:$16 sps:$4 sm:$0xff]  }
 0x7a2   :  { %8317 = vmatpush1.bf16.msra.mxu0 %v17435_v53  ;;  %v17463_v53 = vld [vmem:[%s22903_s23 + $0x494] ss:$16 sps:$4 sm:$0xff]  }
 0x7a3   :  { %8318 = vmatprep.subr.bf16.mxu0 %v17440_v3  ;;  %v17461_v3 = vld [vmem:[%s22903_s23 + $0x490] ss:$16 sps:$4 sm:$0xff]  }
 0x7a5   :  { %7772 = vmatmul.mubr.bf16.gmra.mrb[136].mxu0 %v20729_v30 }
 0x7a6   :  { %8319 = vmatpush1.bf16.msra.mxu0 %v17438_v8  ;;  %14577 = vmatprep.mubr.msk.bf16.mxu0 %vm487_vm3, %v20361_v42  ;;  %v17447_v42 = vld [vmem:[%s22903_s23 + $0x6e0] ss:$16 sps:$4 sm:$0xff]   ;;  %v17469_v8 = vld [vmem:[%s22903_s23 + $0x4d4] ss:$16 sps:$4 sm:$0xff]  }
 0x7a7   :  { %8320 = vmatprep.subr.bf16.mxu0 %v17443_v57 }
 0x7aa   :  { %8321 = vmatpush1.bf16.msra.mxu0 %v17441_v29 }
 0x7ab   :  { %8322 = vmatprep.subr.bf16.mxu0 %v17446_v23 }
 0x7ae   :  { %8323 = vmatpush1.bf16.msra.mxu0 %v17444_v43 }
 0x7af   :  { %8324 = vmatprep.subr.bf16.mxu0 %v17449_v39  ;;  %v17472_v39 = vld [vmem:[%s22903_s23 + $0x4f4] ss:$16 sps:$4 sm:$0xff]  }
 0x7b2   :  { %8325 = vmatpush1.bf16.msra.mxu0 %v17447_v42  ;;  %v17475_v42 = vld [vmem:[%s22903_s23 + $0x514] ss:$16 sps:$4 sm:$0xff]  }
 0x7b3   :  { %8326 = vmatprep.subr.bf16.mxu0 %v17452_v55 }
 0x7b6   :  { %8327 = vmatpush1.bf16.msra.mxu0 %v17450_v38  ;;  %v17473_v38 = vld [vmem:[%s22903_s23 + $0x510] ss:$16 sps:$4 sm:$0xff]  }
 0x7b7   :  { %8328 = vmatprep.subr.bf16.mxu0 %v8298_v19  ;;  %v17476_v19 = vld [vmem:[%s22903_s23 + $0x530] ss:$16 sps:$4 sm:$0xff]  }
 0x7ba   :  { %8329 = vmatpush1.bf16.msra.mxu0 %v8295_v1  ;;  %v17481_v1 = vld [vmem:[%s22903_s23 + $0x554] ss:$16 sps:$4 sm:$0xff]  }
 0x7bb   :  { %8694 = vmatprep.subr.bf16.mxu0 %v17457_v59  ;;  %v17484_v59 = vld [vmem:[%s22903_s23 + $0x574] ss:$16 sps:$4 sm:$0xff]  }
 0x7bd   :  { %8339 = vmatmul.mubr.bf16.vlgmr.msra.gmra.mrb[140].mxu0 %v20478_v54  ;;  %v17466_v54 = vld [vmem:[%s22903_s23 + $0x4b4] ss:$16 sps:$4 sm:$0xff]  }
 0x7be   :  { %8695 = vmatpush1.bf16.msra.mxu0 %v17455_v25  ;;  %14578 = vmatprep.mubr.msk.bf16.mxu0 %vm487_vm3, %v20486_v34  ;;  %v17464_v34 = vld [vmem:[%s22903_s23 + $0x4b0] ss:$16 sps:$4 sm:$0xff]  }
 0x7bf   :  { %8696 = vmatprep.subr.bf16.mxu0 %v17460_v47  ;;  %v17482_v25 = vld [vmem:[%s22903_s23 + $0x570] ss:$16 sps:$4 sm:$0xff]   ;;  %v17487_v47 = vld [vmem:[%s22903_s23 + $0x594] ss:$16 sps:$4 sm:$0xff]  }
 0x7c2   :  { %8697 = vmatpush1.bf16.msra.mxu0 %v17458_v50 }
 0x7c3   :  { %8698 = vmatprep.subr.bf16.mxu0 %v17463_v53  ;;  %v17485_v53 = vld [vmem:[%s22903_s23 + $0x590] ss:$16 sps:$4 sm:$0xff]  }
 0x7c5   :  { %8349 = vmatmul.mubr.bf16.gmra.mrb[144].mxu0 %v20506_v35  ;;  %v17467_v35 = vld [vmem:[%s22903_s23 + $0x4d0] ss:$16 sps:$4 sm:$0xff]  }
 0x7c6   :  { %8699 = vmatpush1.bf16.msra.mxu0 %v17461_v3  ;;  %14579 = vmatprep.mubr.msk.bf16.mxu0 %vm487_vm3, %v20514_v32  ;;  %v17470_v32 = vld [vmem:[%s22903_s23 + $0x4f0] ss:$16 sps:$4 sm:$0xff]  }
 0x7c7   :  { %8700 = vmatprep.subr.bf16.mxu0 %v17466_v54 }
 0x7c8   :  { %v6304_v57 = vpop.f32.mrb[116].mxu0 }
 0x7c9   :  { %v15981_v29 = vpop.f32.mrb[117].mxu0 }
 0x7ca   :  { %8701 = vmatpush1.bf16.msra.mxu0 %v17464_v34  ;;  %v6307_v23 = vpop.f32.mrb[118].mxu0  ;;  %v17495_v29 = vld [vmem:[%s22903_s23 + $0x754] ss:$16 sps:$4 sm:$0xff]  }
 0x7cb   :  { %v15982_v43 = vpop.f32.mrb[119].mxu0  ;;  %8702 = vmatprep.subr.bf16.mxu0 %v17469_v8  ;;  %v17492_v8 = vld [vmem:[%s22903_s23 + $0x734] ss:$16 sps:$4 sm:$0xff]   ;;  %v17493_v23 = vld [vmem:[%s22903_s23 + $0x750] ss:$16 sps:$4 sm:$0xff]  }
 0x7cc   :  { %v17496_v43 = vld [vmem:[%s22903_s23 + $0x770] ss:$16 sps:$4 sm:$0xff]  }
 0x7cd   :  { %8359 = vmatmul.mubr.bf16.gmra.mrb[148].mxu0 %v20530_v7 }
 0x7ce   :  { %8703 = vmatpush1.bf16.msra.mxu0 %v17467_v35  ;;  %14580 = vmatprep.mubr.msk.bf16.mxu0 %vm487_vm3, %v20532_v17  ;;  %v17498_v35 = vld [vmem:[%s22903_s23 + $0x774] ss:$16 sps:$4 sm:$0xff]  }
 0x7cf   :  { %8704 = vmatprep.subr.bf16.mxu0 %v17472_v39  ;;  %v22930_v39 = vsub.s32 2, %v19022_v6 }
 0x7d0   :  { %v6349_v14 = vpop.f32.mrb[120].mxu0 }
 0x7d1   :  { %v21405_v55 = vmax.f32 %v6304_v57, %v6349_v14  ;;  %v15987_v10 = vpop.f32.mrb[121].mxu0  ;;  %v17490_v57 = vld [vmem:[%s22903_s23 + $0x730] ss:$16 sps:$4 sm:$0xff]  }
 0x7d2   :  { %8705 = vmatpush1.bf16.msra.mxu0 %v17470_v32  ;;  %v6352_v7 = vpop.f32.mrb[122].mxu0  ;;  %v17499_v14 = vld [vmem:[%s22903_s23 + $0x790] ss:$16 sps:$4 sm:$0xff]  }
 0x7d3   :  { %6364 = vrot.lane.b32.xlu1 %v21405_v55, %s17776_s25  ;;  %6359 = vrot.lane.b32.xlu0 %v21405_v55, %s17777_s26  ;;  %v15988_v17 = vpop.f32.mrb[123].mxu0  ;;  %6357 = vst.msk [vmem:[#allocation2] sm:$0x1] %vm6356_vm13, %v21405_v55 }
 0x7d4   :  { %8706 = vmatprep.subr.bf16.mxu0 %v17475_v42  ;;  %v22931_v42 = vsub.s32 3, %v19022_v6 }
 0x7d5   :  { %8369 = vmatmul.mubr.bf16.gmra.mrb[152].mxu0 %v20547_v52  ;;  %v17479_v52 = vld [vmem:[%s22903_s23 + $0x550] ss:$16 sps:$4 sm:$0xff]  }
 0x7d6   :  { %8707 = vmatpush1.bf16.msra.mxu0 %v17473_v38  ;;  %14633 = vmatprep.mubr.msk.bf16.mxu0 %vm487_vm3, %v20306_v56  ;;  %v14481_v56 = vld [vmem:[%s22903_s23 + $0x5b0] sm:$0xff] }
 0x7d7   :  { %6369 = vrot.lane.b32.xlu0 %v21405_v55, %s17778_s1  ;;  %8708 = vmatprep.subr.bf16.mxu0 %v17478_v45  ;;  %v14630_v50 = vcombine.high %v14481_v56, %v14481_v56  ;;  %v14629_v3 = vcombine.low %v14481_v56, %v14481_v56  ;;  %v17502_v38 = vld [vmem:[%s22903_s23 + $0x7b0] ss:$16 sps:$4 sm:$0xff]   ;;  %v17507_v45 = vld [vmem:[%s22903_s23 + $0x7d4] ss:$16 sps:$4 sm:$0xff]  }
 0x7d9   :  { %v8686_v54 = vand.u32 %v14630_v50, %v18031_v62  ;;  %v8683_v34 = vand.u32 %v14629_v3, %v18031_v62 }
 0x7da   :  { %8709 = vmatpush1.bf16.msra.mxu0 %v17476_v19 }
 0x7db   :  { %8710 = vmatprep.subr.bf16.mxu0 %v17481_v1 }
 0x7de   :  { %8711 = vmatpush1.bf16.msra.mxu0 %v17479_v52 }
 0x7df   :  { %8712 = vmatprep.subr.bf16.mxu0 %v17484_v59 }
 0x7e2   :  { %8713 = vmatpush1.bf16.msra.mxu0 %v17482_v25 }
 0x7e3   :  { %8714 = vmatprep.subr.bf16.mxu0 %v17487_v47 }
 0x7e6   :  { %8715 = vmatpush1.bf16.msra.mxu0 %v17485_v53 }
 0x7e7   :  { %8716 = vmatprep.subr.bf16.mxu0 %v8686_v54 }
 0x7ea   :  { %8717 = vmatpush1.bf16.msra.mxu0 %v8683_v34 }
 0x7eb   :  { %9128 = vmatprep.subr.bf16.mxu0 %v17492_v8 }
 0x7ed   :  { %8727 = vmatmul.mubr.bf16.vlgmr.msra.gmra.mrb[140].mxu0 %v20420_v2  ;;  %v21474_v2 = vld [vmem:[%s22880_s2] sm:$0xf] }
 0x7ee   :  { %9129 = vmatpush1.bf16.msra.mxu0 %v17490_v57  ;;  %14634 = vmatprep.mubr.msk.bf16.mxu0 %vm487_vm3, %v21155_v4  ;;  %v17501_v4 = vld [vmem:[%s22903_s23 + $0x794] ss:$16 sps:$4 sm:$0xff]   ;;  %v21483_v32 = vrot.slane %v21474_v2, %v22930_v39  ;;  %v21493_v10 = vrot.slane %v21474_v2, %v22931_v42  ;;  %v17508_v39 = vld [vmem:[%s22903_s23 + $0x7f0] ss:$16 sps:$4 sm:$0xff]  }
 0x7ef   :  { %9130 = vmatprep.subr.bf16.mxu0 %v17495_v29 }
 0x7f0   :  { %v7910_v7 = vadd.f32 %v21483_v32, %v21193_v26  ;;  %v7914_v19 = vadd.f32 %v21483_v32, %v21203_v28  ;;  %v7915_v52 = vadd.f32 %v21493_v10, %v21210_v16  ;;  %v17505_v28 = vld [vmem:[%s22903_s23 + $0x7d0] ss:$16 sps:$4 sm:$0xff]   ;;  %v7918_v34 = vadd.f32 %v21483_v32, %v21221_v9  ;;  %v17513_v9 = vld [vmem:[%s22903_s23 + $0x814] ss:$16 sps:$4 sm:$0xff]  }
 0x7f2   :  { %9131 = vmatpush1.bf16.msra.mxu0 %v17493_v23  ;;  %v7946_v54 = vmax.f32 %v7914_v19, 0.0  ;;  %v7947_v29 = vmax.f32 %v7915_v52, 0.0  ;;  %v7919_v23 = vadd.f32 %v21493_v10, %v21223_v49 }
 0x7f3   :  { %9132 = vmatprep.subr.bf16.mxu0 %v17498_v35 }
 0x7f5   :  { %8737 = vmatmul.mubr.bf16.gmra.mrb[144].mxu0 %v21171_v44  ;;  %v17504_v44 = vld [vmem:[%s22903_s23 + $0x7b4] ss:$16 sps:$4 sm:$0xff]  }
 0x7f6   :  { %9133 = vmatpush1.bf16.msra.mxu0 %v17496_v43  ;;  %14635 = vmatprep.mubr.msk.bf16.mxu0 %vm487_vm3, %v21180_v33  ;;  %v7911_v33 = vadd.f32 %v21493_v10, %v21195_v37  ;;  %v7942_v37 = vmax.f32 %v7910_v7, 0.0  ;;  %v7922_v43 = vadd.f32 %v21483_v32, %v21226_v24  ;;  %v7951_v24 = vmax.f32 %v7919_v23, 0.0 }
 0x7f7   :  { %9134 = vmatprep.subr.bf16.mxu0 %v17501_v4 }
 0x7f8   :  { %v7943_v53 = vmax.f32 %v7911_v33, 0.0  ;;  %v7923_v33 = vadd.f32 %v21493_v10, %v21233_v0 }
 0x7fa   :  { %9135 = vmatpush1.bf16.msra.mxu0 %v17499_v14 }
 0x7fb   :  { %v9235_v17 = vpop.f32.mrb[124].mxu1  ;;  %9136 = vmatprep.subr.bf16.mxu0 %v17504_v44  ;;  %v7950_v44 = vmax.f32 %v7918_v34, 0.0 }
 0x7fc   :  { %v9308_v1 = vadd.f32 %v9235_v17, %v21483_v32  ;;  %v9237_v26 = vpop.f32.mrb[125].mxu1 }
 0x7fd   :  { %v9309_v59 = vadd.f32 %v9237_v26, %v21493_v10  ;;  %v9239_v56 = vpop.f32.mrb[126].mxu1  ;;  %8747 = vmatmul.mubr.bf16.gmra.mrb[148].mxu0 %v21200_v36  ;;  %v17510_v36 = vld [vmem:[%s22903_s23 + $0x7f4] ss:$16 sps:$4 sm:$0xff]  }
 0x7fe   :  { %v9340_v25 = vmax.f32 %v9308_v1, 0.0  ;;  %9137 = vmatpush1.bf16.msra.mxu0 %v17502_v38  ;;  %v9312_v47 = vadd.f32 %v9239_v56, %v21483_v32  ;;  %v9241_v50 = vpop.f32.mrb[127].mxu1  ;;  %14636 = vmatprep.mubr.msk.bf16.mxu0 %vm487_vm3, %v20472_v41  ;;  %v7954_v1 = vmax.f32 %v7922_v43, 0.0  ;;  %v17511_v56 = vld [vmem:[%s22903_s23 + $0x810] ss:$16 sps:$4 sm:$0xff]  }
 0x7ff   :  { %v9341_v16 = vmax.f32 %v9309_v59, 0.0  ;;  %v9313_v3 = vadd.f32 %v9241_v50, %v21493_v10  ;;  %9138 = vmatprep.subr.bf16.mxu0 %v17507_v45 }
 0x800   :  { %v9372_v8 = vmax.f32 %v7942_v37, %v9340_v25  ;;  %v9344_v57 = vmax.f32 %v9312_v47, 0.0  ;;  %v7926_v25 = vadd.f32 %v21483_v32, %v21244_v12 }
 0x801   :  { %v9373_v41 = vmax.f32 %v7943_v53, %v9341_v16  ;;  %v9345_v35 = vmax.f32 %v9313_v3, 0.0  ;;  %v7930_v3 = vadd.f32 %v21483_v32, %v21251_v63  ;;  %v14685_v63 = vld [vmem:[%s22903_s23 + $0x890] sm:$0xff] }
 0x802   :  { %v9376_v4 = vmax.f32 %v7946_v54, %v9344_v57  ;;  %9139 = vmatpush1.bf16.msra.mxu0 %v17505_v28  ;;  %v7955_v28 = vmax.f32 %v7923_v33, 0.0  ;;  %v17514_v54 = vld [vmem:[%s22903_s23 + $0x830] ss:$16 sps:$4 sm:$0xff]   ;;  %v7958_v57 = vmax.f32 %v7926_v25, 0.0  ;;  %v14732_v33 = vcombine.high %v14685_v63, %v14685_v63 }
 0x803   :  { %v9377_v14 = vmax.f32 %v7947_v29, %v9345_v35  ;;  %v9245_v42 = vpop.f32.mrb[128].mxu1  ;;  %9140 = vmatprep.subr.bf16.mxu0 %v17510_v36  ;;  %v7931_v35 = vadd.f32 %v21493_v10, %v21256_v11  ;;  %v17522_v11 = vld [vmem:[%s22903_s23 + $0x874] ss:$16 sps:$4 sm:$0xff]  }
 0x804   :  { %v21537_v49 = vpack.c.bf16 %v9376_v4, %v9372_v8  ;;  %v9316_v7 = vadd.f32 %v9245_v42, %v21483_v32  ;;  %v9247_v38 = vpop.f32.mrb[129].mxu1  ;;  %v17519_v8 = vld [vmem:[%s22903_s23 + $0x854] ss:$16 sps:$4 sm:$0xff]  }
 0x805   :  { %v9317_v17 = vadd.f32 %v9247_v38, %v21493_v10  ;;  %v9249_v45 = vpop.f32.mrb[130].mxu1  ;;  %v21543_v19 = vpack.c.bf16 %v9377_v14, %v9373_v41  ;;  %8757 = vmatmul.mubr.bf16.gmra.mrb[152].mxu0 %v20497_v40  ;;  %v17516_v40 = vld [vmem:[%s22903_s23 + $0x834] ss:$16 sps:$4 sm:$0xff]   ;;  %v7962_v14 = vmax.f32 %v7930_v3, 0.0 }
 0x806   :  { %v9348_v26 = vmax.f32 %v9316_v7, 0.0  ;;  %9141 = vmatpush1.bf16.msra.mxu0 %v17508_v39  ;;  %v9320_v52 = vadd.f32 %v9249_v45, %v21483_v32  ;;  %v9251_v59 = vpop.f32.mrb[131].mxu1  ;;  %14735 = vmatprep.mubr.msk.bf16.mxu0 %vm487_vm3, %v20644_v5  ;;  %v7927_v5 = vadd.f32 %v21493_v10, %v21249_v20  ;;  %v17517_v7 = vld [vmem:[%s22903_s23 + $0x850] ss:$16 sps:$4 sm:$0xff]  }
 0x807   :  { %v9349_v0 = vmax.f32 %v9317_v17, 0.0  ;;  %v9321_v37 = vadd.f32 %v9251_v59, %v21493_v10  ;;  %9503 = vmatprep.subr.bf16.mxu1 %v21543_v19  ;;  %9142 = vmatprep.subr.bf16.mxu0 %v17513_v9  ;;  %v7934_v17 = vadd.f32 %v21483_v32, %v21265_v51  ;;  %v14731_v51 = vcombine.low %v14685_v63, %v14685_v63 }
 0x808   :  { %v9380_v47 = vmax.f32 %v7950_v44, %v9348_v26  ;;  %v9352_v50 = vmax.f32 %v9320_v52, 0.0  ;;  %9504 = vmatpush1.bf16.msra.mxu1 %v21537_v49  ;;  %v7959_v41 = vmax.f32 %v7927_v5, 0.0  ;;  %v7963_v26 = vmax.f32 %v7931_v35, 0.0 }
 0x809   :  { %v9381_v53 = vmax.f32 %v7951_v24, %v9349_v0  ;;  %v9353_v16 = vmax.f32 %v9321_v37, 0.0  ;;  %v7935_v52 = vadd.f32 %v21493_v10, %v21267_v60  ;;  %v7938_v0 = vadd.f32 %v21483_v32, %v21269_v48 }
 0x80a   :  { %v9384_v36 = vmax.f32 %v7954_v1, %v9352_v50  ;;  %9143 = vmatpush1.bf16.msra.mxu0 %v17511_v56  ;;  %v9120_v50 = vand.u32 %v14732_v33, %v18031_v62  ;;  %v7939_v48 = vadd.f32 %v21493_v10, %v21272_v22 }
 0x80b   :  { %v9385_v12 = vmax.f32 %v7955_v28, %v9353_v16  ;;  %v9255_v34 = vpop.f32.mrb[132].mxu1  ;;  %9144 = vmatprep.subr.bf16.mxu0 %v17516_v40  ;;  %v17520_v40 = vld [vmem:[%s22903_s23 + $0x870] ss:$16 sps:$4 sm:$0xff]   ;;  %v7966_v28 = vmax.f32 %v7934_v17, 0.0  ;;  %v7967_v16 = vmax.f32 %v7935_v52, 0.0 }
 0x80c   :  { %v21570_v20 = vpack.c.bf16 %v9384_v36, %v9380_v47  ;;  %v9324_v29 = vadd.f32 %v9255_v34, %v21483_v32  ;;  %v9257_v23 = vpop.f32.mrb[133].mxu1  ;;  %v7971_v22 = vmax.f32 %v7939_v48, 0.0  ;;  %v22932_v48 = vsub.s32 0, %v19022_v6 }
 0x80d   :  { %v9325_v43 = vadd.f32 %v9257_v23, %v21493_v10  ;;  %v9259_v4 = vpop.f32.mrb[134].mxu1  ;;  %v21579_v39 = vpack.c.bf16 %v9385_v12, %v9381_v53  ;;  %v7970_v12 = vmax.f32 %v7938_v0, 0.0  ;;  %v17530_v0 = vld [vmem:[%s22882_s4 + $0x170] sm:$0xff]  }
 0x80e   :  { %v9356_v42 = vmax.f32 %v9324_v29, 0.0  ;;  %9145 = vmatpush1.bf16.msra.mxu0 %v17514_v54  ;;  %v9328_v9 = vadd.f32 %v9259_v4, %v21483_v32  ;;  %v9261_v44 = vpop.f32.mrb[135].mxu1  ;;  %v9117_v29 = vand.u32 %v14731_v51, %v18031_v62  ;;  %v17533_v51 = vld [vmem:[%s22882_s4 + $0x188] sm:$0xff]  }
 0x80f   :  { %v9357_v38 = vmax.f32 %v9325_v43, 0.0  ;;  %v9329_v24 = vadd.f32 %v9261_v44, %v21493_v10  ;;  %9505 = vmatprep.subr.bf16.mxu1 %v21579_v39  ;;  %9146 = vmatprep.subr.bf16.mxu0 %v17519_v8 }
 0x810   :  { %v9388_v45 = vmax.f32 %v7958_v57, %v9356_v42  ;;  %v9360_v1 = vmax.f32 %v9328_v9, 0.0  ;;  %9506 = vmatpush1.bf16.msra.mxu1 %v21570_v20 }
 0x811   :  { %v9389_v59 = vmax.f32 %v7959_v41, %v9357_v38  ;;  %v9361_v56 = vmax.f32 %v9329_v24, 0.0 }
 0x812   :  { %v9392_v37 = vmax.f32 %v7962_v14, %v9360_v1  ;;  %9147 = vmatpush1.bf16.msra.mxu0 %v17517_v7 }
 0x813   :  { %v9393_v25 = vmax.f32 %v7963_v26, %v9361_v56  ;;  %v9265_v47 = vpop.f32.mrb[136].mxu1  ;;  %9148 = vmatprep.subr.bf16.mxu0 %v17522_v11  ;;  %v17529_v56 = vld [vmem:[%s22882_s4 + $0x168] sm:$0xff]  }
 0x814   :  { %v9412_v5 = vpack.c.bf16 %v9392_v37, %v9388_v45  ;;  %v9332_v60 = vadd.f32 %v9265_v47, %v21483_v32  ;;  %v9267_v53 = vpop.f32.mrb[137].mxu1  ;;  %v17531_v37 = vld [vmem:[%s22882_s4 + $0x178] sm:$0xff]  }
 0x815   :  { %v9333_v3 = vadd.f32 %v9267_v53, %v21493_v10  ;;  %v9269_v36 = vpop.f32.mrb[138].mxu1  ;;  %v9413_v54 = vpack.c.bf16 %v9393_v25, %v9389_v59  ;;  %v17534_v25 = vld [vmem:[%s22882_s4 + $0x190] sm:$0xff]   ;;  %v17535_v47 = vld [vmem:[%s22882_s4 + $0x198] sm:$0xff]   ;;  %v17540_v53 = vld [vmem:[%s22882_s4 + $0x1c0] sm:$0xff]  }
 0x816   :  { %v9364_v34 = vmax.f32 %v9332_v60, 0.0  ;;  %9149 = vmatpush1.bf16.msra.mxu0 %v17520_v40  ;;  %v9336_v8 = vadd.f32 %v9269_v36, %v21483_v32  ;;  %v9271_v57 = vpop.f32.mrb[139].mxu1  ;;  %v17532_v40 = vld [vmem:[%s22882_s4 + $0x180] sm:$0xff]   ;;  %v17539_v60 = vld [vmem:[%s22882_s4 + $0x1b8] sm:$0xff]   ;;  %v22933_v36 = vsub.s32 1, %v19022_v6 }
 0x817   :  { %v9365_v23 = vmax.f32 %v9333_v3, 0.0  ;;  %v9337_v63 = vadd.f32 %v9271_v57, %v21493_v10  ;;  %9507 = vmatprep.subr.bf16.mxu1 %v9413_v54  ;;  %9150 = vmatprep.subr.bf16.mxu0 %v9120_v50  ;;  %v21616_v10 = vld [vmem:[%s22881_s3] sm:$0xff]   ;;  %v21739_v3 = vrot.slane %v21474_v2, %v22932_v48 }
 0x818   :  { %v9396_v41 = vmax.f32 %v7966_v28, %v9364_v34  ;;  %v9368_v35 = vmax.f32 %v9336_v8, 0.0  ;;  %9508 = vmatpush1.bf16.msra.mxu1 %v9412_v5  ;;  %v17536_v50 = vld [vmem:[%s22882_s4 + $0x1a0] sm:$0xff]   ;;  %v17537_v28 = vld [vmem:[%s22882_s4 + $0x1a8] sm:$0xff]  }
 0x819   :  { %v9397_v43 = vmax.f32 %v7967_v16, %v9365_v23  ;;  %v9369_v4 = vmax.f32 %v9337_v63, 0.0  ;;  %v17541_v16 = vld [vmem:[%s22882_s4 + $0x1c8] sm:$0xff]  }
 0x81a   :  { %v9400_v14 = vmax.f32 %v7970_v12, %v9368_v35  ;;  %9151 = vmatpush1.bf16.msra.mxu0 %v9117_v29 }
 0x81b   :  { %v9401_v42 = vmax.f32 %v7971_v22, %v9369_v4 }
 0x81c   :  { %v9416_v9 = vpack.c.bf16 %v9400_v14, %v9396_v41 }
 0x81d   :  { %v9417_v44 = vpack.c.bf16 %v9401_v42, %v9397_v43  ;;  %9161 = vmatmul.mubr.bf16.vlgmr.msra.gmra.mrb[140].mxu0 %v20688_v46  ;;  %v21630_v46 = vld [vmem:[%s22881_s3 + $0x8] sm:$0x7f]  }
 0x81e   :  { %14736 = vmatprep.mubr.msk.bf16.mxu0 %vm487_vm3, %v20694_v31  ;;  %v9445_v32 = vand.u32 %v9416_v9, %v19188_v15  ;;  %v21642_v31 = vld [vmem:[%s22881_s3 + $0x10] sm:$0xff]  }
 0x81f   :  { %v9448_v62 = vand.u32 %v9417_v44, %v19188_v15 }
 0x821   :  { %9509 = vmatprep.subr.bf16.mxu1 %v9448_v62 }
 0x822   :  { %9510 = vmatpush1.bf16.msra.mxu1 %v9445_v32 }
 0x823   :  { %9629 = vmatprep.subr.bf16.mxu1 %v21543_v19 }
 0x825   :  { %9171 = vmatmul.mubr.bf16.gmra.mrb[144].mxu0 %v20713_v27  ;;  %14747 = vmatmul.mubr.msk.bf16.vlgmr.msra.gmra.mrb[140].mxu1 %vm3120_vm7, %v21616_v10 }
 0x826   :  { %9630 = vmatpush1.bf16.msra.mxu1 %v21537_v49  ;;  %14737 = vmatprep.mubr.msk.bf16.mxu0 %vm487_vm3, %v20721_v18 }
 0x827   :  { %9631 = vmatprep.subr.bf16.mxu1 %v21579_v39  ;;  %9545 = vmatprep.mubr.bf16.mxu1 %v22929_v58 }
 0x82a   :  { %9632 = vmatpush1.bf16.msra.mxu1 %v21570_v20 }
 0x82b   :  { %9633 = vmatprep.subr.bf16.mxu1 %v9413_v54  ;;  %v21744_v54 = vrot.slane %v21474_v2, %v22933_v36 }
 0x82d   :  { %9181 = vmatmul.mubr.bf16.gmra.mrb[148].mxu0 %v20739_v61  ;;  %14748 = vmatmul.mubr.msk.bf16.gmra.mrb[144].mxu1 %vm3120_vm7, %v21630_v46 }
 0x82e   :  { %9634 = vmatpush1.bf16.msra.mxu1 %v9412_v5  ;;  %14738 = vmatprep.mubr.msk.bf16.mxu0 %vm487_vm3, %v20707_v13  ;;  %v21653_v13 = vld [vmem:[%s22881_s3 + $0x18] sm:$0x7f]   ;;  %v17538_v5 = vld [vmem:[%s22882_s4 + $0x1b0] sm:$0xff]   ;;  %vm12725_vm3 = vcmask 818176  }
 0x82f   :  { %9635 = vmatprep.subr.bf16.mxu1 %v9448_v62  ;;  %9661 = vmatprep.mubr.bf16.mxu1 %v22929_v58 }
 0x832   :  { %9636 = vmatpush1.bf16.msra.mxu1 %v9445_v32 }
 0x833   :  { %10118 = vmatprep.subr.bf16.mxu1 %v22929_v58 }
 0x835   :  { %9191 = vmatmul.mubr.bf16.gmra.mrb[152].mxu0 %v20729_v30  ;;  %14757 = vmatmul.mubr.msk.bf16.vlgmr.msra.gmra.mrb[148].mxu1 %vm3120_vm7, %v21642_v31 }
 0x836   :  { %9671 = vmatprep.mubr.bf16.mxu1 %v22929_v58  ;;  %9482 = vmatprep.mubr.bf16.mxu0 %v22929_v58 }
 0x837   :  { %10119 = vmatpush1.bf16.msra.mxu1 %v17529_v56 }
 0x838   :  { %10120 = vmatprep.subr.bf16.mxu1 %v22929_v58 }
 0x83b   :  { %10121 = vmatpush1.bf16.msra.mxu1 %v17530_v0 }
 0x83c   :  { %10122 = vmatprep.subr.bf16.mxu1 %v22929_v58 }
 0x83d   :  { %14758 = vmatmul.mubr.msk.bf16.gmra.mrb[152].mxu1 %vm3120_vm7, %v21653_v13 }
 0x83f   :  { %10123 = vmatpush1.bf16.msra.mxu1 %v17531_v37 }
 0x840   :  { %10124 = vmatprep.subr.bf16.mxu1 %v22929_v58 }
 0x843   :  { %10125 = vmatpush1.bf16.msra.mxu1 %v17532_v40 }
 0x844   :  { %10126 = vmatprep.subr.bf16.mxu1 %v22929_v58 }
 0x845   :  { %v6365_v27 = vpop.permute.xlu1 %6364  ;;  %v6360_v18 = vpop.permute.xlu0 %6359 }
 0x846   :  { %6363 = vst.msk [vmem:[#allocation2 - $0x1] sm:$0x2] %vm6362_vm14, %v6360_v18 }
 0x847   :  { %6368 = vst.msk [vmem:[#allocation2 - $0x2] sm:$0x4] %vm6367_vm15, %v6365_v27  ;;  %10127 = vmatpush1.bf16.msra.mxu1 %v17533_v51 }
 0x848   :  { %10128 = vmatprep.subr.bf16.mxu1 %v22929_v58 }
 0x849   :  { %v6370_v30 = vpop.permute.xlu0 %6369 }
 0x84a   :  { %6373 = vst.msk [vmem:[#allocation2 - $0x3] sm:$0x8] %vm6372_vm0, %v6370_v30 }
 0x84b   :  { %10129 = vmatpush1.bf16.msra.mxu1 %v17534_v25 }
 0x84c   :  { %10130 = vmatprep.subr.bf16.mxu1 %v22929_v58 }
 0x84f   :  { %10131 = vmatpush1.bf16.msra.mxu1 %v17535_v47 }
 0x850   :  { %10132 = vmatprep.subr.bf16.mxu1 %v22929_v58 }
 0x853   :  { %10133 = vmatpush1.bf16.msra.mxu1 %v17536_v50 }
 0x854   :  { %10134 = vmatprep.subr.bf16.mxu1 %v22929_v58 }
 0x857   :  { %10135 = vmatpush1.bf16.msra.mxu1 %v17537_v28 }
 0x858   :  { %10136 = vmatprep.subr.bf16.mxu1 %v22929_v58 }
 0x85b   :  { %10137 = vmatpush1.bf16.msra.mxu1 %v17538_v5 }
 0x85c   :  { %10138 = vmatprep.subr.bf16.mxu1 %v22929_v58 }
 0x85f   :  { %10139 = vmatpush1.bf16.msra.mxu1 %v17539_v60 }
 0x860   :  { %v7743_v61 = vpop.f32.mrb[124].mxu0  ;;  %10140 = vmatprep.subr.bf16.mxu1 %v22929_v58 }
 0x861   :  { %v7745_v49 = vpop.f32.mrb[125].mxu0  ;;  %v7908_v12 = vadd.f32 %v21739_v3, %v7743_v61 }
 0x862   :  { %v7747_v19 = vpop.f32.mrb[126].mxu0  ;;  %v7909_v34 = vadd.f32 %v21744_v54, %v7745_v49 }
 0x863   :  { %v7749_v20 = vpop.f32.mrb[127].mxu0  ;;  %10141 = vmatpush1.bf16.msra.mxu1 %v17540_v53  ;;  %v7912_v57 = vadd.f32 %v21739_v3, %v7747_v19  ;;  %v7940_v22 = vmax.f32 %v7908_v12, 0.0 }
 0x864   :  { %10142 = vmatprep.subr.bf16.mxu1 %v22929_v58  ;;  %v7913_v63 = vadd.f32 %v21744_v54, %v7749_v20  ;;  %v7941_v4 = vmax.f32 %v7909_v34, 0.0 }
 0x865   :  { %v7944_v9 = vmax.f32 %v7912_v57, 0.0 }
 0x866   :  { %v7945_v32 = vmax.f32 %v7913_v63, 0.0 }
 0x867   :  { %10143 = vmatpush1.bf16.msra.mxu1 %v17541_v16 }
 0x868   :  { %v21660_v39 = vpop.f32.mrb[128].mxu0  ;;  %10394 = vmatprep.subr.bf16.mxu1 %v22929_v58 }
 0x869   :  { %v21662_v7 = vpop.f32.mrb[129].mxu0  ;;  %v7916_v30 = vadd.f32 %v21739_v3, %v21660_v39 }
 0x86a   :  { %v21664_v38 = vpop.f32.mrb[130].mxu0  ;;  %v7917_v49 = vadd.f32 %v21744_v54, %v21662_v7 }
 0x86b   :  { %v21666_v24 = vpop.f32.mrb[131].mxu0  ;;  %v7920_v0 = vadd.f32 %v21739_v3, %v21664_v38  ;;  %v7948_v5 = vmax.f32 %v7916_v30, 0.0 }
 0x86c   :  { %v7921_v39 = vadd.f32 %v21744_v54, %v21666_v24  ;;  %v7949_v48 = vmax.f32 %v7917_v49, 0.0 }
 0x86d   :  { %v7952_v24 = vmax.f32 %v7920_v0, 0.0 }
 0x86e   :  { %v7953_v57 = vmax.f32 %v7921_v39, 0.0 }
 0x870   :  { %v21668_v11 = vpop.f32.mrb[132].mxu0 }
 0x871   :  { %v21670_v33 = vpop.f32.mrb[133].mxu0  ;;  %v7924_v63 = vadd.f32 %v21739_v3, %v21668_v11 }
 0x872   :  { %v21672_v17 = vpop.f32.mrb[134].mxu0 }
 0x873   :  { %v21674_v45 = vpop.f32.mrb[135].mxu0 }
 0x874   :  { %v7929_v11 = vadd.f32 %v21744_v54, %v21674_v45 }
 0x878   :  { %v21676_v1 = vpop.f32.mrb[136].mxu0 }
 0x879   :  { %v21678_v26 = vpop.f32.mrb[137].mxu0 }
 0x87a   :  { %v21680_v52 = vpop.f32.mrb[138].mxu0 }
 0x87b   :  { %v21682_v59 = vpop.f32.mrb[139].mxu0 }
 0x8f0   :  { %v9162_v8 = vpop.f32.mrb[140].mxu0 }
 0x8f1   :  { %v9306_v29 = vadd.f32 %v9162_v8, %v21739_v3  ;;  %v9164_v23 = vpop.f32.mrb[141].mxu0 }
 0x8f2   :  { %v9307_v41 = vadd.f32 %v9164_v23, %v21744_v54  ;;  %v9166_v35 = vpop.f32.mrb[142].mxu0 }
 0x8f3   :  { %v9338_v6 = vmax.f32 %v9306_v29, 0.0  ;;  %v9310_v2 = vadd.f32 %v9166_v35, %v21739_v3  ;;  %v9168_v43 = vpop.f32.mrb[143].mxu0  ;;  %v7925_v35 = vadd.f32 %v21744_v54, %v21670_v33 }
 0x8f4   :  { %v9339_v14 = vmax.f32 %v9307_v41, 0.0  ;;  %v9311_v42 = vadd.f32 %v9168_v43, %v21744_v54  ;;  %v7928_v43 = vadd.f32 %v21739_v3, %v21672_v17 }
 0x8f5   :  { %v9370_v44 = vmax.f32 %v7940_v22, %v9338_v6  ;;  %v9342_v62 = vmax.f32 %v9310_v2, 0.0  ;;  %v7957_v49 = vmax.f32 %v7925_v35, 0.0 }
 0x8f6   :  { %v9371_v27 = vmax.f32 %v7941_v4, %v9339_v14  ;;  %v9343_v18 = vmax.f32 %v9311_v42, 0.0  ;;  %v7960_v45 = vmax.f32 %v7928_v43, 0.0 }
 0x8f7   :  { %v9374_v61 = vmax.f32 %v7944_v9, %v9342_v62 }
 0x8f8   :  { %v9375_v19 = vmax.f32 %v7945_v32, %v9343_v18  ;;  %v9172_v20 = vpop.f32.mrb[144].mxu0  ;;  %v21758_v56 = vpop.f32.mrb[140].mxu1 }
 0x8f9   :  { %v21762_v37 = vpack.c.bf16 %v9374_v61, %v9370_v44  ;;  %v9314_v40 = vadd.f32 %v9172_v20, %v21739_v3  ;;  %v9174_v51 = vpop.f32.mrb[145].mxu0  ;;  %v21765_v25 = vpop.f32.mrb[141].mxu1 }
 0x8fa   :  { %v9315_v47 = vadd.f32 %v9174_v51, %v21744_v54  ;;  %v9176_v7 = vpop.f32.mrb[146].mxu0  ;;  %v21770_v50 = vpack.c.bf16 %v9375_v19, %v9371_v27  ;;  %v21772_v28 = vpop.f32.mrb[142].mxu1  ;;  %v7956_v27 = vmax.f32 %v7924_v63, 0.0  ;;  %v7961_v51 = vmax.f32 %v7929_v11, 0.0 }
 0x8fb   :  { %v9346_v60 = vmax.f32 %v9314_v40, 0.0  ;;  %v9318_v38 = vadd.f32 %v9176_v7, %v21739_v3  ;;  %v9178_v53 = vpop.f32.mrb[147].mxu0  ;;  %v21775_v16 = vpop.f32.mrb[143].mxu1  ;;  %v7932_v7 = vadd.f32 %v21739_v3, %v21676_v1  ;;  %v7937_v1 = vadd.f32 %v21744_v54, %v21682_v59 }
 0x8fc   :  { %v9347_v36 = vmax.f32 %v9315_v47, 0.0  ;;  %v9319_v12 = vadd.f32 %v9178_v53, %v21744_v54  ;;  %9450 = vmatprep.subr.bf16.mxu0 %v21770_v50 }
 0x8fd   :  { %v9378_v34 = vmax.f32 %v7948_v5, %v9346_v60  ;;  %v9350_v8 = vmax.f32 %v9318_v38, 0.0  ;;  %9451 = vmatpush1.bf16.msra.mxu0 %v21762_v37  ;;  %v7933_v60 = vadd.f32 %v21744_v54, %v21678_v26 }
 0x8fe   :  { %v9379_v29 = vmax.f32 %v7949_v48, %v9347_v36  ;;  %v9351_v23 = vmax.f32 %v9319_v12, 0.0  ;;  %v7936_v36 = vadd.f32 %v21739_v3, %v21680_v52  ;;  %v7964_v52 = vmax.f32 %v7932_v7, 0.0 }
 0x8ff   :  { %v9382_v41 = vmax.f32 %v7952_v24, %v9350_v8 }
 0x900   :  { %v9383_v22 = vmax.f32 %v7953_v57, %v9351_v23  ;;  %v9182_v6 = vpop.f32.mrb[148].mxu0  ;;  %v21784_v2 = vpop.f32.mrb[144].mxu1 }
 0x901   :  { %v21788_v4 = vpack.c.bf16 %v9382_v41, %v9378_v34  ;;  %v9322_v14 = vadd.f32 %v9182_v6, %v21739_v3  ;;  %v9184_v42 = vpop.f32.mrb[149].mxu0  ;;  %v21791_v9 = vpop.f32.mrb[145].mxu1 }
 0x902   :  { %v9323_v44 = vadd.f32 %v9184_v42, %v21744_v54  ;;  %v9186_v33 = vpop.f32.mrb[150].mxu0  ;;  %v21796_v62 = vpack.c.bf16 %v9383_v22, %v9379_v29  ;;  %v21798_v32 = vpop.f32.mrb[146].mxu1 }
 0x903   :  { %v9354_v18 = vmax.f32 %v9322_v14, 0.0  ;;  %v9326_v17 = vadd.f32 %v9186_v33, %v21739_v3  ;;  %v9188_v30 = vpop.f32.mrb[151].mxu0  ;;  %v21801_v61 = vpop.f32.mrb[147].mxu1  ;;  %v7965_v14 = vmax.f32 %v7933_v60, 0.0 }
 0x904   :  { %v9355_v19 = vmax.f32 %v9323_v44, 0.0  ;;  %v9327_v20 = vadd.f32 %v9188_v30, %v21744_v54  ;;  %9452 = vmatprep.subr.bf16.mxu0 %v21796_v62  ;;  %v7968_v44 = vmax.f32 %v7936_v36, 0.0 }
 0x905   :  { %v9386_v0 = vmax.f32 %v7956_v27, %v9354_v18  ;;  %v9358_v40 = vmax.f32 %v9326_v17, 0.0  ;;  %9453 = vmatpush1.bf16.msra.mxu0 %v21788_v4 }
 0x906   :  { %v9387_v39 = vmax.f32 %v7957_v49, %v9355_v19  ;;  %v9359_v47 = vmax.f32 %v9327_v20, 0.0 }
 0x907   :  { %v9390_v5 = vmax.f32 %v7960_v45, %v9358_v40 }
 0x908   :  { %v9391_v38 = vmax.f32 %v7961_v51, %v9359_v47  ;;  %v9192_v53 = vpop.f32.mrb[152].mxu0  ;;  %v9663_v48 = vpop.f32.mrb[148].mxu1 }
 0x909   :  { %v21812_v12 = vpack.c.bf16 %v9390_v5, %v9386_v0  ;;  %v9330_v24 = vadd.f32 %v9192_v53, %v21739_v3  ;;  %v9194_v34 = vpop.f32.mrb[153].mxu0  ;;  %v9684_v8 = vmax.f32 %v21758_v56, %v9663_v48  ;;  %v9665_v57 = vpop.f32.mrb[149].mxu1 }
 0x90a   :  { %v9331_v29 = vadd.f32 %v9194_v34, %v21744_v54  ;;  %v9196_v26 = vpop.f32.mrb[154].mxu0  ;;  %v21819_v23 = vpack.c.bf16 %v9391_v38, %v9387_v39  ;;  %v9685_v63 = vmax.f32 %v21765_v25, %v9665_v57  ;;  %v9667_v41 = vpop.f32.mrb[150].mxu1 }
 0x90b   :  { %v9362_v35 = vmax.f32 %v9330_v24, 0.0  ;;  %v9334_v22 = vadd.f32 %v9196_v26, %v21739_v3  ;;  %v9198_v6 = vpop.f32.mrb[155].mxu0  ;;  %v9688_v43 = vmax.f32 %v21772_v28, %v9667_v41  ;;  %v9669_v56 = vpop.f32.mrb[151].mxu1  ;;  %v7969_v3 = vmax.f32 %v7937_v1, 0.0 }
 0x90c   :  { %v9363_v42 = vmax.f32 %v9331_v29, 0.0  ;;  %v9335_v59 = vadd.f32 %v9198_v6, %v21744_v54  ;;  %9454 = vmatprep.subr.bf16.mxu0 %v21819_v23  ;;  %v9689_v11 = vmax.f32 %v21775_v16, %v9669_v56  ;;  %v17553_v6 = vld [vmem:[%s22882_s4 + $0xd8] sm:$0xff]   ;;  %v17555_v56 = vld [vmem:[%s22882_s4 + $0x128] sm:$0xff]  }
 0x90d   :  { %v9394_v33 = vmax.f32 %v7964_v52, %v9362_v35  ;;  %v9366_v25 = vmax.f32 %v9334_v22, 0.0  ;;  %9455 = vmatpush1.bf16.msra.mxu0 %v21812_v12  ;;  %v21828_v27 = vpack.c.bf16 %v9688_v43, %v9684_v8  ;;  %v17549_v52 = vld [vmem:[%s22882_s4 + $0xb8] sm:$0xff]   ;;  %v17550_v35 = vld [vmem:[%s22882_s4 + $0xc0] sm:$0xff]   ;;  %v17552_v22 = vld [vmem:[%s22882_s4 + $0xd0] sm:$0xff]  }
 0x90e   :  { %v9395_v18 = vmax.f32 %v7965_v14, %v9363_v42  ;;  %v9367_v17 = vmax.f32 %v9335_v59, 0.0  ;;  %v21830_v28 = vpack.c.bf16 %v9689_v11, %v9685_v63  ;;  %v17554_v43 = vld [vmem:[%s22882_s4 + $0xe0] sm:$0xff]   ;;  %v17557_v42 = vld [vmem:[%s22882_s4 + $0xe8] sm:$0xff]   ;;  %v17559_v11 = vld [vmem:[%s22882_s4 + $0x130] sm:$0xff]  }
 0x90f   :  { %v9398_v30 = vmax.f32 %v7968_v44, %v9366_v25  ;;  %v9850_v49 = vshll.u32 %v21828_v27, 16  ;;  %v9848_v5 = vshrl.u32 %v21828_v27, 16  ;;  %v17556_v14 = vld [vmem:[%s22882_s4 + $0x3e0] sm:$0xff]   ;;  %v17560_v44 = vld [vmem:[%s22882_s4 + $0x3e8] sm:$0xff]  }
 0x910   :  { %v9399_v54 = vmax.f32 %v7969_v3, %v9367_v17  ;;  %v9673_v19 = vpop.f32.mrb[152].mxu1  ;;  %v9862_v20 = vshll.u32 %v21830_v28, 16  ;;  %v9860_v48 = vshrl.u32 %v21830_v28, 16  ;;  %v17558_v59 = vld [vmem:[%s22882_s4 + $0x3a0] sm:$0xff]   ;;  %v17562_v25 = vld [vmem:[%s22882_s4 + $0x3a8] sm:$0xff]   ;;  %v17563_v3 = vld [vmem:[%s22882_s4 + $0x138] sm:$0xff]  }
 0x911   :  { %v9414_v16 = vpack.c.bf16 %v9398_v30, %v9394_v33  ;;  %v9692_v45 = vmax.f32 %v21784_v2, %v9673_v19  ;;  %v9675_v0 = vpop.f32.mrb[153].mxu1  ;;  %v9852_v60 = vrot.slane %v9850_v49, 1  ;;  %v17561_v33 = vld [vmem:[%s22882_s4 + $0xf0] sm:$0xff]   ;;  %v17565_v17 = vld [vmem:[%s22882_s4 + $0xf8] sm:$0xff]   ;;  %v17567_v49 = vld [vmem:[%s22882_s4 + $0x140] sm:$0xff]  }
 0x912   :  { %v9415_v40 = vpack.c.bf16 %v9399_v54, %v9395_v18  ;;  %v9693_v51 = vmax.f32 %v21791_v9, %v9675_v0  ;;  %v9677_v39 = vpop.f32.mrb[154].mxu1  ;;  %v9864_v36 = vrot.slane %v9862_v20, 1  ;;  %v17564_v18 = vld [vmem:[%s22882_s4 + $0x3f0] sm:$0xff]   ;;  %v17568_v54 = vld [vmem:[%s22882_s4 + $0x3f8] sm:$0xff]   ;;  %v17569_v19 = vld [vmem:[%s22882_s4 + $0x100] sm:$0xff]  }
 0x913   :  { %v9696_v47 = vmax.f32 %v21798_v32, %v9677_v39  ;;  %v9679_v7 = vpop.f32.mrb[155].mxu1  ;;  %v9439_v2 = vand.u32 %v9414_v16, %v19188_v15  ;;  %v9853_v32 = vor.u32 %v9852_v60, %v9848_v5  ;;  %v17566_v30 = vld [vmem:[%s22882_s4 + $0x3b0] sm:$0xff]   ;;  %v17570_v20 = vld [vmem:[%s22882_s4 + $0x3b8] sm:$0xff]   ;;  %v17571_v16 = vld [vmem:[%s22882_s4 + $0x148] sm:$0xff]  }
 0x914   :  { %v9442_v38 = vand.u32 %v9415_v40, %v19188_v15  ;;  %v9697_v53 = vmax.f32 %v21801_v61, %v9679_v7  ;;  %v9865_v8 = vor.u32 %v9864_v36, %v9860_v48  ;;  %v17573_v0 = vld [vmem:[%s22882_s4 + $0x108] sm:$0xff]   ;;  %v17574_v40 = vld [vmem:[%s22882_s4 + $0x3c0] sm:$0xff]   ;;  %v17579_v5 = vld [vmem:[%s22882_s4 + $0x158] sm:$0xff]  }
 0x915   :  { %v21842_v24 = vpack.c.bf16 %v9696_v47, %v9692_v45  ;;  %v17572_v45 = vld [vmem:[%s22882_s4 + $0x400] sm:$0xff]   ;;  %v17576_v39 = vld [vmem:[%s22882_s4 + $0x408] sm:$0xff]   ;;  %v17577_v47 = vld [vmem:[%s22882_s4 + $0x110] sm:$0xff]  }
 0x916   :  { %9456 = vmatprep.subr.bf16.mxu0 %v9442_v38  ;;  %v21844_v9 = vpack.c.bf16 %v9697_v53, %v9693_v51  ;;  %v17575_v51 = vld [vmem:[%s22882_s4 + $0x150] sm:$0xff]   ;;  %v17578_v7 = vld [vmem:[%s22882_s4 + $0x3c8] sm:$0xff]   ;;  %v17583_v48 = vld [vmem:[%s22882_s4 + $0x160] sm:$0xff]  }
 0x917   :  { %9457 = vmatpush1.bf16.msra.mxu0 %v9439_v2  ;;  %v9855_v34 = vshll.u32 %v21842_v24, 16  ;;  %v17580_v60 = vld [vmem:[%s22882_s4 + $0x410] sm:$0xff]   ;;  %v17584_v36 = vld [vmem:[%s22882_s4 + $0x418] sm:$0xff]  }
 0x918   :  { %9576 = vmatprep.subr.bf16.mxu0 %v21770_v50  ;;  %v9867_v57 = vshll.u32 %v21844_v9, 16  ;;  %v9880_v1 = vshrl.u32 %v21844_v9, 16  ;;  %v17542_v50 = vld [vmem:[%s22882_s4 + $0x80] sm:$0xff]   ;;  %v17582_v53 = vld [vmem:[%s22882_s4 + $0x3d0] sm:$0xff]  }
 0x919   :  { %v9857_v61 = vrot.slane %v9855_v34, 1  ;;  %v17587_v34 = vld [vmem:[%s22882_s4 + $0x40] sm:$0xff]  }
 0x91a   :  { %14745 = vmatmul.mubr.msk.bf16.vlgmr.msra.gmra.mrb[156].mxu0 %vm3120_vm7, %v21616_v10  ;;  %v9869_v29 = vrot.slane %v9867_v57, 1 }
 0x91b   :  { %9577 = vmatpush1.bf16.msra.mxu0 %v21762_v37  ;;  %9492 = vmatprep.mubr.bf16.mxu0 %v22929_v58  ;;  %v21855_v26 = vsel %vm190_vm2, %v9853_v32, %v9857_v61  ;;  %v9877_v37 = vshrl.u32 %v21842_v24, 16  ;;  %v17586_v32 = vld [vmem:[%s22882_s4 + $0x3d8] sm:$0xff]  }
 0x91c   :  { %9578 = vmatprep.subr.bf16.mxu0 %v21796_v62  ;;  %v21862_v63 = vsel %vm190_vm2, %v9865_v8, %v9869_v29  ;;  %v21866_v10 = vor.u32 %v9880_v1, %v9869_v29  ;;  %v17543_v62 = vld [vmem:[%s22882_s4 + $0x88] sm:$0xff]  }
 0x91d   :  { %14846 = vmatprep.mubr.msk.bf16.mxu1 %vm3758_vm8, %v21862_v63  ;;  %v21880_v41 = vor.u32 %v9877_v37, %v9857_v61 }
 0x91e   :  { %10151 = vmatmul.mubr.bf16.vlgmr.msra.gmra.mrb[156].mxu1 %v21855_v26 }
 0x91f   :  { %9579 = vmatpush1.bf16.msra.mxu0 %v21788_v4  ;;  %10395 = vmatpush1.bf16.msra.mxu1 %v17542_v50  ;;  %v17544_v4 = vld [vmem:[%s22882_s4 + $0x90] sm:$0xff]  }
 0x920   :  { %9580 = vmatprep.subr.bf16.mxu0 %v21819_v23  ;;  %10396 = vmatprep.subr.bf16.mxu1 %v22929_v58  ;;  %v17547_v23 = vld [vmem:[%s22882_s4 + $0xa8] sm:$0xff]  }
 0x921   :  { %14847 = vmatprep.mubr.msk.bf16.mxu1 %vm3758_vm8, %v21866_v10 }
 0x922   :  { %14746 = vmatmul.mubr.msk.bf16.gmra.mrb[160].mxu0 %vm3120_vm7, %v21630_v46  ;;  %v17545_v46 = vld [vmem:[%s22882_s4 + $0x98] sm:$0xff]  }
 0x923   :  { %9581 = vmatpush1.bf16.msra.mxu0 %v21812_v12  ;;  %9608 = vmatprep.mubr.bf16.mxu0 %v22929_v58  ;;  %v17546_v12 = vld [vmem:[%s22882_s4 + $0xa0] sm:$0xff]  }
 0x924   :  { %9582 = vmatprep.subr.bf16.mxu0 %v9442_v38  ;;  %10397 = vmatpush1.bf16.msra.mxu1 %v17543_v62  ;;  %v17581_v38 = vld [vmem:[%s22882_s4 + $0x118] sm:$0xff]  }
 0x925   :  { %10398 = vmatprep.subr.bf16.mxu1 %v22929_v58 }
 0x926   :  { %10159 = vmatmul.mubr.bf16.gmra.mrb[160].mxu1 %v21880_v41 }
 0x927   :  { %9583 = vmatpush1.bf16.msra.mxu0 %v9439_v2  ;;  %14877 = vmatprep.mubr.msk.bf16.mxu1 %vm3758_vm8, %v21830_v28  ;;  %v17585_v2 = vld [vmem:[%s22882_s4 + $0x120] sm:$0xff]  }
 0x928   :  { %10399 = vmatpush1.bf16.msra.mxu1 %v17544_v4  ;;  %15607 = vmatprep.subr.bf16.mxu0 %v17555_v56 }
 0x929   :  { %10400 = vmatprep.subr.bf16.mxu1 %v22929_v58 }
 0x92a   :  { %14755 = vmatmul.mubr.msk.bf16.vlgmr.msra.gmra.mrb[164].mxu0 %vm3120_vm7, %v21642_v31  ;;  %v17548_v31 = vld [vmem:[%s22882_s4 + $0xb0] sm:$0xff]  }
 0x92b   :  { %9618 = vmatprep.mubr.bf16.mxu0 %v22929_v58  ;;  %15608 = vmatpush3.bf16.msra.mxu0 %v17557_v42 }
 0x92c   :  { %10401 = vmatpush1.bf16.msra.mxu1 %v17545_v46  ;;  %15609 = vmatprep.subr.bf16.mxu0 %v17559_v11 }
 0x92d   :  { %10402 = vmatprep.subr.bf16.mxu1 %v22929_v58 }
 0x92f   :  { %15610 = vmatpush3.bf16.msra.mxu0 %v17561_v33 }
 0x930   :  { %10403 = vmatpush1.bf16.msra.mxu1 %v17546_v12  ;;  %15611 = vmatprep.subr.bf16.mxu0 %v17563_v3 }
 0x931   :  { %10404 = vmatprep.subr.bf16.mxu1 %v22929_v58 }
 0x932   :  { %14756 = vmatmul.mubr.msk.bf16.gmra.mrb[168].mxu0 %vm3120_vm7, %v21653_v13  ;;  %v17551_v13 = vld [vmem:[%s22882_s4 + $0xc8] sm:$0xff]  }
 0x933   :  { %15612 = vmatpush3.bf16.msra.mxu0 %v17565_v17 }
 0x934   :  { %10405 = vmatpush1.bf16.msra.mxu1 %v17547_v23  ;;  %15613 = vmatprep.subr.bf16.mxu0 %v17567_v49 }
 0x935   :  { %10406 = vmatprep.subr.bf16.mxu1 %v22929_v58 }
 0x937   :  { %15614 = vmatpush3.bf16.msra.mxu0 %v17569_v19 }
 0x938   :  { %10407 = vmatpush1.bf16.msra.mxu1 %v17548_v31  ;;  %15615 = vmatprep.subr.bf16.mxu0 %v17571_v16 }
 0x939   :  { %10408 = vmatprep.subr.bf16.mxu1 %v22929_v58 }
 0x93b   :  { %15616 = vmatpush3.bf16.msra.mxu0 %v17573_v0 }
 0x93c   :  { %10409 = vmatpush1.bf16.msra.mxu1 %v17549_v52  ;;  %15617 = vmatprep.subr.bf16.mxu0 %v17575_v51 }
 0x93d   :  { %10410 = vmatprep.subr.bf16.mxu1 %v22929_v58 }
 0x93f   :  { %15618 = vmatpush3.bf16.msra.mxu0 %v17577_v47  ;;  %v17588_v47 = vld [vmem:[%s22882_s4] sm:$0xff]  }
 0x940   :  { %10411 = vmatpush1.bf16.msra.mxu1 %v17550_v35  ;;  %15619 = vmatprep.subr.bf16.mxu0 %v17579_v5 }
 0x941   :  { %10412 = vmatprep.subr.bf16.mxu1 %v22929_v58 }
 0x943   :  { %15620 = vmatpush3.bf16.msra.mxu0 %v17581_v38 }
 0x944   :  { %10413 = vmatpush1.bf16.msra.mxu1 %v17551_v13  ;;  %15621 = vmatprep.subr.bf16.mxu0 %v17583_v48  ;;  %v17591_v48 = vld [vmem:[%s22882_s4 + $0x8] sm:$0xff]  }
 0x945   :  { %10414 = vmatprep.subr.bf16.mxu1 %v22929_v58 }
 0x947   :  { %15622 = vmatpush3.bf16.msra.mxu0 %v17585_v2  ;;  %v17593_v2 = vld [vmem:[%s22882_s4 + $0x50] sm:$0xff]  }
 0x948   :  { %10415 = vmatpush1.bf16.msra.mxu1 %v17552_v22  ;;  %15635 = vmatprep.subr.bf16.mxu0 %v17587_v34  ;;  %v17594_v34 = vld [vmem:[%s22882_s4 + $0x10] sm:$0xff]  }
 0x949   :  { %10416 = vmatprep.subr.bf16.mxu1 %v22929_v58 }
 0x94c   :  { %10417 = vmatpush1.bf16.msra.mxu1 %v17553_v6 }
 0x94d   :  { %10418 = vmatprep.subr.bf16.mxu1 %v22929_v58 }
 0x950   :  { %10419 = vmatpush1.bf16.msra.mxu1 %v17554_v43 }
 0x951   :  { %15691 = vmatprep.subr.bf16.mxu1 %v17556_v14 }
 0x953   :  { %10427 = vmatmul.mubr.bf16.vlgmr.msra.gmra.mrb[164].mxu1 %v21828_v27 }
 0x954   :  { %14878 = vmatprep.mubr.msk.bf16.mxu1 %vm3758_vm8, %v21844_v9  ;;  %15692 = vmatpush3.bf16.msra.mxu1 %v17558_v59 }
 0x955   :  { %15693 = vmatprep.subr.bf16.mxu1 %v17560_v44 }
 0x958   :  { %15694 = vmatpush3.bf16.msra.mxu1 %v17562_v25 }
 0x959   :  { %15695 = vmatprep.subr.bf16.mxu1 %v17564_v18 }
 0x95b   :  { %10435 = vmatmul.mubr.bf16.gmra.mrb[168].mxu1 %v21842_v24 }
 0x95c   :  { %15696 = vmatpush3.bf16.msra.mxu1 %v17566_v30 }
 0x95d   :  { %15697 = vmatprep.subr.bf16.mxu1 %v17568_v54 }
 0x960   :  { %15698 = vmatpush3.bf16.msra.mxu1 %v17570_v20 }
 0x961   :  { %15699 = vmatprep.subr.bf16.mxu1 %v17572_v45 }
 0x964   :  { %15700 = vmatpush3.bf16.msra.mxu1 %v17574_v40 }
 0x965   :  { %15701 = vmatprep.subr.bf16.mxu1 %v17576_v39 }
 0x968   :  { %15702 = vmatpush3.bf16.msra.mxu1 %v17578_v7  ;;  %v17589_v7 = vld [vmem:[%s22882_s4 + $0x420] sm:$0xff]  }
 0x969   :  { %15703 = vmatprep.subr.bf16.mxu1 %v17580_v60 }
 0x96c   :  { %15704 = vmatpush3.bf16.msra.mxu1 %v17582_v53  ;;  %v17590_v53 = vld [vmem:[%s22882_s4 + $0x48] sm:$0xff]  }
 0x96d   :  { %15705 = vmatprep.subr.bf16.mxu1 %v17584_v36  ;;  %v17592_v36 = vld [vmem:[%s22882_s4 + $0x428] sm:$0xff]  }
 0x970   :  { %15706 = vmatpush3.bf16.msra.mxu1 %v17586_v32 }
 0x971   :  { %11162 = vmatprep.subr.bf16.mxu1 %v22929_v58 }
 0x9ed   :  { %v9484_v8 = vpop.f32.mrb[156].mxu0 }
 0x9ee   :  { %v9486_v57 = vpop.f32.mrb[157].mxu0 }
 0x9ef   :  { %v9488_v61 = vpop.f32.mrb[158].mxu0 }
 0x9f0   :  { %v9490_v1 = vpop.f32.mrb[159].mxu0 }
 0x9f5   :  { %v9494_v29 = vpop.f32.mrb[160].mxu0 }
 0x9f6   :  { %v9496_v50 = vpop.f32.mrb[161].mxu0 }
 0x9f7   :  { %v9498_v37 = vpop.f32.mrb[162].mxu0 }
 0x9f8   :  { %v9500_v62 = vpop.f32.mrb[163].mxu0 }
 0x9fd   :  { %v9610_v4 = vpop.f32.mrb[164].mxu0 }
 0x9fe   :  { %v9682_v46 = vmax.f32 %v9484_v8, %v9610_v4  ;;  %v9612_v12 = vpop.f32.mrb[165].mxu0  ;;  %v17595_v8 = vld [vmem:[%s22882_s4 + $0x430] sm:$0xff]   ;;  %v17603_v4 = vld [vmem:[%s22882_s4 + $0x28] sm:$0xff]  }
 0x9ff   :  { %v9683_v23 = vmax.f32 %v9486_v57, %v9612_v12  ;;  %v9614_v31 = vpop.f32.mrb[166].mxu0  ;;  %v22116_v12 = vpop.f32.mrb[156].mxu1 }
 0xa00   :  { %v9686_v52 = vmax.f32 %v9488_v61, %v9614_v31  ;;  %v9616_v35 = vpop.f32.mrb[167].mxu0  ;;  %v17596_v61 = vld [vmem:[%s22882_s4 + $0x58] sm:$0xff]   ;;  %v10154_v31 = vpop.f32.mrb[157].mxu1 }
 0xa01   :  { %v9687_v13 = vmax.f32 %v9490_v1, %v9616_v35  ;;  %v17597_v1 = vld [vmem:[%s22882_s4 + $0x18] sm:$0xff]   ;;  %v17607_v35 = vld [vmem:[%s22882_s4 + $0x450] sm:$0xff]  }
 0xa02   :  { %v22040_v22 = vpack.c.bf16 %v9686_v52, %v9682_v46  ;;  %v17604_v46 = vld [vmem:[%s22882_s4 + $0x448] sm:$0xff]   ;;  %v17606_v52 = vld [vmem:[%s22882_s4 + $0x30] sm:$0xff]  }
 0xa03   :  { %v22042_v6 = vpack.c.bf16 %v9687_v13, %v9683_v23  ;;  %v17605_v23 = vld [vmem:[%s22882_s4 + $0x70] sm:$0xff]   ;;  %v22128_v13 = vpop.f32.mrb[158].mxu1 }
 0xa04   :  { %v9826_v25 = vshll.u32 %v22040_v22, 16  ;;  %v9824_v16 = vshrl.u32 %v22040_v22, 16 }
 0xa05   :  { %v9620_v43 = vpop.f32.mrb[168].mxu0  ;;  %v9838_v11 = vshll.u32 %v22042_v6, 16  ;;  %v9836_v19 = vshrl.u32 %v22042_v6, 16 }
 0xa06   :  { %v9690_v56 = vmax.f32 %v9494_v29, %v9620_v43  ;;  %v9622_v14 = vpop.f32.mrb[169].mxu0  ;;  %v9828_v49 = vrot.slane %v9826_v25, 1  ;;  %v17598_v29 = vld [vmem:[%s22882_s4 + $0x438] sm:$0xff]  }
 0xa07   :  { %v9691_v42 = vmax.f32 %v9496_v50, %v9622_v14  ;;  %v9624_v59 = vpop.f32.mrb[170].mxu0  ;;  %v9840_v30 = vrot.slane %v9838_v11, 1  ;;  %v17599_v50 = vld [vmem:[%s22882_s4 + $0x60] sm:$0xff]   ;;  %v17608_v43 = vld [vmem:[%s22882_s4 + $0x78] sm:$0xff]  }
 0xa08   :  { %v9694_v44 = vmax.f32 %v9498_v37, %v9624_v59  ;;  %v9626_v33 = vpop.f32.mrb[171].mxu0  ;;  %v9829_v39 = vor.u32 %v9828_v49, %v9824_v16  ;;  %v17600_v37 = vld [vmem:[%s22882_s4 + $0x20] sm:$0xff]   ;;  %v17609_v59 = vld [vmem:[%s22882_s4 + $0x38] sm:$0xff]   ;;  %v17612_v49 = vld [vmem:[%s22882_s4 + $0x1d0] sm:$0xff]  }
 0xa09   :  { %v9695_v3 = vmax.f32 %v9500_v62, %v9626_v33  ;;  %v9841_v0 = vor.u32 %v9840_v30, %v9836_v19  ;;  %v17601_v62 = vld [vmem:[%s22882_s4 + $0x440] sm:$0xff]   ;;  %v17610_v11 = vld [vmem:[%s22882_s4 + $0x458] sm:$0xff]   ;;  %v17611_v33 = vld [vmem:[%s22882_s4 + $0x210] sm:$0xff]  }
 0xa0a   :  { %v22046_v18 = vpack.c.bf16 %v9694_v44, %v9690_v56  ;;  %v10157_v56 = vpop.f32.mrb[159].mxu1  ;;  %v17613_v19 = vld [vmem:[%s22882_s4 + $0x460] sm:$0xff]  }
 0xa0b   :  { %v22048_v17 = vpack.c.bf16 %v9695_v3, %v9691_v42  ;;  %v22134_v14 = vpop.f32.mrb[160].mxu1  ;;  %v17640_v56 = vld [vmem:[%s22882_s4 + $0x4a0] sm:$0xff]  }
 0xa0c   :  { %v9831_v54 = vshll.u32 %v22046_v18, 16  ;;  %v9871_v32 = vshrl.u32 %v22046_v18, 16  ;;  %v10162_v42 = vpop.f32.mrb[161].mxu1  ;;  %v22252_v31 = vrot.slane %v22046_v18, 1 }
 0xa0d   :  { %v9843_v20 = vshll.u32 %v22048_v17, 16  ;;  %v9874_v51 = vshrl.u32 %v22048_v17, 16  ;;  %v22142_v44 = vpop.f32.mrb[162].mxu1 }
 0xa0e   :  { %v9833_v45 = vrot.slane %v9831_v54, 1  ;;  %v10165_v25 = vpop.f32.mrb[163].mxu1 }
 0xa0f   :  { %v9845_v40 = vrot.slane %v9843_v20, 1  ;;  %v17614_v20 = vld [vmem:[%s22882_s4 + $0x218] sm:$0xff]   ;;  %v10518_v25 = vrot.slane %v21830_v28, 1 }
 0xa10   :  { %v9834_v38 = vsel %vm190_vm2, %v9829_v39, %v9833_v45  ;;  %v9873_v57 = vor.u32 %v9871_v32, %v9833_v45  ;;  %v17615_v45 = vld [vmem:[%s22882_s4 + $0x1d8] sm:$0xff]  }
 0xa11   :  { %v9846_v5 = vsel %vm190_vm2, %v9841_v0, %v9845_v40  ;;  %v9876_v60 = vor.u32 %v9874_v51, %v9845_v40  ;;  %v17616_v40 = vld [vmem:[%s22882_s4 + $0x468] sm:$0xff]   ;;  %v17617_v51 = vld [vmem:[%s22882_s4 + $0x220] sm:$0xff]   ;;  %v17622_v32 = vld [vmem:[%s22882_s4 + $0x478] sm:$0xff]   ;;  %vm6377_vm2 = vcmask 815748  }
 0xa12   :  { %10101 = vmatprep.mubr.bf16.mxu0 %v9846_v5  ;;  %11145 = vmatprep.mubr.bf16.mxu1 %v9846_v5 }
 0xa13   :  { %10102 = vmatmul.mubr.bf16.vlgmr.msra.gmra.mrb[172].mxu0 %v9834_v38  ;;  %11146 = vmatmul.mubr.bf16.vlgmr.msra.gmra.mrb[172].mxu1 %v9834_v38  ;;  %v17619_v38 = vld [vmem:[%s22882_s4 + $0x470] sm:$0xff]  }
 0xa14   :  { %15636 = vmatpush3.bf16.msra.mxu0 %v17588_v47  ;;  %11163 = vmatpush1.bf16.msra.mxu1 %v17589_v7  ;;  %v22177_v47 = vrot.slane %v22048_v17, 1  ;;  %v17618_v7 = vld [vmem:[%s22882_s4 + $0x1e0] sm:$0xff]  }
 0xa15   :  { %10109 = vmatprep.mubr.bf16.mxu0 %v9876_v60  ;;  %11153 = vmatprep.mubr.bf16.mxu1 %v9876_v60  ;;  %v10512_v60 = vrot.slane %v22042_v6, 1 }
 0xa16   :  { %15637 = vmatprep.subr.bf16.mxu0 %v17590_v53  ;;  %11164 = vmatprep.subr.bf16.mxu1 %v22929_v58  ;;  %v17620_v53 = vld [vmem:[%s22882_s4 + $0x228] sm:$0xff]  }
 0xa18   :  { %15638 = vmatpush3.bf16.msra.mxu0 %v17591_v48  ;;  %11165 = vmatpush1.bf16.msra.mxu1 %v17592_v36  ;;  %v10514_v36 = vsel %vm1121_vm4, %v10512_v60, %v22177_v47  ;;  %v17653_v60 = vld [vmem:[%s22882_s4 + $0x278] sm:$0xff]  }
 0xa19   :  { %15639 = vmatprep.subr.bf16.mxu0 %v17593_v2  ;;  %11166 = vmatprep.subr.bf16.mxu1 %v22929_v58  ;;  %v17621_v2 = vld [vmem:[%s22882_s4 + $0x1e8] sm:$0xff]  }
 0xa1b   :  { %10110 = vmatmul.mubr.bf16.gmra.mrb[176].mxu0 %v9873_v57  ;;  %11154 = vmatmul.mubr.bf16.gmra.mrb[176].mxu1 %v9873_v57  ;;  %v17625_v57 = vld [vmem:[%s22882_s4 + $0x480] sm:$0xff]  }
 0xa1c   :  { %15640 = vmatpush3.bf16.msra.mxu0 %v17594_v34  ;;  %11167 = vmatpush1.bf16.msra.mxu1 %v17595_v8  ;;  %v17623_v34 = vld [vmem:[%s22882_s4 + $0x230] sm:$0xff]  }
 0xa1d   :  { %10377 = vmatprep.mubr.bf16.mxu0 %v22042_v6  ;;  %15114 = vmatprep.mubr.msk.bf16.mxu1 %vm3758_vm8, %v21862_v63  ;;  %v17602_v63 = vld [vmem:[%s22882_s4 + $0x68] sm:$0xff]   ;;  %v17624_v8 = vld [vmem:[%s22882_s4 + $0x1f0] sm:$0xff]  }
 0xa1e   :  { %15641 = vmatprep.subr.bf16.mxu0 %v17596_v61  ;;  %11168 = vmatprep.subr.bf16.mxu1 %v22929_v58  ;;  %v17626_v61 = vld [vmem:[%s22882_s4 + $0x238] sm:$0xff]  }
 0xa20   :  { %15642 = vmatpush3.bf16.msra.mxu0 %v17597_v1  ;;  %11169 = vmatpush1.bf16.msra.mxu1 %v17598_v29  ;;  %v17627_v1 = vld [vmem:[%s22882_s4 + $0x4c8] sm:$0xff]   ;;  %v17628_v29 = vld [vmem:[%s22882_s4 + $0x1f8] sm:$0xff]  }
 0xa21   :  { %15643 = vmatprep.subr.bf16.mxu0 %v17599_v50  ;;  %11170 = vmatprep.subr.bf16.mxu1 %v22929_v58  ;;  %v17629_v50 = vld [vmem:[%s22882_s4 + $0x488] sm:$0xff]  }
 0xa24   :  { %15644 = vmatpush3.bf16.msra.mxu0 %v17600_v37  ;;  %11171 = vmatpush1.bf16.msra.mxu1 %v17601_v62  ;;  %v17630_v37 = vld [vmem:[%s22882_s4 + $0x240] sm:$0xff]   ;;  %v17631_v62 = vld [vmem:[%s22882_s4 + $0x4d0] sm:$0xff]  }
 0xa25   :  { %15645 = vmatprep.subr.bf16.mxu0 %v17602_v63  ;;  %11172 = vmatprep.subr.bf16.mxu1 %v22929_v58  ;;  %v17632_v63 = vld [vmem:[%s22882_s4 + $0x200] sm:$0xff]  }
 0xa26   :  { %v22148_v3 = vpop.f32.mrb[164].mxu1 }
 0xa27   :  { %v10430_v30 = vpop.f32.mrb[165].mxu1 }
 0xa28   :  { %15646 = vmatpush3.bf16.msra.mxu0 %v17603_v4  ;;  %11173 = vmatpush1.bf16.msra.mxu1 %v17604_v46  ;;  %v22153_v54 = vpop.f32.mrb[166].mxu1  ;;  %v17633_v4 = vld [vmem:[%s22882_s4 + $0x490] sm:$0xff]   ;;  %v17634_v46 = vld [vmem:[%s22882_s4 + $0x248] sm:$0xff]   ;;  %v22284_v30 = vrot.slane %v21844_v9, 1 }
 0xa29   :  { %15647 = vmatprep.subr.bf16.mxu0 %v17605_v23  ;;  %11174 = vmatprep.subr.bf16.mxu1 %v22929_v58  ;;  %v10433_v16 = vpop.f32.mrb[167].mxu1  ;;  %v17637_v23 = vld [vmem:[%s22882_s4 + $0x498] sm:$0xff]  }
 0xa2a   :  { %v10520_v16 = vsel %vm1121_vm4, %v10518_v25, %v22284_v30  ;;  %v17684_v25 = vld [vmem:[%s22882_s4 + $0x320] sm:$0xff]  }
 0xa2c   :  { %15648 = vmatpush3.bf16.msra.mxu0 %v17606_v52  ;;  %11175 = vmatpush1.bf16.msra.mxu1 %v17607_v35  ;;  %v17638_v52 = vld [vmem:[%s22882_s4 + $0x4e0] sm:$0xff]   ;;  %v10509_v35 = vrot.slane %v22040_v22, 1 }
 0xa2d   :  { %15649 = vmatprep.subr.bf16.mxu0 %v17608_v43  ;;  %11176 = vmatprep.subr.bf16.mxu1 %v22929_v58  ;;  %v17639_v43 = vld [vmem:[%s22882_s4 + $0x250] sm:$0xff]  }
 0xa2e   :  { %v22167_v0 = vpop.f32.mrb[168].mxu1  ;;  %v10511_v42 = vsel %vm1121_vm4, %v10509_v35, %v22252_v31  ;;  %v17675_v35 = vld [vmem:[%s22882_s4 + $0x308] sm:$0xff]  }
 0xa2f   :  { %v10438_v39 = vpop.f32.mrb[169].mxu1 }
 0xa30   :  { %15650 = vmatpush3.bf16.msra.mxu0 %v17609_v59  ;;  %11177 = vmatpush1.bf16.msra.mxu1 %v17610_v11  ;;  %v22182_v5 = vpop.f32.mrb[170].mxu1  ;;  %v17642_v59 = vld [vmem:[%s22882_s4 + $0x258] sm:$0xff]   ;;  %v17643_v11 = vld [vmem:[%s22882_s4 + $0x4a8] sm:$0xff]   ;;  %v17651_v39 = vld [vmem:[%s22882_s4 + $0x270] sm:$0xff]  }
 0xa31   :  { %15663 = vmatprep.subr.bf16.mxu0 %v17611_v33  ;;  %11178 = vmatprep.subr.bf16.mxu1 %v22929_v58  ;;  %v10441_v48 = vpop.f32.mrb[171].mxu1  ;;  %v17644_v33 = vld [vmem:[%s22882_s4 + $0x4f0] sm:$0xff]  }
 0xa32   :  { %v17656_v48 = vld [vmem:[%s22882_s4 + $0x510] sm:$0xff]  }
 0xa33   :  { %10378 = vmatmul.mubr.bf16.vlgmr.msra.gmra.mrb[180].mxu0 %v22040_v22 }
 0xa34   :  { %10385 = vmatprep.mubr.bf16.mxu0 %v22048_v17  ;;  %15664 = vmatpush3.bf16.msra.mxu0 %v17612_v49  ;;  %v17645_v49 = vld [vmem:[%s22882_s4 + $0x260] sm:$0xff]  }
 0xa35   :  { %11179 = vmatpush1.bf16.msra.mxu1 %v17613_v19  ;;  %15665 = vmatprep.subr.bf16.mxu0 %v17614_v20  ;;  %v17646_v19 = vld [vmem:[%s22882_s4 + $0x4b0] sm:$0xff]   ;;  %v17647_v20 = vld [vmem:[%s22882_s4 + $0x4f8] sm:$0xff]  }
 0xa36   :  { %11180 = vmatprep.subr.bf16.mxu1 %v22929_v58 }
 0xa38   :  { %15666 = vmatpush3.bf16.msra.mxu0 %v17615_v45  ;;  %v17648_v45 = vld [vmem:[%s22882_s4 + $0x268] sm:$0xff]  }
 0xa39   :  { %11181 = vmatpush1.bf16.msra.mxu1 %v17616_v40  ;;  %15667 = vmatprep.subr.bf16.mxu0 %v17617_v51  ;;  %v17649_v40 = vld [vmem:[%s22882_s4 + $0x4b8] sm:$0xff]   ;;  %v17650_v51 = vld [vmem:[%s22882_s4 + $0x500] sm:$0xff]  }
 0xa3a   :  { %11182 = vmatprep.subr.bf16.mxu1 %v22929_v58 }
 0xa3b   :  { %10386 = vmatmul.mubr.bf16.gmra.mrb[184].mxu0 %v22046_v18 }
 0xa3c   :  { %15668 = vmatpush3.bf16.msra.mxu0 %v17618_v7  ;;  %10739 = vmatprep.mubr.bf16.mxu0 %v10514_v36  ;;  %v17652_v7 = vld [vmem:[%s22882_s4 + $0x4c0] sm:$0xff]  }
 0xa3d   :  { %11183 = vmatpush1.bf16.msra.mxu1 %v17619_v38  ;;  %15669 = vmatprep.subr.bf16.mxu0 %v17620_v53  ;;  %v17654_v38 = vld [vmem:[%s22882_s4 + $0x508] sm:$0xff]   ;;  %v17655_v53 = vld [vmem:[%s22882_s4 + $0x280] sm:$0xff]  }
 0xa3e   :  { %11184 = vmatprep.subr.bf16.mxu1 %v22929_v58 }
 0xa40   :  { %15670 = vmatpush3.bf16.msra.mxu0 %v17621_v2  ;;  %v17659_v2 = vld [vmem:[%s22882_s4 + $0x290] sm:$0xff]  }
 0xa41   :  { %11185 = vmatpush1.bf16.msra.mxu1 %v17622_v32  ;;  %15671 = vmatprep.subr.bf16.mxu0 %v17623_v34  ;;  %v17660_v32 = vld [vmem:[%s22882_s4 + $0x520] sm:$0xff]   ;;  %v17661_v34 = vld [vmem:[%s22882_s4 + $0x298] sm:$0xff]  }
 0xa42   :  { %11186 = vmatprep.subr.bf16.mxu1 %v22929_v58 }
 0xa44   :  { %15672 = vmatpush3.bf16.msra.mxu0 %v17624_v8  ;;  %v17662_v8 = vld [vmem:[%s22882_s4 + $0x528] sm:$0xff]  }
 0xa45   :  { %11187 = vmatpush1.bf16.msra.mxu1 %v17625_v57  ;;  %15673 = vmatprep.subr.bf16.mxu0 %v17626_v61  ;;  %v17663_v57 = vld [vmem:[%s22882_s4 + $0x2a0] sm:$0xff]   ;;  %v17664_v61 = vld [vmem:[%s22882_s4 + $0x530] sm:$0xff]  }
 0xa46   :  { %15747 = vmatprep.subr.bf16.mxu1 %v17627_v1  ;;  %v17665_v1 = vld [vmem:[%s22882_s4 + $0x2a8] sm:$0xff]  }
 0xa48   :  { %11195 = vmatmul.mubr.bf16.vlgmr.msra.gmra.mrb[180].mxu1 %v21855_v26  ;;  %15674 = vmatpush3.bf16.msra.mxu0 %v17628_v29  ;;  %v17635_v26 = vld [vmem:[%s22882_s4 + $0x4d8] sm:$0xff]  }
 0xa49   :  { %15115 = vmatprep.mubr.msk.bf16.mxu1 %vm3758_vm8, %v21866_v10  ;;  %15748 = vmatpush3.bf16.msra.mxu1 %v17629_v50  ;;  %v17636_v10 = vld [vmem:[%s22882_s4 + $0x208] sm:$0xff]   ;;  %v17666_v29 = vld [vmem:[%s22882_s4 + $0x538] sm:$0xff]   ;;  %v17667_v50 = vld [vmem:[%s22882_s4 + $0x2b0] sm:$0xff]  }
 0xa4a   :  { %15675 = vmatprep.subr.bf16.mxu0 %v17630_v37  ;;  %15749 = vmatprep.subr.bf16.mxu1 %v17631_v62  ;;  %v17668_v37 = vld [vmem:[%s22882_s4 + $0x540] sm:$0xff]   ;;  %v17669_v62 = vld [vmem:[%s22882_s4 + $0x2f8] sm:$0xff]  }
 0xa4c   :  { %15676 = vmatpush3.bf16.msra.mxu0 %v17632_v63  ;;  %v10515_v63 = vrot.slane %v21828_v27, 1 }
 0xa4d   :  { %15750 = vmatpush3.bf16.msra.mxu1 %v17633_v4  ;;  %15677 = vmatprep.subr.bf16.mxu0 %v17634_v46  ;;  %v10516_v4 = vrot.slane %v21842_v24, 1  ;;  %v17670_v46 = vld [vmem:[%s22882_s4 + $0x2b8] sm:$0xff]  }
 0xa4e   :  { %15751 = vmatprep.subr.bf16.mxu1 %v17635_v26  ;;  %v17671_v26 = vld [vmem:[%s22882_s4 + $0x548] sm:$0xff]  }
 0xa50   :  { %11203 = vmatmul.mubr.bf16.gmra.mrb[184].mxu1 %v21880_v41  ;;  %15678 = vmatpush3.bf16.msra.mxu0 %v17636_v10  ;;  %v17641_v41 = vld [vmem:[%s22882_s4 + $0x4e8] sm:$0xff]   ;;  %v17672_v10 = vld [vmem:[%s22882_s4 + $0x300] sm:$0xff]  }
 0xa51   :  { %15752 = vmatpush3.bf16.msra.mxu1 %v17637_v23  ;;  %11747 = vmatprep.mubr.bf16.mxu1 %v10514_v36  ;;  %v17657_v36 = vld [vmem:[%s22882_s4 + $0x288] sm:$0xff]   ;;  %v10517_v23 = vsel %vm1121_vm4, %v10515_v63, %v10516_v4  ;;  %vm12911_vm4 = vcmask 261120  }
 0xa52   :  { %10756 = vmatprep.subr.bf16.mxu0 %v22929_v58  ;;  %15753 = vmatprep.subr.bf16.mxu1 %v17638_v52  ;;  %v17674_v52 = vld [vmem:[%s22882_s4 + $0x550] sm:$0xff]  }
 0xa53   :  { %10740 = vmatmul.mubr.bf16.vlgmr.msra.gmra.mrb[188].mxu0 %v10511_v42 }
 0xa54   :  { %10747 = vmatprep.mubr.bf16.mxu0 %v22177_v47  ;;  %10757 = vmatpush1.bf16.msra.mxu0 %v17639_v43  ;;  %v17676_v43 = vld [vmem:[%s22882_s4 + $0x2c8] sm:$0xff]  }
 0xa55   :  { %15754 = vmatpush3.bf16.msra.mxu1 %v17640_v56  ;;  %10758 = vmatprep.subr.bf16.mxu0 %v22929_v58  ;;  %v17677_v56 = vld [vmem:[%s22882_s4 + $0x558] sm:$0xff]  }
 0xa56   :  { %15755 = vmatprep.subr.bf16.mxu1 %v17641_v41  ;;  %v17679_v41 = vld [vmem:[%s22882_s4 + $0x2d0] sm:$0xff]  }
 0xa58   :  { %10759 = vmatpush1.bf16.msra.mxu0 %v17642_v59  ;;  %v17680_v59 = vld [vmem:[%s22882_s4 + $0x560] sm:$0xff]  }
 0xa59   :  { %15756 = vmatpush3.bf16.msra.mxu1 %v17643_v11  ;;  %10760 = vmatprep.subr.bf16.mxu0 %v22929_v58  ;;  %v17681_v11 = vld [vmem:[%s22882_s4 + $0x318] sm:$0xff]  }
 0xa5a   :  { %15757 = vmatprep.subr.bf16.mxu1 %v17644_v33  ;;  %v17683_v33 = vld [vmem:[%s22882_s4 + $0x568] sm:$0xff]  }
 0xa5b   :  { %10748 = vmatmul.mubr.bf16.gmra.mrb[192].mxu0 %v22252_v31 }
 0xa5c   :  { %10761 = vmatpush1.bf16.msra.mxu0 %v17645_v49  ;;  %14966 = vmatprep.mubr.msk.bf16.mxu0 %vm3758_vm8, %v10520_v16  ;;  %v17685_v49 = vld [vmem:[%s22882_s4 + $0x2e0] sm:$0xff]  }
 0xa5d   :  { %15758 = vmatpush3.bf16.msra.mxu1 %v17646_v19  ;;  %10762 = vmatprep.subr.bf16.mxu0 %v22929_v58  ;;  %v17686_v19 = vld [vmem:[%s22882_s4 + $0x328] sm:$0xff]  }
 0xa5e   :  { %15759 = vmatprep.subr.bf16.mxu1 %v17647_v20  ;;  %v17687_v20 = vld [vmem:[%s22882_s4 + $0x2e8] sm:$0xff]  }
 0xa60   :  { %10763 = vmatpush1.bf16.msra.mxu0 %v17648_v45  ;;  %v17689_v45 = vld [vmem:[%s22882_s4 + $0x2f0] sm:$0xff]  }
 0xa61   :  { %15760 = vmatpush3.bf16.msra.mxu1 %v17649_v40  ;;  %10764 = vmatprep.subr.bf16.mxu0 %v22929_v58  ;;  %v17690_v40 = vld [vmem:[%s22882_s4 + $0x338] sm:$0xff]  }
 0xa62   :  { %15761 = vmatprep.subr.bf16.mxu1 %v17650_v51  ;;  %v17692_v51 = vld [vmem:[%s22882_s4 + $0x348] sm:$0xff]  }
 0xa64   :  { %10765 = vmatpush1.bf16.msra.mxu0 %v17651_v39  ;;  %v17697_v39 = vld [vmem:[%s22882_s4 + $0x370] sm:$0xff]  }
 0xa65   :  { %15762 = vmatpush3.bf16.msra.mxu1 %v17652_v7  ;;  %10766 = vmatprep.subr.bf16.mxu0 %v22929_v58  ;;  %v17698_v7 = vld [vmem:[%s22882_s4 + $0x378] sm:$0xff]  }
 0xa66   :  { %11764 = vmatprep.subr.bf16.mxu1 %v22929_v58 }
 0xa68   :  { %11748 = vmatmul.mubr.bf16.vlgmr.msra.gmra.mrb[188].mxu1 %v10511_v42  ;;  %10767 = vmatpush1.bf16.msra.mxu0 %v17653_v60  ;;  %v17678_v42 = vld [vmem:[%s22882_s4 + $0x310] sm:$0xff]   ;;  %v17699_v60 = vld [vmem:[%s22882_s4 + $0x380] sm:$0xff]  }
 0xa69   :  { %11755 = vmatprep.mubr.bf16.mxu1 %v22177_v47  ;;  %11765 = vmatpush1.bf16.msra.mxu1 %v17654_v38  ;;  %v17658_v47 = vld [vmem:[%s22882_s4 + $0x518] sm:$0xff]   ;;  %v17700_v38 = vld [vmem:[%s22882_s4 + $0x388] sm:$0xff]  }
 0xa6a   :  { %10768 = vmatprep.subr.bf16.mxu0 %v22929_v58  ;;  %11766 = vmatprep.subr.bf16.mxu1 %v22929_v58 }
 0xa6c   :  { %10769 = vmatpush1.bf16.msra.mxu0 %v17655_v53  ;;  %v17701_v53 = vld [vmem:[%s22882_s4 + $0x390] sm:$0xff]  }
 0xa6d   :  { %11767 = vmatpush1.bf16.msra.mxu1 %v17656_v48  ;;  %10770 = vmatprep.subr.bf16.mxu0 %v22929_v58  ;;  %v17702_v48 = vld [vmem:[%s22882_s4 + $0x398] sm:$0xff]  }
 0xa6e   :  { %11768 = vmatprep.subr.bf16.mxu1 %v22929_v58 }
 0xa70   :  { %11756 = vmatmul.mubr.bf16.gmra.mrb[192].mxu1 %v22252_v31  ;;  %10771 = vmatpush1.bf16.msra.mxu0 %v17657_v36  ;;  %v17673_v31 = vld [vmem:[%s22882_s4 + $0x2c0] sm:$0xff]  }
 0xa71   :  { %11769 = vmatpush1.bf16.msra.mxu1 %v17658_v47  ;;  %15234 = vmatprep.mubr.msk.bf16.mxu1 %vm3758_vm8, %v10520_v16  ;;  %v17688_v16 = vld [vmem:[%s22882_s4 + $0x330] sm:$0xff]  }
 0xa72   :  { %10772 = vmatprep.subr.bf16.mxu0 %v22929_v58  ;;  %11770 = vmatprep.subr.bf16.mxu1 %v22929_v58 }
 0xa74   :  { %10773 = vmatpush1.bf16.msra.mxu0 %v17659_v2 }
 0xa75   :  { %11771 = vmatpush1.bf16.msra.mxu1 %v17660_v32  ;;  %10774 = vmatprep.subr.bf16.mxu0 %v22929_v58 }
 0xa76   :  { %11772 = vmatprep.subr.bf16.mxu1 %v22929_v58 }
 0xa78   :  { %10775 = vmatpush1.bf16.msra.mxu0 %v17661_v34 }
 0xa79   :  { %11773 = vmatpush1.bf16.msra.mxu1 %v17662_v8  ;;  %10776 = vmatprep.subr.bf16.mxu0 %v22929_v58 }
 0xa7a   :  { %11774 = vmatprep.subr.bf16.mxu1 %v22929_v58 }
 0xa7c   :  { %10777 = vmatpush1.bf16.msra.mxu0 %v17663_v57 }
 0xa7d   :  { %11775 = vmatpush1.bf16.msra.mxu1 %v17664_v61  ;;  %10778 = vmatprep.subr.bf16.mxu0 %v22929_v58 }
 0xa7e   :  { %11776 = vmatprep.subr.bf16.mxu1 %v22929_v58 }
 0xa80   :  { %10779 = vmatpush1.bf16.msra.mxu0 %v17665_v1 }
 0xa81   :  { %11777 = vmatpush1.bf16.msra.mxu1 %v17666_v29  ;;  %10780 = vmatprep.subr.bf16.mxu0 %v22929_v58 }
 0xa82   :  { %11778 = vmatprep.subr.bf16.mxu1 %v22929_v58 }
 0xa84   :  { %10781 = vmatpush1.bf16.msra.mxu0 %v17667_v50 }
 0xa85   :  { %11779 = vmatpush1.bf16.msra.mxu1 %v17668_v37  ;;  %15719 = vmatprep.subr.bf16.mxu0 %v17669_v62 }
 0xa86   :  { %11780 = vmatprep.subr.bf16.mxu1 %v22929_v58 }
 0xa87   :  { %10789 = vmatmul.mubr.bf16.vlgmr.msra.gmra.mrb[196].mxu0 %v10517_v23 }
 0xa88   :  { %14967 = vmatprep.mubr.msk.bf16.mxu0 %vm3758_vm8, %v22284_v30  ;;  %15720 = vmatpush3.bf16.msra.mxu0 %v17670_v46 }
 0xa89   :  { %11781 = vmatpush1.bf16.msra.mxu1 %v17671_v26  ;;  %15721 = vmatprep.subr.bf16.mxu0 %v17672_v10 }
 0xa8a   :  { %11782 = vmatprep.subr.bf16.mxu1 %v22929_v58 }
 0xa8c   :  { %15722 = vmatpush3.bf16.msra.mxu0 %v17673_v31 }
 0xa8d   :  { %11783 = vmatpush1.bf16.msra.mxu1 %v17674_v52  ;;  %15723 = vmatprep.subr.bf16.mxu0 %v17675_v35 }
 0xa8e   :  { %11784 = vmatprep.subr.bf16.mxu1 %v22929_v58 }
 0xa8f   :  { %10797 = vmatmul.mubr.bf16.gmra.mrb[200].mxu0 %v10516_v4 }
 0xa90   :  { %15724 = vmatpush3.bf16.msra.mxu0 %v17676_v43  ;;  %11417 = vmatprep.mubr.bf16.mxu0 %v22042_v6  ;;  %v17682_v6 = vld [vmem:[%s22882_s4 + $0x2d8] sm:$0xff]  }
 0xa91   :  { %11785 = vmatpush1.bf16.msra.mxu1 %v17677_v56  ;;  %15725 = vmatprep.subr.bf16.mxu0 %v17678_v42 }
 0xa92   :  { %11786 = vmatprep.subr.bf16.mxu1 %v22929_v58 }
 0xa94   :  { %15726 = vmatpush3.bf16.msra.mxu0 %v17679_v41 }
 0xa95   :  { %11787 = vmatpush1.bf16.msra.mxu1 %v17680_v59  ;;  %15727 = vmatprep.subr.bf16.mxu0 %v17681_v11 }
 0xa96   :  { %11788 = vmatprep.subr.bf16.mxu1 %v22929_v58 }
 0xa98   :  { %15728 = vmatpush3.bf16.msra.mxu0 %v17682_v6 }
 0xa99   :  { %11789 = vmatpush1.bf16.msra.mxu1 %v17683_v33  ;;  %15729 = vmatprep.subr.bf16.mxu0 %v17684_v25 }
 0xa9a   :  { %16023 = vmatprep.subr.bf16.mxu1 %v17774_v21 }
 0xa9c   :  { %11797 = vmatmul.mubr.bf16.vlgmr.msra.gmra.mrb[196].mxu1 %v10517_v23  ;;  %15730 = vmatpush3.bf16.msra.mxu0 %v17685_v49 }
 0xa9d   :  { %15235 = vmatprep.mubr.msk.bf16.mxu1 %vm3758_vm8, %v22284_v30  ;;  %15731 = vmatprep.subr.bf16.mxu0 %v17686_v19  ;;  %v17691_v30 = vld [vmem:[%s22882_s4 + $0x340] sm:$0xff]  }
 0xaa0   :  { %15732 = vmatpush3.bf16.msra.mxu0 %v17687_v20 }
 0xaa1   :  { %15733 = vmatprep.subr.bf16.mxu0 %v17688_v16 }
 0xaa4   :  { %11805 = vmatmul.mubr.bf16.gmra.mrb[200].mxu1 %v10516_v4  ;;  %15734 = vmatpush3.bf16.msra.mxu0 %v17689_v45 }
 0xaa5   :  { %11434 = vmatprep.subr.bf16.mxu0 %v22929_v58  ;;  %16037 = vmatprep.mubr.msk.bf16.mxu1 %vm17775_vm9, %v17774_v21 }
 0xaa7   :  { %11418 = vmatmul.mubr.bf16.vlgmr.msra.gmra.mrb[204].mxu0 %v22040_v22  ;;  %v17693_v22 = vld [vmem:[%s22882_s4 + $0x350] sm:$0xff]  }
 0xaa8   :  { %11425 = vmatprep.mubr.bf16.mxu0 %v22048_v17  ;;  %11435 = vmatpush1.bf16.msra.mxu0 %v17690_v40  ;;  %v17694_v17 = vld [vmem:[%s22882_s4 + $0x358] sm:$0xff]  }
 0xaa9   :  { %11436 = vmatprep.subr.bf16.mxu0 %v22929_v58 }
 0xaac   :  { %11437 = vmatpush1.bf16.msra.mxu0 %v17691_v30 }
 0xaad   :  { %11438 = vmatprep.subr.bf16.mxu0 %v22929_v58 }
 0xaaf   :  { %11426 = vmatmul.mubr.bf16.gmra.mrb[208].mxu0 %v22046_v18  ;;  %v17695_v18 = vld [vmem:[%s22882_s4 + $0x360] sm:$0xff]  }
 0xab0   :  { %11439 = vmatpush1.bf16.msra.mxu0 %v17692_v51  ;;  %15145 = vmatprep.mubr.msk.bf16.mxu0 %vm3758_vm8, %v21830_v28  ;;  %v17696_v28 = vld [vmem:[%s22882_s4 + $0x368] sm:$0xff]  }
 0xab1   :  { %11440 = vmatprep.subr.bf16.mxu0 %v22929_v58 }
 0xab4   :  { %11441 = vmatpush1.bf16.msra.mxu0 %v17693_v22 }
 0xab5   :  { %11442 = vmatprep.subr.bf16.mxu0 %v22929_v58 }
 0xab8   :  { %11443 = vmatpush1.bf16.msra.mxu0 %v17694_v17 }
 0xab9   :  { %11444 = vmatprep.subr.bf16.mxu0 %v22929_v58 }
 0xabc   :  { %11445 = vmatpush1.bf16.msra.mxu0 %v17695_v18 }
 0xabd   :  { %11446 = vmatprep.subr.bf16.mxu0 %v22929_v58 }
 0xac0   :  { %11447 = vmatpush1.bf16.msra.mxu0 %v17696_v28 }
 0xac1   :  { %11448 = vmatprep.subr.bf16.mxu0 %v22929_v58 }
 0xac4   :  { %11449 = vmatpush1.bf16.msra.mxu0 %v17697_v39 }
 0xac5   :  { %11450 = vmatprep.subr.bf16.mxu0 %v22929_v58 }
 0xac8   :  { %11451 = vmatpush1.bf16.msra.mxu0 %v17698_v7 }
 0xac9   :  { %11452 = vmatprep.subr.bf16.mxu0 %v22929_v58 }
 0xacc   :  { %11453 = vmatpush1.bf16.msra.mxu0 %v17699_v60 }
 0xacd   :  { %11454 = vmatprep.subr.bf16.mxu0 %v22929_v58 }
 0xad0   :  { %11455 = vmatpush1.bf16.msra.mxu0 %v17700_v38 }
 0xad1   :  { %11456 = vmatprep.subr.bf16.mxu0 %v22929_v58 }
 0xad4   :  { %11457 = vmatpush1.bf16.msra.mxu0 %v17701_v53 }
 0xad5   :  { %11458 = vmatprep.subr.bf16.mxu0 %v22929_v58 }
 0xad8   :  { %11459 = vmatpush1.bf16.msra.mxu0 %v17702_v48 }
 0xad9   :  { %15989 = vmatprep.subr.bf16.mxu0 %v17774_v21 }
 0xadb   :  { %11467 = vmatmul.mubr.bf16.vlgmr.msra.gmra.mrb[212].mxu0 %v21828_v27 }
 0xadc   :  { %15146 = vmatprep.mubr.msk.bf16.mxu0 %vm3758_vm8, %v21844_v9 }
 0xae3   :  { %11475 = vmatmul.mubr.bf16.gmra.mrb[216].mxu0 %v21842_v24 }
 0xae4   :  { %15993 = vmatprep.mubr.msk.bf16.mxu0 %vm17775_vm9, %v17774_v21 }
 0xae6   :  { %v15623_v36 = vpop.f32.mrb[172].mxu0  ;;  %v15707_v47 = vpop.f32.mrb[172].mxu1 }
 0xae7   :  { %v15624_v2 = vpop.f32.mrb[173].mxu0  ;;  %v15708_v32 = vpop.f32.mrb[173].mxu1 }
 0xae8   :  { %v15625_v34 = vadd.f32 %v15624_v2, %v15623_v36  ;;  %v15709_v8 = vadd.f32 %v15708_v32, %v15707_v47  ;;  %v15626_v58 = vpop.f32.mrb[174].mxu0  ;;  %v15710_v57 = vpop.f32.mrb[174].mxu1 }
 0xae9   :  { %v15627_v61 = vpop.f32.mrb[175].mxu0  ;;  %v15711_v1 = vpop.f32.mrb[175].mxu1 }
 0xaea   :  { %v10153_v27 = vadd.f32 %v15625_v34, %v22116_v12  ;;  %v15628_v29 = vadd.f32 %v15627_v61, %v15626_v58  ;;  %v15712_v50 = vadd.f32 %v15711_v1, %v15710_v57 }
 0xaec   :  { %v10156_v9 = vadd.f32 %v15628_v29, %v22128_v13 }
 0xaee   :  { %v15629_v24 = vpop.f32.mrb[176].mxu0  ;;  %v15713_v37 = vpop.f32.mrb[176].mxu1 }
 0xaef   :  { %v15630_v62 = vpop.f32.mrb[177].mxu0  ;;  %v15714_v63 = vpop.f32.mrb[177].mxu1 }
 0xaf0   :  { %v15631_v4 = vadd.f32 %v15630_v62, %v15629_v24  ;;  %v15715_v46 = vadd.f32 %v15714_v63, %v15713_v37  ;;  %v15632_v26 = vpop.f32.mrb[178].mxu0  ;;  %v15716_v10 = vpop.f32.mrb[178].mxu1 }
 0xaf1   :  { %v15633_v23 = vpop.f32.mrb[179].mxu0  ;;  %v15717_v31 = vpop.f32.mrb[179].mxu1 }
 0xaf2   :  { %v10161_v52 = vadd.f32 %v15631_v4, %v22134_v14  ;;  %v15634_v35 = vadd.f32 %v15633_v23, %v15632_v26  ;;  %v15718_v43 = vadd.f32 %v15717_v31, %v15716_v10  ;;  %v17705_v31 = vld [vmem:[%s22884_s7] sm:$0xff]  }
 0xaf3   :  { %16024 = vmatpush3.bf16.msra.mxu1 %v17705_v31 }
 0xaf4   :  { %v10164_v12 = vadd.f32 %v15634_v35, %v22142_v44  ;;  %16025 = vmatprep.subr.bf16.mxu1 %v17774_v21  ;;  %v17708_v35 = vld [vmem:[%s22884_s7 + $0x10] sm:$0xff]  }
 0xb06   :  { %v15651_v56 = vpop.f32.mrb[180].mxu0 }
 0xb07   :  { %v15652_v42 = vpop.f32.mrb[181].mxu0 }
 0xb08   :  { %v15653_v41 = vadd.f32 %v15652_v42, %v15651_v56  ;;  %v15654_v13 = vpop.f32.mrb[182].mxu0 }
 0xb09   :  { %v15655_v59 = vpop.f32.mrb[183].mxu0 }
 0xb0a   :  { %v10380_v11 = vadd.f32 %v15653_v41, %v10153_v27  ;;  %v15656_v6 = vadd.f32 %v15655_v59, %v15654_v13  ;;  %v17710_v41 = vld [vmem:[%s22884_s7 + $0x18] sm:$0xff]  }
 0xb0c   :  { %v10383_v33 = vadd.f32 %v15656_v6, %v10156_v9  ;;  %v10429_v25 = vadd.f32 %v22148_v3, %v10380_v11 }
 0xb0e   :  { %v15657_v49 = vpop.f32.mrb[184].mxu0  ;;  %v22533_v19 = vadd.f32 %v22153_v54, %v10383_v33 }
 0xb0f   :  { %v15658_v20 = vpop.f32.mrb[185].mxu0 }
 0xb10   :  { %v15659_v14 = vadd.f32 %v15658_v20, %v15657_v49  ;;  %v15660_v16 = vpop.f32.mrb[186].mxu0 }
 0xb11   :  { %v15661_v45 = vpop.f32.mrb[187].mxu0 }
 0xb12   :  { %v10388_v40 = vadd.f32 %v15659_v14, %v10161_v52  ;;  %v15662_v44 = vadd.f32 %v15661_v45, %v15660_v16  ;;  %v17706_v52 = vld [vmem:[%s22884_s7 + $0x8] sm:$0xff]  }
 0xb13   :  { %16026 = vmatpush3.bf16.msra.mxu1 %v17706_v52 }
 0xb14   :  { %v10391_v30 = vadd.f32 %v15662_v44, %v10164_v12  ;;  %v10437_v51 = vadd.f32 %v22167_v0, %v10388_v40  ;;  %16027 = vmatprep.subr.bf16.mxu1 %v17774_v21 }
 0xb16   :  { %v22537_v22 = vadd.f32 %v22182_v5, %v10391_v30 }
 0xb17   :  { %16028 = vmatpush3.bf16.msra.mxu1 %v17708_v35 }
 0xb18   :  { %16029 = vmatprep.subr.bf16.mxu1 %v17774_v21 }
 0xb1b   :  { %v11196_v17 = vpop.f32.mrb[180].mxu1  ;;  %16030 = vmatpush3.bf16.msra.mxu1 %v17710_v41 }
 0xb1c   :  { %v22539_v18 = vadd.f32 %v15709_v8, %v11196_v17  ;;  %v11198_v3 = vpop.f32.mrb[181].mxu1  ;;  %16031 = vmatprep.subr.bf16.mxu1 %v17774_v21 }
 0xb1d   :  { %v11199_v28 = vpop.f32.mrb[182].mxu1 }
 0xb1e   :  { %v22541_v39 = vadd.f32 %v15712_v50, %v11199_v28  ;;  %v11201_v54 = vpop.f32.mrb[183].mxu1 }
 0xb23   :  { %v11204_v7 = vpop.f32.mrb[184].mxu1 }
 0xb24   :  { %v22543_v60 = vadd.f32 %v15715_v46, %v11204_v7  ;;  %v11206_v38 = vpop.f32.mrb[185].mxu1 }
 0xb25   :  { %v11207_v53 = vpop.f32.mrb[186].mxu1 }
 0xb26   :  { %v22545_v48 = vadd.f32 %v15718_v43, %v11207_v53  ;;  %v11209_v36 = vpop.f32.mrb[187].mxu1  ;;  %v15679_v0 = vpop.f32.mrb[188].mxu0 }
 0xb27   :  { %v15680_v47 = vpop.f32.mrb[189].mxu0 }
 0xb28   :  { %v15681_v5 = vadd.f32 %v15680_v47, %v15679_v0  ;;  %v15682_v2 = vpop.f32.mrb[190].mxu0 }
 0xb29   :  { %v15683_v32 = vpop.f32.mrb[191].mxu0 }
 0xb2a   :  { %v15684_v34 = vadd.f32 %v15683_v32, %v15682_v2 }
 0xb2e   :  { %v15685_v8 = vpop.f32.mrb[192].mxu0 }
 0xb2f   :  { %v15686_v58 = vpop.f32.mrb[193].mxu0 }
 0xb30   :  { %v15687_v57 = vadd.f32 %v15686_v58, %v15685_v8  ;;  %v15688_v61 = vpop.f32.mrb[194].mxu0 }
 0xb31   :  { %v15689_v1 = vpop.f32.mrb[195].mxu0 }
 0xb32   :  { %v15690_v27 = vadd.f32 %v15689_v1, %v15688_v61 }
 0xb3b   :  { %v15763_v29 = vpop.f32.mrb[188].mxu1 }
 0xb3c   :  { %v15764_v50 = vpop.f32.mrb[189].mxu1 }
 0xb3d   :  { %v15765_v9 = vadd.f32 %v15764_v50, %v15763_v29  ;;  %v15766_v24 = vpop.f32.mrb[190].mxu1 }
 0xb3e   :  { %v15767_v37 = vpop.f32.mrb[191].mxu1 }
 0xb3f   :  { %v15768_v62 = vadd.f32 %v15767_v37, %v15766_v24  ;;  %v14968_v24 = vld [vmem:[%s22885_s5] ss:$0 sm:$0xff] }
 0xb43   :  { %v15769_v63 = vpop.f32.mrb[192].mxu1 }
 0xb44   :  { %v15770_v4 = vpop.f32.mrb[193].mxu1 }
 0xb45   :  { %v15771_v46 = vadd.f32 %v15770_v4, %v15769_v63  ;;  %v15772_v26 = vpop.f32.mrb[194].mxu1 }
 0xb46   :  { %v15773_v10 = vpop.f32.mrb[195].mxu1 }
 0xb47   :  { %v15774_v23 = vadd.f32 %v15773_v10, %v15772_v26 }
 0xb5a   :  { %v10790_v43 = vpop.f32.mrb[196].mxu0 }
 0xb5b   :  { %v10791_v12 = vadd.f32 %v15681_v5, %v10790_v43  ;;  %v10792_v56 = vpop.f32.mrb[197].mxu0 }
 0xb5c   :  { %v10793_v42 = vpop.f32.mrb[198].mxu0 }
 0xb5d   :  { %v10805_v13 = vadd.f32 %v10791_v12, %v10429_v25  ;;  %v10794_v59 = vadd.f32 %v15684_v34, %v10793_v42  ;;  %v10795_v11 = vpop.f32.mrb[199].mxu0 }
 0xb5f   :  { %v10806_v6 = vadd.f32 %v10794_v59, %v22533_v19  ;;  %v10815_v4 = vadd.f32 %v14968_v24, %v10805_v13 }
 0xb61   :  { %v10816_v10 = vadd.f32 %v14968_v24, %v10806_v6  ;;  %v10819_v52 = vmax.f32 %v10815_v4, 0.0 }
 0xb62   :  { %v10798_v33 = vpop.f32.mrb[200].mxu0 }
 0xb63   :  { %v10799_v49 = vadd.f32 %v15687_v57, %v10798_v33  ;;  %v10800_v20 = vpop.f32.mrb[201].mxu0 }
 0xb64   :  { %v10801_v14 = vpop.f32.mrb[202].mxu0 }
 0xb65   :  { %v10807_v16 = vadd.f32 %v10799_v49, %v10437_v51  ;;  %v10802_v45 = vadd.f32 %v15690_v27, %v10801_v14  ;;  %v10803_v40 = vpop.f32.mrb[203].mxu0 }
 0xb67   :  { %v10808_v44 = vadd.f32 %v10802_v45, %v22537_v22  ;;  %v10817_v11 = vadd.f32 %v14968_v24, %v10807_v16 }
 0xb69   :  { %v10818_v14 = vadd.f32 %v14968_v24, %v10808_v44  ;;  %v17703_v44 = vld [vmem:[%s22883_s6] sm:$0x7f]  }
 0xb6f   :  { %v11798_v30 = vpop.f32.mrb[196].mxu1 }
 0xb70   :  { %v11799_v25 = vadd.f32 %v15765_v9, %v11798_v30  ;;  %v11800_v17 = vpop.f32.mrb[197].mxu1  ;;  %v10821_v30 = vmax.f32 %v10817_v11, 0.0  ;;  %v17733_v11 = vld [vmem:[%s22884_s7 + $0x98] ss:$0 sps:$4 sm:$0xff]  }
 0xb71   :  { %v11801_v3 = vpop.f32.mrb[198].mxu1 }
 0xb72   :  { %v11802_v28 = vadd.f32 %v15768_v62, %v11801_v3  ;;  %v11803_v54 = vpop.f32.mrb[199].mxu1  ;;  %v10822_v3 = vmax.f32 %v10818_v14, 0.0 }
 0xb77   :  { %v11806_v7 = vpop.f32.mrb[200].mxu1 }
 0xb78   :  { %v11807_v19 = vadd.f32 %v15771_v46, %v11806_v7  ;;  %v11808_v38 = vpop.f32.mrb[201].mxu1 }
 0xb79   :  { %v11809_v53 = vpop.f32.mrb[202].mxu1 }
 0xb7a   :  { %v11810_v36 = vadd.f32 %v15774_v23, %v11809_v53  ;;  %v11811_v0 = vpop.f32.mrb[203].mxu1  ;;  %v15735_v47 = vpop.f32.mrb[204].mxu0  ;;  %v17707_v53 = vld [vmem:[%s22884_s7 + $0x34] sm:$0xff]  }
 0xb7b   :  { %v15736_v5 = vpop.f32.mrb[205].mxu0  ;;  %v17711_v0 = vld [vmem:[%s22884_s7 + $0x44] sm:$0xff]  }
 0xb7c   :  { %v15737_v2 = vadd.f32 %v15736_v5, %v15735_v47  ;;  %v15738_v51 = vpop.f32.mrb[206].mxu0  ;;  %v17712_v47 = vld [vmem:[%s22884_s7 + $0x20] sm:$0xff]   ;;  %v17713_v5 = vld [vmem:[%s22884_s7 + $0x4c] sm:$0xff]  }
 0xb7d   :  { %v15739_v32 = vpop.f32.mrb[207].mxu0  ;;  %16032 = vmatpush3.bf16.msra.mxu1 %v17712_v47 }
 0xb7e   :  { %v15740_v34 = vadd.f32 %v15739_v32, %v15738_v51  ;;  %v11420_v22 = vadd.f32 %v15737_v2, %v22539_v18  ;;  %v17714_v2 = vld [vmem:[%s22884_s7 + $0x28] sm:$0xff]   ;;  %16033 = vmatprep.subr.bf16.mxu1 %v17774_v21  ;;  %v17715_v51 = vld [vmem:[%s22884_s7 + $0x54] sm:$0xff]   ;;  %v17716_v32 = vld [vmem:[%s22884_s7 + $0x30] ss:$0 sps:$4 sm:$0xff]  }
 0xb80   :  { %v11423_v8 = vadd.f32 %v15740_v34, %v22541_v39  ;;  %v12101_v34 = vsel %vm501_vm1, %v17716_v32, 0 }
 0xb81   :  { %16034 = vmatpush3.bf16.msra.mxu1 %v17714_v2 }
 0xb82   :  { %v15741_v58 = vpop.f32.mrb[208].mxu0  ;;  %16035 = vmatprep.subr.bf16.mxu1 %v17774_v21 }
 0xb83   :  { %v15742_v57 = vpop.f32.mrb[209].mxu0 }
 0xb84   :  { %v15743_v61 = vadd.f32 %v15742_v57, %v15741_v58  ;;  %v15744_v1 = vpop.f32.mrb[210].mxu0 }
 0xb85   :  { %v15745_v27 = vpop.f32.mrb[211].mxu0  ;;  %16036 = vmatpush3.bf16.msra.mxu1 %v12101_v34 }
 0xb86   :  { %v15746_v29 = vadd.f32 %v15745_v27, %v15744_v1  ;;  %v11428_v50 = vadd.f32 %v15743_v61, %v22543_v60  ;;  %16059 = vmatprep.subr.bf16.mxu1 %v17774_v21 }
 0xb88   :  { %v11431_v9 = vadd.f32 %v15746_v29, %v22545_v48  ;;  %v10820_v48 = vmax.f32 %v10816_v10, 0.0  ;;  %v17721_v10 = vld [vmem:[%s22884_s7 + $0x68] sm:$0xff]  }
 0xbae   :  { %v11468_v37 = vpop.f32.mrb[212].mxu0 }
 0xbaf   :  { %v11469_v62 = vadd.f32 %v11468_v37, %v11420_v22  ;;  %v11470_v63 = vpop.f32.mrb[213].mxu0  ;;  %v17717_v22 = vld [vmem:[%s22884_s7 + $0x5c] sm:$0xff]  }
 0xbb0   :  { %v11471_v18 = vpop.f32.mrb[214].mxu0  ;;  %v17718_v63 = vld [vmem:[%s22884_s7 + $0xd0] sm:$0xff]  }
 0xbb1   :  { %v11813_v39 = vadd.f32 %v11799_v25, %v11469_v62  ;;  %v11472_v46 = vadd.f32 %v11471_v18, %v11423_v8  ;;  %v11473_v26 = vpop.f32.mrb[215].mxu0  ;;  %v17719_v8 = vld [vmem:[%s22884_s7 + $0x64] ss:$0 sps:$4 sm:$0xff]  }
 0xbb2   :  { %v12016_v58 = vsel %vm501_vm1, %v17719_v8, 0 }
 0xbb3   :  { %v11817_v23 = vadd.f32 %v14968_v24, %v11813_v39  ;;  %v11814_v31 = vadd.f32 %v11802_v28, %v11472_v46  ;;  %v17720_v39 = vld [vmem:[%s22884_s7 + $0xd8] sm:$0xff]  }
 0xbb5   :  { %v11821_v35 = vmax.f32 %v11817_v23, 0.0  ;;  %v11818_v60 = vadd.f32 %v14968_v24, %v11814_v31  ;;  %v17722_v31 = vld [vmem:[%s22884_s7 + $0xe0] sm:$0xff]  }
 0xbb6   :  { %v11476_v43 = vpop.f32.mrb[216].mxu0 }
 0xbb7   :  { %v11825_v12 = vmax.f32 %v10819_v52, %v11821_v35  ;;  %v11822_v56 = vmax.f32 %v11818_v60, 0.0  ;;  %v11477_v42 = vadd.f32 %v11476_v43, %v11428_v50  ;;  %v11478_v41 = vpop.f32.mrb[217].mxu0  ;;  %v17723_v52 = vld [vmem:[%s22884_s7 + $0x70] sm:$0xff]   ;;  %v17724_v35 = vld [vmem:[%s22884_s7 + $0xe8] sm:$0xff]   ;;  %v17725_v60 = vld [vmem:[%s22884_s7 + $0x78] sm:$0xff]  }
 0xbb8   :  { %v11479_v59 = vpop.f32.mrb[218].mxu0  ;;  %v17726_v43 = vld [vmem:[%s22884_s7 + $0xf0] sm:$0xff]  }
 0xbb9   :  { %v11826_v33 = vmax.f32 %v10820_v48, %v11822_v56  ;;  %v11815_v49 = vadd.f32 %v11807_v19, %v11477_v42  ;;  %v11480_v13 = vadd.f32 %v11479_v59, %v11431_v9  ;;  %v11481_v20 = vpop.f32.mrb[219].mxu0  ;;  %v17704_v19 = vld [vmem:[%s22883_s6 + $0x8] sm:$0x7f]   ;;  %v17727_v48 = vld [vmem:[%s22884_s7 + $0x80] sm:$0xff]   ;;  %v17731_v59 = vld [vmem:[%s22884_s7 + $0x90] sm:$0xff]  }
 0xbba   :  { %v17730_v56 = vld [vmem:[%s22884_s7 + $0x100] ss:$0 sps:$4 sm:$0xff]   ;;  %v17729_v42 = vld [vmem:[%s22884_s7 + $0x88] sm:$0xff]  }
 0xbbb   :  { %v11819_v45 = vadd.f32 %v14968_v24, %v11815_v49  ;;  %v11816_v6 = vadd.f32 %v11810_v36, %v11480_v13  ;;  %v11829_v40 = vpack.c.bf16 %v11826_v33, %v11825_v12  ;;  %v17709_v36 = vld [vmem:[%s22884_s7 + $0x3c] sm:$0xff]   ;;  %v12323_v41 = vsel %vm501_vm1, %v17730_v56, 0  ;;  %v17732_v33 = vld [vmem:[%s22884_s7 + $0x104] sm:$0xff]   ;;  %v17734_v13 = vld [vmem:[%s22884_s7 + $0x10c] sm:$0xff]  }
 0xbbc   :  { %v17728_v12 = vld [vmem:[%s22884_s7 + $0xf8] sm:$0xff]   ;;  %v12202_v49 = vsel %vm501_vm1, %v17733_v11, 0 }
 0xbbd   :  { %v11823_v25 = vmax.f32 %v11819_v45, 0.0  ;;  %v11820_v17 = vadd.f32 %v14968_v24, %v11816_v6  ;;  %15990 = vmatpush3.bf16.msra.mxu0 %v11829_v40  ;;  %v17735_v20 = vld [vmem:[%s22884_s7 + $0x9c] sm:$0xff]   ;;  %v17736_v45 = vld [vmem:[%s22884_s7 + $0x114] sm:$0xff]   ;;  %v17737_v6 = vld [vmem:[%s22884_s7 + $0xa4] sm:$0xff]  }
 0xbbe   :  { %15991 = vmatprep.subr.bf16.mxu0 %v17774_v21 }
 0xbbf   :  { %v11827_v28 = vmax.f32 %v10821_v30, %v11823_v25  ;;  %v11824_v54 = vmax.f32 %v11820_v17, 0.0  ;;  %v17739_v30 = vld [vmem:[%s22884_s7 + $0xac] sm:$0xff]   ;;  %v17740_v25 = vld [vmem:[%s22884_s7 + $0x124] sm:$0xff]   ;;  %v17741_v17 = vld [vmem:[%s22884_s7 + $0xb4] sm:$0xff]  }
 0xbc1   :  { %v11828_v7 = vmax.f32 %v10822_v3, %v11824_v54  ;;  %v17742_v3 = vld [vmem:[%s22884_s7 + $0x12c] sm:$0xff]   ;;  %v17743_v54 = vld [vmem:[%s22884_s7 + $0xbc] sm:$0xff]  }
 0xbc3   :  { %v11830_v38 = vpack.c.bf16 %v11828_v7, %v11827_v28  ;;  %v17744_v28 = vld [vmem:[%s22884_s7 + $0x134] ss:$0 sps:$4 sm:$0xff]  }
 0xbc4   :  { %v12502_v7 = vsel %vm501_vm1, %v17744_v28, 0  ;;  %v17752_v28 = vld [vmem:[%s22888_s10 + $0x28] sm:$0xff]  }
 0xbc5   :  { %v11842_v16 = vand.u32 %v11830_v38, %v19188_v15  ;;  %v17745_v38 = vld [vmem:[%s22884_s7 + $0xc4] sm:$0xff]  }
 0xbc7   :  { %15992 = vmatpush3.bf16.msra.mxu0 %v11842_v16 }
 0xbc8   :  { %15997 = vmatprep.subr.bf16.mxu0 %v17774_v21 }
 0xbca   :  { %15994 = vmatmul.mubr.msk.bf16.vlgmr.msra.gmra.mrb[220].mxu0 %vm5538_vm10, %v17703_v44 }
 0xbcb   :  { %15998 = vmatpush3.bf16.msra.mxu0 %v11829_v40  ;;  %16001 = vmatprep.mubr.msk.bf16.mxu0 %vm17775_vm9, %v17774_v21  ;;  %v17738_v40 = vld [vmem:[%s22884_s7 + $0x11c] sm:$0xff]  }
 0xbcc   :  { %15999 = vmatprep.subr.bf16.mxu0 %v17774_v21 }
 0xbcf   :  { %16000 = vmatpush3.bf16.msra.mxu0 %v11842_v16  ;;  %v17746_v16 = vld [vmem:[%s22884_s7 + $0xcc] ss:$0 sps:$4 sm:$0xff]  }
 0xbd0   :  { %16005 = vmatprep.subr.bf16.mxu0 %v17774_v21  ;;  %v12406_v44 = vsel %vm501_vm1, %v17746_v16, 0  ;;  %vm12729_vm1 = vcmask 1041408  }
 0xbd2   :  { %16002 = vmatmul.mubr.msk.bf16.vlgmr.msra.gmra.mrb[224].mxu0 %vm5538_vm10, %v17704_v19 }
 0xbd3   :  { %16006 = vmatpush3.bf16.msra.mxu0 %v17707_v53  ;;  %16019 = vmatprep.mubr.msk.bf16.mxu0 %vm17775_vm9, %v17774_v21 }
 0xbd4   :  { %16007 = vmatprep.subr.bf16.mxu0 %v17774_v21 }
 0xbd7   :  { %16008 = vmatpush3.bf16.msra.mxu0 %v17709_v36 }
 0xbd8   :  { %16009 = vmatprep.subr.bf16.mxu0 %v17774_v21 }
 0xbdb   :  { %16010 = vmatpush3.bf16.msra.mxu0 %v17711_v0 }
 0xbdc   :  { %16011 = vmatprep.subr.bf16.mxu0 %v17774_v21 }
 0xbdf   :  { %16012 = vmatpush3.bf16.msra.mxu0 %v17713_v5 }
 0xbe0   :  { %16013 = vmatprep.subr.bf16.mxu0 %v17774_v21 }
 0xbe3   :  { %16014 = vmatpush3.bf16.msra.mxu0 %v17715_v51 }
 0xbe4   :  { %16015 = vmatprep.subr.bf16.mxu0 %v17774_v21 }
 0xbe7   :  { %16016 = vmatpush3.bf16.msra.mxu0 %v17717_v22 }
 0xbe8   :  { %16017 = vmatprep.subr.bf16.mxu0 %v17774_v21 }
 0xbeb   :  { %16018 = vmatpush3.bf16.msra.mxu0 %v12016_v58 }
 0xbec   :  { %16041 = vmatprep.subr.bf16.mxu0 %v17774_v21 }
 0xc9d   :  { %v11878_v57 = vpop.f32.mrb[220].mxu0 }
 0xc9e   :  { %v15995_v61 = vpop.f32.mrb[221].mxu0 }
 0xc9f   :  { %v11881_v1 = vpop.f32.mrb[222].mxu0 }
 0xca0   :  { %v15996_v27 = vpop.f32.mrb[223].mxu0 }
 0xca5   :  { %v11929_v29 = vpop.f32.mrb[224].mxu0 }
 0xca6   :  { %v11936_v50 = vmax.f32 %v11878_v57, %v11929_v29  ;;  %v16003_v9 = vpop.f32.mrb[225].mxu0 }
 0xca7   :  { %v11932_v24 = vpop.f32.mrb[226].mxu0 }
 0xca8   :  { %v11937_v37 = vmax.f32 %v11881_v1, %v11932_v24  ;;  %v16004_v62 = vpop.f32.mrb[227].mxu0 }
 0xcaa   :  { %v22634_v18 = vpack.c.bf16 %v11937_v37, %v11936_v50 }
 0xcac   :  { %16038 = vmatmul.mubr.msk.bf16.vlgmr.msra.gmra.mrb[204].mxu1 %vm5715_vm11, %v22634_v18  ;;  %v11969_v4 = vshll.u32 %v22634_v18, 16  ;;  %v11967_v46 = vshrl.u32 %v22634_v18, 16  ;;  %v12158_v14 = vrot.slane %v22634_v18, 1 }
 0xcad   :  { %16060 = vmatpush3.bf16.msra.mxu1 %v17718_v63  ;;  %16073 = vmatprep.mubr.msk.bf16.mxu1 %vm17775_vm9, %v17774_v21 }
 0xcae   :  { %16061 = vmatprep.subr.bf16.mxu1 %v17774_v21  ;;  %v11971_v26 = vrot.slane %v11969_v4, 1 }
 0xcb0   :  { %v11972_v23 = vor.u32 %v11971_v26, %v11967_v46 }
 0xcb1   :  { %16062 = vmatpush3.bf16.msra.mxu1 %v17720_v39 }
 0xcb2   :  { %16020 = vmatmul.mubr.msk.bf16.vlgmr.msra.gmra.mrb[228].mxu0 %vm5715_vm11, %v11972_v23  ;;  %16063 = vmatprep.subr.bf16.mxu1 %v17774_v21 }
 0xcb3   :  { %16042 = vmatpush3.bf16.msra.mxu0 %v17721_v10  ;;  %16055 = vmatprep.mubr.msk.bf16.mxu0 %vm17775_vm9, %v17774_v21 }
 0xcb4   :  { %16043 = vmatprep.subr.bf16.mxu0 %v17774_v21 }
 0xcb5   :  { %16064 = vmatpush3.bf16.msra.mxu1 %v17722_v31 }
 0xcb6   :  { %16065 = vmatprep.subr.bf16.mxu1 %v17774_v21 }
 0xcb7   :  { %16044 = vmatpush3.bf16.msra.mxu0 %v17723_v52 }
 0xcb8   :  { %16045 = vmatprep.subr.bf16.mxu0 %v17774_v21 }
 0xcb9   :  { %16066 = vmatpush3.bf16.msra.mxu1 %v17724_v35 }
 0xcba   :  { %16067 = vmatprep.subr.bf16.mxu1 %v17774_v21 }
 0xcbb   :  { %16046 = vmatpush3.bf16.msra.mxu0 %v17725_v60 }
 0xcbc   :  { %16047 = vmatprep.subr.bf16.mxu0 %v17774_v21 }
 0xcbd   :  { %16068 = vmatpush3.bf16.msra.mxu1 %v17726_v43 }
 0xcbe   :  { %16069 = vmatprep.subr.bf16.mxu1 %v17774_v21 }
 0xcbf   :  { %16048 = vmatpush3.bf16.msra.mxu0 %v17727_v48 }
 0xcc0   :  { %16049 = vmatprep.subr.bf16.mxu0 %v17774_v21 }
 0xcc1   :  { %16070 = vmatpush3.bf16.msra.mxu1 %v17728_v12 }
 0xcc2   :  { %16071 = vmatprep.subr.bf16.mxu1 %v17774_v21 }
 0xcc3   :  { %16050 = vmatpush3.bf16.msra.mxu0 %v17729_v42 }
 0xcc4   :  { %16051 = vmatprep.subr.bf16.mxu0 %v17774_v21 }
 0xcc5   :  { %16072 = vmatpush3.bf16.msra.mxu1 %v12323_v41 }
 0xcc6   :  { %16095 = vmatprep.subr.bf16.mxu1 %v17774_v21 }
 0xcc7   :  { %16052 = vmatpush3.bf16.msra.mxu0 %v17731_v59 }
 0xcc8   :  { %16074 = vmatmul.mubr.msk.bf16.vlgmr.msra.gmra.mrb[208].mxu1 %vm5715_vm11, %v11972_v23  ;;  %16053 = vmatprep.subr.bf16.mxu0 %v17774_v21 }
 0xcc9   :  { %16096 = vmatpush3.bf16.msra.mxu1 %v17732_v33  ;;  %16109 = vmatprep.mubr.msk.bf16.mxu1 %vm17775_vm9, %v17774_v21 }
 0xcca   :  { %16097 = vmatprep.subr.bf16.mxu1 %v17774_v21 }
 0xccb   :  { %16054 = vmatpush3.bf16.msra.mxu0 %v12202_v49 }
 0xccc   :  { %16077 = vmatprep.subr.bf16.mxu0 %v17774_v21 }
 0xccd   :  { %16098 = vmatpush3.bf16.msra.mxu1 %v17734_v13  ;;  %v12554_v13 = vld [vmem:[%s22887_s9] sm:$0x7] }
 0xcce   :  { %16056 = vmatmul.mubr.msk.bf16.vlgmr.msra.gmra.mrb[232].mxu0 %vm5715_vm11, %v12158_v14  ;;  %16099 = vmatprep.subr.bf16.mxu1 %v17774_v21 }
 0xccf   :  { %16078 = vmatpush3.bf16.msra.mxu0 %v17735_v20  ;;  %16091 = vmatprep.mubr.msk.bf16.mxu0 %vm17775_vm9, %v17774_v21  ;;  %v15357_v20 = vld [vmem:[%s22887_s9 + $0x4] sm:$0x7] }
 0xcd0   :  { %16079 = vmatprep.subr.bf16.mxu0 %v17774_v21 }
 0xcd1   :  { %16100 = vmatpush3.bf16.msra.mxu1 %v17736_v45  ;;  %v17749_v45 = vld [vmem:[%s22888_s10 + $0x10] sm:$0xff]  }
 0xcd2   :  { %16101 = vmatprep.subr.bf16.mxu1 %v17774_v21 }
 0xcd3   :  { %16080 = vmatpush3.bf16.msra.mxu0 %v17737_v6  ;;  %v17750_v6 = vld [vmem:[%s22888_s10 + $0x18] sm:$0xff]  }
 0xcd4   :  { %16081 = vmatprep.subr.bf16.mxu0 %v17774_v21 }
 0xcd5   :  { %16102 = vmatpush3.bf16.msra.mxu1 %v17738_v40 }
 0xcd6   :  { %16103 = vmatprep.subr.bf16.mxu1 %v17774_v21 }
 0xcd7   :  { %16082 = vmatpush3.bf16.msra.mxu0 %v17739_v30 }
 0xcd8   :  { %16083 = vmatprep.subr.bf16.mxu0 %v17774_v21 }
 0xcd9   :  { %16104 = vmatpush3.bf16.msra.mxu1 %v17740_v25 }
 0xcda   :  { %16105 = vmatprep.subr.bf16.mxu1 %v17774_v21 }
 0xcdb   :  { %16084 = vmatpush3.bf16.msra.mxu0 %v17741_v17  ;;  %v17751_v17 = vld [vmem:[%s22888_s10 + $0x20] sm:$0xff]  }
 0xcdc   :  { %16085 = vmatprep.subr.bf16.mxu0 %v17774_v21 }
 0xcdd   :  { %16106 = vmatpush3.bf16.msra.mxu1 %v17742_v3 }
 0xcde   :  { %16107 = vmatprep.subr.bf16.mxu1 %v17774_v21 }
 0xcdf   :  { %16086 = vmatpush3.bf16.msra.mxu0 %v17743_v54  ;;  %v17753_v54 = vld [vmem:[%s22888_s10 + $0x30] ss:$0 sps:$4 sm:$0x33]  }
 0xce0   :  { %16087 = vmatprep.subr.bf16.mxu0 %v17774_v21 }
 0xce1   :  { %16108 = vmatpush3.bf16.msra.mxu1 %v12502_v7 }
 0xce2   :  { %16143 = vmatprep.subr.bf16.mxu1 %v17774_v21 }
 0xce3   :  { %16088 = vmatpush3.bf16.msra.mxu0 %v17745_v38 }
 0xce4   :  { %16110 = vmatmul.mubr.msk.bf16.vlgmr.msra.gmra.mrb[212].mxu1 %vm5715_vm11, %v12158_v14  ;;  %16089 = vmatprep.subr.bf16.mxu0 %v17774_v21  ;;  %v17748_v14 = vld [vmem:[%s22888_s10 + $0x8] sm:$0xff]  }
 0xce5   :  { %16159 = vmatprep.mubr.msk.bf16.mxu1 %vm17775_vm9, %v17774_v21 }
 0xce7   :  { %16090 = vmatpush3.bf16.msra.mxu0 %v12406_v44 }
 0xce8   :  { %16113 = vmatprep.subr.bf16.mxu0 %v17774_v21 }
 0xcea   :  { %16092 = vmatmul.mubr.msk.bf16.vlgmr.msra.gmra.mrb[236].mxu0 %vm5715_vm11, %v22634_v18  ;;  %v15292_v18 = vld [vmem:[%s22886_s8] ss:$0 sm:$0xff] }
 0xceb   :  { %16115 = vmatprep.mubr.msk.bf16.mxu0 %vm17775_vm9, %v17774_v21 }
 0xd7f   :  { %v12137_v19 = vpop.f32.mrb[204].mxu1 }
 0xd80   :  { %v16039_v53 = vpop.f32.mrb[205].mxu1 }
 0xd81   :  { %v12140_v36 = vpop.f32.mrb[206].mxu1 }
 0xd82   :  { %v16040_v0 = vpop.f32.mrb[207].mxu1 }
 0xd83   :  { %v17755_v0 = vld [vmem:[%s22889_s12 + $0x8] sm:$0xff]  }
 0xd85   :  { %v12052_v47 = vpop.f32.mrb[228].mxu0 }
 0xd86   :  { %v12138_v5 = vadd.f32 %v12137_v19, %v12052_v47  ;;  %v16021_v2 = vpop.f32.mrb[229].mxu0  ;;  %v12731_v19 = vsel %vm12729_vm1, %v17753_v54, 0  ;;  %v17756_v47 = vld [vmem:[%s22889_s12 + $0x10] sm:$0xff]  }
 0xd87   :  { %v12055_v51 = vpop.f32.mrb[230].mxu0  ;;  %v17759_v2 = vld [vmem:[%s22889_s12 + $0x28] sm:$0xff]  }
 0xd88   :  { %v12141_v32 = vadd.f32 %v12140_v36, %v12055_v51  ;;  %v16022_v34 = vpop.f32.mrb[231].mxu0  ;;  %v17754_v36 = vld [vmem:[%s22889_s12] sm:$0xff]  }
 0xd89   :  { %16144 = vmatpush3.bf16.msra.mxu1 %v17754_v36 }
 0xd8a   :  { %16145 = vmatprep.subr.bf16.mxu1 %v17774_v21 }
 0xd8d   :  { %16146 = vmatpush3.bf16.msra.mxu1 %v17755_v0 }
 0xd8e   :  { %16147 = vmatprep.subr.bf16.mxu1 %v17774_v21 }
 0xd91   :  { %16148 = vmatpush3.bf16.msra.mxu1 %v17756_v47 }
 0xd92   :  { %16149 = vmatprep.subr.bf16.mxu1 %v17774_v21 }
 0xd9b   :  { %v12359_v22 = vpop.f32.mrb[208].mxu1 }
 0xd9c   :  { %v16075_v8 = vpop.f32.mrb[209].mxu1 }
 0xd9d   :  { %v12362_v58 = vpop.f32.mrb[210].mxu1 }
 0xd9e   :  { %v16076_v57 = vpop.f32.mrb[211].mxu1 }
 0xda1   :  { %v12238_v61 = vpop.f32.mrb[232].mxu0 }
 0xda2   :  { %v12245_v1 = vadd.f32 %v12238_v61, %v12138_v5  ;;  %v16057_v27 = vpop.f32.mrb[233].mxu0  ;;  %v17758_v5 = vld [vmem:[%s22889_s12 + $0x20] sm:$0xff]   ;;  %v17760_v61 = vld [vmem:[%s22889_s12 + $0x30] sm:$0xff]  }
 0xda3   :  { %v12241_v29 = vpop.f32.mrb[234].mxu0  ;;  %v15359_v27 = vld [vmem:[%s22890_s11] ss:$0 sm:$0xff] }
 0xda4   :  { %v12246_v50 = vadd.f32 %v12241_v29, %v12141_v32  ;;  %v16058_v9 = vpop.f32.mrb[235].mxu0  ;;  %v12253_v10 = vadd.f32 %v15292_v18, %v12245_v1  ;;  %v17761_v1 = vld [vmem:[%s22889_s12 + $0x38] sm:$0xff]  }
 0xda6   :  { %v12254_v35 = vadd.f32 %v15292_v18, %v12246_v50  ;;  %v12255_v48 = vmax.f32 %v12253_v10, 0.0 }
 0xda8   :  { %v12256_v42 = vmax.f32 %v12254_v35, 0.0 }
 0xdb7   :  { %v12538_v24 = vpop.f32.mrb[212].mxu1 }
 0xdb8   :  { %v16111_v37 = vpop.f32.mrb[213].mxu1 }
 0xdb9   :  { %v12541_v62 = vpop.f32.mrb[214].mxu1 }
 0xdba   :  { %v16112_v63 = vpop.f32.mrb[215].mxu1 }
 0xdbd   :  { %v12442_v4 = vpop.f32.mrb[236].mxu0 }
 0xdbe   :  { %v12443_v39 = vadd.f32 %v12442_v4, %v12359_v22  ;;  %v16093_v46 = vpop.f32.mrb[237].mxu0  ;;  %v17763_v4 = vld [vmem:[%s22891_s14 + $0x8] sm:$0xff]  }
 0xdbf   :  { %v12445_v26 = vpop.f32.mrb[238].mxu0  ;;  %v15368_v46 = vld [vmem:[%s22893_s13] ss:$0 sm:$0xff] }
 0xdc0   :  { %v12545_v23 = vadd.f32 %v12538_v24, %v12443_v39  ;;  %v12446_v31 = vadd.f32 %v12445_v26, %v12362_v58  ;;  %v16094_v52 = vpop.f32.mrb[239].mxu0  ;;  %v21_v39 = vstv %s22892_s15 }
 0xdc1   :  { %22 = vst [vmem:[#allocation3] sm:$0x1] %v21_v39 }
 0xdc2   :  { %v12547_v60 = vadd.f32 %v15292_v18, %v12545_v23  ;;  %v12546_v43 = vadd.f32 %v12541_v62, %v12446_v31 }
 0xdc4   :  { %v12549_v12 = vmax.f32 %v12547_v60, 0.0  ;;  %v12548_v56 = vadd.f32 %v15292_v18, %v12546_v43  ;;  %v17762_v18 = vld [vmem:[%s22891_s14] sm:$0xff]  }
 0xdc6   :  { %v12551_v41 = vmax.f32 %v12255_v48, %v12549_v12  ;;  %v12550_v59 = vmax.f32 %v12548_v56, 0.0 }
 0xdc8   :  { %v12552_v11 = vmax.f32 %v12256_v42, %v12550_v59  ;;  %v15377_v60 = vld [vmem:[#allocation3] ss:$0 sm:$0xff] }
 0xdca   :  { %v12553_v33 = vpack.c.bf16 %v12552_v11, %v12551_v41 }
 0xdcc   :  { %v12559_v49 = vand.u32 %v12553_v33, %v19188_v15  ;;  %v17747_v15 = vld [vmem:[%s22888_s10] sm:$0xff]   ;;  %s17779_s10 = smov 80  }
 0xdce   :  { %16114 = vmatpush3.bf16.msra.mxu0 %v12559_v49 }
 0xdcf   :  { %16119 = vmatprep.subr.bf16.mxu0 %v17774_v21 }
 0xdd1   :  { %16116 = vmatmul.mubr.msk.bf16.vlgmr.msra.gmra.mrb[240].mxu0 %vm6263_vm12, %v12554_v13 }
 0xdd2   :  { %16120 = vmatpush3.bf16.msra.mxu0 %v12559_v49  ;;  %16121 = vmatprep.mubr.msk.bf16.mxu0 %vm17775_vm9, %v17774_v21 }
 0xdd3   :  { %16125 = vmatprep.subr.bf16.mxu0 %v17774_v21 }
 0xdd9   :  { %16122 = vmatmul.mubr.msk.bf16.vlgmr.msra.gmra.mrb[244].mxu0 %vm6263_vm12, %v15357_v20 }
 0xdda   :  { %16139 = vmatprep.mubr.msk.bf16.mxu0 %vm17775_vm9, %v17774_v21  ;;  %16126 = vmatpush3.bf16.msra.mxu0 %v17747_v15 }
 0xddb   :  { %16127 = vmatprep.subr.bf16.mxu0 %v17774_v21 }
 0xdde   :  { %16128 = vmatpush3.bf16.msra.mxu0 %v17748_v14 }
 0xddf   :  { %16129 = vmatprep.subr.bf16.mxu0 %v17774_v21 }
 0xde2   :  { %16130 = vmatpush3.bf16.msra.mxu0 %v17749_v45 }
 0xde3   :  { %16131 = vmatprep.subr.bf16.mxu0 %v17774_v21 }
 0xde6   :  { %16132 = vmatpush3.bf16.msra.mxu0 %v17750_v6 }
 0xde7   :  { %16133 = vmatprep.subr.bf16.mxu0 %v17774_v21 }
 0xdea   :  { %16134 = vmatpush3.bf16.msra.mxu0 %v17751_v17 }
 0xdeb   :  { %16135 = vmatprep.subr.bf16.mxu0 %v17774_v21 }
 0xdee   :  { %16136 = vmatpush3.bf16.msra.mxu0 %v17752_v28 }
 0xdef   :  { %16137 = vmatprep.subr.bf16.mxu0 %v17774_v21 }
 0xdf2   :  { %16138 = vmatpush3.bf16.msra.mxu0 %v12731_v19 }
 0xdf3   :  { %16163 = vmatprep.subr.bf16.mxu0 %v17774_v21 }
 0xea4   :  { %v12595_v40 = vpop.f32.mrb[240].mxu0 }
 0xea5   :  { %v16117_v30 = vpop.f32.mrb[241].mxu0 }
 0xea6   :  { %v12598_v25 = vpop.f32.mrb[242].mxu0 }
 0xea7   :  { %v16118_v3 = vpop.f32.mrb[243].mxu0 }
 0xeac   :  { %v12639_v7 = vpop.f32.mrb[244].mxu0 }
 0xead   :  { %v12645_v38 = vmax.f32 %v12595_v40, %v12639_v7  ;;  %v16123_v16 = vpop.f32.mrb[245].mxu0 }
 0xeae   :  { %v12642_v44 = vpop.f32.mrb[246].mxu0 }
 0xeaf   :  { %12646 = vst.msk [vmem:[#allocation2 + $0x1] sm:$0x1] %vm6356_vm13, %v12645_v38  ;;  %12652 = vrot.lane.b32.xlu1 %v12645_v38, %s17776_s25  ;;  %12648 = vrot.lane.b32.xlu0 %v12645_v38, %s17777_s26  ;;  %v16124_v53 = vpop.f32.mrb[247].mxu0 }
 0xeb3   :  { %12656 = vrot.lane.b32.xlu1 %v12645_v38, %s17778_s1  ;;  %6374 = vrot.lane.b32.xlu0 %v21405_v55, %s17779_s10  ;;  %v17757_v55 = vld [vmem:[%s22889_s12 + $0x18] sm:$0xff]  }
 0xeb4   :  { %16150 = vmatpush3.bf16.msra.mxu1 %v17757_v55 }
 0xeb5   :  { %16151 = vmatprep.subr.bf16.mxu1 %v17774_v21 }
 0xeb7   :  { %12660 = vrot.lane.b32.xlu1 %v12645_v38, %s17779_s10 }
 0xeb8   :  { %16152 = vmatpush3.bf16.msra.mxu1 %v17758_v5 }
 0xeb9   :  { %16153 = vmatprep.subr.bf16.mxu1 %v17774_v21 }
 0xebc   :  { %16154 = vmatpush3.bf16.msra.mxu1 %v17759_v2 }
 0xebd   :  { %16155 = vmatprep.subr.bf16.mxu1 %v17774_v21 }
 0xec0   :  { %16156 = vmatpush3.bf16.msra.mxu1 %v17760_v61 }
 0xec1   :  { %16157 = vmatprep.subr.bf16.mxu1 %v17774_v21 }
 0xec4   :  { %16158 = vmatpush3.bf16.msra.mxu1 %v17761_v1 }
 0xf21   :  { %v12653_v51 = vpop.permute.xlu1 %12652  ;;  %v12649_v32 = vpop.permute.xlu0 %12648 }
 0xf22   :  { %12651 = vst.msk [vmem:[#allocation2] sm:$0x2] %vm6362_vm14, %v12649_v32 }
 0xf23   :  { %12655 = vst.msk [vmem:[#allocation2 - $0x1] sm:$0x4] %vm6367_vm15, %v12653_v51 }
 0xf25   :  { %v12657_v34 = vpop.permute.xlu1 %12656  ;;  %v6375_v22 = vpop.permute.xlu0 %6374 }
 0xf26   :  { %12659 = vst.msk [vmem:[#allocation2 - $0x2] sm:$0x8] %vm6372_vm0, %v12657_v34 }
 0xf27   :  { %6378 = vst.msk [vmem:[#allocation2 - $0x4] sm:$0x10] %vm6377_vm2, %v6375_v22 }
 0xf29   :  { %v12661_v8 = vpop.permute.xlu1 %12660 }
 0xf2a   :  { %12663 = vst.msk [vmem:[#allocation2 - $0x3] sm:$0x10] %vm6377_vm2, %v12661_v8 }
 0xf31   :  { %v12664_v58 = vld [vmem:[#allocation2] sm:$0x3] }
 0xf32   :  { %v12665_v57 = vpack.c.bf16 %v12664_v58, %v12664_v58 }
 0xf34   :  { %16140 = vmatmul.mubr.msk.bf16.vlgmr.msra.gmra.mrb[248].mxu0 %vm12725_vm3, %v12665_v57 }
 0xf35   :  { %16167 = vmatprep.mubr.msk.bf16.mxu0 %vm17775_vm9, %v17774_v21  ;;  %16164 = vmatpush3.bf16.msra.mxu0 %v17762_v18 }
 0xf36   :  { %16165 = vmatprep.subr.bf16.mxu0 %v17774_v21 }
 0xf39   :  { %16166 = vmatpush3.bf16.msra.mxu0 %v17763_v4 }
0x1007   :  { %v12767_v29 = vpop.f32.mrb[248].mxu0 }
0x1008   :  { %v12768_v50 = vadd.f32 %v15359_v27, %v12767_v29  ;;  %v16141_v9 = vpop.f32.mrb[249].mxu0 }
0x1009   :  { %v12770_v24 = vpop.f32.mrb[250].mxu0 }
0x100a   :  { %v12773_v37 = vmax.f32 %v12768_v50, 0.0  ;;  %v16142_v62 = vpop.f32.mrb[251].mxu0 }
0x100c   :  { %v12774_v63 = vpack.c.bf16 %v12773_v37, %v12773_v37 }
0x100e   :  { %16160 = vmatmul.mubr.bf16.vlgmr.msra.gmra.mrb[216].mxu1 %v12774_v63 }
0x10e1   :  { %v12880_v26 = vpop.f32.mrb[216].mxu1 }
0x10e2   :  { %v12881_v10 = vadd.f32 %v15368_v46, %v12880_v26  ;;  %v16161_v23 = vpop.f32.mrb[217].mxu1 }
0x10e3   :  { %v12883_v31 = vpop.f32.mrb[218].mxu1 }
0x10e4   :  { %v12886_v52 = vmax.f32 %v12881_v10, 0.0  ;;  %v16162_v21 = vpop.f32.mrb[219].mxu1 }
0x10e6   :  { %v12887_v35 = vpack.c.bf16 %v12886_v52, %v12886_v52 }
0x10e8   :  { %16168 = vmatmul.mubr.msk.bf16.vlgmr.msra.gmra.mrb[252].mxu0 %vm12911_vm4, %v12887_v35 }
0x11bb   :  { %v12949_v43 = vpop.f32.mrb[252].mxu0 }
0x11bc   :  { %v12950_v48 = vadd.f32 %v15377_v60, %v12949_v43  ;;  %v16169_v12 = vpop.f32.mrb[253].mxu0 }
0x11bd   :  { %v12952_v56 = vpop.f32.mrb[254].mxu0 }
0x11be   :  { %12956 = vst.msk [vmem:[%s22894_s16] sm:$0x3] %vm12955_vm5, %v12950_v48  ;;  %v16170_v42 = vpop.f32.mrb[255].mxu0 }

</bundles_post_ra>
